<compile_context>
chip_gen: v5e
topology: v5e:2x2
jax: 0.10.0
libtpu: 0.0.40
codegen_flags: <defaults>
</compile_context>

<pallas_src>
import jax
import jax.numpy as jnp
from jax import lax
from jax.experimental import pallas as pl
from jax.experimental.pallas import tpu as pltpu

jax.config.update("jax_default_matmul_precision", "highest")


# ----------------------------------- kernel -----------------------------------

def _make_lqr_kernel(T, ns, nc):
    nsc = ns + nc

    # upper-triangle index map for the symmetric value matrix V
    ut_pos = {}
    for i in range(ns):
        for j in range(i, ns):
            ut_pos[(i, j)] = len(ut_pos)
    NV = len(ut_pos)  # ns*(ns+1)//2

    def kernel(Q_ref, p_ref, A_ref, B_ref, c1_ref, x0_ref,
               x_out, u_out, cost_out, K_scr, k_scr):

        # -------------- tiny unrolled helpers on (BS, 128) vreg slabs --------------
        def dotn(xs, ys):
            out = xs[0] * ys[0]
            for a, b in zip(xs[1:], ys[1:]):
                out = out + a * b
            return out

        def recip(d):
            # EUP approx reciprocal + one Newton step: off the VALU critical path.
            r = pl.reciprocal(d, approx=True)
            return r * (2.0 - d * r)

        def spd_inv(M, n):
            """Closed-form inverse of a tiny symmetric positive-definite matrix.
            TODO(synk): torch.linalg.pinv is SVD-based with no Pallas equivalent;
            for the SPD Quu blocks LQR produces the exact inverse is identical."""
            if n == 1:
                return [[recip(M[0][0])]]
            if n == 2:
                a, b, d = M[0][0], M[0][1], M[1][1]
                rdet = recip(a * d - b * b)
                ob = -b * rdet
                return [[d * rdet, ob], [ob, a * rdet]]
            if n == 3:
                a, b, c = M[0][0], M[0][1], M[0][2]
                e, f = M[1][1], M[1][2]
                g = M[2][2]
                c00 = e * g - f * f
                c01 = c * f - b * g
                c02 = b * f - c * e
                rdet = recip(a * c00 + b * c01 + c * c02)
                i00, i01, i02 = c00 * rdet, c01 * rdet, c02 * rdet
                i11 = (a * g - c * c) * rdet
                i12 = (c * b - a * f) * rdet
                i22 = (a * e - b * b) * rdet
                return [[i00, i01, i02], [i01, i11, i12], [i02, i12, i22]]
            # generic small n: unrolled Gauss-Jordan (no pivoting; valid for SPD)
            Mw = [list(row) for row in M]
            one = jnp.ones_like(M[0][0])
            zro = jnp.zeros_like(M[0][0])
            Iw = [[one if r == c else zro for c in range(n)] for r in range(n)]
            for pv in range(n):
                piv = recip(Mw[pv][pv])
                Mw[pv] = [x * piv for x in Mw[pv]]
                Iw[pv] = [x * piv for x in Iw[pv]]
                for r in range(n):
                    if r == pv:
                        continue
                    fac = Mw[r][pv]
                    Mw[r] = [Mw[r][c] - fac * Mw[pv][c] for c in range(n)]
                    Iw[r] = [Iw[r][c] - fac * Iw[pv][c] for c in range(n)]
            return Iw

        def riccati_step(t, Qxx, Qxu, Quu, qx, qu):
            """One backward step from the already-assembled Qt/qt blocks.
            Stores K_t / k_t and returns the next (V upper-tri, v) carry.
            Qxx/Quu are symmetric; Qux == Qxu^T is never materialized."""
            Quu_inv = spd_inv(Quu, nc)
            # K_t = -Quu^{-1} Qux = -Quu^{-1} Qxu^T ;  k_t = -Quu^{-1} qu
            Kt = [[-dotn(Quu_inv[i], [Qxu[j][k] for k in range(nc)])
                   for j in range(ns)] for i in range(nc)]
            kt = [-dotn(Quu_inv[i], qu) for i in range(nc)]

            # Direct full-vreg row stores (no concatenate -> no XLU shuffles).
            for i in range(nc):
                for j in range(ns):
                    K_scr[t, i * ns + j] = Kt[i][j]
                k_scr[t, i] = kt[i]

            # V_t = Qxx + Qxu K + K^T Qux + K^T Quu K   (symmetric; upper tri only)
            S = [[dotn(Qxu[i], [Kt[k][j] for k in range(nc)]) for j in range(ns)]
                 for i in range(ns)]                       # Qxu @ K
            W = [[dotn(Quu[i], [Kt[k][j] for k in range(nc)]) for j in range(ns)]
                 for i in range(nc)]                       # Quu @ K
            V_ut = []
            for i in range(ns):
                for j in range(i, ns):
                    V_ut.append(Qxx[i][j] + S[i][j] + S[j][i]
                                + dotn([Kt[k][i] for k in range(nc)],
                                       [W[k][j] for k in range(nc)]))
            # v_t = qx + Qxu k + K^T (qu + Quu k)
            quW = [qu[k] + dotn(Quu[k], kt) for k in range(nc)]
            vn = [qx[i] + dotn(Qxu[i], kt)
                  + dotn([Kt[k][i] for k in range(nc)], quW)
                  for i in range(ns)]
            return tuple(V_ut) + tuple(vn)

        # -------------------- backward Riccati recursion ---------------------------
        # Peeled t = T-1 step (V = v = 0): Qt = Q[T-1], qt = p[T-1] directly.
        tL = T - 1
        Qxx0 = [[Q_ref[tL, i * nsc + j] for j in range(ns)] for i in range(ns)]
        Qxu0 = [[Q_ref[tL, i * nsc + ns + j] for j in range(nc)] for i in range(ns)]
        Quu0 = [[Q_ref[tL, (ns + i) * nsc + ns + j] for j in range(nc)]
                for i in range(nc)]
        qx0 = [p_ref[tL, i] for i in range(ns)]
        qu0 = [p_ref[tL, ns + i] for i in range(nc)]
        carry0 = riccati_step(tL, Qxx0, Qxu0, Quu0, qx0, qu0)

        def backward_body(it, carry):
            t = T - 1 - it
            V = [[carry[ut_pos[(i, j) if i <= j else (j, i)]] for j in range(ns)]
                 for i in range(ns)]
            v = [carry[NV + i] for i in range(ns)]

            # Re-read the (time-invariant) system rows each iteration: keeps them
            # out of long live ranges; they're cheap VMEM vlds.
            A = [[A_ref[i * ns + j] for j in range(ns)] for i in range(ns)]
            Bm = [[B_ref[i * nc + j] for j in range(nc)] for i in range(ns)]
            c1 = [c1_ref[i] for i in range(ns)]

            # VA = V A, VB = V B, w = v + V c1   (V symmetric)
            VA = [[dotn(V[i], [A[k][j] for k in range(ns)]) for j in range(ns)]
                  for i in range(ns)]
            VB = [[dotn(V[i], [Bm[k][j] for k in range(ns)]) for j in range(nc)]
                  for i in range(ns)]
            w = [v[i] + dotn(V[i], c1) for i in range(ns)]

            def Qq(r, c):
                return Q_ref[t, r * nsc + c]

            # Qt = Q[t] + F^T V F  (block-wise; lower triangles mirrored, not computed)
            Qxx = [[None] * ns for _ in range(ns)]
            for i in range(ns):
                for j in range(i, ns):
                    Qxx[i][j] = Qq(i, j) + dotn([A[k][i] for k in range(ns)],
                                                [VA[k][j] for k in range(ns)])
                for j in range(i):
                    Qxx[i][j] = Qxx[j][i]
            Qxu = [[Qq(i, ns + j) + dotn([A[k][i] for k in range(ns)],
                                         [VB[k][j] for k in range(ns)])
                    for j in range(nc)] for i in range(ns)]
            Quu = [[None] * nc for _ in range(nc)]
            for i in range(nc):
                for j in range(i, nc):
                    Quu[i][j] = Qq(ns + i, ns + j) + dotn(
                        [Bm[k][i] for k in range(ns)],
                        [VB[k][j] for k in range(ns)])
                for j in range(i):
                    Quu[i][j] = Quu[j][i]
            # qt = p[t] + F^T (v + V c1)
            qx = [p_ref[t, i] + dotn([A[k][i] for k in range(ns)], w)
                  for i in range(ns)]
            qu = [p_ref[t, ns + i] + dotn([Bm[k][i] for k in range(ns)], w)
                  for i in range(nc)]

            return riccati_step(t, Qxx, Qxu, Quu, qx, qu)

        lax.fori_loop(1, T, backward_body, carry0)

        # -------------------- forward rollout + cost -------------------------------
        x0 = [x0_ref[i] for i in range(ns)]
        zero = jnp.zeros_like(x0[0])

        def forward_body(t, carry):
            x = list(carry[:ns])
            cost = carry[ns]

            A = [[A_ref[i * ns + j] for j in range(ns)] for i in range(ns)]
            Bm = [[B_ref[i * nc + j] for j in range(nc)] for i in range(ns)]
            c1 = [c1_ref[i] for i in range(ns)]
            Kt = [[K_scr[t, i * ns + j] for j in range(ns)] for i in range(nc)]
            kt = [k_scr[t, i] for i in range(nc)]

            u = [dotn(Kt[i], x) + kt[i] for i in range(nc)]

            # Direct full-vreg row stores (no concatenate).
            for i in range(ns):
                x_out[t, i] = x[i]
            for i in range(nc):
                u_out[t, i] = u[i]

            # cost += 0.5 tau^T Q[t] tau + p[t].tau, restructured as
            # w_i = sum_j Q_ij tau_j ; cost += sum_i tau_i (0.5 w_i + p_i)
            tau = x + u
            cstep = zero
            for i in range(nsc):
                wi = dotn([Q_ref[t, i * nsc + j] for j in range(nsc)], tau)
                cstep = cstep + tau[i] * (0.5 * wi + p_ref[t, i])
            cost = cost + cstep

            # LTI step: x_{t+1} = A x_t + B u_t + c1
            xn = [dotn(A[i], x) + dotn(Bm[i], u) + c1[i] for i in range(ns)]
            return tuple(xn) + (cost,)

        final = lax.fori_loop(0, T, forward_body, tuple(x0) + (zero,))
        cost_out[...] = final[ns]   # written exactly once

    return kernel


# ----------------------------------- wrapper -----------------------------------

def lqr_pallas(Q, p, A, Bm, c1, x_init):
    """Q:(B,T,nsc,nsc)  p:(B,T,nsc)  A:(B,ns,ns)  Bm:(B,ns,nc)  c1:(B,ns)  x_init:(B,ns)"""
    Bn, T, nsc, _ = Q.shape
    ns = A.shape[-1]
    nc = Bm.shape[-1]
    dt = Q.dtype

    # pypose assumes a symmetric cost Hessian; enforce it so the kernel may exploit
    # Qux == Qxu^T and a symmetric Riccati V (cost is unchanged by symmetrization).
    Q = 0.5 * (Q + jnp.swapaxes(Q, -1, -2))

    # ---- batch packing across (sublane, lane): pad, then tile (BS, 128) ----------
    BL = 128
    if Bn <= 8 * BL:
        BS = -(-Bn // BL)          # 1..8 sublanes, single tile
        n_tiles = 1
    else:
        BS = 8
        n_tiles = -(-Bn // (BS * BL))
    padB = n_tiles * BS * BL
    pad = padB - Bn
    if pad:
        # Padded Q slots are identity so Quu stays SPD and 1/det finite; the padded
        # lanes compute harmless zeros that are sliced off below.
        eyeQ = jnp.broadcast_to(jnp.eye(nsc, dtype=dt), (pad, T, nsc, nsc))
        Q = jnp.concatenate([Q, eyeQ], axis=0)
        p = jnp.concatenate([p, jnp.zeros((pad, T, nsc), dt)], axis=0)
        A = jnp.concatenate([A, jnp.zeros((pad, ns, ns), dt)], axis=0)
        Bm = jnp.concatenate([Bm, jnp.zeros((pad, ns, nc), dt)], axis=0)
        c1 = jnp.concatenate([c1, jnp.zeros((pad, ns), dt)], axis=0)
        x_init = jnp.concatenate([x_init, jnp.zeros((pad, ns), dt)], axis=0)

    # One fused re-layout per array into packed batch-last form: element index is the
    # leading (untiled) axis, the batch fills the (sublane, lane) tile.
    Qp = jnp.transpose(Q, (1, 2, 3, 0)).reshape(T, nsc * nsc, n_tiles * BS, BL)
    pp = jnp.transpose(p, (1, 2, 0)).reshape(T, nsc, n_tiles * BS, BL)
    Ap = jnp.transpose(A, (1, 2, 0)).reshape(ns * ns, n_tiles * BS, BL)
    Bp = jnp.transpose(Bm, (1, 2, 0)).reshape(ns * nc, n_tiles * BS, BL)
    c1p = jnp.transpose(c1, (1, 0)).reshape(ns, n_tiles * BS, BL)
    x0p = jnp.transpose(x_init, (1, 0)).reshape(ns, n_tiles * BS, BL)

    # Rough per-tile VMEM need (double-buffered ins/outs + scratch); only raise the
    # scoped limit when the default would not fit (no-op for small problems).
    elem = jnp.dtype(dt).itemsize
    tile_elems = BS * BL
    per_step = 2 * (nsc * nsc + nsc) + 2 * (ns + nc) + (nc * ns + nc)
    vmem_need = (T * per_step + 2 * (ns * ns + ns * nc + 2 * ns) + BS) * tile_elems * elem
    cp_kwargs = dict(dimension_semantics=("parallel",))
    if vmem_need > (32 << 20):
        cp_kwargs["vmem_limit_bytes"] = int(min(vmem_need + (16 << 20), 100 << 20))

    # TODO(synk): for very long horizons (v7x: 64 MiB VMEM) stream Q/p and x/u over t
    # with pltpu.emit_pipeline / manual double-buffering instead of holding the full
    # (T, ...) slabs per batch tile; only K/k scratch needs to stay resident.
    kernel = _make_lqr_kernel(T, ns, nc)
    x_tm, u_tm, cost_tm = pl.pallas_call(
        kernel,
        out_shape=(jax.ShapeDtypeStruct((T, ns, n_tiles * BS, BL), dt),
                   jax.ShapeDtypeStruct((T, nc, n_tiles * BS, BL), dt),
                   jax.ShapeDtypeStruct((n_tiles * BS, BL), dt)),
        grid=(n_tiles,),
        in_specs=[
            pl.BlockSpec((T, nsc * nsc, BS, BL), lambda b: (0, 0, b, 0)),
            pl.BlockSpec((T, nsc, BS, BL), lambda b: (0, 0, b, 0)),
            pl.BlockSpec((ns * ns, BS, BL), lambda b: (0, b, 0)),
            pl.BlockSpec((ns * nc, BS, BL), lambda b: (0, b, 0)),
            pl.BlockSpec((ns, BS, BL), lambda b: (0, b, 0)),
            pl.BlockSpec((ns, BS, BL), lambda b: (0, b, 0)),
        ],
        out_specs=(
            pl.BlockSpec((T, ns, BS, BL), lambda b: (0, 0, b, 0)),
            pl.BlockSpec((T, nc, BS, BL), lambda b: (0, 0, b, 0)),
            pl.BlockSpec((BS, BL), lambda b: (b, 0)),
        ),
        scratch_shapes=[
            pltpu.VMEM((T, nc * ns, BS, BL), dt),   # K_t feedback gains
            pltpu.VMEM((T, nc, BS, BL), dt),        # k_t feedforward gains
        ],
        compiler_params=pltpu.CompilerParams(**cp_kwargs),
    )(Qp, pp, Ap, Bp, c1p, x0p)

    x = jnp.transpose(x_tm.reshape(T, ns, padB), (2, 0, 1))[:Bn]   # (B, T, ns)
    u = jnp.transpose(u_tm.reshape(T, nc, padB), (2, 0, 1))[:Bn]   # (B, T, nc)
    cost = cost_tm.reshape(padB)[:Bn]
    return x, u, cost


# ------------------------- pure-JAX reference (checker) -------------------------

def lqr_ref(Q, p, A, Bm, c1, x_init):
    Bn, T, nsc, _ = Q.shape
    ns, nc = A.shape[-1], Bm.shape[-1]
    F = jnp.concatenate([A, Bm], axis=-1)
    Ft = jnp.swapaxes(F, -1, -2)
    Ks, ks = [None] * T, [None] * T
    V = jnp.zeros((Bn, ns, ns), Q.dtype)
    v = jnp.zeros((Bn, ns), Q.dtype)
    for t in range(T - 1, -1, -1):
        if t == T - 1:
            Qt, qt = Q[:, t], p[:, t]
        else:
            Qt = Q[:, t] + Ft @ V @ F
            qt = (p[:, t] + jnp.einsum('bij,bj->bi', Ft, v)
                  + jnp.einsum('bij,bj->bi', Ft @ V, c1))
        Qxx, Qxu = Qt[:, :ns, :ns], Qt[:, :ns, ns:]
        Qux, Quu = Qt[:, ns:, :ns], Qt[:, ns:, ns:]
        qx, qu = qt[:, :ns], qt[:, ns:]
        Quu_inv = jnp.linalg.pinv(Quu)
        Kt = -Quu_inv @ Qux
        kt = -jnp.einsum('bij,bj->bi', Quu_inv, qu)
        Ks[t], ks[t] = Kt, kt
        KtT = jnp.swapaxes(Kt, -1, -2)
        V = Qxx + Qxu @ Kt + KtT @ Qux + KtT @ Quu @ Kt
        v = (qx + jnp.einsum('bij,bj->bi', Qxu, kt)
             + jnp.einsum('bij,bj->bi', KtT, qu)
             + jnp.einsum('bij,bj->bi', KtT @ Quu, kt))
    xs, us = [], []
    cost = jnp.zeros((Bn,), Q.dtype)
    xt = x_init
    for t in range(T):
        ut = jnp.einsum('bij,bj->bi', Ks[t], xt) + ks[t]
        xs.append(xt)
        us.append(ut)
        xut = jnp.concatenate([xt, ut], axis=-1)
        cost = (cost + 0.5 * jnp.einsum('bi,bij,bj->b', xut, Q[:, t], xut)
                + jnp.sum(xut * p[:, t], axis=-1))
        xt = (jnp.einsum('bij,bj->bi', A, xt)
              + jnp.einsum('bij,bj->bi', Bm, ut) + c1)
    return jnp.stack(xs, 1), jnp.stack(us, 1), cost


if __name__ == "__main__":
    key = jax.random.PRNGKey(0)
    n_batch, T, ns, nc = 2, 5, 4, 3
    nsc = ns + nc
    k1, k2, k3, k4, k5, k6 = jax.random.split(key, 6)

    Q = jax.random.normal(k1, (n_batch, T, nsc, nsc), jnp.float32)
    Q = jnp.einsum('btji,btjk->btik', Q, Q) + 0.5 * jnp.eye(nsc, dtype=jnp.float32)
    p = jax.random.normal(k2, (n_batch, T, nsc), jnp.float32)
    r = 0.2 * jax.random.normal(k3, (ns, ns), jnp.float32)
    A = jnp.tile((jnp.eye(ns, dtype=jnp.float32) + r)[None], (n_batch, 1, 1))
    Bm = jax.random.normal(k4, (n_batch, ns, nc), jnp.float32)
    c1 = jnp.tile(jax.random.normal(k5, (ns,), jnp.float32)[None], (n_batch, 1))
    x_init = jax.random.normal(k6, (n_batch, ns), jnp.float32)

    x, u, cost = jax.jit(lqr_pallas)(Q, p, A, Bm, c1, x_init)
    jax.block_until_ready((x, u, cost))

    xr, ur, cr = lqr_ref(Q, p, A, Bm, c1, x_init)
    assert jnp.allclose(x, xr, rtol=2e-3, atol=2e-3), "state mismatch"
    assert jnp.allclose(u, ur, rtol=2e-3, atol=2e-3), "control mismatch"
    assert jnp.allclose(cost, cr, rtol=2e-3, atol=2e-3), "cost mismatch"

    print("KERNEL_OK")
</pallas_src>

<mosaic_0001>
module attributes {stable_mosaic.version = 11 : i64} {
  func.func @kernel(%arg0: i32, %arg1: memref<5x49x1x128xf32, #tpu.memory_space<vmem>>, %arg2: memref<5x7x1x128xf32, #tpu.memory_space<vmem>>, %arg3: memref<16x1x128xf32, #tpu.memory_space<vmem>>, %arg4: memref<12x1x128xf32, #tpu.memory_space<vmem>>, %arg5: memref<4x1x128xf32, #tpu.memory_space<vmem>>, %arg6: memref<4x1x128xf32, #tpu.memory_space<vmem>>, %arg7: memref<5x4x1x128xf32, #tpu.memory_space<vmem>>, %arg8: memref<5x3x1x128xf32, #tpu.memory_space<vmem>>, %arg9: memref<1x128xf32, #tpu.memory_space<vmem>>, %arg10: memref<5x12x1x128xf32, #tpu.memory_space<vmem>>, %arg11: memref<5x3x1x128xf32, #tpu.memory_space<vmem>>) attributes {dimension_semantics = [#tpu.dimension_semantics<parallel>], iteration_bounds = array<i64: 1>, scalar_prefetch = 0 : i64, scratch_operands = 2 : i64, tpu.core_type = #tpu.core_type<tc>, window_params = [{transform_indices = @transform_0, window_bounds = array<i64: 5, 49, 1, 128>}, {transform_indices = @transform_1, window_bounds = array<i64: 5, 7, 1, 128>}, {transform_indices = @transform_2, window_bounds = array<i64: 16, 1, 128>}, {transform_indices = @transform_3, window_bounds = array<i64: 12, 1, 128>}, {transform_indices = @transform_4, window_bounds = array<i64: 4, 1, 128>}, {transform_indices = @transform_5, window_bounds = array<i64: 4, 1, 128>}, {transform_indices = @transform_6, window_bounds = array<i64: 5, 4, 1, 128>}, {transform_indices = @transform_7, window_bounds = array<i64: 5, 3, 1, 128>}, {transform_indices = @transform_8, window_bounds = array<i64: 1, 128>}]} {
    %c4 = arith.constant 4 : index
    %c0 = arith.constant 0 : index
    %c0_0 = arith.constant 0 : index
    %c0_1 = arith.constant 0 : index
    %0 = vector.load %arg1[%c4, %c0, %c0_0, %c0_1] : memref<5x49x1x128xf32, #tpu.memory_space<vmem>>, vector<1x1x1x128xf32>
    %1 = vector.shape_cast %0 : vector<1x1x1x128xf32> to vector<1x128xf32>
    %c4_2 = arith.constant 4 : index
    %c1 = arith.constant 1 : index
    %c0_3 = arith.constant 0 : index
    %c0_4 = arith.constant 0 : index
    %2 = vector.load %arg1[%c4_2, %c1, %c0_3, %c0_4] : memref<5x49x1x128xf32, #tpu.memory_space<vmem>>, vector<1x1x1x128xf32>
    %3 = vector.shape_cast %2 : vector<1x1x1x128xf32> to vector<1x128xf32>
    %c4_5 = arith.constant 4 : index
    %c2 = arith.constant 2 : index
    %c0_6 = arith.constant 0 : index
    %c0_7 = arith.constant 0 : index
    %4 = vector.load %arg1[%c4_5, %c2, %c0_6, %c0_7] : memref<5x49x1x128xf32, #tpu.memory_space<vmem>>, vector<1x1x1x128xf32>
    %5 = vector.shape_cast %4 : vector<1x1x1x128xf32> to vector<1x128xf32>
    %c4_8 = arith.constant 4 : index
    %c3 = arith.constant 3 : index
    %c0_9 = arith.constant 0 : index
    %c0_10 = arith.constant 0 : index
    %6 = vector.load %arg1[%c4_8, %c3, %c0_9, %c0_10] : memref<5x49x1x128xf32, #tpu.memory_space<vmem>>, vector<1x1x1x128xf32>
    %7 = vector.shape_cast %6 : vector<1x1x1x128xf32> to vector<1x128xf32>
    %c4_11 = arith.constant 4 : index
    %c8 = arith.constant 8 : index
    %c0_12 = arith.constant 0 : index
    %c0_13 = arith.constant 0 : index
    %8 = vector.load %arg1[%c4_11, %c8, %c0_12, %c0_13] : memref<5x49x1x128xf32, #tpu.memory_space<vmem>>, vector<1x1x1x128xf32>
    %9 = vector.shape_cast %8 : vector<1x1x1x128xf32> to vector<1x128xf32>
    %c4_14 = arith.constant 4 : index
    %c9 = arith.constant 9 : index
    %c0_15 = arith.constant 0 : index
    %c0_16 = arith.constant 0 : index
    %10 = vector.load %arg1[%c4_14, %c9, %c0_15, %c0_16] : memref<5x49x1x128xf32, #tpu.memory_space<vmem>>, vector<1x1x1x128xf32>
    %11 = vector.shape_cast %10 : vector<1x1x1x128xf32> to vector<1x128xf32>
    %c4_17 = arith.constant 4 : index
    %c10 = arith.constant 10 : index
    %c0_18 = arith.constant 0 : index
    %c0_19 = arith.constant 0 : index
    %12 = vector.load %arg1[%c4_17, %c10, %c0_18, %c0_19] : memref<5x49x1x128xf32, #tpu.memory_space<vmem>>, vector<1x1x1x128xf32>
    %13 = vector.shape_cast %12 : vector<1x1x1x128xf32> to vector<1x128xf32>
    %c4_20 = arith.constant 4 : index
    %c16 = arith.constant 16 : index
    %c0_21 = arith.constant 0 : index
    %c0_22 = arith.constant 0 : index
    %14 = vector.load %arg1[%c4_20, %c16, %c0_21, %c0_22] : memref<5x49x1x128xf32, #tpu.memory_space<vmem>>, vector<1x1x1x128xf32>
    %15 = vector.shape_cast %14 : vector<1x1x1x128xf32> to vector<1x128xf32>
    %c4_23 = arith.constant 4 : index
    %c17 = arith.constant 17 : index
    %c0_24 = arith.constant 0 : index
    %c0_25 = arith.constant 0 : index
    %16 = vector.load %arg1[%c4_23, %c17, %c0_24, %c0_25] : memref<5x49x1x128xf32, #tpu.memory_space<vmem>>, vector<1x1x1x128xf32>
    %17 = vector.shape_cast %16 : vector<1x1x1x128xf32> to vector<1x128xf32>
    %c4_26 = arith.constant 4 : index
    %c24 = arith.constant 24 : index
    %c0_27 = arith.constant 0 : index
    %c0_28 = arith.constant 0 : index
    %18 = vector.load %arg1[%c4_26, %c24, %c0_27, %c0_28] : memref<5x49x1x128xf32, #tpu.memory_space<vmem>>, vector<1x1x1x128xf32>
    %19 = vector.shape_cast %18 : vector<1x1x1x128xf32> to vector<1x128xf32>
    %c4_29 = arith.constant 4 : index
    %c4_30 = arith.constant 4 : index
    %c0_31 = arith.constant 0 : index
    %c0_32 = arith.constant 0 : index
    %20 = vector.load %arg1[%c4_29, %c4_30, %c0_31, %c0_32] : memref<5x49x1x128xf32, #tpu.memory_space<vmem>>, vector<1x1x1x128xf32>
    %21 = vector.shape_cast %20 : vector<1x1x1x128xf32> to vector<1x128xf32>
    %c4_33 = arith.constant 4 : index
    %c5 = arith.constant 5 : index
    %c0_34 = arith.constant 0 : index
    %c0_35 = arith.constant 0 : index
    %22 = vector.load %arg1[%c4_33, %c5, %c0_34, %c0_35] : memref<5x49x1x128xf32, #tpu.memory_space<vmem>>, vector<1x1x1x128xf32>
    %23 = vector.shape_cast %22 : vector<1x1x1x128xf32> to vector<1x128xf32>
    %c4_36 = arith.constant 4 : index
    %c6 = arith.constant 6 : index
    %c0_37 = arith.constant 0 : index
    %c0_38 = arith.constant 0 : index
    %24 = vector.load %arg1[%c4_36, %c6, %c0_37, %c0_38] : memref<5x49x1x128xf32, #tpu.memory_space<vmem>>, vector<1x1x1x128xf32>
    %25 = vector.shape_cast %24 : vector<1x1x1x128xf32> to vector<1x128xf32>
    %c4_39 = arith.constant 4 : index
    %c11 = arith.constant 11 : index
    %c0_40 = arith.constant 0 : index
    %c0_41 = arith.constant 0 : index
    %26 = vector.load %arg1[%c4_39, %c11, %c0_40, %c0_41] : memref<5x49x1x128xf32, #tpu.memory_space<vmem>>, vector<1x1x1x128xf32>
    %27 = vector.shape_cast %26 : vector<1x1x1x128xf32> to vector<1x128xf32>
    %c4_42 = arith.constant 4 : index
    %c12 = arith.constant 12 : index
    %c0_43 = arith.constant 0 : index
    %c0_44 = arith.constant 0 : index
    %28 = vector.load %arg1[%c4_42, %c12, %c0_43, %c0_44] : memref<5x49x1x128xf32, #tpu.memory_space<vmem>>, vector<1x1x1x128xf32>
    %29 = vector.shape_cast %28 : vector<1x1x1x128xf32> to vector<1x128xf32>
    %c4_45 = arith.constant 4 : index
    %c13 = arith.constant 13 : index
    %c0_46 = arith.constant 0 : index
    %c0_47 = arith.constant 0 : index
    %30 = vector.load %arg1[%c4_45, %c13, %c0_46, %c0_47] : memref<5x49x1x128xf32, #tpu.memory_space<vmem>>, vector<1x1x1x128xf32>
    %31 = vector.shape_cast %30 : vector<1x1x1x128xf32> to vector<1x128xf32>
    %c4_48 = arith.constant 4 : index
    %c18 = arith.constant 18 : index
    %c0_49 = arith.constant 0 : index
    %c0_50 = arith.constant 0 : index
    %32 = vector.load %arg1[%c4_48, %c18, %c0_49, %c0_50] : memref<5x49x1x128xf32, #tpu.memory_space<vmem>>, vector<1x1x1x128xf32>
    %33 = vector.shape_cast %32 : vector<1x1x1x128xf32> to vector<1x128xf32>
    %c4_51 = arith.constant 4 : index
    %c19 = arith.constant 19 : index
    %c0_52 = arith.constant 0 : index
    %c0_53 = arith.constant 0 : index
    %34 = vector.load %arg1[%c4_51, %c19, %c0_52, %c0_53] : memref<5x49x1x128xf32, #tpu.memory_space<vmem>>, vector<1x1x1x128xf32>
    %35 = vector.shape_cast %34 : vector<1x1x1x128xf32> to vector<1x128xf32>
    %c4_54 = arith.constant 4 : index
    %c20 = arith.constant 20 : index
    %c0_55 = arith.constant 0 : index
    %c0_56 = arith.constant 0 : index
    %36 = vector.load %arg1[%c4_54, %c20, %c0_55, %c0_56] : memref<5x49x1x128xf32, #tpu.memory_space<vmem>>, vector<1x1x1x128xf32>
    %37 = vector.shape_cast %36 : vector<1x1x1x128xf32> to vector<1x128xf32>
    %c4_57 = arith.constant 4 : index
    %c25 = arith.constant 25 : index
    %c0_58 = arith.constant 0 : index
    %c0_59 = arith.constant 0 : index
    %38 = vector.load %arg1[%c4_57, %c25, %c0_58, %c0_59] : memref<5x49x1x128xf32, #tpu.memory_space<vmem>>, vector<1x1x1x128xf32>
    %39 = vector.shape_cast %38 : vector<1x1x1x128xf32> to vector<1x128xf32>
    %c4_60 = arith.constant 4 : index
    %c26 = arith.constant 26 : index
    %c0_61 = arith.constant 0 : index
    %c0_62 = arith.constant 0 : index
    %40 = vector.load %arg1[%c4_60, %c26, %c0_61, %c0_62] : memref<5x49x1x128xf32, #tpu.memory_space<vmem>>, vector<1x1x1x128xf32>
    %41 = vector.shape_cast %40 : vector<1x1x1x128xf32> to vector<1x128xf32>
    %c4_63 = arith.constant 4 : index
    %c27 = arith.constant 27 : index
    %c0_64 = arith.constant 0 : index
    %c0_65 = arith.constant 0 : index
    %42 = vector.load %arg1[%c4_63, %c27, %c0_64, %c0_65] : memref<5x49x1x128xf32, #tpu.memory_space<vmem>>, vector<1x1x1x128xf32>
    %43 = vector.shape_cast %42 : vector<1x1x1x128xf32> to vector<1x128xf32>
    %c4_66 = arith.constant 4 : index
    %c32 = arith.constant 32 : index
    %c0_67 = arith.constant 0 : index
    %c0_68 = arith.constant 0 : index
    %44 = vector.load %arg1[%c4_66, %c32, %c0_67, %c0_68] : memref<5x49x1x128xf32, #tpu.memory_space<vmem>>, vector<1x1x1x128xf32>
    %45 = vector.shape_cast %44 : vector<1x1x1x128xf32> to vector<1x128xf32>
    %c4_69 = arith.constant 4 : index
    %c33 = arith.constant 33 : index
    %c0_70 = arith.constant 0 : index
    %c0_71 = arith.constant 0 : index
    %46 = vector.load %arg1[%c4_69, %c33, %c0_70, %c0_71] : memref<5x49x1x128xf32, #tpu.memory_space<vmem>>, vector<1x1x1x128xf32>
    %47 = vector.shape_cast %46 : vector<1x1x1x128xf32> to vector<1x128xf32>
    %c4_72 = arith.constant 4 : index
    %c34 = arith.constant 34 : index
    %c0_73 = arith.constant 0 : index
    %c0_74 = arith.constant 0 : index
    %48 = vector.load %arg1[%c4_72, %c34, %c0_73, %c0_74] : memref<5x49x1x128xf32, #tpu.memory_space<vmem>>, vector<1x1x1x128xf32>
    %49 = vector.shape_cast %48 : vector<1x1x1x128xf32> to vector<1x128xf32>
    %c4_75 = arith.constant 4 : index
    %c39 = arith.constant 39 : index
    %c0_76 = arith.constant 0 : index
    %c0_77 = arith.constant 0 : index
    %50 = vector.load %arg1[%c4_75, %c39, %c0_76, %c0_77] : memref<5x49x1x128xf32, #tpu.memory_space<vmem>>, vector<1x1x1x128xf32>
    %51 = vector.shape_cast %50 : vector<1x1x1x128xf32> to vector<1x128xf32>
    %c4_78 = arith.constant 4 : index
    %c40 = arith.constant 40 : index
    %c0_79 = arith.constant 0 : index
    %c0_80 = arith.constant 0 : index
    %52 = vector.load %arg1[%c4_78, %c40, %c0_79, %c0_80] : memref<5x49x1x128xf32, #tpu.memory_space<vmem>>, vector<1x1x1x128xf32>
    %53 = vector.shape_cast %52 : vector<1x1x1x128xf32> to vector<1x128xf32>
    %c4_81 = arith.constant 4 : index
    %c41 = arith.constant 41 : index
    %c0_82 = arith.constant 0 : index
    %c0_83 = arith.constant 0 : index
    %54 = vector.load %arg1[%c4_81, %c41, %c0_82, %c0_83] : memref<5x49x1x128xf32, #tpu.memory_space<vmem>>, vector<1x1x1x128xf32>
    %55 = vector.shape_cast %54 : vector<1x1x1x128xf32> to vector<1x128xf32>
    %c4_84 = arith.constant 4 : index
    %c46 = arith.constant 46 : index
    %c0_85 = arith.constant 0 : index
    %c0_86 = arith.constant 0 : index
    %56 = vector.load %arg1[%c4_84, %c46, %c0_85, %c0_86] : memref<5x49x1x128xf32, #tpu.memory_space<vmem>>, vector<1x1x1x128xf32>
    %57 = vector.shape_cast %56 : vector<1x1x1x128xf32> to vector<1x128xf32>
    %c4_87 = arith.constant 4 : index
    %c47 = arith.constant 47 : index
    %c0_88 = arith.constant 0 : index
    %c0_89 = arith.constant 0 : index
    %58 = vector.load %arg1[%c4_87, %c47, %c0_88, %c0_89] : memref<5x49x1x128xf32, #tpu.memory_space<vmem>>, vector<1x1x1x128xf32>
    %59 = vector.shape_cast %58 : vector<1x1x1x128xf32> to vector<1x128xf32>
    %c4_90 = arith.constant 4 : index
    %c48 = arith.constant 48 : index
    %c0_91 = arith.constant 0 : index
    %c0_92 = arith.constant 0 : index
    %60 = vector.load %arg1[%c4_90, %c48, %c0_91, %c0_92] : memref<5x49x1x128xf32, #tpu.memory_space<vmem>>, vector<1x1x1x128xf32>
    %61 = vector.shape_cast %60 : vector<1x1x1x128xf32> to vector<1x128xf32>
    %c4_93 = arith.constant 4 : index
    %c0_94 = arith.constant 0 : index
    %c0_95 = arith.constant 0 : index
    %c0_96 = arith.constant 0 : index
    %62 = vector.load %arg2[%c4_93, %c0_94, %c0_95, %c0_96] : memref<5x7x1x128xf32, #tpu.memory_space<vmem>>, vector<1x1x1x128xf32>
    %63 = vector.shape_cast %62 : vector<1x1x1x128xf32> to vector<1x128xf32>
    %c4_97 = arith.constant 4 : index
    %c1_98 = arith.constant 1 : index
    %c0_99 = arith.constant 0 : index
    %c0_100 = arith.constant 0 : index
    %64 = vector.load %arg2[%c4_97, %c1_98, %c0_99, %c0_100] : memref<5x7x1x128xf32, #tpu.memory_space<vmem>>, vector<1x1x1x128xf32>
    %65 = vector.shape_cast %64 : vector<1x1x1x128xf32> to vector<1x128xf32>
    %c4_101 = arith.constant 4 : index
    %c2_102 = arith.constant 2 : index
    %c0_103 = arith.constant 0 : index
    %c0_104 = arith.constant 0 : index
    %66 = vector.load %arg2[%c4_101, %c2_102, %c0_103, %c0_104] : memref<5x7x1x128xf32, #tpu.memory_space<vmem>>, vector<1x1x1x128xf32>
    %67 = vector.shape_cast %66 : vector<1x1x1x128xf32> to vector<1x128xf32>
    %c4_105 = arith.constant 4 : index
    %c3_106 = arith.constant 3 : index
    %c0_107 = arith.constant 0 : index
    %c0_108 = arith.constant 0 : index
    %68 = vector.load %arg2[%c4_105, %c3_106, %c0_107, %c0_108] : memref<5x7x1x128xf32, #tpu.memory_space<vmem>>, vector<1x1x1x128xf32>
    %69 = vector.shape_cast %68 : vector<1x1x1x128xf32> to vector<1x128xf32>
    %c4_109 = arith.constant 4 : index
    %c4_110 = arith.constant 4 : index
    %c0_111 = arith.constant 0 : index
    %c0_112 = arith.constant 0 : index
    %70 = vector.load %arg2[%c4_109, %c4_110, %c0_111, %c0_112] : memref<5x7x1x128xf32, #tpu.memory_space<vmem>>, vector<1x1x1x128xf32>
    %71 = vector.shape_cast %70 : vector<1x1x1x128xf32> to vector<1x128xf32>
    %c4_113 = arith.constant 4 : index
    %c5_114 = arith.constant 5 : index
    %c0_115 = arith.constant 0 : index
    %c0_116 = arith.constant 0 : index
    %72 = vector.load %arg2[%c4_113, %c5_114, %c0_115, %c0_116] : memref<5x7x1x128xf32, #tpu.memory_space<vmem>>, vector<1x1x1x128xf32>
    %73 = vector.shape_cast %72 : vector<1x1x1x128xf32> to vector<1x128xf32>
    %c4_117 = arith.constant 4 : index
    %c6_118 = arith.constant 6 : index
    %c0_119 = arith.constant 0 : index
    %c0_120 = arith.constant 0 : index
    %74 = vector.load %arg2[%c4_117, %c6_118, %c0_119, %c0_120] : memref<5x7x1x128xf32, #tpu.memory_space<vmem>>, vector<1x1x1x128xf32>
    %75 = vector.shape_cast %74 : vector<1x1x1x128xf32> to vector<1x128xf32>
    %76 = arith.mulf %53, %61 : vector<1x128xf32>
    %77 = arith.mulf %55, %55 : vector<1x128xf32>
    %78 = arith.subf %76, %77 : vector<1x128xf32>
    %79 = arith.mulf %49, %55 : vector<1x128xf32>
    %80 = arith.mulf %47, %61 : vector<1x128xf32>
    %81 = arith.subf %79, %80 : vector<1x128xf32>
    %82 = arith.mulf %47, %55 : vector<1x128xf32>
    %83 = arith.mulf %49, %53 : vector<1x128xf32>
    %84 = arith.subf %82, %83 : vector<1x128xf32>
    %85 = arith.mulf %45, %78 : vector<1x128xf32>
    %86 = arith.mulf %47, %81 : vector<1x128xf32>
    %87 = arith.addf %85, %86 : vector<1x128xf32>
    %88 = arith.mulf %49, %84 : vector<1x128xf32>
    %89 = arith.addf %87, %88 : vector<1x128xf32>
    %90 = tpu.reciprocal %89 {approx = true} : vector<1x128xf32> -> vector<1x128xf32>
    %91 = arith.mulf %89, %90 : vector<1x128xf32>
    %cst = arith.constant 2.000000e+00 : f32
    %92 = vector.broadcast %cst : f32 to vector<1x128xf32>
    %93 = arith.subf %92, %91 : vector<1x128xf32>
    %94 = arith.mulf %90, %93 : vector<1x128xf32>
    %95 = arith.mulf %78, %94 : vector<1x128xf32>
    %96 = arith.mulf %81, %94 : vector<1x128xf32>
    %97 = arith.mulf %84, %94 : vector<1x128xf32>
    %98 = arith.mulf %45, %61 : vector<1x128xf32>
    %99 = arith.mulf %49, %49 : vector<1x128xf32>
    %100 = arith.subf %98, %99 : vector<1x128xf32>
    %101 = arith.mulf %100, %94 : vector<1x128xf32>
    %102 = arith.mulf %49, %47 : vector<1x128xf32>
    %103 = arith.mulf %45, %55 : vector<1x128xf32>
    %104 = arith.subf %102, %103 : vector<1x128xf32>
    %105 = arith.mulf %104, %94 : vector<1x128xf32>
    %106 = arith.mulf %45, %53 : vector<1x128xf32>
    %107 = arith.mulf %47, %47 : vector<1x128xf32>
    %108 = arith.subf %106, %107 : vector<1x128xf32>
    %109 = arith.mulf %108, %94 : vector<1x128xf32>
    %110 = arith.mulf %95, %21 : vector<1x128xf32>
    %111 = arith.mulf %96, %23 : vector<1x128xf32>
    %112 = arith.addf %110, %111 : vector<1x128xf32>
    %113 = arith.mulf %97, %25 : vector<1x128xf32>
    %114 = arith.addf %112, %113 : vector<1x128xf32>
    %cst_121 = arith.constant 0.000000e+00 : f32
    %115 = vector.broadcast %cst_121 : f32 to vector<1x128xf32>
    %116 = arith.subf %115, %114 : vector<1x128xf32>
    %117 = arith.mulf %95, %27 : vector<1x128xf32>
    %118 = arith.mulf %96, %29 : vector<1x128xf32>
    %119 = arith.addf %117, %118 : vector<1x128xf32>
    %120 = arith.mulf %97, %31 : vector<1x128xf32>
    %121 = arith.addf %119, %120 : vector<1x128xf32>
    %cst_122 = arith.constant 0.000000e+00 : f32
    %122 = vector.broadcast %cst_122 : f32 to vector<1x128xf32>
    %123 = arith.subf %122, %121 : vector<1x128xf32>
    %124 = arith.mulf %95, %33 : vector<1x128xf32>
    %125 = arith.mulf %96, %35 : vector<1x128xf32>
    %126 = arith.addf %124, %125 : vector<1x128xf32>
    %127 = arith.mulf %97, %37 : vector<1x128xf32>
    %128 = arith.addf %126, %127 : vector<1x128xf32>
    %cst_123 = arith.constant 0.000000e+00 : f32
    %129 = vector.broadcast %cst_123 : f32 to vector<1x128xf32>
    %130 = arith.subf %129, %128 : vector<1x128xf32>
    %131 = arith.mulf %95, %39 : vector<1x128xf32>
    %132 = arith.mulf %96, %41 : vector<1x128xf32>
    %133 = arith.addf %131, %132 : vector<1x128xf32>
    %134 = arith.mulf %97, %43 : vector<1x128xf32>
    %135 = arith.addf %133, %134 : vector<1x128xf32>
    %cst_124 = arith.constant 0.000000e+00 : f32
    %136 = vector.broadcast %cst_124 : f32 to vector<1x128xf32>
    %137 = arith.subf %136, %135 : vector<1x128xf32>
    %138 = arith.mulf %96, %21 : vector<1x128xf32>
    %139 = arith.mulf %101, %23 : vector<1x128xf32>
    %140 = arith.addf %138, %139 : vector<1x128xf32>
    %141 = arith.mulf %105, %25 : vector<1x128xf32>
    %142 = arith.addf %140, %141 : vector<1x128xf32>
    %cst_125 = arith.constant 0.000000e+00 : f32
    %143 = vector.broadcast %cst_125 : f32 to vector<1x128xf32>
    %144 = arith.subf %143, %142 : vector<1x128xf32>
    %145 = arith.mulf %96, %27 : vector<1x128xf32>
    %146 = arith.mulf %101, %29 : vector<1x128xf32>
    %147 = arith.addf %145, %146 : vector<1x128xf32>
    %148 = arith.mulf %105, %31 : vector<1x128xf32>
    %149 = arith.addf %147, %148 : vector<1x128xf32>
    %cst_126 = arith.constant 0.000000e+00 : f32
    %150 = vector.broadcast %cst_126 : f32 to vector<1x128xf32>
    %151 = arith.subf %150, %149 : vector<1x128xf32>
    %152 = arith.mulf %96, %33 : vector<1x128xf32>
    %153 = arith.mulf %101, %35 : vector<1x128xf32>
    %154 = arith.addf %152, %153 : vector<1x128xf32>
    %155 = arith.mulf %105, %37 : vector<1x128xf32>
    %156 = arith.addf %154, %155 : vector<1x128xf32>
    %cst_127 = arith.constant 0.000000e+00 : f32
    %157 = vector.broadcast %cst_127 : f32 to vector<1x128xf32>
    %158 = arith.subf %157, %156 : vector<1x128xf32>
    %159 = arith.mulf %96, %39 : vector<1x128xf32>
    %160 = arith.mulf %101, %41 : vector<1x128xf32>
    %161 = arith.addf %159, %160 : vector<1x128xf32>
    %162 = arith.mulf %105, %43 : vector<1x128xf32>
    %163 = arith.addf %161, %162 : vector<1x128xf32>
    %cst_128 = arith.constant 0.000000e+00 : f32
    %164 = vector.broadcast %cst_128 : f32 to vector<1x128xf32>
    %165 = arith.subf %164, %163 : vector<1x128xf32>
    %166 = arith.mulf %97, %21 : vector<1x128xf32>
    %167 = arith.mulf %105, %23 : vector<1x128xf32>
    %168 = arith.addf %166, %167 : vector<1x128xf32>
    %169 = arith.mulf %109, %25 : vector<1x128xf32>
    %170 = arith.addf %168, %169 : vector<1x128xf32>
    %cst_129 = arith.constant 0.000000e+00 : f32
    %171 = vector.broadcast %cst_129 : f32 to vector<1x128xf32>
    %172 = arith.subf %171, %170 : vector<1x128xf32>
    %173 = arith.mulf %97, %27 : vector<1x128xf32>
    %174 = arith.mulf %105, %29 : vector<1x128xf32>
    %175 = arith.addf %173, %174 : vector<1x128xf32>
    %176 = arith.mulf %109, %31 : vector<1x128xf32>
    %177 = arith.addf %175, %176 : vector<1x128xf32>
    %cst_130 = arith.constant 0.000000e+00 : f32
    %178 = vector.broadcast %cst_130 : f32 to vector<1x128xf32>
    %179 = arith.subf %178, %177 : vector<1x128xf32>
    %180 = arith.mulf %97, %33 : vector<1x128xf32>
    %181 = arith.mulf %105, %35 : vector<1x128xf32>
    %182 = arith.addf %180, %181 : vector<1x128xf32>
    %183 = arith.mulf %109, %37 : vector<1x128xf32>
    %184 = arith.addf %182, %183 : vector<1x128xf32>
    %cst_131 = arith.constant 0.000000e+00 : f32
    %185 = vector.broadcast %cst_131 : f32 to vector<1x128xf32>
    %186 = arith.subf %185, %184 : vector<1x128xf32>
    %187 = arith.mulf %97, %39 : vector<1x128xf32>
    %188 = arith.mulf %105, %41 : vector<1x128xf32>
    %189 = arith.addf %187, %188 : vector<1x128xf32>
    %190 = arith.mulf %109, %43 : vector<1x128xf32>
    %191 = arith.addf %189, %190 : vector<1x128xf32>
    %cst_132 = arith.constant 0.000000e+00 : f32
    %192 = vector.broadcast %cst_132 : f32 to vector<1x128xf32>
    %193 = arith.subf %192, %191 : vector<1x128xf32>
    %194 = arith.mulf %95, %71 : vector<1x128xf32>
    %195 = arith.mulf %96, %73 : vector<1x128xf32>
    %196 = arith.addf %194, %195 : vector<1x128xf32>
    %197 = arith.mulf %97, %75 : vector<1x128xf32>
    %198 = arith.addf %196, %197 : vector<1x128xf32>
    %cst_133 = arith.constant 0.000000e+00 : f32
    %199 = vector.broadcast %cst_133 : f32 to vector<1x128xf32>
    %200 = arith.subf %199, %198 : vector<1x128xf32>
    %201 = arith.mulf %96, %71 : vector<1x128xf32>
    %202 = arith.mulf %101, %73 : vector<1x128xf32>
    %203 = arith.addf %201, %202 : vector<1x128xf32>
    %204 = arith.mulf %105, %75 : vector<1x128xf32>
    %205 = arith.addf %203, %204 : vector<1x128xf32>
    %cst_134 = arith.constant 0.000000e+00 : f32
    %206 = vector.broadcast %cst_134 : f32 to vector<1x128xf32>
    %207 = arith.subf %206, %205 : vector<1x128xf32>
    %208 = arith.mulf %97, %71 : vector<1x128xf32>
    %209 = arith.mulf %105, %73 : vector<1x128xf32>
    %210 = arith.addf %208, %209 : vector<1x128xf32>
    %211 = arith.mulf %109, %75 : vector<1x128xf32>
    %212 = arith.addf %210, %211 : vector<1x128xf32>
    %cst_135 = arith.constant 0.000000e+00 : f32
    %213 = vector.broadcast %cst_135 : f32 to vector<1x128xf32>
    %214 = arith.subf %213, %212 : vector<1x128xf32>
    %c4_136 = arith.constant 4 : index
    %c0_137 = arith.constant 0 : index
    %c0_138 = arith.constant 0 : index
    %c0_139 = arith.constant 0 : index
    %215 = vector.load %arg10[%c4_136, %c0_137, %c0_138, %c0_139] : memref<5x12x1x128xf32, #tpu.memory_space<vmem>>, vector<1x1x1x128xf32>
    %216 = vector.shape_cast %215 : vector<1x1x1x128xf32> to vector<1x128xf32>
    %217 = vector.shape_cast %116 : vector<1x128xf32> to vector<1x1x1x128xf32>
    tpu.vector_store %arg10[%c4_136, %c0_137, %c0_138, %c0_139], %217 {strides = array<i32>} : memref<5x12x1x128xf32, #tpu.memory_space<vmem>>, vector<1x1x1x128xf32>,
    %c4_140 = arith.constant 4 : index
    %c1_141 = arith.constant 1 : index
    %c0_142 = arith.constant 0 : index
    %c0_143 = arith.constant 0 : index
    %218 = vector.load %arg10[%c4_140, %c1_141, %c0_142, %c0_143] : memref<5x12x1x128xf32, #tpu.memory_space<vmem>>, vector<1x1x1x128xf32>
    %219 = vector.shape_cast %218 : vector<1x1x1x128xf32> to vector<1x128xf32>
    %220 = vector.shape_cast %123 : vector<1x128xf32> to vector<1x1x1x128xf32>
    tpu.vector_store %arg10[%c4_140, %c1_141, %c0_142, %c0_143], %220 {strides = array<i32>} : memref<5x12x1x128xf32, #tpu.memory_space<vmem>>, vector<1x1x1x128xf32>,
    %c4_144 = arith.constant 4 : index
    %c2_145 = arith.constant 2 : index
    %c0_146 = arith.constant 0 : index
    %c0_147 = arith.constant 0 : index
    %221 = vector.load %arg10[%c4_144, %c2_145, %c0_146, %c0_147] : memref<5x12x1x128xf32, #tpu.memory_space<vmem>>, vector<1x1x1x128xf32>
    %222 = vector.shape_cast %221 : vector<1x1x1x128xf32> to vector<1x128xf32>
    %223 = vector.shape_cast %130 : vector<1x128xf32> to vector<1x1x1x128xf32>
    tpu.vector_store %arg10[%c4_144, %c2_145, %c0_146, %c0_147], %223 {strides = array<i32>} : memref<5x12x1x128xf32, #tpu.memory_space<vmem>>, vector<1x1x1x128xf32>,
    %c4_148 = arith.constant 4 : index
    %c3_149 = arith.constant 3 : index
    %c0_150 = arith.constant 0 : index
    %c0_151 = arith.constant 0 : index
    %224 = vector.load %arg10[%c4_148, %c3_149, %c0_150, %c0_151] : memref<5x12x1x128xf32, #tpu.memory_space<vmem>>, vector<1x1x1x128xf32>
    %225 = vector.shape_cast %224 : vector<1x1x1x128xf32> to vector<1x128xf32>
    %226 = vector.shape_cast %137 : vector<1x128xf32> to vector<1x1x1x128xf32>
    tpu.vector_store %arg10[%c4_148, %c3_149, %c0_150, %c0_151], %226 {strides = array<i32>} : memref<5x12x1x128xf32, #tpu.memory_space<vmem>>, vector<1x1x1x128xf32>,
    %c4_152 = arith.constant 4 : index
    %c0_153 = arith.constant 0 : index
    %c0_154 = arith.constant 0 : index
    %c0_155 = arith.constant 0 : index
    %227 = vector.load %arg11[%c4_152, %c0_153, %c0_154, %c0_155] : memref<5x3x1x128xf32, #tpu.memory_space<vmem>>, vector<1x1x1x128xf32>
    %228 = vector.shape_cast %227 : vector<1x1x1x128xf32> to vector<1x128xf32>
    %229 = vector.shape_cast %200 : vector<1x128xf32> to vector<1x1x1x128xf32>
    tpu.vector_store %arg11[%c4_152, %c0_153, %c0_154, %c0_155], %229 {strides = array<i32>} : memref<5x3x1x128xf32, #tpu.memory_space<vmem>>, vector<1x1x1x128xf32>,
    %c4_156 = arith.constant 4 : index
    %c4_157 = arith.constant 4 : index
    %c0_158 = arith.constant 0 : index
    %c0_159 = arith.constant 0 : index
    %230 = vector.load %arg10[%c4_156, %c4_157, %c0_158, %c0_159] : memref<5x12x1x128xf32, #tpu.memory_space<vmem>>, vector<1x1x1x128xf32>
    %231 = vector.shape_cast %230 : vector<1x1x1x128xf32> to vector<1x128xf32>
    %232 = vector.shape_cast %144 : vector<1x128xf32> to vector<1x1x1x128xf32>
    tpu.vector_store %arg10[%c4_156, %c4_157, %c0_158, %c0_159], %232 {strides = array<i32>} : memref<5x12x1x128xf32, #tpu.memory_space<vmem>>, vector<1x1x1x128xf32>,
    %c4_160 = arith.constant 4 : index
    %c5_161 = arith.constant 5 : index
    %c0_162 = arith.constant 0 : index
    %c0_163 = arith.constant 0 : index
    %233 = vector.load %arg10[%c4_160, %c5_161, %c0_162, %c0_163] : memref<5x12x1x128xf32, #tpu.memory_space<vmem>>, vector<1x1x1x128xf32>
    %234 = vector.shape_cast %233 : vector<1x1x1x128xf32> to vector<1x128xf32>
    %235 = vector.shape_cast %151 : vector<1x128xf32> to vector<1x1x1x128xf32>
    tpu.vector_store %arg10[%c4_160, %c5_161, %c0_162, %c0_163], %235 {strides = array<i32>} : memref<5x12x1x128xf32, #tpu.memory_space<vmem>>, vector<1x1x1x128xf32>,
    %c4_164 = arith.constant 4 : index
    %c6_165 = arith.constant 6 : index
    %c0_166 = arith.constant 0 : index
    %c0_167 = arith.constant 0 : index
    %236 = vector.load %arg10[%c4_164, %c6_165, %c0_166, %c0_167] : memref<5x12x1x128xf32, #tpu.memory_space<vmem>>, vector<1x1x1x128xf32>
    %237 = vector.shape_cast %236 : vector<1x1x1x128xf32> to vector<1x128xf32>
    %238 = vector.shape_cast %158 : vector<1x128xf32> to vector<1x1x1x128xf32>
    tpu.vector_store %arg10[%c4_164, %c6_165, %c0_166, %c0_167], %238 {strides = array<i32>} : memref<5x12x1x128xf32, #tpu.memory_space<vmem>>, vector<1x1x1x128xf32>,
    %c4_168 = arith.constant 4 : index
    %c7 = arith.constant 7 : index
    %c0_169 = arith.constant 0 : index
    %c0_170 = arith.constant 0 : index
    %239 = vector.load %arg10[%c4_168, %c7, %c0_169, %c0_170] : memref<5x12x1x128xf32, #tpu.memory_space<vmem>>, vector<1x1x1x128xf32>
    %240 = vector.shape_cast %239 : vector<1x1x1x128xf32> to vector<1x128xf32>
    %241 = vector.shape_cast %165 : vector<1x128xf32> to vector<1x1x1x128xf32>
    tpu.vector_store %arg10[%c4_168, %c7, %c0_169, %c0_170], %241 {strides = array<i32>} : memref<5x12x1x128xf32, #tpu.memory_space<vmem>>, vector<1x1x1x128xf32>,
    %c4_171 = arith.constant 4 : index
    %c1_172 = arith.constant 1 : index
    %c0_173 = arith.constant 0 : index
    %c0_174 = arith.constant 0 : index
    %242 = vector.load %arg11[%c4_171, %c1_172, %c0_173, %c0_174] : memref<5x3x1x128xf32, #tpu.memory_space<vmem>>, vector<1x1x1x128xf32>
    %243 = vector.shape_cast %242 : vector<1x1x1x128xf32> to vector<1x128xf32>
    %244 = vector.shape_cast %207 : vector<1x128xf32> to vector<1x1x1x128xf32>
    tpu.vector_store %arg11[%c4_171, %c1_172, %c0_173, %c0_174], %244 {strides = array<i32>} : memref<5x3x1x128xf32, #tpu.memory_space<vmem>>, vector<1x1x1x128xf32>,
    %c4_175 = arith.constant 4 : index
    %c8_176 = arith.constant 8 : index
    %c0_177 = arith.constant 0 : index
    %c0_178 = arith.constant 0 : index
    %245 = vector.load %arg10[%c4_175, %c8_176, %c0_177, %c0_178] : memref<5x12x1x128xf32, #tpu.memory_space<vmem>>, vector<1x1x1x128xf32>
    %246 = vector.shape_cast %245 : vector<1x1x1x128xf32> to vector<1x128xf32>
    %247 = vector.shape_cast %172 : vector<1x128xf32> to vector<1x1x1x128xf32>
    tpu.vector_store %arg10[%c4_175, %c8_176, %c0_177, %c0_178], %247 {strides = array<i32>} : memref<5x12x1x128xf32, #tpu.memory_space<vmem>>, vector<1x1x1x128xf32>,
    %c4_179 = arith.constant 4 : index
    %c9_180 = arith.constant 9 : index
    %c0_181 = arith.constant 0 : index
    %c0_182 = arith.constant 0 : index
    %248 = vector.load %arg10[%c4_179, %c9_180, %c0_181, %c0_182] : memref<5x12x1x128xf32, #tpu.memory_space<vmem>>, vector<1x1x1x128xf32>
    %249 = vector.shape_cast %248 : vector<1x1x1x128xf32> to vector<1x128xf32>
    %250 = vector.shape_cast %179 : vector<1x128xf32> to vector<1x1x1x128xf32>
    tpu.vector_store %arg10[%c4_179, %c9_180, %c0_181, %c0_182], %250 {strides = array<i32>} : memref<5x12x1x128xf32, #tpu.memory_space<vmem>>, vector<1x1x1x128xf32>,
    %c4_183 = arith.constant 4 : index
    %c10_184 = arith.constant 10 : index
    %c0_185 = arith.constant 0 : index
    %c0_186 = arith.constant 0 : index
    %251 = vector.load %arg10[%c4_183, %c10_184, %c0_185, %c0_186] : memref<5x12x1x128xf32, #tpu.memory_space<vmem>>, vector<1x1x1x128xf32>
    %252 = vector.shape_cast %251 : vector<1x1x1x128xf32> to vector<1x128xf32>
    %253 = vector.shape_cast %186 : vector<1x128xf32> to vector<1x1x1x128xf32>
    tpu.vector_store %arg10[%c4_183, %c10_184, %c0_185, %c0_186], %253 {strides = array<i32>} : memref<5x12x1x128xf32, #tpu.memory_space<vmem>>, vector<1x1x1x128xf32>,
    %c4_187 = arith.constant 4 : index
    %c11_188 = arith.constant 11 : index
    %c0_189 = arith.constant 0 : index
    %c0_190 = arith.constant 0 : index
    %254 = vector.load %arg10[%c4_187, %c11_188, %c0_189, %c0_190] : memref<5x12x1x128xf32, #tpu.memory_space<vmem>>, vector<1x1x1x128xf32>
    %255 = vector.shape_cast %254 : vector<1x1x1x128xf32> to vector<1x128xf32>
    %256 = vector.shape_cast %193 : vector<1x128xf32> to vector<1x1x1x128xf32>
    tpu.vector_store %arg10[%c4_187, %c11_188, %c0_189, %c0_190], %256 {strides = array<i32>} : memref<5x12x1x128xf32, #tpu.memory_space<vmem>>, vector<1x1x1x128xf32>,
    %c4_191 = arith.constant 4 : index
    %c2_192 = arith.constant 2 : index
    %c0_193 = arith.constant 0 : index
    %c0_194 = arith.constant 0 : index
    %257 = vector.load %arg11[%c4_191, %c2_192, %c0_193, %c0_194] : memref<5x3x1x128xf32, #tpu.memory_space<vmem>>, vector<1x1x1x128xf32>
    %258 = vector.shape_cast %257 : vector<1x1x1x128xf32> to vector<1x128xf32>
    %259 = vector.shape_cast %214 : vector<1x128xf32> to vector<1x1x1x128xf32>
    tpu.vector_store %arg11[%c4_191, %c2_192, %c0_193, %c0_194], %259 {strides = array<i32>} : memref<5x3x1x128xf32, #tpu.memory_space<vmem>>, vector<1x1x1x128xf32>,
    %260 = arith.mulf %21, %116 : vector<1x128xf32>
    %261 = arith.mulf %23, %144 : vector<1x128xf32>
    %262 = arith.addf %260, %261 : vector<1x128xf32>
    %263 = arith.mulf %25, %172 : vector<1x128xf32>
    %264 = arith.addf %262, %263 : vector<1x128xf32>
    %265 = arith.mulf %21, %123 : vector<1x128xf32>
    %266 = arith.mulf %23, %151 : vector<1x128xf32>
    %267 = arith.addf %265, %266 : vector<1x128xf32>
    %268 = arith.mulf %25, %179 : vector<1x128xf32>
    %269 = arith.addf %267, %268 : vector<1x128xf32>
    %270 = arith.mulf %21, %130 : vector<1x128xf32>
    %271 = arith.mulf %23, %158 : vector<1x128xf32>
    %272 = arith.addf %270, %271 : vector<1x128xf32>
    %273 = arith.mulf %25, %186 : vector<1x128xf32>
    %274 = arith.addf %272, %273 : vector<1x128xf32>
    %275 = arith.mulf %21, %137 : vector<1x128xf32>
    %276 = arith.mulf %23, %165 : vector<1x128xf32>
    %277 = arith.addf %275, %276 : vector<1x128xf32>
    %278 = arith.mulf %25, %193 : vector<1x128xf32>
    %279 = arith.addf %277, %278 : vector<1x128xf32>
    %280 = arith.mulf %27, %116 : vector<1x128xf32>
    %281 = arith.mulf %29, %144 : vector<1x128xf32>
    %282 = arith.addf %280, %281 : vector<1x128xf32>
    %283 = arith.mulf %31, %172 : vector<1x128xf32>
    %284 = arith.addf %282, %283 : vector<1x128xf32>
    %285 = arith.mulf %27, %123 : vector<1x128xf32>
    %286 = arith.mulf %29, %151 : vector<1x128xf32>
    %287 = arith.addf %285, %286 : vector<1x128xf32>
    %288 = arith.mulf %31, %179 : vector<1x128xf32>
    %289 = arith.addf %287, %288 : vector<1x128xf32>
    %290 = arith.mulf %27, %130 : vector<1x128xf32>
    %291 = arith.mulf %29, %158 : vector<1x128xf32>
    %292 = arith.addf %290, %291 : vector<1x128xf32>
    %293 = arith.mulf %31, %186 : vector<1x128xf32>
    %294 = arith.addf %292, %293 : vector<1x128xf32>
    %295 = arith.mulf %27, %137 : vector<1x128xf32>
    %296 = arith.mulf %29, %165 : vector<1x128xf32>
    %297 = arith.addf %295, %296 : vector<1x128xf32>
    %298 = arith.mulf %31, %193 : vector<1x128xf32>
    %299 = arith.addf %297, %298 : vector<1x128xf32>
    %300 = arith.mulf %33, %116 : vector<1x128xf32>
    %301 = arith.mulf %35, %144 : vector<1x128xf32>
    %302 = arith.addf %300, %301 : vector<1x128xf32>
    %303 = arith.mulf %37, %172 : vector<1x128xf32>
    %304 = arith.addf %302, %303 : vector<1x128xf32>
    %305 = arith.mulf %33, %123 : vector<1x128xf32>
    %306 = arith.mulf %35, %151 : vector<1x128xf32>
    %307 = arith.addf %305, %306 : vector<1x128xf32>
    %308 = arith.mulf %37, %179 : vector<1x128xf32>
    %309 = arith.addf %307, %308 : vector<1x128xf32>
    %310 = arith.mulf %33, %130 : vector<1x128xf32>
    %311 = arith.mulf %35, %158 : vector<1x128xf32>
    %312 = arith.addf %310, %311 : vector<1x128xf32>
    %313 = arith.mulf %37, %186 : vector<1x128xf32>
    %314 = arith.addf %312, %313 : vector<1x128xf32>
    %315 = arith.mulf %33, %137 : vector<1x128xf32>
    %316 = arith.mulf %35, %165 : vector<1x128xf32>
    %317 = arith.addf %315, %316 : vector<1x128xf32>
    %318 = arith.mulf %37, %193 : vector<1x128xf32>
    %319 = arith.addf %317, %318 : vector<1x128xf32>
    %320 = arith.mulf %39, %116 : vector<1x128xf32>
    %321 = arith.mulf %41, %144 : vector<1x128xf32>
    %322 = arith.addf %320, %321 : vector<1x128xf32>
    %323 = arith.mulf %43, %172 : vector<1x128xf32>
    %324 = arith.addf %322, %323 : vector<1x128xf32>
    %325 = arith.mulf %39, %123 : vector<1x128xf32>
    %326 = arith.mulf %41, %151 : vector<1x128xf32>
    %327 = arith.addf %325, %326 : vector<1x128xf32>
    %328 = arith.mulf %43, %179 : vector<1x128xf32>
    %329 = arith.addf %327, %328 : vector<1x128xf32>
    %330 = arith.mulf %39, %130 : vector<1x128xf32>
    %331 = arith.mulf %41, %158 : vector<1x128xf32>
    %332 = arith.addf %330, %331 : vector<1x128xf32>
    %333 = arith.mulf %43, %186 : vector<1x128xf32>
    %334 = arith.addf %332, %333 : vector<1x128xf32>
    %335 = arith.mulf %39, %137 : vector<1x128xf32>
    %336 = arith.mulf %41, %165 : vector<1x128xf32>
    %337 = arith.addf %335, %336 : vector<1x128xf32>
    %338 = arith.mulf %43, %193 : vector<1x128xf32>
    %339 = arith.addf %337, %338 : vector<1x128xf32>
    %340 = arith.mulf %45, %116 : vector<1x128xf32>
    %341 = arith.mulf %47, %144 : vector<1x128xf32>
    %342 = arith.addf %340, %341 : vector<1x128xf32>
    %343 = arith.mulf %49, %172 : vector<1x128xf32>
    %344 = arith.addf %342, %343 : vector<1x128xf32>
    %345 = arith.mulf %45, %123 : vector<1x128xf32>
    %346 = arith.mulf %47, %151 : vector<1x128xf32>
    %347 = arith.addf %345, %346 : vector<1x128xf32>
    %348 = arith.mulf %49, %179 : vector<1x128xf32>
    %349 = arith.addf %347, %348 : vector<1x128xf32>
    %350 = arith.mulf %45, %130 : vector<1x128xf32>
    %351 = arith.mulf %47, %158 : vector<1x128xf32>
    %352 = arith.addf %350, %351 : vector<1x128xf32>
    %353 = arith.mulf %49, %186 : vector<1x128xf32>
    %354 = arith.addf %352, %353 : vector<1x128xf32>
    %355 = arith.mulf %45, %137 : vector<1x128xf32>
    %356 = arith.mulf %47, %165 : vector<1x128xf32>
    %357 = arith.addf %355, %356 : vector<1x128xf32>
    %358 = arith.mulf %49, %193 : vector<1x128xf32>
    %359 = arith.addf %357, %358 : vector<1x128xf32>
    %360 = arith.mulf %51, %116 : vector<1x128xf32>
    %361 = arith.mulf %53, %144 : vector<1x128xf32>
    %362 = arith.addf %360, %361 : vector<1x128xf32>
    %363 = arith.mulf %55, %172 : vector<1x128xf32>
    %364 = arith.addf %362, %363 : vector<1x128xf32>
    %365 = arith.mulf %51, %123 : vector<1x128xf32>
    %366 = arith.mulf %53, %151 : vector<1x128xf32>
    %367 = arith.addf %365, %366 : vector<1x128xf32>
    %368 = arith.mulf %55, %179 : vector<1x128xf32>
    %369 = arith.addf %367, %368 : vector<1x128xf32>
    %370 = arith.mulf %51, %130 : vector<1x128xf32>
    %371 = arith.mulf %53, %158 : vector<1x128xf32>
    %372 = arith.addf %370, %371 : vector<1x128xf32>
    %373 = arith.mulf %55, %186 : vector<1x128xf32>
    %374 = arith.addf %372, %373 : vector<1x128xf32>
    %375 = arith.mulf %51, %137 : vector<1x128xf32>
    %376 = arith.mulf %53, %165 : vector<1x128xf32>
    %377 = arith.addf %375, %376 : vector<1x128xf32>
    %378 = arith.mulf %55, %193 : vector<1x128xf32>
    %379 = arith.addf %377, %378 : vector<1x128xf32>
    %380 = arith.mulf %57, %116 : vector<1x128xf32>
    %381 = arith.mulf %59, %144 : vector<1x128xf32>
    %382 = arith.addf %380, %381 : vector<1x128xf32>
    %383 = arith.mulf %61, %172 : vector<1x128xf32>
    %384 = arith.addf %382, %383 : vector<1x128xf32>
    %385 = arith.mulf %57, %123 : vector<1x128xf32>
    %386 = arith.mulf %59, %151 : vector<1x128xf32>
    %387 = arith.addf %385, %386 : vector<1x128xf32>
    %388 = arith.mulf %61, %179 : vector<1x128xf32>
    %389 = arith.addf %387, %388 : vector<1x128xf32>
    %390 = arith.mulf %57, %130 : vector<1x128xf32>
    %391 = arith.mulf %59, %158 : vector<1x128xf32>
    %392 = arith.addf %390, %391 : vector<1x128xf32>
    %393 = arith.mulf %61, %186 : vector<1x128xf32>
    %394 = arith.addf %392, %393 : vector<1x128xf32>
    %395 = arith.mulf %57, %137 : vector<1x128xf32>
    %396 = arith.mulf %59, %165 : vector<1x128xf32>
    %397 = arith.addf %395, %396 : vector<1x128xf32>
    %398 = arith.mulf %61, %193 : vector<1x128xf32>
    %399 = arith.addf %397, %398 : vector<1x128xf32>
    %400 = arith.addf %1, %264 : vector<1x128xf32>
    %401 = arith.addf %400, %264 : vector<1x128xf32>
    %402 = arith.mulf %116, %344 : vector<1x128xf32>
    %403 = arith.mulf %144, %364 : vector<1x128xf32>
    %404 = arith.addf %402, %403 : vector<1x128xf32>
    %405 = arith.mulf %172, %384 : vector<1x128xf32>
    %406 = arith.addf %404, %405 : vector<1x128xf32>
    %407 = arith.addf %401, %406 : vector<1x128xf32>
    %408 = arith.addf %3, %269 : vector<1x128xf32>
    %409 = arith.addf %408, %284 : vector<1x128xf32>
    %410 = arith.mulf %116, %349 : vector<1x128xf32>
    %411 = arith.mulf %144, %369 : vector<1x128xf32>
    %412 = arith.addf %410, %411 : vector<1x128xf32>
    %413 = arith.mulf %172, %389 : vector<1x128xf32>
    %414 = arith.addf %412, %413 : vector<1x128xf32>
    %415 = arith.addf %409, %414 : vector<1x128xf32>
    %416 = arith.addf %5, %274 : vector<1x128xf32>
    %417 = arith.addf %416, %304 : vector<1x128xf32>
    %418 = arith.mulf %116, %354 : vector<1x128xf32>
    %419 = arith.mulf %144, %374 : vector<1x128xf32>
    %420 = arith.addf %418, %419 : vector<1x128xf32>
    %421 = arith.mulf %172, %394 : vector<1x128xf32>
    %422 = arith.addf %420, %421 : vector<1x128xf32>
    %423 = arith.addf %417, %422 : vector<1x128xf32>
    %424 = arith.addf %7, %279 : vector<1x128xf32>
    %425 = arith.addf %424, %324 : vector<1x128xf32>
    %426 = arith.mulf %116, %359 : vector<1x128xf32>
    %427 = arith.mulf %144, %379 : vector<1x128xf32>
    %428 = arith.addf %426, %427 : vector<1x128xf32>
    %429 = arith.mulf %172, %399 : vector<1x128xf32>
    %430 = arith.addf %428, %429 : vector<1x128xf32>
    %431 = arith.addf %425, %430 : vector<1x128xf32>
    %432 = arith.addf %9, %289 : vector<1x128xf32>
    %433 = arith.addf %432, %289 : vector<1x128xf32>
    %434 = arith.mulf %123, %349 : vector<1x128xf32>
    %435 = arith.mulf %151, %369 : vector<1x128xf32>
    %436 = arith.addf %434, %435 : vector<1x128xf32>
    %437 = arith.mulf %179, %389 : vector<1x128xf32>
    %438 = arith.addf %436, %437 : vector<1x128xf32>
    %439 = arith.addf %433, %438 : vector<1x128xf32>
    %440 = arith.addf %11, %294 : vector<1x128xf32>
    %441 = arith.addf %440, %309 : vector<1x128xf32>
    %442 = arith.mulf %123, %354 : vector<1x128xf32>
    %443 = arith.mulf %151, %374 : vector<1x128xf32>
    %444 = arith.addf %442, %443 : vector<1x128xf32>
    %445 = arith.mulf %179, %394 : vector<1x128xf32>
    %446 = arith.addf %444, %445 : vector<1x128xf32>
    %447 = arith.addf %441, %446 : vector<1x128xf32>
    %448 = arith.addf %13, %299 : vector<1x128xf32>
    %449 = arith.addf %448, %329 : vector<1x128xf32>
    %450 = arith.mulf %123, %359 : vector<1x128xf32>
    %451 = arith.mulf %151, %379 : vector<1x128xf32>
    %452 = arith.addf %450, %451 : vector<1x128xf32>
    %453 = arith.mulf %179, %399 : vector<1x128xf32>
    %454 = arith.addf %452, %453 : vector<1x128xf32>
    %455 = arith.addf %449, %454 : vector<1x128xf32>
    %456 = arith.addf %15, %314 : vector<1x128xf32>
    %457 = arith.addf %456, %314 : vector<1x128xf32>
    %458 = arith.mulf %130, %354 : vector<1x128xf32>
    %459 = arith.mulf %158, %374 : vector<1x128xf32>
    %460 = arith.addf %458, %459 : vector<1x128xf32>
    %461 = arith.mulf %186, %394 : vector<1x128xf32>
    %462 = arith.addf %460, %461 : vector<1x128xf32>
    %463 = arith.addf %457, %462 : vector<1x128xf32>
    %464 = arith.addf %17, %319 : vector<1x128xf32>
    %465 = arith.addf %464, %334 : vector<1x128xf32>
    %466 = arith.mulf %130, %359 : vector<1x128xf32>
    %467 = arith.mulf %158, %379 : vector<1x128xf32>
    %468 = arith.addf %466, %467 : vector<1x128xf32>
    %469 = arith.mulf %186, %399 : vector<1x128xf32>
    %470 = arith.addf %468, %469 : vector<1x128xf32>
    %471 = arith.addf %465, %470 : vector<1x128xf32>
    %472 = arith.addf %19, %339 : vector<1x128xf32>
    %473 = arith.addf %472, %339 : vector<1x128xf32>
    %474 = arith.mulf %137, %359 : vector<1x128xf32>
    %475 = arith.mulf %165, %379 : vector<1x128xf32>
    %476 = arith.addf %474, %475 : vector<1x128xf32>
    %477 = arith.mulf %193, %399 : vector<1x128xf32>
    %478 = arith.addf %476, %477 : vector<1x128xf32>
    %479 = arith.addf %473, %478 : vector<1x128xf32>
    %480 = arith.mulf %45, %200 : vector<1x128xf32>
    %481 = arith.mulf %47, %207 : vector<1x128xf32>
    %482 = arith.addf %480, %481 : vector<1x128xf32>
    %483 = arith.mulf %49, %214 : vector<1x128xf32>
    %484 = arith.addf %482, %483 : vector<1x128xf32>
    %485 = arith.addf %71, %484 : vector<1x128xf32>
    %486 = arith.mulf %51, %200 : vector<1x128xf32>
    %487 = arith.mulf %53, %207 : vector<1x128xf32>
    %488 = arith.addf %486, %487 : vector<1x128xf32>
    %489 = arith.mulf %55, %214 : vector<1x128xf32>
    %490 = arith.addf %488, %489 : vector<1x128xf32>
    %491 = arith.addf %73, %490 : vector<1x128xf32>
    %492 = arith.mulf %57, %200 : vector<1x128xf32>
    %493 = arith.mulf %59, %207 : vector<1x128xf32>
    %494 = arith.addf %492, %493 : vector<1x128xf32>
    %495 = arith.mulf %61, %214 : vector<1x128xf32>
    %496 = arith.addf %494, %495 : vector<1x128xf32>
    %497 = arith.addf %75, %496 : vector<1x128xf32>
    %498 = arith.mulf %21, %200 : vector<1x128xf32>
    %499 = arith.mulf %23, %207 : vector<1x128xf32>
    %500 = arith.addf %498, %499 : vector<1x128xf32>
    %501 = arith.mulf %25, %214 : vector<1x128xf32>
    %502 = arith.addf %500, %501 : vector<1x128xf32>
    %503 = arith.addf %63, %502 : vector<1x128xf32>
    %504 = arith.mulf %116, %485 : vector<1x128xf32>
    %505 = arith.mulf %144, %491 : vector<1x128xf32>
    %506 = arith.addf %504, %505 : vector<1x128xf32>
    %507 = arith.mulf %172, %497 : vector<1x128xf32>
    %508 = arith.addf %506, %507 : vector<1x128xf32>
    %509 = arith.addf %503, %508 : vector<1x128xf32>
    %510 = arith.mulf %27, %200 : vector<1x128xf32>
    %511 = arith.mulf %29, %207 : vector<1x128xf32>
    %512 = arith.addf %510, %511 : vector<1x128xf32>
    %513 = arith.mulf %31, %214 : vector<1x128xf32>
    %514 = arith.addf %512, %513 : vector<1x128xf32>
    %515 = arith.addf %65, %514 : vector<1x128xf32>
    %516 = arith.mulf %123, %485 : vector<1x128xf32>
    %517 = arith.mulf %151, %491 : vector<1x128xf32>
    %518 = arith.addf %516, %517 : vector<1x128xf32>
    %519 = arith.mulf %179, %497 : vector<1x128xf32>
    %520 = arith.addf %518, %519 : vector<1x128xf32>
    %521 = arith.addf %515, %520 : vector<1x128xf32>
    %522 = arith.mulf %33, %200 : vector<1x128xf32>
    %523 = arith.mulf %35, %207 : vector<1x128xf32>
    %524 = arith.addf %522, %523 : vector<1x128xf32>
    %525 = arith.mulf %37, %214 : vector<1x128xf32>
    %526 = arith.addf %524, %525 : vector<1x128xf32>
    %527 = arith.addf %67, %526 : vector<1x128xf32>
    %528 = arith.mulf %130, %485 : vector<1x128xf32>
    %529 = arith.mulf %158, %491 : vector<1x128xf32>
    %530 = arith.addf %528, %529 : vector<1x128xf32>
    %531 = arith.mulf %186, %497 : vector<1x128xf32>
    %532 = arith.addf %530, %531 : vector<1x128xf32>
    %533 = arith.addf %527, %532 : vector<1x128xf32>
    %534 = arith.mulf %39, %200 : vector<1x128xf32>
    %535 = arith.mulf %41, %207 : vector<1x128xf32>
    %536 = arith.addf %534, %535 : vector<1x128xf32>
    %537 = arith.mulf %43, %214 : vector<1x128xf32>
    %538 = arith.addf %536, %537 : vector<1x128xf32>
    %539 = arith.addf %69, %538 : vector<1x128xf32>
    %540 = arith.mulf %137, %485 : vector<1x128xf32>
    %541 = arith.mulf %165, %491 : vector<1x128xf32>
    %542 = arith.addf %540, %541 : vector<1x128xf32>
    %543 = arith.mulf %193, %497 : vector<1x128xf32>
    %544 = arith.addf %542, %543 : vector<1x128xf32>
    %545 = arith.addf %539, %544 : vector<1x128xf32>
    %c1_i32 = arith.constant 1 : i32
    %c4_i32 = arith.constant 4 : i32
    %546 = arith.addi %c1_i32, %c4_i32 : i32
    %c1_i32_195 = arith.constant 1 : i32
    %547:14 = scf.for %arg12 = %c1_i32 to %546 step %c1_i32_195 iter_args(%arg13 = %407, %arg14 = %415, %arg15 = %423, %arg16 = %431, %arg17 = %439, %arg18 = %447, %arg19 = %455, %arg20 = %463, %arg21 = %471, %arg22 = %479, %arg23 = %509, %arg24 = %521, %arg25 = %533, %arg26 = %545) -> (vector<1x128xf32>, vector<1x128xf32>, vector<1x128xf32>, vector<1x128xf32>, vector<1x128xf32>, vector<1x128xf32>, vector<1x128xf32>, vector<1x128xf32>, vector<1x128xf32>, vector<1x128xf32>, vector<1x128xf32>, vector<1x128xf32>, vector<1x128xf32>, vector<1x128xf32>)  : i32 {
      %c4_i32_214 = arith.constant 4 : i32
      %560 = arith.subi %c4_i32_214, %arg12 : i32
      %c0_215 = arith.constant 0 : index
      %c0_216 = arith.constant 0 : index
      %c0_217 = arith.constant 0 : index
      %561 = vector.load %arg3[%c0_215, %c0_216, %c0_217] : memref<16x1x128xf32, #tpu.memory_space<vmem>>, vector<1x1x128xf32>
      %562 = vector.shape_cast %561 : vector<1x1x128xf32> to vector<1x128xf32>
      %c1_218 = arith.constant 1 : index
      %c0_219 = arith.constant 0 : index
      %c0_220 = arith.constant 0 : index
      %563 = vector.load %arg3[%c1_218, %c0_219, %c0_220] : memref<16x1x128xf32, #tpu.memory_space<vmem>>, vector<1x1x128xf32>
      %564 = vector.shape_cast %563 : vector<1x1x128xf32> to vector<1x128xf32>
      %c2_221 = arith.constant 2 : index
      %c0_222 = arith.constant 0 : index
      %c0_223 = arith.constant 0 : index
      %565 = vector.load %arg3[%c2_221, %c0_222, %c0_223] : memref<16x1x128xf32, #tpu.memory_space<vmem>>, vector<1x1x128xf32>
      %566 = vector.shape_cast %565 : vector<1x1x128xf32> to vector<1x128xf32>
      %c3_224 = arith.constant 3 : index
      %c0_225 = arith.constant 0 : index
      %c0_226 = arith.constant 0 : index
      %567 = vector.load %arg3[%c3_224, %c0_225, %c0_226] : memref<16x1x128xf32, #tpu.memory_space<vmem>>, vector<1x1x128xf32>
      %568 = vector.shape_cast %567 : vector<1x1x128xf32> to vector<1x128xf32>
      %c4_227 = arith.constant 4 : index
      %c0_228 = arith.constant 0 : index
      %c0_229 = arith.constant 0 : index
      %569 = vector.load %arg3[%c4_227, %c0_228, %c0_229] : memref<16x1x128xf32, #tpu.memory_space<vmem>>, vector<1x1x128xf32>
      %570 = vector.shape_cast %569 : vector<1x1x128xf32> to vector<1x128xf32>
      %c5_230 = arith.constant 5 : index
      %c0_231 = arith.constant 0 : index
      %c0_232 = arith.constant 0 : index
      %571 = vector.load %arg3[%c5_230, %c0_231, %c0_232] : memref<16x1x128xf32, #tpu.memory_space<vmem>>, vector<1x1x128xf32>
      %572 = vector.shape_cast %571 : vector<1x1x128xf32> to vector<1x128xf32>
      %c6_233 = arith.constant 6 : index
      %c0_234 = arith.constant 0 : index
      %c0_235 = arith.constant 0 : index
      %573 = vector.load %arg3[%c6_233, %c0_234, %c0_235] : memref<16x1x128xf32, #tpu.memory_space<vmem>>, vector<1x1x128xf32>
      %574 = vector.shape_cast %573 : vector<1x1x128xf32> to vector<1x128xf32>
      %c7_236 = arith.constant 7 : index
      %c0_237 = arith.constant 0 : index
      %c0_238 = arith.constant 0 : index
      %575 = vector.load %arg3[%c7_236, %c0_237, %c0_238] : memref<16x1x128xf32, #tpu.memory_space<vmem>>, vector<1x1x128xf32>
      %576 = vector.shape_cast %575 : vector<1x1x128xf32> to vector<1x128xf32>
      %c8_239 = arith.constant 8 : index
      %c0_240 = arith.constant 0 : index
      %c0_241 = arith.constant 0 : index
      %577 = vector.load %arg3[%c8_239, %c0_240, %c0_241] : memref<16x1x128xf32, #tpu.memory_space<vmem>>, vector<1x1x128xf32>
      %578 = vector.shape_cast %577 : vector<1x1x128xf32> to vector<1x128xf32>
      %c9_242 = arith.constant 9 : index
      %c0_243 = arith.constant 0 : index
      %c0_244 = arith.constant 0 : index
      %579 = vector.load %arg3[%c9_242, %c0_243, %c0_244] : memref<16x1x128xf32, #tpu.memory_space<vmem>>, vector<1x1x128xf32>
      %580 = vector.shape_cast %579 : vector<1x1x128xf32> to vector<1x128xf32>
      %c10_245 = arith.constant 10 : index
      %c0_246 = arith.constant 0 : index
      %c0_247 = arith.constant 0 : index
      %581 = vector.load %arg3[%c10_245, %c0_246, %c0_247] : memref<16x1x128xf32, #tpu.memory_space<vmem>>, vector<1x1x128xf32>
      %582 = vector.shape_cast %581 : vector<1x1x128xf32> to vector<1x128xf32>
      %c11_248 = arith.constant 11 : index
      %c0_249 = arith.constant 0 : index
      %c0_250 = arith.constant 0 : index
      %583 = vector.load %arg3[%c11_248, %c0_249, %c0_250] : memref<16x1x128xf32, #tpu.memory_space<vmem>>, vector<1x1x128xf32>
      %584 = vector.shape_cast %583 : vector<1x1x128xf32> to vector<1x128xf32>
      %c12_251 = arith.constant 12 : index
      %c0_252 = arith.constant 0 : index
      %c0_253 = arith.constant 0 : index
      %585 = vector.load %arg3[%c12_251, %c0_252, %c0_253] : memref<16x1x128xf32, #tpu.memory_space<vmem>>, vector<1x1x128xf32>
      %586 = vector.shape_cast %585 : vector<1x1x128xf32> to vector<1x128xf32>
      %c13_254 = arith.constant 13 : index
      %c0_255 = arith.constant 0 : index
      %c0_256 = arith.constant 0 : index
      %587 = vector.load %arg3[%c13_254, %c0_255, %c0_256] : memref<16x1x128xf32, #tpu.memory_space<vmem>>, vector<1x1x128xf32>
      %588 = vector.shape_cast %587 : vector<1x1x128xf32> to vector<1x128xf32>
      %c14 = arith.constant 14 : index
      %c0_257 = arith.constant 0 : index
      %c0_258 = arith.constant 0 : index
      %589 = vector.load %arg3[%c14, %c0_257, %c0_258] : memref<16x1x128xf32, #tpu.memory_space<vmem>>, vector<1x1x128xf32>
      %590 = vector.shape_cast %589 : vector<1x1x128xf32> to vector<1x128xf32>
      %c15 = arith.constant 15 : index
      %c0_259 = arith.constant 0 : index
      %c0_260 = arith.constant 0 : index
      %591 = vector.load %arg3[%c15, %c0_259, %c0_260] : memref<16x1x128xf32, #tpu.memory_space<vmem>>, vector<1x1x128xf32>
      %592 = vector.shape_cast %591 : vector<1x1x128xf32> to vector<1x128xf32>
      %c0_261 = arith.constant 0 : index
      %c0_262 = arith.constant 0 : index
      %c0_263 = arith.constant 0 : index
      %593 = vector.load %arg4[%c0_261, %c0_262, %c0_263] : memref<12x1x128xf32, #tpu.memory_space<vmem>>, vector<1x1x128xf32>
      %594 = vector.shape_cast %593 : vector<1x1x128xf32> to vector<1x128xf32>
      %c1_264 = arith.constant 1 : index
      %c0_265 = arith.constant 0 : index
      %c0_266 = arith.constant 0 : index
      %595 = vector.load %arg4[%c1_264, %c0_265, %c0_266] : memref<12x1x128xf32, #tpu.memory_space<vmem>>, vector<1x1x128xf32>
      %596 = vector.shape_cast %595 : vector<1x1x128xf32> to vector<1x128xf32>
      %c2_267 = arith.constant 2 : index
      %c0_268 = arith.constant 0 : index
      %c0_269 = arith.constant 0 : index
      %597 = vector.load %arg4[%c2_267, %c0_268, %c0_269] : memref<12x1x128xf32, #tpu.memory_space<vmem>>, vector<1x1x128xf32>
      %598 = vector.shape_cast %597 : vector<1x1x128xf32> to vector<1x128xf32>
      %c3_270 = arith.constant 3 : index
      %c0_271 = arith.constant 0 : index
      %c0_272 = arith.constant 0 : index
      %599 = vector.load %arg4[%c3_270, %c0_271, %c0_272] : memref<12x1x128xf32, #tpu.memory_space<vmem>>, vector<1x1x128xf32>
      %600 = vector.shape_cast %599 : vector<1x1x128xf32> to vector<1x128xf32>
      %c4_273 = arith.constant 4 : index
      %c0_274 = arith.constant 0 : index
      %c0_275 = arith.constant 0 : index
      %601 = vector.load %arg4[%c4_273, %c0_274, %c0_275] : memref<12x1x128xf32, #tpu.memory_space<vmem>>, vector<1x1x128xf32>
      %602 = vector.shape_cast %601 : vector<1x1x128xf32> to vector<1x128xf32>
      %c5_276 = arith.constant 5 : index
      %c0_277 = arith.constant 0 : index
      %c0_278 = arith.constant 0 : index
      %603 = vector.load %arg4[%c5_276, %c0_277, %c0_278] : memref<12x1x128xf32, #tpu.memory_space<vmem>>, vector<1x1x128xf32>
      %604 = vector.shape_cast %603 : vector<1x1x128xf32> to vector<1x128xf32>
      %c6_279 = arith.constant 6 : index
      %c0_280 = arith.constant 0 : index
      %c0_281 = arith.constant 0 : index
      %605 = vector.load %arg4[%c6_279, %c0_280, %c0_281] : memref<12x1x128xf32, #tpu.memory_space<vmem>>, vector<1x1x128xf32>
      %606 = vector.shape_cast %605 : vector<1x1x128xf32> to vector<1x128xf32>
      %c7_282 = arith.constant 7 : index
      %c0_283 = arith.constant 0 : index
      %c0_284 = arith.constant 0 : index
      %607 = vector.load %arg4[%c7_282, %c0_283, %c0_284] : memref<12x1x128xf32, #tpu.memory_space<vmem>>, vector<1x1x128xf32>
      %608 = vector.shape_cast %607 : vector<1x1x128xf32> to vector<1x128xf32>
      %c8_285 = arith.constant 8 : index
      %c0_286 = arith.constant 0 : index
      %c0_287 = arith.constant 0 : index
      %609 = vector.load %arg4[%c8_285, %c0_286, %c0_287] : memref<12x1x128xf32, #tpu.memory_space<vmem>>, vector<1x1x128xf32>
      %610 = vector.shape_cast %609 : vector<1x1x128xf32> to vector<1x128xf32>
      %c9_288 = arith.constant 9 : index
      %c0_289 = arith.constant 0 : index
      %c0_290 = arith.constant 0 : index
      %611 = vector.load %arg4[%c9_288, %c0_289, %c0_290] : memref<12x1x128xf32, #tpu.memory_space<vmem>>, vector<1x1x128xf32>
      %612 = vector.shape_cast %611 : vector<1x1x128xf32> to vector<1x128xf32>
      %c10_291 = arith.constant 10 : index
      %c0_292 = arith.constant 0 : index
      %c0_293 = arith.constant 0 : index
      %613 = vector.load %arg4[%c10_291, %c0_292, %c0_293] : memref<12x1x128xf32, #tpu.memory_space<vmem>>, vector<1x1x128xf32>
      %614 = vector.shape_cast %613 : vector<1x1x128xf32> to vector<1x128xf32>
      %c11_294 = arith.constant 11 : index
      %c0_295 = arith.constant 0 : index
      %c0_296 = arith.constant 0 : index
      %615 = vector.load %arg4[%c11_294, %c0_295, %c0_296] : memref<12x1x128xf32, #tpu.memory_space<vmem>>, vector<1x1x128xf32>
      %616 = vector.shape_cast %615 : vector<1x1x128xf32> to vector<1x128xf32>
      %c0_297 = arith.constant 0 : index
      %c0_298 = arith.constant 0 : index
      %c0_299 = arith.constant 0 : index
      %617 = vector.load %arg5[%c0_297, %c0_298, %c0_299] : memref<4x1x128xf32, #tpu.memory_space<vmem>>, vector<1x1x128xf32>
      %618 = vector.shape_cast %617 : vector<1x1x128xf32> to vector<1x128xf32>
      %c1_300 = arith.constant 1 : index
      %c0_301 = arith.constant 0 : index
      %c0_302 = arith.constant 0 : index
      %619 = vector.load %arg5[%c1_300, %c0_301, %c0_302] : memref<4x1x128xf32, #tpu.memory_space<vmem>>, vector<1x1x128xf32>
      %620 = vector.shape_cast %619 : vector<1x1x128xf32> to vector<1x128xf32>
      %c2_303 = arith.constant 2 : index
      %c0_304 = arith.constant 0 : index
      %c0_305 = arith.constant 0 : index
      %621 = vector.load %arg5[%c2_303, %c0_304, %c0_305] : memref<4x1x128xf32, #tpu.memory_space<vmem>>, vector<1x1x128xf32>
      %622 = vector.shape_cast %621 : vector<1x1x128xf32> to vector<1x128xf32>
      %c3_306 = arith.constant 3 : index
      %c0_307 = arith.constant 0 : index
      %c0_308 = arith.constant 0 : index
      %623 = vector.load %arg5[%c3_306, %c0_307, %c0_308] : memref<4x1x128xf32, #tpu.memory_space<vmem>>, vector<1x1x128xf32>
      %624 = vector.shape_cast %623 : vector<1x1x128xf32> to vector<1x128xf32>
      %625 = arith.mulf %arg13, %562 : vector<1x128xf32>
      %626 = arith.mulf %arg14, %570 : vector<1x128xf32>
      %627 = arith.addf %625, %626 : vector<1x128xf32>
      %628 = arith.mulf %arg15, %578 : vector<1x128xf32>
      %629 = arith.addf %627, %628 : vector<1x128xf32>
      %630 = arith.mulf %arg16, %586 : vector<1x128xf32>
      %631 = arith.addf %629, %630 : vector<1x128xf32>
      %632 = arith.mulf %arg13, %564 : vector<1x128xf32>
      %633 = arith.mulf %arg14, %572 : vector<1x128xf32>
      %634 = arith.addf %632, %633 : vector<1x128xf32>
      %635 = arith.mulf %arg15, %580 : vector<1x128xf32>
      %636 = arith.addf %634, %635 : vector<1x128xf32>
      %637 = arith.mulf %arg16, %588 : vector<1x128xf32>
      %638 = arith.addf %636, %637 : vector<1x128xf32>
      %639 = arith.mulf %arg13, %566 : vector<1x128xf32>
      %640 = arith.mulf %arg14, %574 : vector<1x128xf32>
      %641 = arith.addf %639, %640 : vector<1x128xf32>
      %642 = arith.mulf %arg15, %582 : vector<1x128xf32>
      %643 = arith.addf %641, %642 : vector<1x128xf32>
      %644 = arith.mulf %arg16, %590 : vector<1x128xf32>
      %645 = arith.addf %643, %644 : vector<1x128xf32>
      %646 = arith.mulf %arg13, %568 : vector<1x128xf32>
      %647 = arith.mulf %arg14, %576 : vector<1x128xf32>
      %648 = arith.addf %646, %647 : vector<1x128xf32>
      %649 = arith.mulf %arg15, %584 : vector<1x128xf32>
      %650 = arith.addf %648, %649 : vector<1x128xf32>
      %651 = arith.mulf %arg16, %592 : vector<1x128xf32>
      %652 = arith.addf %650, %651 : vector<1x128xf32>
      %653 = arith.mulf %arg14, %562 : vector<1x128xf32>
      %654 = arith.mulf %arg17, %570 : vector<1x128xf32>
      %655 = arith.addf %653, %654 : vector<1x128xf32>
      %656 = arith.mulf %arg18, %578 : vector<1x128xf32>
      %657 = arith.addf %655, %656 : vector<1x128xf32>
      %658 = arith.mulf %arg19, %586 : vector<1x128xf32>
      %659 = arith.addf %657, %658 : vector<1x128xf32>
      %660 = arith.mulf %arg14, %564 : vector<1x128xf32>
      %661 = arith.mulf %arg17, %572 : vector<1x128xf32>
      %662 = arith.addf %660, %661 : vector<1x128xf32>
      %663 = arith.mulf %arg18, %580 : vector<1x128xf32>
      %664 = arith.addf %662, %663 : vector<1x128xf32>
      %665 = arith.mulf %arg19, %588 : vector<1x128xf32>
      %666 = arith.addf %664, %665 : vector<1x128xf32>
      %667 = arith.mulf %arg14, %566 : vector<1x128xf32>
      %668 = arith.mulf %arg17, %574 : vector<1x128xf32>
      %669 = arith.addf %667, %668 : vector<1x128xf32>
      %670 = arith.mulf %arg18, %582 : vector<1x128xf32>
      %671 = arith.addf %669, %670 : vector<1x128xf32>
      %672 = arith.mulf %arg19, %590 : vector<1x128xf32>
      %673 = arith.addf %671, %672 : vector<1x128xf32>
      %674 = arith.mulf %arg14, %568 : vector<1x128xf32>
      %675 = arith.mulf %arg17, %576 : vector<1x128xf32>
      %676 = arith.addf %674, %675 : vector<1x128xf32>
      %677 = arith.mulf %arg18, %584 : vector<1x128xf32>
      %678 = arith.addf %676, %677 : vector<1x128xf32>
      %679 = arith.mulf %arg19, %592 : vector<1x128xf32>
      %680 = arith.addf %678, %679 : vector<1x128xf32>
      %681 = arith.mulf %arg15, %562 : vector<1x128xf32>
      %682 = arith.mulf %arg18, %570 : vector<1x128xf32>
      %683 = arith.addf %681, %682 : vector<1x128xf32>
      %684 = arith.mulf %arg20, %578 : vector<1x128xf32>
      %685 = arith.addf %683, %684 : vector<1x128xf32>
      %686 = arith.mulf %arg21, %586 : vector<1x128xf32>
      %687 = arith.addf %685, %686 : vector<1x128xf32>
      %688 = arith.mulf %arg15, %564 : vector<1x128xf32>
      %689 = arith.mulf %arg18, %572 : vector<1x128xf32>
      %690 = arith.addf %688, %689 : vector<1x128xf32>
      %691 = arith.mulf %arg20, %580 : vector<1x128xf32>
      %692 = arith.addf %690, %691 : vector<1x128xf32>
      %693 = arith.mulf %arg21, %588 : vector<1x128xf32>
      %694 = arith.addf %692, %693 : vector<1x128xf32>
      %695 = arith.mulf %arg15, %566 : vector<1x128xf32>
      %696 = arith.mulf %arg18, %574 : vector<1x128xf32>
      %697 = arith.addf %695, %696 : vector<1x128xf32>
      %698 = arith.mulf %arg20, %582 : vector<1x128xf32>
      %699 = arith.addf %697, %698 : vector<1x128xf32>
      %700 = arith.mulf %arg21, %590 : vector<1x128xf32>
      %701 = arith.addf %699, %700 : vector<1x128xf32>
      %702 = arith.mulf %arg15, %568 : vector<1x128xf32>
      %703 = arith.mulf %arg18, %576 : vector<1x128xf32>
      %704 = arith.addf %702, %703 : vector<1x128xf32>
      %705 = arith.mulf %arg20, %584 : vector<1x128xf32>
      %706 = arith.addf %704, %705 : vector<1x128xf32>
      %707 = arith.mulf %arg21, %592 : vector<1x128xf32>
      %708 = arith.addf %706, %707 : vector<1x128xf32>
      %709 = arith.mulf %arg16, %562 : vector<1x128xf32>
      %710 = arith.mulf %arg19, %570 : vector<1x128xf32>
      %711 = arith.addf %709, %710 : vector<1x128xf32>
      %712 = arith.mulf %arg21, %578 : vector<1x128xf32>
      %713 = arith.addf %711, %712 : vector<1x128xf32>
      %714 = arith.mulf %arg22, %586 : vector<1x128xf32>
      %715 = arith.addf %713, %714 : vector<1x128xf32>
      %716 = arith.mulf %arg16, %564 : vector<1x128xf32>
      %717 = arith.mulf %arg19, %572 : vector<1x128xf32>
      %718 = arith.addf %716, %717 : vector<1x128xf32>
      %719 = arith.mulf %arg21, %580 : vector<1x128xf32>
      %720 = arith.addf %718, %719 : vector<1x128xf32>
      %721 = arith.mulf %arg22, %588 : vector<1x128xf32>
      %722 = arith.addf %720, %721 : vector<1x128xf32>
      %723 = arith.mulf %arg16, %566 : vector<1x128xf32>
      %724 = arith.mulf %arg19, %574 : vector<1x128xf32>
      %725 = arith.addf %723, %724 : vector<1x128xf32>
      %726 = arith.mulf %arg21, %582 : vector<1x128xf32>
      %727 = arith.addf %725, %726 : vector<1x128xf32>
      %728 = arith.mulf %arg22, %590 : vector<1x128xf32>
      %729 = arith.addf %727, %728 : vector<1x128xf32>
      %730 = arith.mulf %arg16, %568 : vector<1x128xf32>
      %731 = arith.mulf %arg19, %576 : vector<1x128xf32>
      %732 = arith.addf %730, %731 : vector<1x128xf32>
      %733 = arith.mulf %arg21, %584 : vector<1x128xf32>
      %734 = arith.addf %732, %733 : vector<1x128xf32>
      %735 = arith.mulf %arg22, %592 : vector<1x128xf32>
      %736 = arith.addf %734, %735 : vector<1x128xf32>
      %737 = arith.mulf %arg13, %594 : vector<1x128xf32>
      %738 = arith.mulf %arg14, %600 : vector<1x128xf32>
      %739 = arith.addf %737, %738 : vector<1x128xf32>
      %740 = arith.mulf %arg15, %606 : vector<1x128xf32>
      %741 = arith.addf %739, %740 : vector<1x128xf32>
      %742 = arith.mulf %arg16, %612 : vector<1x128xf32>
      %743 = arith.addf %741, %742 : vector<1x128xf32>
      %744 = arith.mulf %arg13, %596 : vector<1x128xf32>
      %745 = arith.mulf %arg14, %602 : vector<1x128xf32>
      %746 = arith.addf %744, %745 : vector<1x128xf32>
      %747 = arith.mulf %arg15, %608 : vector<1x128xf32>
      %748 = arith.addf %746, %747 : vector<1x128xf32>
      %749 = arith.mulf %arg16, %614 : vector<1x128xf32>
      %750 = arith.addf %748, %749 : vector<1x128xf32>
      %751 = arith.mulf %arg13, %598 : vector<1x128xf32>
      %752 = arith.mulf %arg14, %604 : vector<1x128xf32>
      %753 = arith.addf %751, %752 : vector<1x128xf32>
      %754 = arith.mulf %arg15, %610 : vector<1x128xf32>
      %755 = arith.addf %753, %754 : vector<1x128xf32>
      %756 = arith.mulf %arg16, %616 : vector<1x128xf32>
      %757 = arith.addf %755, %756 : vector<1x128xf32>
      %758 = arith.mulf %arg14, %594 : vector<1x128xf32>
      %759 = arith.mulf %arg17, %600 : vector<1x128xf32>
      %760 = arith.addf %758, %759 : vector<1x128xf32>
      %761 = arith.mulf %arg18, %606 : vector<1x128xf32>
      %762 = arith.addf %760, %761 : vector<1x128xf32>
      %763 = arith.mulf %arg19, %612 : vector<1x128xf32>
      %764 = arith.addf %762, %763 : vector<1x128xf32>
      %765 = arith.mulf %arg14, %596 : vector<1x128xf32>
      %766 = arith.mulf %arg17, %602 : vector<1x128xf32>
      %767 = arith.addf %765, %766 : vector<1x128xf32>
      %768 = arith.mulf %arg18, %608 : vector<1x128xf32>
      %769 = arith.addf %767, %768 : vector<1x128xf32>
      %770 = arith.mulf %arg19, %614 : vector<1x128xf32>
      %771 = arith.addf %769, %770 : vector<1x128xf32>
      %772 = arith.mulf %arg14, %598 : vector<1x128xf32>
      %773 = arith.mulf %arg17, %604 : vector<1x128xf32>
      %774 = arith.addf %772, %773 : vector<1x128xf32>
      %775 = arith.mulf %arg18, %610 : vector<1x128xf32>
      %776 = arith.addf %774, %775 : vector<1x128xf32>
      %777 = arith.mulf %arg19, %616 : vector<1x128xf32>
      %778 = arith.addf %776, %777 : vector<1x128xf32>
      %779 = arith.mulf %arg15, %594 : vector<1x128xf32>
      %780 = arith.mulf %arg18, %600 : vector<1x128xf32>
      %781 = arith.addf %779, %780 : vector<1x128xf32>
      %782 = arith.mulf %arg20, %606 : vector<1x128xf32>
      %783 = arith.addf %781, %782 : vector<1x128xf32>
      %784 = arith.mulf %arg21, %612 : vector<1x128xf32>
      %785 = arith.addf %783, %784 : vector<1x128xf32>
      %786 = arith.mulf %arg15, %596 : vector<1x128xf32>
      %787 = arith.mulf %arg18, %602 : vector<1x128xf32>
      %788 = arith.addf %786, %787 : vector<1x128xf32>
      %789 = arith.mulf %arg20, %608 : vector<1x128xf32>
      %790 = arith.addf %788, %789 : vector<1x128xf32>
      %791 = arith.mulf %arg21, %614 : vector<1x128xf32>
      %792 = arith.addf %790, %791 : vector<1x128xf32>
      %793 = arith.mulf %arg15, %598 : vector<1x128xf32>
      %794 = arith.mulf %arg18, %604 : vector<1x128xf32>
      %795 = arith.addf %793, %794 : vector<1x128xf32>
      %796 = arith.mulf %arg20, %610 : vector<1x128xf32>
      %797 = arith.addf %795, %796 : vector<1x128xf32>
      %798 = arith.mulf %arg21, %616 : vector<1x128xf32>
      %799 = arith.addf %797, %798 : vector<1x128xf32>
      %800 = arith.mulf %arg16, %594 : vector<1x128xf32>
      %801 = arith.mulf %arg19, %600 : vector<1x128xf32>
      %802 = arith.addf %800, %801 : vector<1x128xf32>
      %803 = arith.mulf %arg21, %606 : vector<1x128xf32>
      %804 = arith.addf %802, %803 : vector<1x128xf32>
      %805 = arith.mulf %arg22, %612 : vector<1x128xf32>
      %806 = arith.addf %804, %805 : vector<1x128xf32>
      %807 = arith.mulf %arg16, %596 : vector<1x128xf32>
      %808 = arith.mulf %arg19, %602 : vector<1x128xf32>
      %809 = arith.addf %807, %808 : vector<1x128xf32>
      %810 = arith.mulf %arg21, %608 : vector<1x128xf32>
      %811 = arith.addf %809, %810 : vector<1x128xf32>
      %812 = arith.mulf %arg22, %614 : vector<1x128xf32>
      %813 = arith.addf %811, %812 : vector<1x128xf32>
      %814 = arith.mulf %arg16, %598 : vector<1x128xf32>
      %815 = arith.mulf %arg19, %604 : vector<1x128xf32>
      %816 = arith.addf %814, %815 : vector<1x128xf32>
      %817 = arith.mulf %arg21, %610 : vector<1x128xf32>
      %818 = arith.addf %816, %817 : vector<1x128xf32>
      %819 = arith.mulf %arg22, %616 : vector<1x128xf32>
      %820 = arith.addf %818, %819 : vector<1x128xf32>
      %821 = arith.mulf %arg13, %618 : vector<1x128xf32>
      %822 = arith.mulf %arg14, %620 : vector<1x128xf32>
      %823 = arith.addf %821, %822 : vector<1x128xf32>
      %824 = arith.mulf %arg15, %622 : vector<1x128xf32>
      %825 = arith.addf %823, %824 : vector<1x128xf32>
      %826 = arith.mulf %arg16, %624 : vector<1x128xf32>
      %827 = arith.addf %825, %826 : vector<1x128xf32>
      %828 = arith.addf %arg23, %827 : vector<1x128xf32>
      %829 = arith.mulf %arg14, %618 : vector<1x128xf32>
      %830 = arith.mulf %arg17, %620 : vector<1x128xf32>
      %831 = arith.addf %829, %830 : vector<1x128xf32>
      %832 = arith.mulf %arg18, %622 : vector<1x128xf32>
      %833 = arith.addf %831, %832 : vector<1x128xf32>
      %834 = arith.mulf %arg19, %624 : vector<1x128xf32>
      %835 = arith.addf %833, %834 : vector<1x128xf32>
      %836 = arith.addf %arg24, %835 : vector<1x128xf32>
      %837 = arith.mulf %arg15, %618 : vector<1x128xf32>
      %838 = arith.mulf %arg18, %620 : vector<1x128xf32>
      %839 = arith.addf %837, %838 : vector<1x128xf32>
      %840 = arith.mulf %arg20, %622 : vector<1x128xf32>
      %841 = arith.addf %839, %840 : vector<1x128xf32>
      %842 = arith.mulf %arg21, %624 : vector<1x128xf32>
      %843 = arith.addf %841, %842 : vector<1x128xf32>
      %844 = arith.addf %arg25, %843 : vector<1x128xf32>
      %845 = arith.mulf %arg16, %618 : vector<1x128xf32>
      %846 = arith.mulf %arg19, %620 : vector<1x128xf32>
      %847 = arith.addf %845, %846 : vector<1x128xf32>
      %848 = arith.mulf %arg21, %622 : vector<1x128xf32>
      %849 = arith.addf %847, %848 : vector<1x128xf32>
      %850 = arith.mulf %arg22, %624 : vector<1x128xf32>
      %851 = arith.addf %849, %850 : vector<1x128xf32>
      %852 = arith.addf %arg26, %851 : vector<1x128xf32>
      %853 = arith.index_cast %560 : i32 to index
      %c0_309 = arith.constant 0 : index
      %c0_310 = arith.constant 0 : index
      %c0_311 = arith.constant 0 : index
      %854 = vector.load %arg1[%853, %c0_309, %c0_310, %c0_311] : memref<5x49x1x128xf32, #tpu.memory_space<vmem>>, vector<1x1x1x128xf32>
      %855 = vector.shape_cast %854 : vector<1x1x1x128xf32> to vector<1x128xf32>
      %856 = arith.mulf %562, %631 : vector<1x128xf32>
      %857 = arith.mulf %570, %659 : vector<1x128xf32>
      %858 = arith.addf %856, %857 : vector<1x128xf32>
      %859 = arith.mulf %578, %687 : vector<1x128xf32>
      %860 = arith.addf %858, %859 : vector<1x128xf32>
      %861 = arith.mulf %586, %715 : vector<1x128xf32>
      %862 = arith.addf %860, %861 : vector<1x128xf32>
      %863 = arith.addf %855, %862 : vector<1x128xf32>
      %864 = arith.index_cast %560 : i32 to index
      %c1_312 = arith.constant 1 : index
      %c0_313 = arith.constant 0 : index
      %c0_314 = arith.constant 0 : index
      %865 = vector.load %arg1[%864, %c1_312, %c0_313, %c0_314] : memref<5x49x1x128xf32, #tpu.memory_space<vmem>>, vector<1x1x1x128xf32>
      %866 = vector.shape_cast %865 : vector<1x1x1x128xf32> to vector<1x128xf32>
      %867 = arith.mulf %562, %638 : vector<1x128xf32>
      %868 = arith.mulf %570, %666 : vector<1x128xf32>
      %869 = arith.addf %867, %868 : vector<1x128xf32>
      %870 = arith.mulf %578, %694 : vector<1x128xf32>
      %871 = arith.addf %869, %870 : vector<1x128xf32>
      %872 = arith.mulf %586, %722 : vector<1x128xf32>
      %873 = arith.addf %871, %872 : vector<1x128xf32>
      %874 = arith.addf %866, %873 : vector<1x128xf32>
      %875 = arith.index_cast %560 : i32 to index
      %c2_315 = arith.constant 2 : index
      %c0_316 = arith.constant 0 : index
      %c0_317 = arith.constant 0 : index
      %876 = vector.load %arg1[%875, %c2_315, %c0_316, %c0_317] : memref<5x49x1x128xf32, #tpu.memory_space<vmem>>, vector<1x1x1x128xf32>
      %877 = vector.shape_cast %876 : vector<1x1x1x128xf32> to vector<1x128xf32>
      %878 = arith.mulf %562, %645 : vector<1x128xf32>
      %879 = arith.mulf %570, %673 : vector<1x128xf32>
      %880 = arith.addf %878, %879 : vector<1x128xf32>
      %881 = arith.mulf %578, %701 : vector<1x128xf32>
      %882 = arith.addf %880, %881 : vector<1x128xf32>
      %883 = arith.mulf %586, %729 : vector<1x128xf32>
      %884 = arith.addf %882, %883 : vector<1x128xf32>
      %885 = arith.addf %877, %884 : vector<1x128xf32>
      %886 = arith.index_cast %560 : i32 to index
      %c3_318 = arith.constant 3 : index
      %c0_319 = arith.constant 0 : index
      %c0_320 = arith.constant 0 : index
      %887 = vector.load %arg1[%886, %c3_318, %c0_319, %c0_320] : memref<5x49x1x128xf32, #tpu.memory_space<vmem>>, vector<1x1x1x128xf32>
      %888 = vector.shape_cast %887 : vector<1x1x1x128xf32> to vector<1x128xf32>
      %889 = arith.mulf %562, %652 : vector<1x128xf32>
      %890 = arith.mulf %570, %680 : vector<1x128xf32>
      %891 = arith.addf %889, %890 : vector<1x128xf32>
      %892 = arith.mulf %578, %708 : vector<1x128xf32>
      %893 = arith.addf %891, %892 : vector<1x128xf32>
      %894 = arith.mulf %586, %736 : vector<1x128xf32>
      %895 = arith.addf %893, %894 : vector<1x128xf32>
      %896 = arith.addf %888, %895 : vector<1x128xf32>
      %897 = arith.index_cast %560 : i32 to index
      %c8_321 = arith.constant 8 : index
      %c0_322 = arith.constant 0 : index
      %c0_323 = arith.constant 0 : index
      %898 = vector.load %arg1[%897, %c8_321, %c0_322, %c0_323] : memref<5x49x1x128xf32, #tpu.memory_space<vmem>>, vector<1x1x1x128xf32>
      %899 = vector.shape_cast %898 : vector<1x1x1x128xf32> to vector<1x128xf32>
      %900 = arith.mulf %564, %638 : vector<1x128xf32>
      %901 = arith.mulf %572, %666 : vector<1x128xf32>
      %902 = arith.addf %900, %901 : vector<1x128xf32>
      %903 = arith.mulf %580, %694 : vector<1x128xf32>
      %904 = arith.addf %902, %903 : vector<1x128xf32>
      %905 = arith.mulf %588, %722 : vector<1x128xf32>
      %906 = arith.addf %904, %905 : vector<1x128xf32>
      %907 = arith.addf %899, %906 : vector<1x128xf32>
      %908 = arith.index_cast %560 : i32 to index
      %c9_324 = arith.constant 9 : index
      %c0_325 = arith.constant 0 : index
      %c0_326 = arith.constant 0 : index
      %909 = vector.load %arg1[%908, %c9_324, %c0_325, %c0_326] : memref<5x49x1x128xf32, #tpu.memory_space<vmem>>, vector<1x1x1x128xf32>
      %910 = vector.shape_cast %909 : vector<1x1x1x128xf32> to vector<1x128xf32>
      %911 = arith.mulf %564, %645 : vector<1x128xf32>
      %912 = arith.mulf %572, %673 : vector<1x128xf32>
      %913 = arith.addf %911, %912 : vector<1x128xf32>
      %914 = arith.mulf %580, %701 : vector<1x128xf32>
      %915 = arith.addf %913, %914 : vector<1x128xf32>
      %916 = arith.mulf %588, %729 : vector<1x128xf32>
      %917 = arith.addf %915, %916 : vector<1x128xf32>
      %918 = arith.addf %910, %917 : vector<1x128xf32>
      %919 = arith.index_cast %560 : i32 to index
      %c10_327 = arith.constant 10 : index
      %c0_328 = arith.constant 0 : index
      %c0_329 = arith.constant 0 : index
      %920 = vector.load %arg1[%919, %c10_327, %c0_328, %c0_329] : memref<5x49x1x128xf32, #tpu.memory_space<vmem>>, vector<1x1x1x128xf32>
      %921 = vector.shape_cast %920 : vector<1x1x1x128xf32> to vector<1x128xf32>
      %922 = arith.mulf %564, %652 : vector<1x128xf32>
      %923 = arith.mulf %572, %680 : vector<1x128xf32>
      %924 = arith.addf %922, %923 : vector<1x128xf32>
      %925 = arith.mulf %580, %708 : vector<1x128xf32>
      %926 = arith.addf %924, %925 : vector<1x128xf32>
      %927 = arith.mulf %588, %736 : vector<1x128xf32>
      %928 = arith.addf %926, %927 : vector<1x128xf32>
      %929 = arith.addf %921, %928 : vector<1x128xf32>
      %930 = arith.index_cast %560 : i32 to index
      %c16_330 = arith.constant 16 : index
      %c0_331 = arith.constant 0 : index
      %c0_332 = arith.constant 0 : index
      %931 = vector.load %arg1[%930, %c16_330, %c0_331, %c0_332] : memref<5x49x1x128xf32, #tpu.memory_space<vmem>>, vector<1x1x1x128xf32>
      %932 = vector.shape_cast %931 : vector<1x1x1x128xf32> to vector<1x128xf32>
      %933 = arith.mulf %566, %645 : vector<1x128xf32>
      %934 = arith.mulf %574, %673 : vector<1x128xf32>
      %935 = arith.addf %933, %934 : vector<1x128xf32>
      %936 = arith.mulf %582, %701 : vector<1x128xf32>
      %937 = arith.addf %935, %936 : vector<1x128xf32>
      %938 = arith.mulf %590, %729 : vector<1x128xf32>
      %939 = arith.addf %937, %938 : vector<1x128xf32>
      %940 = arith.addf %932, %939 : vector<1x128xf32>
      %941 = arith.index_cast %560 : i32 to index
      %c17_333 = arith.constant 17 : index
      %c0_334 = arith.constant 0 : index
      %c0_335 = arith.constant 0 : index
      %942 = vector.load %arg1[%941, %c17_333, %c0_334, %c0_335] : memref<5x49x1x128xf32, #tpu.memory_space<vmem>>, vector<1x1x1x128xf32>
      %943 = vector.shape_cast %942 : vector<1x1x1x128xf32> to vector<1x128xf32>
      %944 = arith.mulf %566, %652 : vector<1x128xf32>
      %945 = arith.mulf %574, %680 : vector<1x128xf32>
      %946 = arith.addf %944, %945 : vector<1x128xf32>
      %947 = arith.mulf %582, %708 : vector<1x128xf32>
      %948 = arith.addf %946, %947 : vector<1x128xf32>
      %949 = arith.mulf %590, %736 : vector<1x128xf32>
      %950 = arith.addf %948, %949 : vector<1x128xf32>
      %951 = arith.addf %943, %950 : vector<1x128xf32>
      %952 = arith.index_cast %560 : i32 to index
      %c24_336 = arith.constant 24 : index
      %c0_337 = arith.constant 0 : index
      %c0_338 = arith.constant 0 : index
      %953 = vector.load %arg1[%952, %c24_336, %c0_337, %c0_338] : memref<5x49x1x128xf32, #tpu.memory_space<vmem>>, vector<1x1x1x128xf32>
      %954 = vector.shape_cast %953 : vector<1x1x1x128xf32> to vector<1x128xf32>
      %955 = arith.mulf %568, %652 : vector<1x128xf32>
      %956 = arith.mulf %576, %680 : vector<1x128xf32>
      %957 = arith.addf %955, %956 : vector<1x128xf32>
      %958 = arith.mulf %584, %708 : vector<1x128xf32>
      %959 = arith.addf %957, %958 : vector<1x128xf32>
      %960 = arith.mulf %592, %736 : vector<1x128xf32>
      %961 = arith.addf %959, %960 : vector<1x128xf32>
      %962 = arith.addf %954, %961 : vector<1x128xf32>
      %963 = arith.index_cast %560 : i32 to index
      %c4_339 = arith.constant 4 : index
      %c0_340 = arith.constant 0 : index
      %c0_341 = arith.constant 0 : index
      %964 = vector.load %arg1[%963, %c4_339, %c0_340, %c0_341] : memref<5x49x1x128xf32, #tpu.memory_space<vmem>>, vector<1x1x1x128xf32>
      %965 = vector.shape_cast %964 : vector<1x1x1x128xf32> to vector<1x128xf32>
      %966 = arith.mulf %562, %743 : vector<1x128xf32>
      %967 = arith.mulf %570, %764 : vector<1x128xf32>
      %968 = arith.addf %966, %967 : vector<1x128xf32>
      %969 = arith.mulf %578, %785 : vector<1x128xf32>
      %970 = arith.addf %968, %969 : vector<1x128xf32>
      %971 = arith.mulf %586, %806 : vector<1x128xf32>
      %972 = arith.addf %970, %971 : vector<1x128xf32>
      %973 = arith.addf %965, %972 : vector<1x128xf32>
      %974 = arith.index_cast %560 : i32 to index
      %c5_342 = arith.constant 5 : index
      %c0_343 = arith.constant 0 : index
      %c0_344 = arith.constant 0 : index
      %975 = vector.load %arg1[%974, %c5_342, %c0_343, %c0_344] : memref<5x49x1x128xf32, #tpu.memory_space<vmem>>, vector<1x1x1x128xf32>
      %976 = vector.shape_cast %975 : vector<1x1x1x128xf32> to vector<1x128xf32>
      %977 = arith.mulf %562, %750 : vector<1x128xf32>
      %978 = arith.mulf %570, %771 : vector<1x128xf32>
      %979 = arith.addf %977, %978 : vector<1x128xf32>
      %980 = arith.mulf %578, %792 : vector<1x128xf32>
      %981 = arith.addf %979, %980 : vector<1x128xf32>
      %982 = arith.mulf %586, %813 : vector<1x128xf32>
      %983 = arith.addf %981, %982 : vector<1x128xf32>
      %984 = arith.addf %976, %983 : vector<1x128xf32>
      %985 = arith.index_cast %560 : i32 to index
      %c6_345 = arith.constant 6 : index
      %c0_346 = arith.constant 0 : index
      %c0_347 = arith.constant 0 : index
      %986 = vector.load %arg1[%985, %c6_345, %c0_346, %c0_347] : memref<5x49x1x128xf32, #tpu.memory_space<vmem>>, vector<1x1x1x128xf32>
      %987 = vector.shape_cast %986 : vector<1x1x1x128xf32> to vector<1x128xf32>
      %988 = arith.mulf %562, %757 : vector<1x128xf32>
      %989 = arith.mulf %570, %778 : vector<1x128xf32>
      %990 = arith.addf %988, %989 : vector<1x128xf32>
      %991 = arith.mulf %578, %799 : vector<1x128xf32>
      %992 = arith.addf %990, %991 : vector<1x128xf32>
      %993 = arith.mulf %586, %820 : vector<1x128xf32>
      %994 = arith.addf %992, %993 : vector<1x128xf32>
      %995 = arith.addf %987, %994 : vector<1x128xf32>
      %996 = arith.index_cast %560 : i32 to index
      %c11_348 = arith.constant 11 : index
      %c0_349 = arith.constant 0 : index
      %c0_350 = arith.constant 0 : index
      %997 = vector.load %arg1[%996, %c11_348, %c0_349, %c0_350] : memref<5x49x1x128xf32, #tpu.memory_space<vmem>>, vector<1x1x1x128xf32>
      %998 = vector.shape_cast %997 : vector<1x1x1x128xf32> to vector<1x128xf32>
      %999 = arith.mulf %564, %743 : vector<1x128xf32>
      %1000 = arith.mulf %572, %764 : vector<1x128xf32>
      %1001 = arith.addf %999, %1000 : vector<1x128xf32>
      %1002 = arith.mulf %580, %785 : vector<1x128xf32>
      %1003 = arith.addf %1001, %1002 : vector<1x128xf32>
      %1004 = arith.mulf %588, %806 : vector<1x128xf32>
      %1005 = arith.addf %1003, %1004 : vector<1x128xf32>
      %1006 = arith.addf %998, %1005 : vector<1x128xf32>
      %1007 = arith.index_cast %560 : i32 to index
      %c12_351 = arith.constant 12 : index
      %c0_352 = arith.constant 0 : index
      %c0_353 = arith.constant 0 : index
      %1008 = vector.load %arg1[%1007, %c12_351, %c0_352, %c0_353] : memref<5x49x1x128xf32, #tpu.memory_space<vmem>>, vector<1x1x1x128xf32>
      %1009 = vector.shape_cast %1008 : vector<1x1x1x128xf32> to vector<1x128xf32>
      %1010 = arith.mulf %564, %750 : vector<1x128xf32>
      %1011 = arith.mulf %572, %771 : vector<1x128xf32>
      %1012 = arith.addf %1010, %1011 : vector<1x128xf32>
      %1013 = arith.mulf %580, %792 : vector<1x128xf32>
      %1014 = arith.addf %1012, %1013 : vector<1x128xf32>
      %1015 = arith.mulf %588, %813 : vector<1x128xf32>
      %1016 = arith.addf %1014, %1015 : vector<1x128xf32>
      %1017 = arith.addf %1009, %1016 : vector<1x128xf32>
      %1018 = arith.index_cast %560 : i32 to index
      %c13_354 = arith.constant 13 : index
      %c0_355 = arith.constant 0 : index
      %c0_356 = arith.constant 0 : index
      %1019 = vector.load %arg1[%1018, %c13_354, %c0_355, %c0_356] : memref<5x49x1x128xf32, #tpu.memory_space<vmem>>, vector<1x1x1x128xf32>
      %1020 = vector.shape_cast %1019 : vector<1x1x1x128xf32> to vector<1x128xf32>
      %1021 = arith.mulf %564, %757 : vector<1x128xf32>
      %1022 = arith.mulf %572, %778 : vector<1x128xf32>
      %1023 = arith.addf %1021, %1022 : vector<1x128xf32>
      %1024 = arith.mulf %580, %799 : vector<1x128xf32>
      %1025 = arith.addf %1023, %1024 : vector<1x128xf32>
      %1026 = arith.mulf %588, %820 : vector<1x128xf32>
      %1027 = arith.addf %1025, %1026 : vector<1x128xf32>
      %1028 = arith.addf %1020, %1027 : vector<1x128xf32>
      %1029 = arith.index_cast %560 : i32 to index
      %c18_357 = arith.constant 18 : index
      %c0_358 = arith.constant 0 : index
      %c0_359 = arith.constant 0 : index
      %1030 = vector.load %arg1[%1029, %c18_357, %c0_358, %c0_359] : memref<5x49x1x128xf32, #tpu.memory_space<vmem>>, vector<1x1x1x128xf32>
      %1031 = vector.shape_cast %1030 : vector<1x1x1x128xf32> to vector<1x128xf32>
      %1032 = arith.mulf %566, %743 : vector<1x128xf32>
      %1033 = arith.mulf %574, %764 : vector<1x128xf32>
      %1034 = arith.addf %1032, %1033 : vector<1x128xf32>
      %1035 = arith.mulf %582, %785 : vector<1x128xf32>
      %1036 = arith.addf %1034, %1035 : vector<1x128xf32>
      %1037 = arith.mulf %590, %806 : vector<1x128xf32>
      %1038 = arith.addf %1036, %1037 : vector<1x128xf32>
      %1039 = arith.addf %1031, %1038 : vector<1x128xf32>
      %1040 = arith.index_cast %560 : i32 to index
      %c19_360 = arith.constant 19 : index
      %c0_361 = arith.constant 0 : index
      %c0_362 = arith.constant 0 : index
      %1041 = vector.load %arg1[%1040, %c19_360, %c0_361, %c0_362] : memref<5x49x1x128xf32, #tpu.memory_space<vmem>>, vector<1x1x1x128xf32>
      %1042 = vector.shape_cast %1041 : vector<1x1x1x128xf32> to vector<1x128xf32>
      %1043 = arith.mulf %566, %750 : vector<1x128xf32>
      %1044 = arith.mulf %574, %771 : vector<1x128xf32>
      %1045 = arith.addf %1043, %1044 : vector<1x128xf32>
      %1046 = arith.mulf %582, %792 : vector<1x128xf32>
      %1047 = arith.addf %1045, %1046 : vector<1x128xf32>
      %1048 = arith.mulf %590, %813 : vector<1x128xf32>
      %1049 = arith.addf %1047, %1048 : vector<1x128xf32>
      %1050 = arith.addf %1042, %1049 : vector<1x128xf32>
      %1051 = arith.index_cast %560 : i32 to index
      %c20_363 = arith.constant 20 : index
      %c0_364 = arith.constant 0 : index
      %c0_365 = arith.constant 0 : index
      %1052 = vector.load %arg1[%1051, %c20_363, %c0_364, %c0_365] : memref<5x49x1x128xf32, #tpu.memory_space<vmem>>, vector<1x1x1x128xf32>
      %1053 = vector.shape_cast %1052 : vector<1x1x1x128xf32> to vector<1x128xf32>
      %1054 = arith.mulf %566, %757 : vector<1x128xf32>
      %1055 = arith.mulf %574, %778 : vector<1x128xf32>
      %1056 = arith.addf %1054, %1055 : vector<1x128xf32>
      %1057 = arith.mulf %582, %799 : vector<1x128xf32>
      %1058 = arith.addf %1056, %1057 : vector<1x128xf32>
      %1059 = arith.mulf %590, %820 : vector<1x128xf32>
      %1060 = arith.addf %1058, %1059 : vector<1x128xf32>
      %1061 = arith.addf %1053, %1060 : vector<1x128xf32>
      %1062 = arith.index_cast %560 : i32 to index
      %c25_366 = arith.constant 25 : index
      %c0_367 = arith.constant 0 : index
      %c0_368 = arith.constant 0 : index
      %1063 = vector.load %arg1[%1062, %c25_366, %c0_367, %c0_368] : memref<5x49x1x128xf32, #tpu.memory_space<vmem>>, vector<1x1x1x128xf32>
      %1064 = vector.shape_cast %1063 : vector<1x1x1x128xf32> to vector<1x128xf32>
      %1065 = arith.mulf %568, %743 : vector<1x128xf32>
      %1066 = arith.mulf %576, %764 : vector<1x128xf32>
      %1067 = arith.addf %1065, %1066 : vector<1x128xf32>
      %1068 = arith.mulf %584, %785 : vector<1x128xf32>
      %1069 = arith.addf %1067, %1068 : vector<1x128xf32>
      %1070 = arith.mulf %592, %806 : vector<1x128xf32>
      %1071 = arith.addf %1069, %1070 : vector<1x128xf32>
      %1072 = arith.addf %1064, %1071 : vector<1x128xf32>
      %1073 = arith.index_cast %560 : i32 to index
      %c26_369 = arith.constant 26 : index
      %c0_370 = arith.constant 0 : index
      %c0_371 = arith.constant 0 : index
      %1074 = vector.load %arg1[%1073, %c26_369, %c0_370, %c0_371] : memref<5x49x1x128xf32, #tpu.memory_space<vmem>>, vector<1x1x1x128xf32>
      %1075 = vector.shape_cast %1074 : vector<1x1x1x128xf32> to vector<1x128xf32>
      %1076 = arith.mulf %568, %750 : vector<1x128xf32>
      %1077 = arith.mulf %576, %771 : vector<1x128xf32>
      %1078 = arith.addf %1076, %1077 : vector<1x128xf32>
      %1079 = arith.mulf %584, %792 : vector<1x128xf32>
      %1080 = arith.addf %1078, %1079 : vector<1x128xf32>
      %1081 = arith.mulf %592, %813 : vector<1x128xf32>
      %1082 = arith.addf %1080, %1081 : vector<1x128xf32>
      %1083 = arith.addf %1075, %1082 : vector<1x128xf32>
      %1084 = arith.index_cast %560 : i32 to index
      %c27_372 = arith.constant 27 : index
      %c0_373 = arith.constant 0 : index
      %c0_374 = arith.constant 0 : index
      %1085 = vector.load %arg1[%1084, %c27_372, %c0_373, %c0_374] : memref<5x49x1x128xf32, #tpu.memory_space<vmem>>, vector<1x1x1x128xf32>
      %1086 = vector.shape_cast %1085 : vector<1x1x1x128xf32> to vector<1x128xf32>
      %1087 = arith.mulf %568, %757 : vector<1x128xf32>
      %1088 = arith.mulf %576, %778 : vector<1x128xf32>
      %1089 = arith.addf %1087, %1088 : vector<1x128xf32>
      %1090 = arith.mulf %584, %799 : vector<1x128xf32>
      %1091 = arith.addf %1089, %1090 : vector<1x128xf32>
      %1092 = arith.mulf %592, %820 : vector<1x128xf32>
      %1093 = arith.addf %1091, %1092 : vector<1x128xf32>
      %1094 = arith.addf %1086, %1093 : vector<1x128xf32>
      %1095 = arith.index_cast %560 : i32 to index
      %c32_375 = arith.constant 32 : index
      %c0_376 = arith.constant 0 : index
      %c0_377 = arith.constant 0 : index
      %1096 = vector.load %arg1[%1095, %c32_375, %c0_376, %c0_377] : memref<5x49x1x128xf32, #tpu.memory_space<vmem>>, vector<1x1x1x128xf32>
      %1097 = vector.shape_cast %1096 : vector<1x1x1x128xf32> to vector<1x128xf32>
      %1098 = arith.mulf %594, %743 : vector<1x128xf32>
      %1099 = arith.mulf %600, %764 : vector<1x128xf32>
      %1100 = arith.addf %1098, %1099 : vector<1x128xf32>
      %1101 = arith.mulf %606, %785 : vector<1x128xf32>
      %1102 = arith.addf %1100, %1101 : vector<1x128xf32>
      %1103 = arith.mulf %612, %806 : vector<1x128xf32>
      %1104 = arith.addf %1102, %1103 : vector<1x128xf32>
      %1105 = arith.addf %1097, %1104 : vector<1x128xf32>
      %1106 = arith.index_cast %560 : i32 to index
      %c33_378 = arith.constant 33 : index
      %c0_379 = arith.constant 0 : index
      %c0_380 = arith.constant 0 : index
      %1107 = vector.load %arg1[%1106, %c33_378, %c0_379, %c0_380] : memref<5x49x1x128xf32, #tpu.memory_space<vmem>>, vector<1x1x1x128xf32>
      %1108 = vector.shape_cast %1107 : vector<1x1x1x128xf32> to vector<1x128xf32>
      %1109 = arith.mulf %594, %750 : vector<1x128xf32>
      %1110 = arith.mulf %600, %771 : vector<1x128xf32>
      %1111 = arith.addf %1109, %1110 : vector<1x128xf32>
      %1112 = arith.mulf %606, %792 : vector<1x128xf32>
      %1113 = arith.addf %1111, %1112 : vector<1x128xf32>
      %1114 = arith.mulf %612, %813 : vector<1x128xf32>
      %1115 = arith.addf %1113, %1114 : vector<1x128xf32>
      %1116 = arith.addf %1108, %1115 : vector<1x128xf32>
      %1117 = arith.index_cast %560 : i32 to index
      %c34_381 = arith.constant 34 : index
      %c0_382 = arith.constant 0 : index
      %c0_383 = arith.constant 0 : index
      %1118 = vector.load %arg1[%1117, %c34_381, %c0_382, %c0_383] : memref<5x49x1x128xf32, #tpu.memory_space<vmem>>, vector<1x1x1x128xf32>
      %1119 = vector.shape_cast %1118 : vector<1x1x1x128xf32> to vector<1x128xf32>
      %1120 = arith.mulf %594, %757 : vector<1x128xf32>
      %1121 = arith.mulf %600, %778 : vector<1x128xf32>
      %1122 = arith.addf %1120, %1121 : vector<1x128xf32>
      %1123 = arith.mulf %606, %799 : vector<1x128xf32>
      %1124 = arith.addf %1122, %1123 : vector<1x128xf32>
      %1125 = arith.mulf %612, %820 : vector<1x128xf32>
      %1126 = arith.addf %1124, %1125 : vector<1x128xf32>
      %1127 = arith.addf %1119, %1126 : vector<1x128xf32>
      %1128 = arith.index_cast %560 : i32 to index
      %c40_384 = arith.constant 40 : index
      %c0_385 = arith.constant 0 : index
      %c0_386 = arith.constant 0 : index
      %1129 = vector.load %arg1[%1128, %c40_384, %c0_385, %c0_386] : memref<5x49x1x128xf32, #tpu.memory_space<vmem>>, vector<1x1x1x128xf32>
      %1130 = vector.shape_cast %1129 : vector<1x1x1x128xf32> to vector<1x128xf32>
      %1131 = arith.mulf %596, %750 : vector<1x128xf32>
      %1132 = arith.mulf %602, %771 : vector<1x128xf32>
      %1133 = arith.addf %1131, %1132 : vector<1x128xf32>
      %1134 = arith.mulf %608, %792 : vector<1x128xf32>
      %1135 = arith.addf %1133, %1134 : vector<1x128xf32>
      %1136 = arith.mulf %614, %813 : vector<1x128xf32>
      %1137 = arith.addf %1135, %1136 : vector<1x128xf32>
      %1138 = arith.addf %1130, %1137 : vector<1x128xf32>
      %1139 = arith.index_cast %560 : i32 to index
      %c41_387 = arith.constant 41 : index
      %c0_388 = arith.constant 0 : index
      %c0_389 = arith.constant 0 : index
      %1140 = vector.load %arg1[%1139, %c41_387, %c0_388, %c0_389] : memref<5x49x1x128xf32, #tpu.memory_space<vmem>>, vector<1x1x1x128xf32>
      %1141 = vector.shape_cast %1140 : vector<1x1x1x128xf32> to vector<1x128xf32>
      %1142 = arith.mulf %596, %757 : vector<1x128xf32>
      %1143 = arith.mulf %602, %778 : vector<1x128xf32>
      %1144 = arith.addf %1142, %1143 : vector<1x128xf32>
      %1145 = arith.mulf %608, %799 : vector<1x128xf32>
      %1146 = arith.addf %1144, %1145 : vector<1x128xf32>
      %1147 = arith.mulf %614, %820 : vector<1x128xf32>
      %1148 = arith.addf %1146, %1147 : vector<1x128xf32>
      %1149 = arith.addf %1141, %1148 : vector<1x128xf32>
      %1150 = arith.index_cast %560 : i32 to index
      %c48_390 = arith.constant 48 : index
      %c0_391 = arith.constant 0 : index
      %c0_392 = arith.constant 0 : index
      %1151 = vector.load %arg1[%1150, %c48_390, %c0_391, %c0_392] : memref<5x49x1x128xf32, #tpu.memory_space<vmem>>, vector<1x1x1x128xf32>
      %1152 = vector.shape_cast %1151 : vector<1x1x1x128xf32> to vector<1x128xf32>
      %1153 = arith.mulf %598, %757 : vector<1x128xf32>
      %1154 = arith.mulf %604, %778 : vector<1x128xf32>
      %1155 = arith.addf %1153, %1154 : vector<1x128xf32>
      %1156 = arith.mulf %610, %799 : vector<1x128xf32>
      %1157 = arith.addf %1155, %1156 : vector<1x128xf32>
      %1158 = arith.mulf %616, %820 : vector<1x128xf32>
      %1159 = arith.addf %1157, %1158 : vector<1x128xf32>
      %1160 = arith.addf %1152, %1159 : vector<1x128xf32>
      %1161 = arith.index_cast %560 : i32 to index
      %c0_393 = arith.constant 0 : index
      %c0_394 = arith.constant 0 : index
      %c0_395 = arith.constant 0 : index
      %1162 = vector.load %arg2[%1161, %c0_393, %c0_394, %c0_395] : memref<5x7x1x128xf32, #tpu.memory_space<vmem>>, vector<1x1x1x128xf32>
      %1163 = vector.shape_cast %1162 : vector<1x1x1x128xf32> to vector<1x128xf32>
      %1164 = arith.mulf %562, %828 : vector<1x128xf32>
      %1165 = arith.mulf %570, %836 : vector<1x128xf32>
      %1166 = arith.addf %1164, %1165 : vector<1x128xf32>
      %1167 = arith.mulf %578, %844 : vector<1x128xf32>
      %1168 = arith.addf %1166, %1167 : vector<1x128xf32>
      %1169 = arith.mulf %586, %852 : vector<1x128xf32>
      %1170 = arith.addf %1168, %1169 : vector<1x128xf32>
      %1171 = arith.addf %1163, %1170 : vector<1x128xf32>
      %1172 = arith.index_cast %560 : i32 to index
      %c1_396 = arith.constant 1 : index
      %c0_397 = arith.constant 0 : index
      %c0_398 = arith.constant 0 : index
      %1173 = vector.load %arg2[%1172, %c1_396, %c0_397, %c0_398] : memref<5x7x1x128xf32, #tpu.memory_space<vmem>>, vector<1x1x1x128xf32>
      %1174 = vector.shape_cast %1173 : vector<1x1x1x128xf32> to vector<1x128xf32>
      %1175 = arith.mulf %564, %828 : vector<1x128xf32>
      %1176 = arith.mulf %572, %836 : vector<1x128xf32>
      %1177 = arith.addf %1175, %1176 : vector<1x128xf32>
      %1178 = arith.mulf %580, %844 : vector<1x128xf32>
      %1179 = arith.addf %1177, %1178 : vector<1x128xf32>
      %1180 = arith.mulf %588, %852 : vector<1x128xf32>
      %1181 = arith.addf %1179, %1180 : vector<1x128xf32>
      %1182 = arith.addf %1174, %1181 : vector<1x128xf32>
      %1183 = arith.index_cast %560 : i32 to index
      %c2_399 = arith.constant 2 : index
      %c0_400 = arith.constant 0 : index
      %c0_401 = arith.constant 0 : index
      %1184 = vector.load %arg2[%1183, %c2_399, %c0_400, %c0_401] : memref<5x7x1x128xf32, #tpu.memory_space<vmem>>, vector<1x1x1x128xf32>
      %1185 = vector.shape_cast %1184 : vector<1x1x1x128xf32> to vector<1x128xf32>
      %1186 = arith.mulf %566, %828 : vector<1x128xf32>
      %1187 = arith.mulf %574, %836 : vector<1x128xf32>
      %1188 = arith.addf %1186, %1187 : vector<1x128xf32>
      %1189 = arith.mulf %582, %844 : vector<1x128xf32>
      %1190 = arith.addf %1188, %1189 : vector<1x128xf32>
      %1191 = arith.mulf %590, %852 : vector<1x128xf32>
      %1192 = arith.addf %1190, %1191 : vector<1x128xf32>
      %1193 = arith.addf %1185, %1192 : vector<1x128xf32>
      %1194 = arith.index_cast %560 : i32 to index
      %c3_402 = arith.constant 3 : index
      %c0_403 = arith.constant 0 : index
      %c0_404 = arith.constant 0 : index
      %1195 = vector.load %arg2[%1194, %c3_402, %c0_403, %c0_404] : memref<5x7x1x128xf32, #tpu.memory_space<vmem>>, vector<1x1x1x128xf32>
      %1196 = vector.shape_cast %1195 : vector<1x1x1x128xf32> to vector<1x128xf32>
      %1197 = arith.mulf %568, %828 : vector<1x128xf32>
      %1198 = arith.mulf %576, %836 : vector<1x128xf32>
      %1199 = arith.addf %1197, %1198 : vector<1x128xf32>
      %1200 = arith.mulf %584, %844 : vector<1x128xf32>
      %1201 = arith.addf %1199, %1200 : vector<1x128xf32>
      %1202 = arith.mulf %592, %852 : vector<1x128xf32>
      %1203 = arith.addf %1201, %1202 : vector<1x128xf32>
      %1204 = arith.addf %1196, %1203 : vector<1x128xf32>
      %1205 = arith.index_cast %560 : i32 to index
      %c4_405 = arith.constant 4 : index
      %c0_406 = arith.constant 0 : index
      %c0_407 = arith.constant 0 : index
      %1206 = vector.load %arg2[%1205, %c4_405, %c0_406, %c0_407] : memref<5x7x1x128xf32, #tpu.memory_space<vmem>>, vector<1x1x1x128xf32>
      %1207 = vector.shape_cast %1206 : vector<1x1x1x128xf32> to vector<1x128xf32>
      %1208 = arith.mulf %594, %828 : vector<1x128xf32>
      %1209 = arith.mulf %600, %836 : vector<1x128xf32>
      %1210 = arith.addf %1208, %1209 : vector<1x128xf32>
      %1211 = arith.mulf %606, %844 : vector<1x128xf32>
      %1212 = arith.addf %1210, %1211 : vector<1x128xf32>
      %1213 = arith.mulf %612, %852 : vector<1x128xf32>
      %1214 = arith.addf %1212, %1213 : vector<1x128xf32>
      %1215 = arith.addf %1207, %1214 : vector<1x128xf32>
      %1216 = arith.index_cast %560 : i32 to index
      %c5_408 = arith.constant 5 : index
      %c0_409 = arith.constant 0 : index
      %c0_410 = arith.constant 0 : index
      %1217 = vector.load %arg2[%1216, %c5_408, %c0_409, %c0_410] : memref<5x7x1x128xf32, #tpu.memory_space<vmem>>, vector<1x1x1x128xf32>
      %1218 = vector.shape_cast %1217 : vector<1x1x1x128xf32> to vector<1x128xf32>
      %1219 = arith.mulf %596, %828 : vector<1x128xf32>
      %1220 = arith.mulf %602, %836 : vector<1x128xf32>
      %1221 = arith.addf %1219, %1220 : vector<1x128xf32>
      %1222 = arith.mulf %608, %844 : vector<1x128xf32>
      %1223 = arith.addf %1221, %1222 : vector<1x128xf32>
      %1224 = arith.mulf %614, %852 : vector<1x128xf32>
      %1225 = arith.addf %1223, %1224 : vector<1x128xf32>
      %1226 = arith.addf %1218, %1225 : vector<1x128xf32>
      %1227 = arith.index_cast %560 : i32 to index
      %c6_411 = arith.constant 6 : index
      %c0_412 = arith.constant 0 : index
      %c0_413 = arith.constant 0 : index
      %1228 = vector.load %arg2[%1227, %c6_411, %c0_412, %c0_413] : memref<5x7x1x128xf32, #tpu.memory_space<vmem>>, vector<1x1x1x128xf32>
      %1229 = vector.shape_cast %1228 : vector<1x1x1x128xf32> to vector<1x128xf32>
      %1230 = arith.mulf %598, %828 : vector<1x128xf32>
      %1231 = arith.mulf %604, %836 : vector<1x128xf32>
      %1232 = arith.addf %1230, %1231 : vector<1x128xf32>
      %1233 = arith.mulf %610, %844 : vector<1x128xf32>
      %1234 = arith.addf %1232, %1233 : vector<1x128xf32>
      %1235 = arith.mulf %616, %852 : vector<1x128xf32>
      %1236 = arith.addf %1234, %1235 : vector<1x128xf32>
      %1237 = arith.addf %1229, %1236 : vector<1x128xf32>
      %1238 = arith.mulf %1138, %1160 : vector<1x128xf32>
      %1239 = arith.mulf %1149, %1149 : vector<1x128xf32>
      %1240 = arith.subf %1238, %1239 : vector<1x128xf32>
      %1241 = arith.mulf %1127, %1149 : vector<1x128xf32>
      %1242 = arith.mulf %1116, %1160 : vector<1x128xf32>
      %1243 = arith.subf %1241, %1242 : vector<1x128xf32>
      %1244 = arith.mulf %1116, %1149 : vector<1x128xf32>
      %1245 = arith.mulf %1127, %1138 : vector<1x128xf32>
      %1246 = arith.subf %1244, %1245 : vector<1x128xf32>
      %1247 = arith.mulf %1105, %1240 : vector<1x128xf32>
      %1248 = arith.mulf %1116, %1243 : vector<1x128xf32>
      %1249 = arith.addf %1247, %1248 : vector<1x128xf32>
      %1250 = arith.mulf %1127, %1246 : vector<1x128xf32>
      %1251 = arith.addf %1249, %1250 : vector<1x128xf32>
      %1252 = tpu.reciprocal %1251 {approx = true} : vector<1x128xf32> -> vector<1x128xf32>
      %1253 = arith.mulf %1251, %1252 : vector<1x128xf32>
      %cst_414 = arith.constant 2.000000e+00 : f32
      %1254 = vector.broadcast %cst_414 : f32 to vector<1x128xf32>
      %1255 = arith.subf %1254, %1253 : vector<1x128xf32>
      %1256 = arith.mulf %1252, %1255 : vector<1x128xf32>
      %1257 = arith.mulf %1240, %1256 : vector<1x128xf32>
      %1258 = arith.mulf %1243, %1256 : vector<1x128xf32>
      %1259 = arith.mulf %1246, %1256 : vector<1x128xf32>
      %1260 = arith.mulf %1105, %1160 : vector<1x128xf32>
      %1261 = arith.mulf %1127, %1127 : vector<1x128xf32>
      %1262 = arith.subf %1260, %1261 : vector<1x128xf32>
      %1263 = arith.mulf %1262, %1256 : vector<1x128xf32>
      %1264 = arith.mulf %1127, %1116 : vector<1x128xf32>
      %1265 = arith.mulf %1105, %1149 : vector<1x128xf32>
      %1266 = arith.subf %1264, %1265 : vector<1x128xf32>
      %1267 = arith.mulf %1266, %1256 : vector<1x128xf32>
      %1268 = arith.mulf %1105, %1138 : vector<1x128xf32>
      %1269 = arith.mulf %1116, %1116 : vector<1x128xf32>
      %1270 = arith.subf %1268, %1269 : vector<1x128xf32>
      %1271 = arith.mulf %1270, %1256 : vector<1x128xf32>
      %1272 = arith.mulf %1257, %973 : vector<1x128xf32>
      %1273 = arith.mulf %1258, %984 : vector<1x128xf32>
      %1274 = arith.addf %1272, %1273 : vector<1x128xf32>
      %1275 = arith.mulf %1259, %995 : vector<1x128xf32>
      %1276 = arith.addf %1274, %1275 : vector<1x128xf32>
      %cst_415 = arith.constant 0.000000e+00 : f32
      %1277 = vector.broadcast %cst_415 : f32 to vector<1x128xf32>
      %1278 = arith.subf %1277, %1276 : vector<1x128xf32>
      %1279 = arith.mulf %1257, %1006 : vector<1x128xf32>
      %1280 = arith.mulf %1258, %1017 : vector<1x128xf32>
      %1281 = arith.addf %1279, %1280 : vector<1x128xf32>
      %1282 = arith.mulf %1259, %1028 : vector<1x128xf32>
      %1283 = arith.addf %1281, %1282 : vector<1x128xf32>
      %cst_416 = arith.constant 0.000000e+00 : f32
      %1284 = vector.broadcast %cst_416 : f32 to vector<1x128xf32>
      %1285 = arith.subf %1284, %1283 : vector<1x128xf32>
      %1286 = arith.mulf %1257, %1039 : vector<1x128xf32>
      %1287 = arith.mulf %1258, %1050 : vector<1x128xf32>
      %1288 = arith.addf %1286, %1287 : vector<1x128xf32>
      %1289 = arith.mulf %1259, %1061 : vector<1x128xf32>
      %1290 = arith.addf %1288, %1289 : vector<1x128xf32>
      %cst_417 = arith.constant 0.000000e+00 : f32
      %1291 = vector.broadcast %cst_417 : f32 to vector<1x128xf32>
      %1292 = arith.subf %1291, %1290 : vector<1x128xf32>
      %1293 = arith.mulf %1257, %1072 : vector<1x128xf32>
      %1294 = arith.mulf %1258, %1083 : vector<1x128xf32>
      %1295 = arith.addf %1293, %1294 : vector<1x128xf32>
      %1296 = arith.mulf %1259, %1094 : vector<1x128xf32>
      %1297 = arith.addf %1295, %1296 : vector<1x128xf32>
      %cst_418 = arith.constant 0.000000e+00 : f32
      %1298 = vector.broadcast %cst_418 : f32 to vector<1x128xf32>
      %1299 = arith.subf %1298, %1297 : vector<1x128xf32>
      %1300 = arith.mulf %1258, %973 : vector<1x128xf32>
      %1301 = arith.mulf %1263, %984 : vector<1x128xf32>
      %1302 = arith.addf %1300, %1301 : vector<1x128xf32>
      %1303 = arith.mulf %1267, %995 : vector<1x128xf32>
      %1304 = arith.addf %1302, %1303 : vector<1x128xf32>
      %cst_419 = arith.constant 0.000000e+00 : f32
      %1305 = vector.broadcast %cst_419 : f32 to vector<1x128xf32>
      %1306 = arith.subf %1305, %1304 : vector<1x128xf32>
      %1307 = arith.mulf %1258, %1006 : vector<1x128xf32>
      %1308 = arith.mulf %1263, %1017 : vector<1x128xf32>
      %1309 = arith.addf %1307, %1308 : vector<1x128xf32>
      %1310 = arith.mulf %1267, %1028 : vector<1x128xf32>
      %1311 = arith.addf %1309, %1310 : vector<1x128xf32>
      %cst_420 = arith.constant 0.000000e+00 : f32
      %1312 = vector.broadcast %cst_420 : f32 to vector<1x128xf32>
      %1313 = arith.subf %1312, %1311 : vector<1x128xf32>
      %1314 = arith.mulf %1258, %1039 : vector<1x128xf32>
      %1315 = arith.mulf %1263, %1050 : vector<1x128xf32>
      %1316 = arith.addf %1314, %1315 : vector<1x128xf32>
      %1317 = arith.mulf %1267, %1061 : vector<1x128xf32>
      %1318 = arith.addf %1316, %1317 : vector<1x128xf32>
      %cst_421 = arith.constant 0.000000e+00 : f32
      %1319 = vector.broadcast %cst_421 : f32 to vector<1x128xf32>
      %1320 = arith.subf %1319, %1318 : vector<1x128xf32>
      %1321 = arith.mulf %1258, %1072 : vector<1x128xf32>
      %1322 = arith.mulf %1263, %1083 : vector<1x128xf32>
      %1323 = arith.addf %1321, %1322 : vector<1x128xf32>
      %1324 = arith.mulf %1267, %1094 : vector<1x128xf32>
      %1325 = arith.addf %1323, %1324 : vector<1x128xf32>
      %cst_422 = arith.constant 0.000000e+00 : f32
      %1326 = vector.broadcast %cst_422 : f32 to vector<1x128xf32>
      %1327 = arith.subf %1326, %1325 : vector<1x128xf32>
      %1328 = arith.mulf %1259, %973 : vector<1x128xf32>
      %1329 = arith.mulf %1267, %984 : vector<1x128xf32>
      %1330 = arith.addf %1328, %1329 : vector<1x128xf32>
      %1331 = arith.mulf %1271, %995 : vector<1x128xf32>
      %1332 = arith.addf %1330, %1331 : vector<1x128xf32>
      %cst_423 = arith.constant 0.000000e+00 : f32
      %1333 = vector.broadcast %cst_423 : f32 to vector<1x128xf32>
      %1334 = arith.subf %1333, %1332 : vector<1x128xf32>
      %1335 = arith.mulf %1259, %1006 : vector<1x128xf32>
      %1336 = arith.mulf %1267, %1017 : vector<1x128xf32>
      %1337 = arith.addf %1335, %1336 : vector<1x128xf32>
      %1338 = arith.mulf %1271, %1028 : vector<1x128xf32>
      %1339 = arith.addf %1337, %1338 : vector<1x128xf32>
      %cst_424 = arith.constant 0.000000e+00 : f32
      %1340 = vector.broadcast %cst_424 : f32 to vector<1x128xf32>
      %1341 = arith.subf %1340, %1339 : vector<1x128xf32>
      %1342 = arith.mulf %1259, %1039 : vector<1x128xf32>
      %1343 = arith.mulf %1267, %1050 : vector<1x128xf32>
      %1344 = arith.addf %1342, %1343 : vector<1x128xf32>
      %1345 = arith.mulf %1271, %1061 : vector<1x128xf32>
      %1346 = arith.addf %1344, %1345 : vector<1x128xf32>
      %cst_425 = arith.constant 0.000000e+00 : f32
      %1347 = vector.broadcast %cst_425 : f32 to vector<1x128xf32>
      %1348 = arith.subf %1347, %1346 : vector<1x128xf32>
      %1349 = arith.mulf %1259, %1072 : vector<1x128xf32>
      %1350 = arith.mulf %1267, %1083 : vector<1x128xf32>
      %1351 = arith.addf %1349, %1350 : vector<1x128xf32>
      %1352 = arith.mulf %1271, %1094 : vector<1x128xf32>
      %1353 = arith.addf %1351, %1352 : vector<1x128xf32>
      %cst_426 = arith.constant 0.000000e+00 : f32
      %1354 = vector.broadcast %cst_426 : f32 to vector<1x128xf32>
      %1355 = arith.subf %1354, %1353 : vector<1x128xf32>
      %1356 = arith.mulf %1257, %1215 : vector<1x128xf32>
      %1357 = arith.mulf %1258, %1226 : vector<1x128xf32>
      %1358 = arith.addf %1356, %1357 : vector<1x128xf32>
      %1359 = arith.mulf %1259, %1237 : vector<1x128xf32>
      %1360 = arith.addf %1358, %1359 : vector<1x128xf32>
      %cst_427 = arith.constant 0.000000e+00 : f32
      %1361 = vector.broadcast %cst_427 : f32 to vector<1x128xf32>
      %1362 = arith.subf %1361, %1360 : vector<1x128xf32>
      %1363 = arith.mulf %1258, %1215 : vector<1x128xf32>
      %1364 = arith.mulf %1263, %1226 : vector<1x128xf32>
      %1365 = arith.addf %1363, %1364 : vector<1x128xf32>
      %1366 = arith.mulf %1267, %1237 : vector<1x128xf32>
      %1367 = arith.addf %1365, %1366 : vector<1x128xf32>
      %cst_428 = arith.constant 0.000000e+00 : f32
      %1368 = vector.broadcast %cst_428 : f32 to vector<1x128xf32>
      %1369 = arith.subf %1368, %1367 : vector<1x128xf32>
      %1370 = arith.mulf %1259, %1215 : vector<1x128xf32>
      %1371 = arith.mulf %1267, %1226 : vector<1x128xf32>
      %1372 = arith.addf %1370, %1371 : vector<1x128xf32>
      %1373 = arith.mulf %1271, %1237 : vector<1x128xf32>
      %1374 = arith.addf %1372, %1373 : vector<1x128xf32>
      %cst_429 = arith.constant 0.000000e+00 : f32
      %1375 = vector.broadcast %cst_429 : f32 to vector<1x128xf32>
      %1376 = arith.subf %1375, %1374 : vector<1x128xf32>
      %1377 = arith.index_cast %560 : i32 to index
      %c0_430 = arith.constant 0 : index
      %c0_431 = arith.constant 0 : index
      %c0_432 = arith.constant 0 : index
      %1378 = vector.load %arg10[%1377, %c0_430, %c0_431, %c0_432] : memref<5x12x1x128xf32, #tpu.memory_space<vmem>>, vector<1x1x1x128xf32>
      %1379 = vector.shape_cast %1378 : vector<1x1x1x128xf32> to vector<1x128xf32>
      %1380 = vector.shape_cast %1278 : vector<1x128xf32> to vector<1x1x1x128xf32>
      tpu.vector_store %arg10[%1377, %c0_430, %c0_431, %c0_432], %1380 {strides = array<i32>} : memref<5x12x1x128xf32, #tpu.memory_space<vmem>>, vector<1x1x1x128xf32>,
      %1381 = arith.index_cast %560 : i32 to index
      %c1_433 = arith.constant 1 : index
      %c0_434 = arith.constant 0 : index
      %c0_435 = arith.constant 0 : index
      %1382 = vector.load %arg10[%1381, %c1_433, %c0_434, %c0_435] : memref<5x12x1x128xf32, #tpu.memory_space<vmem>>, vector<1x1x1x128xf32>
      %1383 = vector.shape_cast %1382 : vector<1x1x1x128xf32> to vector<1x128xf32>
      %1384 = vector.shape_cast %1285 : vector<1x128xf32> to vector<1x1x1x128xf32>
      tpu.vector_store %arg10[%1381, %c1_433, %c0_434, %c0_435], %1384 {strides = array<i32>} : memref<5x12x1x128xf32, #tpu.memory_space<vmem>>, vector<1x1x1x128xf32>,
      %1385 = arith.index_cast %560 : i32 to index
      %c2_436 = arith.constant 2 : index
      %c0_437 = arith.constant 0 : index
      %c0_438 = arith.constant 0 : index
      %1386 = vector.load %arg10[%1385, %c2_436, %c0_437, %c0_438] : memref<5x12x1x128xf32, #tpu.memory_space<vmem>>, vector<1x1x1x128xf32>
      %1387 = vector.shape_cast %1386 : vector<1x1x1x128xf32> to vector<1x128xf32>
      %1388 = vector.shape_cast %1292 : vector<1x128xf32> to vector<1x1x1x128xf32>
      tpu.vector_store %arg10[%1385, %c2_436, %c0_437, %c0_438], %1388 {strides = array<i32>} : memref<5x12x1x128xf32, #tpu.memory_space<vmem>>, vector<1x1x1x128xf32>,
      %1389 = arith.index_cast %560 : i32 to index
      %c3_439 = arith.constant 3 : index
      %c0_440 = arith.constant 0 : index
      %c0_441 = arith.constant 0 : index
      %1390 = vector.load %arg10[%1389, %c3_439, %c0_440, %c0_441] : memref<5x12x1x128xf32, #tpu.memory_space<vmem>>, vector<1x1x1x128xf32>
      %1391 = vector.shape_cast %1390 : vector<1x1x1x128xf32> to vector<1x128xf32>
      %1392 = vector.shape_cast %1299 : vector<1x128xf32> to vector<1x1x1x128xf32>
      tpu.vector_store %arg10[%1389, %c3_439, %c0_440, %c0_441], %1392 {strides = array<i32>} : memref<5x12x1x128xf32, #tpu.memory_space<vmem>>, vector<1x1x1x128xf32>,
      %1393 = arith.index_cast %560 : i32 to index
      %c0_442 = arith.constant 0 : index
      %c0_443 = arith.constant 0 : index
      %c0_444 = arith.constant 0 : index
      %1394 = vector.load %arg11[%1393, %c0_442, %c0_443, %c0_444] : memref<5x3x1x128xf32, #tpu.memory_space<vmem>>, vector<1x1x1x128xf32>
      %1395 = vector.shape_cast %1394 : vector<1x1x1x128xf32> to vector<1x128xf32>
      %1396 = vector.shape_cast %1362 : vector<1x128xf32> to vector<1x1x1x128xf32>
      tpu.vector_store %arg11[%1393, %c0_442, %c0_443, %c0_444], %1396 {strides = array<i32>} : memref<5x3x1x128xf32, #tpu.memory_space<vmem>>, vector<1x1x1x128xf32>,
      %1397 = arith.index_cast %560 : i32 to index
      %c4_445 = arith.constant 4 : index
      %c0_446 = arith.constant 0 : index
      %c0_447 = arith.constant 0 : index
      %1398 = vector.load %arg10[%1397, %c4_445, %c0_446, %c0_447] : memref<5x12x1x128xf32, #tpu.memory_space<vmem>>, vector<1x1x1x128xf32>
      %1399 = vector.shape_cast %1398 : vector<1x1x1x128xf32> to vector<1x128xf32>
      %1400 = vector.shape_cast %1306 : vector<1x128xf32> to vector<1x1x1x128xf32>
      tpu.vector_store %arg10[%1397, %c4_445, %c0_446, %c0_447], %1400 {strides = array<i32>} : memref<5x12x1x128xf32, #tpu.memory_space<vmem>>, vector<1x1x1x128xf32>,
      %1401 = arith.index_cast %560 : i32 to index
      %c5_448 = arith.constant 5 : index
      %c0_449 = arith.constant 0 : index
      %c0_450 = arith.constant 0 : index
      %1402 = vector.load %arg10[%1401, %c5_448, %c0_449, %c0_450] : memref<5x12x1x128xf32, #tpu.memory_space<vmem>>, vector<1x1x1x128xf32>
      %1403 = vector.shape_cast %1402 : vector<1x1x1x128xf32> to vector<1x128xf32>
      %1404 = vector.shape_cast %1313 : vector<1x128xf32> to vector<1x1x1x128xf32>
      tpu.vector_store %arg10[%1401, %c5_448, %c0_449, %c0_450], %1404 {strides = array<i32>} : memref<5x12x1x128xf32, #tpu.memory_space<vmem>>, vector<1x1x1x128xf32>,
      %1405 = arith.index_cast %560 : i32 to index
      %c6_451 = arith.constant 6 : index
      %c0_452 = arith.constant 0 : index
      %c0_453 = arith.constant 0 : index
      %1406 = vector.load %arg10[%1405, %c6_451, %c0_452, %c0_453] : memref<5x12x1x128xf32, #tpu.memory_space<vmem>>, vector<1x1x1x128xf32>
      %1407 = vector.shape_cast %1406 : vector<1x1x1x128xf32> to vector<1x128xf32>
      %1408 = vector.shape_cast %1320 : vector<1x128xf32> to vector<1x1x1x128xf32>
      tpu.vector_store %arg10[%1405, %c6_451, %c0_452, %c0_453], %1408 {strides = array<i32>} : memref<5x12x1x128xf32, #tpu.memory_space<vmem>>, vector<1x1x1x128xf32>,
      %1409 = arith.index_cast %560 : i32 to index
      %c7_454 = arith.constant 7 : index
      %c0_455 = arith.constant 0 : index
      %c0_456 = arith.constant 0 : index
      %1410 = vector.load %arg10[%1409, %c7_454, %c0_455, %c0_456] : memref<5x12x1x128xf32, #tpu.memory_space<vmem>>, vector<1x1x1x128xf32>
      %1411 = vector.shape_cast %1410 : vector<1x1x1x128xf32> to vector<1x128xf32>
      %1412 = vector.shape_cast %1327 : vector<1x128xf32> to vector<1x1x1x128xf32>
      tpu.vector_store %arg10[%1409, %c7_454, %c0_455, %c0_456], %1412 {strides = array<i32>} : memref<5x12x1x128xf32, #tpu.memory_space<vmem>>, vector<1x1x1x128xf32>,
      %1413 = arith.index_cast %560 : i32 to index
      %c1_457 = arith.constant 1 : index
      %c0_458 = arith.constant 0 : index
      %c0_459 = arith.constant 0 : index
      %1414 = vector.load %arg11[%1413, %c1_457, %c0_458, %c0_459] : memref<5x3x1x128xf32, #tpu.memory_space<vmem>>, vector<1x1x1x128xf32>
      %1415 = vector.shape_cast %1414 : vector<1x1x1x128xf32> to vector<1x128xf32>
      %1416 = vector.shape_cast %1369 : vector<1x128xf32> to vector<1x1x1x128xf32>
      tpu.vector_store %arg11[%1413, %c1_457, %c0_458, %c0_459], %1416 {strides = array<i32>} : memref<5x3x1x128xf32, #tpu.memory_space<vmem>>, vector<1x1x1x128xf32>,
      %1417 = arith.index_cast %560 : i32 to index
      %c8_460 = arith.constant 8 : index
      %c0_461 = arith.constant 0 : index
      %c0_462 = arith.constant 0 : index
      %1418 = vector.load %arg10[%1417, %c8_460, %c0_461, %c0_462] : memref<5x12x1x128xf32, #tpu.memory_space<vmem>>, vector<1x1x1x128xf32>
      %1419 = vector.shape_cast %1418 : vector<1x1x1x128xf32> to vector<1x128xf32>
      %1420 = vector.shape_cast %1334 : vector<1x128xf32> to vector<1x1x1x128xf32>
      tpu.vector_store %arg10[%1417, %c8_460, %c0_461, %c0_462], %1420 {strides = array<i32>} : memref<5x12x1x128xf32, #tpu.memory_space<vmem>>, vector<1x1x1x128xf32>,
      %1421 = arith.index_cast %560 : i32 to index
      %c9_463 = arith.constant 9 : index
      %c0_464 = arith.constant 0 : index
      %c0_465 = arith.constant 0 : index
      %1422 = vector.load %arg10[%1421, %c9_463, %c0_464, %c0_465] : memref<5x12x1x128xf32, #tpu.memory_space<vmem>>, vector<1x1x1x128xf32>
      %1423 = vector.shape_cast %1422 : vector<1x1x1x128xf32> to vector<1x128xf32>
      %1424 = vector.shape_cast %1341 : vector<1x128xf32> to vector<1x1x1x128xf32>
      tpu.vector_store %arg10[%1421, %c9_463, %c0_464, %c0_465], %1424 {strides = array<i32>} : memref<5x12x1x128xf32, #tpu.memory_space<vmem>>, vector<1x1x1x128xf32>,
      %1425 = arith.index_cast %560 : i32 to index
      %c10_466 = arith.constant 10 : index
      %c0_467 = arith.constant 0 : index
      %c0_468 = arith.constant 0 : index
      %1426 = vector.load %arg10[%1425, %c10_466, %c0_467, %c0_468] : memref<5x12x1x128xf32, #tpu.memory_space<vmem>>, vector<1x1x1x128xf32>
      %1427 = vector.shape_cast %1426 : vector<1x1x1x128xf32> to vector<1x128xf32>
      %1428 = vector.shape_cast %1348 : vector<1x128xf32> to vector<1x1x1x128xf32>
      tpu.vector_store %arg10[%1425, %c10_466, %c0_467, %c0_468], %1428 {strides = array<i32>} : memref<5x12x1x128xf32, #tpu.memory_space<vmem>>, vector<1x1x1x128xf32>,
      %1429 = arith.index_cast %560 : i32 to index
      %c11_469 = arith.constant 11 : index
      %c0_470 = arith.constant 0 : index
      %c0_471 = arith.constant 0 : index
      %1430 = vector.load %arg10[%1429, %c11_469, %c0_470, %c0_471] : memref<5x12x1x128xf32, #tpu.memory_space<vmem>>, vector<1x1x1x128xf32>
      %1431 = vector.shape_cast %1430 : vector<1x1x1x128xf32> to vector<1x128xf32>
      %1432 = vector.shape_cast %1355 : vector<1x128xf32> to vector<1x1x1x128xf32>
      tpu.vector_store %arg10[%1429, %c11_469, %c0_470, %c0_471], %1432 {strides = array<i32>} : memref<5x12x1x128xf32, #tpu.memory_space<vmem>>, vector<1x1x1x128xf32>,
      %1433 = arith.index_cast %560 : i32 to index
      %c2_472 = arith.constant 2 : index
      %c0_473 = arith.constant 0 : index
      %c0_474 = arith.constant 0 : index
      %1434 = vector.load %arg11[%1433, %c2_472, %c0_473, %c0_474] : memref<5x3x1x128xf32, #tpu.memory_space<vmem>>, vector<1x1x1x128xf32>
      %1435 = vector.shape_cast %1434 : vector<1x1x1x128xf32> to vector<1x128xf32>
      %1436 = vector.shape_cast %1376 : vector<1x128xf32> to vector<1x1x1x128xf32>
      tpu.vector_store %arg11[%1433, %c2_472, %c0_473, %c0_474], %1436 {strides = array<i32>} : memref<5x3x1x128xf32, #tpu.memory_space<vmem>>, vector<1x1x1x128xf32>,
      %1437 = arith.mulf %973, %1278 : vector<1x128xf32>
      %1438 = arith.mulf %984, %1306 : vector<1x128xf32>
      %1439 = arith.addf %1437, %1438 : vector<1x128xf32>
      %1440 = arith.mulf %995, %1334 : vector<1x128xf32>
      %1441 = arith.addf %1439, %1440 : vector<1x128xf32>
      %1442 = arith.mulf %973, %1285 : vector<1x128xf32>
      %1443 = arith.mulf %984, %1313 : vector<1x128xf32>
      %1444 = arith.addf %1442, %1443 : vector<1x128xf32>
      %1445 = arith.mulf %995, %1341 : vector<1x128xf32>
      %1446 = arith.addf %1444, %1445 : vector<1x128xf32>
      %1447 = arith.mulf %973, %1292 : vector<1x128xf32>
      %1448 = arith.mulf %984, %1320 : vector<1x128xf32>
      %1449 = arith.addf %1447, %1448 : vector<1x128xf32>
      %1450 = arith.mulf %995, %1348 : vector<1x128xf32>
      %1451 = arith.addf %1449, %1450 : vector<1x128xf32>
      %1452 = arith.mulf %973, %1299 : vector<1x128xf32>
      %1453 = arith.mulf %984, %1327 : vector<1x128xf32>
      %1454 = arith.addf %1452, %1453 : vector<1x128xf32>
      %1455 = arith.mulf %995, %1355 : vector<1x128xf32>
      %1456 = arith.addf %1454, %1455 : vector<1x128xf32>
      %1457 = arith.mulf %1006, %1278 : vector<1x128xf32>
      %1458 = arith.mulf %1017, %1306 : vector<1x128xf32>
      %1459 = arith.addf %1457, %1458 : vector<1x128xf32>
      %1460 = arith.mulf %1028, %1334 : vector<1x128xf32>
      %1461 = arith.addf %1459, %1460 : vector<1x128xf32>
      %1462 = arith.mulf %1006, %1285 : vector<1x128xf32>
      %1463 = arith.mulf %1017, %1313 : vector<1x128xf32>
      %1464 = arith.addf %1462, %1463 : vector<1x128xf32>
      %1465 = arith.mulf %1028, %1341 : vector<1x128xf32>
      %1466 = arith.addf %1464, %1465 : vector<1x128xf32>
      %1467 = arith.mulf %1006, %1292 : vector<1x128xf32>
      %1468 = arith.mulf %1017, %1320 : vector<1x128xf32>
      %1469 = arith.addf %1467, %1468 : vector<1x128xf32>
      %1470 = arith.mulf %1028, %1348 : vector<1x128xf32>
      %1471 = arith.addf %1469, %1470 : vector<1x128xf32>
      %1472 = arith.mulf %1006, %1299 : vector<1x128xf32>
      %1473 = arith.mulf %1017, %1327 : vector<1x128xf32>
      %1474 = arith.addf %1472, %1473 : vector<1x128xf32>
      %1475 = arith.mulf %1028, %1355 : vector<1x128xf32>
      %1476 = arith.addf %1474, %1475 : vector<1x128xf32>
      %1477 = arith.mulf %1039, %1278 : vector<1x128xf32>
      %1478 = arith.mulf %1050, %1306 : vector<1x128xf32>
      %1479 = arith.addf %1477, %1478 : vector<1x128xf32>
      %1480 = arith.mulf %1061, %1334 : vector<1x128xf32>
      %1481 = arith.addf %1479, %1480 : vector<1x128xf32>
      %1482 = arith.mulf %1039, %1285 : vector<1x128xf32>
      %1483 = arith.mulf %1050, %1313 : vector<1x128xf32>
      %1484 = arith.addf %1482, %1483 : vector<1x128xf32>
      %1485 = arith.mulf %1061, %1341 : vector<1x128xf32>
      %1486 = arith.addf %1484, %1485 : vector<1x128xf32>
      %1487 = arith.mulf %1039, %1292 : vector<1x128xf32>
      %1488 = arith.mulf %1050, %1320 : vector<1x128xf32>
      %1489 = arith.addf %1487, %1488 : vector<1x128xf32>
      %1490 = arith.mulf %1061, %1348 : vector<1x128xf32>
      %1491 = arith.addf %1489, %1490 : vector<1x128xf32>
      %1492 = arith.mulf %1039, %1299 : vector<1x128xf32>
      %1493 = arith.mulf %1050, %1327 : vector<1x128xf32>
      %1494 = arith.addf %1492, %1493 : vector<1x128xf32>
      %1495 = arith.mulf %1061, %1355 : vector<1x128xf32>
      %1496 = arith.addf %1494, %1495 : vector<1x128xf32>
      %1497 = arith.mulf %1072, %1278 : vector<1x128xf32>
      %1498 = arith.mulf %1083, %1306 : vector<1x128xf32>
      %1499 = arith.addf %1497, %1498 : vector<1x128xf32>
      %1500 = arith.mulf %1094, %1334 : vector<1x128xf32>
      %1501 = arith.addf %1499, %1500 : vector<1x128xf32>
      %1502 = arith.mulf %1072, %1285 : vector<1x128xf32>
      %1503 = arith.mulf %1083, %1313 : vector<1x128xf32>
      %1504 = arith.addf %1502, %1503 : vector<1x128xf32>
      %1505 = arith.mulf %1094, %1341 : vector<1x128xf32>
      %1506 = arith.addf %1504, %1505 : vector<1x128xf32>
      %1507 = arith.mulf %1072, %1292 : vector<1x128xf32>
      %1508 = arith.mulf %1083, %1320 : vector<1x128xf32>
      %1509 = arith.addf %1507, %1508 : vector<1x128xf32>
      %1510 = arith.mulf %1094, %1348 : vector<1x128xf32>
      %1511 = arith.addf %1509, %1510 : vector<1x128xf32>
      %1512 = arith.mulf %1072, %1299 : vector<1x128xf32>
      %1513 = arith.mulf %1083, %1327 : vector<1x128xf32>
      %1514 = arith.addf %1512, %1513 : vector<1x128xf32>
      %1515 = arith.mulf %1094, %1355 : vector<1x128xf32>
      %1516 = arith.addf %1514, %1515 : vector<1x128xf32>
      %1517 = arith.mulf %1105, %1278 : vector<1x128xf32>
      %1518 = arith.mulf %1116, %1306 : vector<1x128xf32>
      %1519 = arith.addf %1517, %1518 : vector<1x128xf32>
      %1520 = arith.mulf %1127, %1334 : vector<1x128xf32>
      %1521 = arith.addf %1519, %1520 : vector<1x128xf32>
      %1522 = arith.mulf %1105, %1285 : vector<1x128xf32>
      %1523 = arith.mulf %1116, %1313 : vector<1x128xf32>
      %1524 = arith.addf %1522, %1523 : vector<1x128xf32>
      %1525 = arith.mulf %1127, %1341 : vector<1x128xf32>
      %1526 = arith.addf %1524, %1525 : vector<1x128xf32>
      %1527 = arith.mulf %1105, %1292 : vector<1x128xf32>
      %1528 = arith.mulf %1116, %1320 : vector<1x128xf32>
      %1529 = arith.addf %1527, %1528 : vector<1x128xf32>
      %1530 = arith.mulf %1127, %1348 : vector<1x128xf32>
      %1531 = arith.addf %1529, %1530 : vector<1x128xf32>
      %1532 = arith.mulf %1105, %1299 : vector<1x128xf32>
      %1533 = arith.mulf %1116, %1327 : vector<1x128xf32>
      %1534 = arith.addf %1532, %1533 : vector<1x128xf32>
      %1535 = arith.mulf %1127, %1355 : vector<1x128xf32>
      %1536 = arith.addf %1534, %1535 : vector<1x128xf32>
      %1537 = arith.mulf %1116, %1278 : vector<1x128xf32>
      %1538 = arith.mulf %1138, %1306 : vector<1x128xf32>
      %1539 = arith.addf %1537, %1538 : vector<1x128xf32>
      %1540 = arith.mulf %1149, %1334 : vector<1x128xf32>
      %1541 = arith.addf %1539, %1540 : vector<1x128xf32>
      %1542 = arith.mulf %1116, %1285 : vector<1x128xf32>
      %1543 = arith.mulf %1138, %1313 : vector<1x128xf32>
      %1544 = arith.addf %1542, %1543 : vector<1x128xf32>
      %1545 = arith.mulf %1149, %1341 : vector<1x128xf32>
      %1546 = arith.addf %1544, %1545 : vector<1x128xf32>
      %1547 = arith.mulf %1116, %1292 : vector<1x128xf32>
      %1548 = arith.mulf %1138, %1320 : vector<1x128xf32>
      %1549 = arith.addf %1547, %1548 : vector<1x128xf32>
      %1550 = arith.mulf %1149, %1348 : vector<1x128xf32>
      %1551 = arith.addf %1549, %1550 : vector<1x128xf32>
      %1552 = arith.mulf %1116, %1299 : vector<1x128xf32>
      %1553 = arith.mulf %1138, %1327 : vector<1x128xf32>
      %1554 = arith.addf %1552, %1553 : vector<1x128xf32>
      %1555 = arith.mulf %1149, %1355 : vector<1x128xf32>
      %1556 = arith.addf %1554, %1555 : vector<1x128xf32>
      %1557 = arith.mulf %1127, %1278 : vector<1x128xf32>
      %1558 = arith.mulf %1149, %1306 : vector<1x128xf32>
      %1559 = arith.addf %1557, %1558 : vector<1x128xf32>
      %1560 = arith.mulf %1160, %1334 : vector<1x128xf32>
      %1561 = arith.addf %1559, %1560 : vector<1x128xf32>
      %1562 = arith.mulf %1127, %1285 : vector<1x128xf32>
      %1563 = arith.mulf %1149, %1313 : vector<1x128xf32>
      %1564 = arith.addf %1562, %1563 : vector<1x128xf32>
      %1565 = arith.mulf %1160, %1341 : vector<1x128xf32>
      %1566 = arith.addf %1564, %1565 : vector<1x128xf32>
      %1567 = arith.mulf %1127, %1292 : vector<1x128xf32>
      %1568 = arith.mulf %1149, %1320 : vector<1x128xf32>
      %1569 = arith.addf %1567, %1568 : vector<1x128xf32>
      %1570 = arith.mulf %1160, %1348 : vector<1x128xf32>
      %1571 = arith.addf %1569, %1570 : vector<1x128xf32>
      %1572 = arith.mulf %1127, %1299 : vector<1x128xf32>
      %1573 = arith.mulf %1149, %1327 : vector<1x128xf32>
      %1574 = arith.addf %1572, %1573 : vector<1x128xf32>
      %1575 = arith.mulf %1160, %1355 : vector<1x128xf32>
      %1576 = arith.addf %1574, %1575 : vector<1x128xf32>
      %1577 = arith.addf %863, %1441 : vector<1x128xf32>
      %1578 = arith.addf %1577, %1441 : vector<1x128xf32>
      %1579 = arith.mulf %1278, %1521 : vector<1x128xf32>
      %1580 = arith.mulf %1306, %1541 : vector<1x128xf32>
      %1581 = arith.addf %1579, %1580 : vector<1x128xf32>
      %1582 = arith.mulf %1334, %1561 : vector<1x128xf32>
      %1583 = arith.addf %1581, %1582 : vector<1x128xf32>
      %1584 = arith.addf %1578, %1583 : vector<1x128xf32>
      %1585 = arith.addf %874, %1446 : vector<1x128xf32>
      %1586 = arith.addf %1585, %1461 : vector<1x128xf32>
      %1587 = arith.mulf %1278, %1526 : vector<1x128xf32>
      %1588 = arith.mulf %1306, %1546 : vector<1x128xf32>
      %1589 = arith.addf %1587, %1588 : vector<1x128xf32>
      %1590 = arith.mulf %1334, %1566 : vector<1x128xf32>
      %1591 = arith.addf %1589, %1590 : vector<1x128xf32>
      %1592 = arith.addf %1586, %1591 : vector<1x128xf32>
      %1593 = arith.addf %885, %1451 : vector<1x128xf32>
      %1594 = arith.addf %1593, %1481 : vector<1x128xf32>
      %1595 = arith.mulf %1278, %1531 : vector<1x128xf32>
      %1596 = arith.mulf %1306, %1551 : vector<1x128xf32>
      %1597 = arith.addf %1595, %1596 : vector<1x128xf32>
      %1598 = arith.mulf %1334, %1571 : vector<1x128xf32>
      %1599 = arith.addf %1597, %1598 : vector<1x128xf32>
      %1600 = arith.addf %1594, %1599 : vector<1x128xf32>
      %1601 = arith.addf %896, %1456 : vector<1x128xf32>
      %1602 = arith.addf %1601, %1501 : vector<1x128xf32>
      %1603 = arith.mulf %1278, %1536 : vector<1x128xf32>
      %1604 = arith.mulf %1306, %1556 : vector<1x128xf32>
      %1605 = arith.addf %1603, %1604 : vector<1x128xf32>
      %1606 = arith.mulf %1334, %1576 : vector<1x128xf32>
      %1607 = arith.addf %1605, %1606 : vector<1x128xf32>
      %1608 = arith.addf %1602, %1607 : vector<1x128xf32>
      %1609 = arith.addf %907, %1466 : vector<1x128xf32>
      %1610 = arith.addf %1609, %1466 : vector<1x128xf32>
      %1611 = arith.mulf %1285, %1526 : vector<1x128xf32>
      %1612 = arith.mulf %1313, %1546 : vector<1x128xf32>
      %1613 = arith.addf %1611, %1612 : vector<1x128xf32>
      %1614 = arith.mulf %1341, %1566 : vector<1x128xf32>
      %1615 = arith.addf %1613, %1614 : vector<1x128xf32>
      %1616 = arith.addf %1610, %1615 : vector<1x128xf32>
      %1617 = arith.addf %918, %1471 : vector<1x128xf32>
      %1618 = arith.addf %1617, %1486 : vector<1x128xf32>
      %1619 = arith.mulf %1285, %1531 : vector<1x128xf32>
      %1620 = arith.mulf %1313, %1551 : vector<1x128xf32>
      %1621 = arith.addf %1619, %1620 : vector<1x128xf32>
      %1622 = arith.mulf %1341, %1571 : vector<1x128xf32>
      %1623 = arith.addf %1621, %1622 : vector<1x128xf32>
      %1624 = arith.addf %1618, %1623 : vector<1x128xf32>
      %1625 = arith.addf %929, %1476 : vector<1x128xf32>
      %1626 = arith.addf %1625, %1506 : vector<1x128xf32>
      %1627 = arith.mulf %1285, %1536 : vector<1x128xf32>
      %1628 = arith.mulf %1313, %1556 : vector<1x128xf32>
      %1629 = arith.addf %1627, %1628 : vector<1x128xf32>
      %1630 = arith.mulf %1341, %1576 : vector<1x128xf32>
      %1631 = arith.addf %1629, %1630 : vector<1x128xf32>
      %1632 = arith.addf %1626, %1631 : vector<1x128xf32>
      %1633 = arith.addf %940, %1491 : vector<1x128xf32>
      %1634 = arith.addf %1633, %1491 : vector<1x128xf32>
      %1635 = arith.mulf %1292, %1531 : vector<1x128xf32>
      %1636 = arith.mulf %1320, %1551 : vector<1x128xf32>
      %1637 = arith.addf %1635, %1636 : vector<1x128xf32>
      %1638 = arith.mulf %1348, %1571 : vector<1x128xf32>
      %1639 = arith.addf %1637, %1638 : vector<1x128xf32>
      %1640 = arith.addf %1634, %1639 : vector<1x128xf32>
      %1641 = arith.addf %951, %1496 : vector<1x128xf32>
      %1642 = arith.addf %1641, %1511 : vector<1x128xf32>
      %1643 = arith.mulf %1292, %1536 : vector<1x128xf32>
      %1644 = arith.mulf %1320, %1556 : vector<1x128xf32>
      %1645 = arith.addf %1643, %1644 : vector<1x128xf32>
      %1646 = arith.mulf %1348, %1576 : vector<1x128xf32>
      %1647 = arith.addf %1645, %1646 : vector<1x128xf32>
      %1648 = arith.addf %1642, %1647 : vector<1x128xf32>
      %1649 = arith.addf %962, %1516 : vector<1x128xf32>
      %1650 = arith.addf %1649, %1516 : vector<1x128xf32>
      %1651 = arith.mulf %1299, %1536 : vector<1x128xf32>
      %1652 = arith.mulf %1327, %1556 : vector<1x128xf32>
      %1653 = arith.addf %1651, %1652 : vector<1x128xf32>
      %1654 = arith.mulf %1355, %1576 : vector<1x128xf32>
      %1655 = arith.addf %1653, %1654 : vector<1x128xf32>
      %1656 = arith.addf %1650, %1655 : vector<1x128xf32>
      %1657 = arith.mulf %1105, %1362 : vector<1x128xf32>
      %1658 = arith.mulf %1116, %1369 : vector<1x128xf32>
      %1659 = arith.addf %1657, %1658 : vector<1x128xf32>
      %1660 = arith.mulf %1127, %1376 : vector<1x128xf32>
      %1661 = arith.addf %1659, %1660 : vector<1x128xf32>
      %1662 = arith.addf %1215, %1661 : vector<1x128xf32>
      %1663 = arith.mulf %1116, %1362 : vector<1x128xf32>
      %1664 = arith.mulf %1138, %1369 : vector<1x128xf32>
      %1665 = arith.addf %1663, %1664 : vector<1x128xf32>
      %1666 = arith.mulf %1149, %1376 : vector<1x128xf32>
      %1667 = arith.addf %1665, %1666 : vector<1x128xf32>
      %1668 = arith.addf %1226, %1667 : vector<1x128xf32>
      %1669 = arith.mulf %1127, %1362 : vector<1x128xf32>
      %1670 = arith.mulf %1149, %1369 : vector<1x128xf32>
      %1671 = arith.addf %1669, %1670 : vector<1x128xf32>
      %1672 = arith.mulf %1160, %1376 : vector<1x128xf32>
      %1673 = arith.addf %1671, %1672 : vector<1x128xf32>
      %1674 = arith.addf %1237, %1673 : vector<1x128xf32>
      %1675 = arith.mulf %973, %1362 : vector<1x128xf32>
      %1676 = arith.mulf %984, %1369 : vector<1x128xf32>
      %1677 = arith.addf %1675, %1676 : vector<1x128xf32>
      %1678 = arith.mulf %995, %1376 : vector<1x128xf32>
      %1679 = arith.addf %1677, %1678 : vector<1x128xf32>
      %1680 = arith.addf %1171, %1679 : vector<1x128xf32>
      %1681 = arith.mulf %1278, %1662 : vector<1x128xf32>
      %1682 = arith.mulf %1306, %1668 : vector<1x128xf32>
      %1683 = arith.addf %1681, %1682 : vector<1x128xf32>
      %1684 = arith.mulf %1334, %1674 : vector<1x128xf32>
      %1685 = arith.addf %1683, %1684 : vector<1x128xf32>
      %1686 = arith.addf %1680, %1685 : vector<1x128xf32>
      %1687 = arith.mulf %1006, %1362 : vector<1x128xf32>
      %1688 = arith.mulf %1017, %1369 : vector<1x128xf32>
      %1689 = arith.addf %1687, %1688 : vector<1x128xf32>
      %1690 = arith.mulf %1028, %1376 : vector<1x128xf32>
      %1691 = arith.addf %1689, %1690 : vector<1x128xf32>
      %1692 = arith.addf %1182, %1691 : vector<1x128xf32>
      %1693 = arith.mulf %1285, %1662 : vector<1x128xf32>
      %1694 = arith.mulf %1313, %1668 : vector<1x128xf32>
      %1695 = arith.addf %1693, %1694 : vector<1x128xf32>
      %1696 = arith.mulf %1341, %1674 : vector<1x128xf32>
      %1697 = arith.addf %1695, %1696 : vector<1x128xf32>
      %1698 = arith.addf %1692, %1697 : vector<1x128xf32>
      %1699 = arith.mulf %1039, %1362 : vector<1x128xf32>
      %1700 = arith.mulf %1050, %1369 : vector<1x128xf32>
      %1701 = arith.addf %1699, %1700 : vector<1x128xf32>
      %1702 = arith.mulf %1061, %1376 : vector<1x128xf32>
      %1703 = arith.addf %1701, %1702 : vector<1x128xf32>
      %1704 = arith.addf %1193, %1703 : vector<1x128xf32>
      %1705 = arith.mulf %1292, %1662 : vector<1x128xf32>
      %1706 = arith.mulf %1320, %1668 : vector<1x128xf32>
      %1707 = arith.addf %1705, %1706 : vector<1x128xf32>
      %1708 = arith.mulf %1348, %1674 : vector<1x128xf32>
      %1709 = arith.addf %1707, %1708 : vector<1x128xf32>
      %1710 = arith.addf %1704, %1709 : vector<1x128xf32>
      %1711 = arith.mulf %1072, %1362 : vector<1x128xf32>
      %1712 = arith.mulf %1083, %1369 : vector<1x128xf32>
      %1713 = arith.addf %1711, %1712 : vector<1x128xf32>
      %1714 = arith.mulf %1094, %1376 : vector<1x128xf32>
      %1715 = arith.addf %1713, %1714 : vector<1x128xf32>
      %1716 = arith.addf %1204, %1715 : vector<1x128xf32>
      %1717 = arith.mulf %1299, %1662 : vector<1x128xf32>
      %1718 = arith.mulf %1327, %1668 : vector<1x128xf32>
      %1719 = arith.addf %1717, %1718 : vector<1x128xf32>
      %1720 = arith.mulf %1355, %1674 : vector<1x128xf32>
      %1721 = arith.addf %1719, %1720 : vector<1x128xf32>
      %1722 = arith.addf %1716, %1721 : vector<1x128xf32>
      scf.yield %1584, %1592, %1600, %1608, %1616, %1624, %1632, %1640, %1648, %1656, %1686, %1698, %1710, %1722 : vector<1x128xf32>, vector<1x128xf32>, vector<1x128xf32>, vector<1x128xf32>, vector<1x128xf32>, vector<1x128xf32>, vector<1x128xf32>, vector<1x128xf32>, vector<1x128xf32>, vector<1x128xf32>, vector<1x128xf32>, vector<1x128xf32>, vector<1x128xf32>, vector<1x128xf32>
    }
    %c4_i32_196 = arith.constant 4 : i32
    %c0_197 = arith.constant 0 : index
    %c0_198 = arith.constant 0 : index
    %c0_199 = arith.constant 0 : index
    %548 = vector.load %arg6[%c0_197, %c0_198, %c0_199] : memref<4x1x128xf32, #tpu.memory_space<vmem>>, vector<1x1x128xf32>
    %549 = vector.shape_cast %548 : vector<1x1x128xf32> to vector<1x128xf32>
    %c1_200 = arith.constant 1 : index
    %c0_201 = arith.constant 0 : index
    %c0_202 = arith.constant 0 : index
    %550 = vector.load %arg6[%c1_200, %c0_201, %c0_202] : memref<4x1x128xf32, #tpu.memory_space<vmem>>, vector<1x1x128xf32>
    %551 = vector.shape_cast %550 : vector<1x1x128xf32> to vector<1x128xf32>
    %c2_203 = arith.constant 2 : index
    %c0_204 = arith.constant 0 : index
    %c0_205 = arith.constant 0 : index
    %552 = vector.load %arg6[%c2_203, %c0_204, %c0_205] : memref<4x1x128xf32, #tpu.memory_space<vmem>>, vector<1x1x128xf32>
    %553 = vector.shape_cast %552 : vector<1x1x128xf32> to vector<1x128xf32>
    %c3_206 = arith.constant 3 : index
    %c0_207 = arith.constant 0 : index
    %c0_208 = arith.constant 0 : index
    %554 = vector.load %arg6[%c3_206, %c0_207, %c0_208] : memref<4x1x128xf32, #tpu.memory_space<vmem>>, vector<1x1x128xf32>
    %555 = vector.shape_cast %554 : vector<1x1x128xf32> to vector<1x128xf32>
    %cst_209 = arith.constant 0.000000e+00 : f32
    %556 = vector.broadcast %cst_209 : f32 to vector<1x128xf32>
    %c0_i32 = arith.constant 0 : i32
    %c5_i32 = arith.constant 5 : i32
    %557 = arith.addi %c0_i32, %c5_i32 : i32
    %c1_i32_210 = arith.constant 1 : i32
    %558:5 = scf.for %arg12 = %c0_i32 to %557 step %c1_i32_210 iter_args(%arg13 = %549, %arg14 = %551, %arg15 = %553, %arg16 = %555, %arg17 = %556) -> (vector<1x128xf32>, vector<1x128xf32>, vector<1x128xf32>, vector<1x128xf32>, vector<1x128xf32>)  : i32 {
      %c0_214 = arith.constant 0 : index
      %c0_215 = arith.constant 0 : index
      %c0_216 = arith.constant 0 : index
      %560 = vector.load %arg3[%c0_214, %c0_215, %c0_216] : memref<16x1x128xf32, #tpu.memory_space<vmem>>, vector<1x1x128xf32>
      %561 = vector.shape_cast %560 : vector<1x1x128xf32> to vector<1x128xf32>
      %c1_217 = arith.constant 1 : index
      %c0_218 = arith.constant 0 : index
      %c0_219 = arith.constant 0 : index
      %562 = vector.load %arg3[%c1_217, %c0_218, %c0_219] : memref<16x1x128xf32, #tpu.memory_space<vmem>>, vector<1x1x128xf32>
      %563 = vector.shape_cast %562 : vector<1x1x128xf32> to vector<1x128xf32>
      %c2_220 = arith.constant 2 : index
      %c0_221 = arith.constant 0 : index
      %c0_222 = arith.constant 0 : index
      %564 = vector.load %arg3[%c2_220, %c0_221, %c0_222] : memref<16x1x128xf32, #tpu.memory_space<vmem>>, vector<1x1x128xf32>
      %565 = vector.shape_cast %564 : vector<1x1x128xf32> to vector<1x128xf32>
      %c3_223 = arith.constant 3 : index
      %c0_224 = arith.constant 0 : index
      %c0_225 = arith.constant 0 : index
      %566 = vector.load %arg3[%c3_223, %c0_224, %c0_225] : memref<16x1x128xf32, #tpu.memory_space<vmem>>, vector<1x1x128xf32>
      %567 = vector.shape_cast %566 : vector<1x1x128xf32> to vector<1x128xf32>
      %c4_226 = arith.constant 4 : index
      %c0_227 = arith.constant 0 : index
      %c0_228 = arith.constant 0 : index
      %568 = vector.load %arg3[%c4_226, %c0_227, %c0_228] : memref<16x1x128xf32, #tpu.memory_space<vmem>>, vector<1x1x128xf32>
      %569 = vector.shape_cast %568 : vector<1x1x128xf32> to vector<1x128xf32>
      %c5_229 = arith.constant 5 : index
      %c0_230 = arith.constant 0 : index
      %c0_231 = arith.constant 0 : index
      %570 = vector.load %arg3[%c5_229, %c0_230, %c0_231] : memref<16x1x128xf32, #tpu.memory_space<vmem>>, vector<1x1x128xf32>
      %571 = vector.shape_cast %570 : vector<1x1x128xf32> to vector<1x128xf32>
      %c6_232 = arith.constant 6 : index
      %c0_233 = arith.constant 0 : index
      %c0_234 = arith.constant 0 : index
      %572 = vector.load %arg3[%c6_232, %c0_233, %c0_234] : memref<16x1x128xf32, #tpu.memory_space<vmem>>, vector<1x1x128xf32>
      %573 = vector.shape_cast %572 : vector<1x1x128xf32> to vector<1x128xf32>
      %c7_235 = arith.constant 7 : index
      %c0_236 = arith.constant 0 : index
      %c0_237 = arith.constant 0 : index
      %574 = vector.load %arg3[%c7_235, %c0_236, %c0_237] : memref<16x1x128xf32, #tpu.memory_space<vmem>>, vector<1x1x128xf32>
      %575 = vector.shape_cast %574 : vector<1x1x128xf32> to vector<1x128xf32>
      %c8_238 = arith.constant 8 : index
      %c0_239 = arith.constant 0 : index
      %c0_240 = arith.constant 0 : index
      %576 = vector.load %arg3[%c8_238, %c0_239, %c0_240] : memref<16x1x128xf32, #tpu.memory_space<vmem>>, vector<1x1x128xf32>
      %577 = vector.shape_cast %576 : vector<1x1x128xf32> to vector<1x128xf32>
      %c9_241 = arith.constant 9 : index
      %c0_242 = arith.constant 0 : index
      %c0_243 = arith.constant 0 : index
      %578 = vector.load %arg3[%c9_241, %c0_242, %c0_243] : memref<16x1x128xf32, #tpu.memory_space<vmem>>, vector<1x1x128xf32>
      %579 = vector.shape_cast %578 : vector<1x1x128xf32> to vector<1x128xf32>
      %c10_244 = arith.constant 10 : index
      %c0_245 = arith.constant 0 : index
      %c0_246 = arith.constant 0 : index
      %580 = vector.load %arg3[%c10_244, %c0_245, %c0_246] : memref<16x1x128xf32, #tpu.memory_space<vmem>>, vector<1x1x128xf32>
      %581 = vector.shape_cast %580 : vector<1x1x128xf32> to vector<1x128xf32>
      %c11_247 = arith.constant 11 : index
      %c0_248 = arith.constant 0 : index
      %c0_249 = arith.constant 0 : index
      %582 = vector.load %arg3[%c11_247, %c0_248, %c0_249] : memref<16x1x128xf32, #tpu.memory_space<vmem>>, vector<1x1x128xf32>
      %583 = vector.shape_cast %582 : vector<1x1x128xf32> to vector<1x128xf32>
      %c12_250 = arith.constant 12 : index
      %c0_251 = arith.constant 0 : index
      %c0_252 = arith.constant 0 : index
      %584 = vector.load %arg3[%c12_250, %c0_251, %c0_252] : memref<16x1x128xf32, #tpu.memory_space<vmem>>, vector<1x1x128xf32>
      %585 = vector.shape_cast %584 : vector<1x1x128xf32> to vector<1x128xf32>
      %c13_253 = arith.constant 13 : index
      %c0_254 = arith.constant 0 : index
      %c0_255 = arith.constant 0 : index
      %586 = vector.load %arg3[%c13_253, %c0_254, %c0_255] : memref<16x1x128xf32, #tpu.memory_space<vmem>>, vector<1x1x128xf32>
      %587 = vector.shape_cast %586 : vector<1x1x128xf32> to vector<1x128xf32>
      %c14 = arith.constant 14 : index
      %c0_256 = arith.constant 0 : index
      %c0_257 = arith.constant 0 : index
      %588 = vector.load %arg3[%c14, %c0_256, %c0_257] : memref<16x1x128xf32, #tpu.memory_space<vmem>>, vector<1x1x128xf32>
      %589 = vector.shape_cast %588 : vector<1x1x128xf32> to vector<1x128xf32>
      %c15 = arith.constant 15 : index
      %c0_258 = arith.constant 0 : index
      %c0_259 = arith.constant 0 : index
      %590 = vector.load %arg3[%c15, %c0_258, %c0_259] : memref<16x1x128xf32, #tpu.memory_space<vmem>>, vector<1x1x128xf32>
      %591 = vector.shape_cast %590 : vector<1x1x128xf32> to vector<1x128xf32>
      %c0_260 = arith.constant 0 : index
      %c0_261 = arith.constant 0 : index
      %c0_262 = arith.constant 0 : index
      %592 = vector.load %arg4[%c0_260, %c0_261, %c0_262] : memref<12x1x128xf32, #tpu.memory_space<vmem>>, vector<1x1x128xf32>
      %593 = vector.shape_cast %592 : vector<1x1x128xf32> to vector<1x128xf32>
      %c1_263 = arith.constant 1 : index
      %c0_264 = arith.constant 0 : index
      %c0_265 = arith.constant 0 : index
      %594 = vector.load %arg4[%c1_263, %c0_264, %c0_265] : memref<12x1x128xf32, #tpu.memory_space<vmem>>, vector<1x1x128xf32>
      %595 = vector.shape_cast %594 : vector<1x1x128xf32> to vector<1x128xf32>
      %c2_266 = arith.constant 2 : index
      %c0_267 = arith.constant 0 : index
      %c0_268 = arith.constant 0 : index
      %596 = vector.load %arg4[%c2_266, %c0_267, %c0_268] : memref<12x1x128xf32, #tpu.memory_space<vmem>>, vector<1x1x128xf32>
      %597 = vector.shape_cast %596 : vector<1x1x128xf32> to vector<1x128xf32>
      %c3_269 = arith.constant 3 : index
      %c0_270 = arith.constant 0 : index
      %c0_271 = arith.constant 0 : index
      %598 = vector.load %arg4[%c3_269, %c0_270, %c0_271] : memref<12x1x128xf32, #tpu.memory_space<vmem>>, vector<1x1x128xf32>
      %599 = vector.shape_cast %598 : vector<1x1x128xf32> to vector<1x128xf32>
      %c4_272 = arith.constant 4 : index
      %c0_273 = arith.constant 0 : index
      %c0_274 = arith.constant 0 : index
      %600 = vector.load %arg4[%c4_272, %c0_273, %c0_274] : memref<12x1x128xf32, #tpu.memory_space<vmem>>, vector<1x1x128xf32>
      %601 = vector.shape_cast %600 : vector<1x1x128xf32> to vector<1x128xf32>
      %c5_275 = arith.constant 5 : index
      %c0_276 = arith.constant 0 : index
      %c0_277 = arith.constant 0 : index
      %602 = vector.load %arg4[%c5_275, %c0_276, %c0_277] : memref<12x1x128xf32, #tpu.memory_space<vmem>>, vector<1x1x128xf32>
      %603 = vector.shape_cast %602 : vector<1x1x128xf32> to vector<1x128xf32>
      %c6_278 = arith.constant 6 : index
      %c0_279 = arith.constant 0 : index
      %c0_280 = arith.constant 0 : index
      %604 = vector.load %arg4[%c6_278, %c0_279, %c0_280] : memref<12x1x128xf32, #tpu.memory_space<vmem>>, vector<1x1x128xf32>
      %605 = vector.shape_cast %604 : vector<1x1x128xf32> to vector<1x128xf32>
      %c7_281 = arith.constant 7 : index
      %c0_282 = arith.constant 0 : index
      %c0_283 = arith.constant 0 : index
      %606 = vector.load %arg4[%c7_281, %c0_282, %c0_283] : memref<12x1x128xf32, #tpu.memory_space<vmem>>, vector<1x1x128xf32>
      %607 = vector.shape_cast %606 : vector<1x1x128xf32> to vector<1x128xf32>
      %c8_284 = arith.constant 8 : index
      %c0_285 = arith.constant 0 : index
      %c0_286 = arith.constant 0 : index
      %608 = vector.load %arg4[%c8_284, %c0_285, %c0_286] : memref<12x1x128xf32, #tpu.memory_space<vmem>>, vector<1x1x128xf32>
      %609 = vector.shape_cast %608 : vector<1x1x128xf32> to vector<1x128xf32>
      %c9_287 = arith.constant 9 : index
      %c0_288 = arith.constant 0 : index
      %c0_289 = arith.constant 0 : index
      %610 = vector.load %arg4[%c9_287, %c0_288, %c0_289] : memref<12x1x128xf32, #tpu.memory_space<vmem>>, vector<1x1x128xf32>
      %611 = vector.shape_cast %610 : vector<1x1x128xf32> to vector<1x128xf32>
      %c10_290 = arith.constant 10 : index
      %c0_291 = arith.constant 0 : index
      %c0_292 = arith.constant 0 : index
      %612 = vector.load %arg4[%c10_290, %c0_291, %c0_292] : memref<12x1x128xf32, #tpu.memory_space<vmem>>, vector<1x1x128xf32>
      %613 = vector.shape_cast %612 : vector<1x1x128xf32> to vector<1x128xf32>
      %c11_293 = arith.constant 11 : index
      %c0_294 = arith.constant 0 : index
      %c0_295 = arith.constant 0 : index
      %614 = vector.load %arg4[%c11_293, %c0_294, %c0_295] : memref<12x1x128xf32, #tpu.memory_space<vmem>>, vector<1x1x128xf32>
      %615 = vector.shape_cast %614 : vector<1x1x128xf32> to vector<1x128xf32>
      %c0_296 = arith.constant 0 : index
      %c0_297 = arith.constant 0 : index
      %c0_298 = arith.constant 0 : index
      %616 = vector.load %arg5[%c0_296, %c0_297, %c0_298] : memref<4x1x128xf32, #tpu.memory_space<vmem>>, vector<1x1x128xf32>
      %617 = vector.shape_cast %616 : vector<1x1x128xf32> to vector<1x128xf32>
      %c1_299 = arith.constant 1 : index
      %c0_300 = arith.constant 0 : index
      %c0_301 = arith.constant 0 : index
      %618 = vector.load %arg5[%c1_299, %c0_300, %c0_301] : memref<4x1x128xf32, #tpu.memory_space<vmem>>, vector<1x1x128xf32>
      %619 = vector.shape_cast %618 : vector<1x1x128xf32> to vector<1x128xf32>
      %c2_302 = arith.constant 2 : index
      %c0_303 = arith.constant 0 : index
      %c0_304 = arith.constant 0 : index
      %620 = vector.load %arg5[%c2_302, %c0_303, %c0_304] : memref<4x1x128xf32, #tpu.memory_space<vmem>>, vector<1x1x128xf32>
      %621 = vector.shape_cast %620 : vector<1x1x128xf32> to vector<1x128xf32>
      %c3_305 = arith.constant 3 : index
      %c0_306 = arith.constant 0 : index
      %c0_307 = arith.constant 0 : index
      %622 = vector.load %arg5[%c3_305, %c0_306, %c0_307] : memref<4x1x128xf32, #tpu.memory_space<vmem>>, vector<1x1x128xf32>
      %623 = vector.shape_cast %622 : vector<1x1x128xf32> to vector<1x128xf32>
      %624 = arith.index_cast %arg12 : i32 to index
      %c0_308 = arith.constant 0 : index
      %c0_309 = arith.constant 0 : index
      %c0_310 = arith.constant 0 : index
      %625 = vector.load %arg10[%624, %c0_308, %c0_309, %c0_310] : memref<5x12x1x128xf32, #tpu.memory_space<vmem>>, vector<1x1x1x128xf32>
      %626 = vector.shape_cast %625 : vector<1x1x1x128xf32> to vector<1x128xf32>
      %627 = arith.index_cast %arg12 : i32 to index
      %c1_311 = arith.constant 1 : index
      %c0_312 = arith.constant 0 : index
      %c0_313 = arith.constant 0 : index
      %628 = vector.load %arg10[%627, %c1_311, %c0_312, %c0_313] : memref<5x12x1x128xf32, #tpu.memory_space<vmem>>, vector<1x1x1x128xf32>
      %629 = vector.shape_cast %628 : vector<1x1x1x128xf32> to vector<1x128xf32>
      %630 = arith.index_cast %arg12 : i32 to index
      %c2_314 = arith.constant 2 : index
      %c0_315 = arith.constant 0 : index
      %c0_316 = arith.constant 0 : index
      %631 = vector.load %arg10[%630, %c2_314, %c0_315, %c0_316] : memref<5x12x1x128xf32, #tpu.memory_space<vmem>>, vector<1x1x1x128xf32>
      %632 = vector.shape_cast %631 : vector<1x1x1x128xf32> to vector<1x128xf32>
      %633 = arith.index_cast %arg12 : i32 to index
      %c3_317 = arith.constant 3 : index
      %c0_318 = arith.constant 0 : index
      %c0_319 = arith.constant 0 : index
      %634 = vector.load %arg10[%633, %c3_317, %c0_318, %c0_319] : memref<5x12x1x128xf32, #tpu.memory_space<vmem>>, vector<1x1x1x128xf32>
      %635 = vector.shape_cast %634 : vector<1x1x1x128xf32> to vector<1x128xf32>
      %636 = arith.index_cast %arg12 : i32 to index
      %c4_320 = arith.constant 4 : index
      %c0_321 = arith.constant 0 : index
      %c0_322 = arith.constant 0 : index
      %637 = vector.load %arg10[%636, %c4_320, %c0_321, %c0_322] : memref<5x12x1x128xf32, #tpu.memory_space<vmem>>, vector<1x1x1x128xf32>
      %638 = vector.shape_cast %637 : vector<1x1x1x128xf32> to vector<1x128xf32>
      %639 = arith.index_cast %arg12 : i32 to index
      %c5_323 = arith.constant 5 : index
      %c0_324 = arith.constant 0 : index
      %c0_325 = arith.constant 0 : index
      %640 = vector.load %arg10[%639, %c5_323, %c0_324, %c0_325] : memref<5x12x1x128xf32, #tpu.memory_space<vmem>>, vector<1x1x1x128xf32>
      %641 = vector.shape_cast %640 : vector<1x1x1x128xf32> to vector<1x128xf32>
      %642 = arith.index_cast %arg12 : i32 to index
      %c6_326 = arith.constant 6 : index
      %c0_327 = arith.constant 0 : index
      %c0_328 = arith.constant 0 : index
      %643 = vector.load %arg10[%642, %c6_326, %c0_327, %c0_328] : memref<5x12x1x128xf32, #tpu.memory_space<vmem>>, vector<1x1x1x128xf32>
      %644 = vector.shape_cast %643 : vector<1x1x1x128xf32> to vector<1x128xf32>
      %645 = arith.index_cast %arg12 : i32 to index
      %c7_329 = arith.constant 7 : index
      %c0_330 = arith.constant 0 : index
      %c0_331 = arith.constant 0 : index
      %646 = vector.load %arg10[%645, %c7_329, %c0_330, %c0_331] : memref<5x12x1x128xf32, #tpu.memory_space<vmem>>, vector<1x1x1x128xf32>
      %647 = vector.shape_cast %646 : vector<1x1x1x128xf32> to vector<1x128xf32>
      %648 = arith.index_cast %arg12 : i32 to index
      %c8_332 = arith.constant 8 : index
      %c0_333 = arith.constant 0 : index
      %c0_334 = arith.constant 0 : index
      %649 = vector.load %arg10[%648, %c8_332, %c0_333, %c0_334] : memref<5x12x1x128xf32, #tpu.memory_space<vmem>>, vector<1x1x1x128xf32>
      %650 = vector.shape_cast %649 : vector<1x1x1x128xf32> to vector<1x128xf32>
      %651 = arith.index_cast %arg12 : i32 to index
      %c9_335 = arith.constant 9 : index
      %c0_336 = arith.constant 0 : index
      %c0_337 = arith.constant 0 : index
      %652 = vector.load %arg10[%651, %c9_335, %c0_336, %c0_337] : memref<5x12x1x128xf32, #tpu.memory_space<vmem>>, vector<1x1x1x128xf32>
      %653 = vector.shape_cast %652 : vector<1x1x1x128xf32> to vector<1x128xf32>
      %654 = arith.index_cast %arg12 : i32 to index
      %c10_338 = arith.constant 10 : index
      %c0_339 = arith.constant 0 : index
      %c0_340 = arith.constant 0 : index
      %655 = vector.load %arg10[%654, %c10_338, %c0_339, %c0_340] : memref<5x12x1x128xf32, #tpu.memory_space<vmem>>, vector<1x1x1x128xf32>
      %656 = vector.shape_cast %655 : vector<1x1x1x128xf32> to vector<1x128xf32>
      %657 = arith.index_cast %arg12 : i32 to index
      %c11_341 = arith.constant 11 : index
      %c0_342 = arith.constant 0 : index
      %c0_343 = arith.constant 0 : index
      %658 = vector.load %arg10[%657, %c11_341, %c0_342, %c0_343] : memref<5x12x1x128xf32, #tpu.memory_space<vmem>>, vector<1x1x1x128xf32>
      %659 = vector.shape_cast %658 : vector<1x1x1x128xf32> to vector<1x128xf32>
      %660 = arith.index_cast %arg12 : i32 to index
      %c0_344 = arith.constant 0 : index
      %c0_345 = arith.constant 0 : index
      %c0_346 = arith.constant 0 : index
      %661 = vector.load %arg11[%660, %c0_344, %c0_345, %c0_346] : memref<5x3x1x128xf32, #tpu.memory_space<vmem>>, vector<1x1x1x128xf32>
      %662 = vector.shape_cast %661 : vector<1x1x1x128xf32> to vector<1x128xf32>
      %663 = arith.index_cast %arg12 : i32 to index
      %c1_347 = arith.constant 1 : index
      %c0_348 = arith.constant 0 : index
      %c0_349 = arith.constant 0 : index
      %664 = vector.load %arg11[%663, %c1_347, %c0_348, %c0_349] : memref<5x3x1x128xf32, #tpu.memory_space<vmem>>, vector<1x1x1x128xf32>
      %665 = vector.shape_cast %664 : vector<1x1x1x128xf32> to vector<1x128xf32>
      %666 = arith.index_cast %arg12 : i32 to index
      %c2_350 = arith.constant 2 : index
      %c0_351 = arith.constant 0 : index
      %c0_352 = arith.constant 0 : index
      %667 = vector.load %arg11[%666, %c2_350, %c0_351, %c0_352] : memref<5x3x1x128xf32, #tpu.memory_space<vmem>>, vector<1x1x1x128xf32>
      %668 = vector.shape_cast %667 : vector<1x1x1x128xf32> to vector<1x128xf32>
      %669 = arith.mulf %626, %arg13 : vector<1x128xf32>
      %670 = arith.mulf %629, %arg14 : vector<1x128xf32>
      %671 = arith.addf %669, %670 : vector<1x128xf32>
      %672 = arith.mulf %632, %arg15 : vector<1x128xf32>
      %673 = arith.addf %671, %672 : vector<1x128xf32>
      %674 = arith.mulf %635, %arg16 : vector<1x128xf32>
      %675 = arith.addf %673, %674 : vector<1x128xf32>
      %676 = arith.addf %675, %662 : vector<1x128xf32>
      %677 = arith.mulf %638, %arg13 : vector<1x128xf32>
      %678 = arith.mulf %641, %arg14 : vector<1x128xf32>
      %679 = arith.addf %677, %678 : vector<1x128xf32>
      %680 = arith.mulf %644, %arg15 : vector<1x128xf32>
      %681 = arith.addf %679, %680 : vector<1x128xf32>
      %682 = arith.mulf %647, %arg16 : vector<1x128xf32>
      %683 = arith.addf %681, %682 : vector<1x128xf32>
      %684 = arith.addf %683, %665 : vector<1x128xf32>
      %685 = arith.mulf %650, %arg13 : vector<1x128xf32>
      %686 = arith.mulf %653, %arg14 : vector<1x128xf32>
      %687 = arith.addf %685, %686 : vector<1x128xf32>
      %688 = arith.mulf %656, %arg15 : vector<1x128xf32>
      %689 = arith.addf %687, %688 : vector<1x128xf32>
      %690 = arith.mulf %659, %arg16 : vector<1x128xf32>
      %691 = arith.addf %689, %690 : vector<1x128xf32>
      %692 = arith.addf %691, %668 : vector<1x128xf32>
      %693 = arith.index_cast %arg12 : i32 to index
      %c0_353 = arith.constant 0 : index
      %c0_354 = arith.constant 0 : index
      %c0_355 = arith.constant 0 : index
      %694 = vector.load %arg7[%693, %c0_353, %c0_354, %c0_355] : memref<5x4x1x128xf32, #tpu.memory_space<vmem>>, vector<1x1x1x128xf32>
      %695 = vector.shape_cast %694 : vector<1x1x1x128xf32> to vector<1x128xf32>
      %696 = vector.shape_cast %arg13 : vector<1x128xf32> to vector<1x1x1x128xf32>
      tpu.vector_store %arg7[%693, %c0_353, %c0_354, %c0_355], %696 {strides = array<i32>} : memref<5x4x1x128xf32, #tpu.memory_space<vmem>>, vector<1x1x1x128xf32>,
      %697 = arith.index_cast %arg12 : i32 to index
      %c1_356 = arith.constant 1 : index
      %c0_357 = arith.constant 0 : index
      %c0_358 = arith.constant 0 : index
      %698 = vector.load %arg7[%697, %c1_356, %c0_357, %c0_358] : memref<5x4x1x128xf32, #tpu.memory_space<vmem>>, vector<1x1x1x128xf32>
      %699 = vector.shape_cast %698 : vector<1x1x1x128xf32> to vector<1x128xf32>
      %700 = vector.shape_cast %arg14 : vector<1x128xf32> to vector<1x1x1x128xf32>
      tpu.vector_store %arg7[%697, %c1_356, %c0_357, %c0_358], %700 {strides = array<i32>} : memref<5x4x1x128xf32, #tpu.memory_space<vmem>>, vector<1x1x1x128xf32>,
      %701 = arith.index_cast %arg12 : i32 to index
      %c2_359 = arith.constant 2 : index
      %c0_360 = arith.constant 0 : index
      %c0_361 = arith.constant 0 : index
      %702 = vector.load %arg7[%701, %c2_359, %c0_360, %c0_361] : memref<5x4x1x128xf32, #tpu.memory_space<vmem>>, vector<1x1x1x128xf32>
      %703 = vector.shape_cast %702 : vector<1x1x1x128xf32> to vector<1x128xf32>
      %704 = vector.shape_cast %arg15 : vector<1x128xf32> to vector<1x1x1x128xf32>
      tpu.vector_store %arg7[%701, %c2_359, %c0_360, %c0_361], %704 {strides = array<i32>} : memref<5x4x1x128xf32, #tpu.memory_space<vmem>>, vector<1x1x1x128xf32>,
      %705 = arith.index_cast %arg12 : i32 to index
      %c3_362 = arith.constant 3 : index
      %c0_363 = arith.constant 0 : index
      %c0_364 = arith.constant 0 : index
      %706 = vector.load %arg7[%705, %c3_362, %c0_363, %c0_364] : memref<5x4x1x128xf32, #tpu.memory_space<vmem>>, vector<1x1x1x128xf32>
      %707 = vector.shape_cast %706 : vector<1x1x1x128xf32> to vector<1x128xf32>
      %708 = vector.shape_cast %arg16 : vector<1x128xf32> to vector<1x1x1x128xf32>
      tpu.vector_store %arg7[%705, %c3_362, %c0_363, %c0_364], %708 {strides = array<i32>} : memref<5x4x1x128xf32, #tpu.memory_space<vmem>>, vector<1x1x1x128xf32>,
      %709 = arith.index_cast %arg12 : i32 to index
      %c0_365 = arith.constant 0 : index
      %c0_366 = arith.constant 0 : index
      %c0_367 = arith.constant 0 : index
      %710 = vector.load %arg8[%709, %c0_365, %c0_366, %c0_367] : memref<5x3x1x128xf32, #tpu.memory_space<vmem>>, vector<1x1x1x128xf32>
      %711 = vector.shape_cast %710 : vector<1x1x1x128xf32> to vector<1x128xf32>
      %712 = vector.shape_cast %676 : vector<1x128xf32> to vector<1x1x1x128xf32>
      tpu.vector_store %arg8[%709, %c0_365, %c0_366, %c0_367], %712 {strides = array<i32>} : memref<5x3x1x128xf32, #tpu.memory_space<vmem>>, vector<1x1x1x128xf32>,
      %713 = arith.index_cast %arg12 : i32 to index
      %c1_368 = arith.constant 1 : index
      %c0_369 = arith.constant 0 : index
      %c0_370 = arith.constant 0 : index
      %714 = vector.load %arg8[%713, %c1_368, %c0_369, %c0_370] : memref<5x3x1x128xf32, #tpu.memory_space<vmem>>, vector<1x1x1x128xf32>
      %715 = vector.shape_cast %714 : vector<1x1x1x128xf32> to vector<1x128xf32>
      %716 = vector.shape_cast %684 : vector<1x128xf32> to vector<1x1x1x128xf32>
      tpu.vector_store %arg8[%713, %c1_368, %c0_369, %c0_370], %716 {strides = array<i32>} : memref<5x3x1x128xf32, #tpu.memory_space<vmem>>, vector<1x1x1x128xf32>,
      %717 = arith.index_cast %arg12 : i32 to index
      %c2_371 = arith.constant 2 : index
      %c0_372 = arith.constant 0 : index
      %c0_373 = arith.constant 0 : index
      %718 = vector.load %arg8[%717, %c2_371, %c0_372, %c0_373] : memref<5x3x1x128xf32, #tpu.memory_space<vmem>>, vector<1x1x1x128xf32>
      %719 = vector.shape_cast %718 : vector<1x1x1x128xf32> to vector<1x128xf32>
      %720 = vector.shape_cast %692 : vector<1x128xf32> to vector<1x1x1x128xf32>
      tpu.vector_store %arg8[%717, %c2_371, %c0_372, %c0_373], %720 {strides = array<i32>} : memref<5x3x1x128xf32, #tpu.memory_space<vmem>>, vector<1x1x1x128xf32>,
      %721 = arith.index_cast %arg12 : i32 to index
      %c0_374 = arith.constant 0 : index
      %c0_375 = arith.constant 0 : index
      %c0_376 = arith.constant 0 : index
      %722 = vector.load %arg1[%721, %c0_374, %c0_375, %c0_376] : memref<5x49x1x128xf32, #tpu.memory_space<vmem>>, vector<1x1x1x128xf32>
      %723 = vector.shape_cast %722 : vector<1x1x1x128xf32> to vector<1x128xf32>
      %724 = arith.index_cast %arg12 : i32 to index
      %c1_377 = arith.constant 1 : index
      %c0_378 = arith.constant 0 : index
      %c0_379 = arith.constant 0 : index
      %725 = vector.load %arg1[%724, %c1_377, %c0_378, %c0_379] : memref<5x49x1x128xf32, #tpu.memory_space<vmem>>, vector<1x1x1x128xf32>
      %726 = vector.shape_cast %725 : vector<1x1x1x128xf32> to vector<1x128xf32>
      %727 = arith.index_cast %arg12 : i32 to index
      %c2_380 = arith.constant 2 : index
      %c0_381 = arith.constant 0 : index
      %c0_382 = arith.constant 0 : index
      %728 = vector.load %arg1[%727, %c2_380, %c0_381, %c0_382] : memref<5x49x1x128xf32, #tpu.memory_space<vmem>>, vector<1x1x1x128xf32>
      %729 = vector.shape_cast %728 : vector<1x1x1x128xf32> to vector<1x128xf32>
      %730 = arith.index_cast %arg12 : i32 to index
      %c3_383 = arith.constant 3 : index
      %c0_384 = arith.constant 0 : index
      %c0_385 = arith.constant 0 : index
      %731 = vector.load %arg1[%730, %c3_383, %c0_384, %c0_385] : memref<5x49x1x128xf32, #tpu.memory_space<vmem>>, vector<1x1x1x128xf32>
      %732 = vector.shape_cast %731 : vector<1x1x1x128xf32> to vector<1x128xf32>
      %733 = arith.index_cast %arg12 : i32 to index
      %c4_386 = arith.constant 4 : index
      %c0_387 = arith.constant 0 : index
      %c0_388 = arith.constant 0 : index
      %734 = vector.load %arg1[%733, %c4_386, %c0_387, %c0_388] : memref<5x49x1x128xf32, #tpu.memory_space<vmem>>, vector<1x1x1x128xf32>
      %735 = vector.shape_cast %734 : vector<1x1x1x128xf32> to vector<1x128xf32>
      %736 = arith.index_cast %arg12 : i32 to index
      %c5_389 = arith.constant 5 : index
      %c0_390 = arith.constant 0 : index
      %c0_391 = arith.constant 0 : index
      %737 = vector.load %arg1[%736, %c5_389, %c0_390, %c0_391] : memref<5x49x1x128xf32, #tpu.memory_space<vmem>>, vector<1x1x1x128xf32>
      %738 = vector.shape_cast %737 : vector<1x1x1x128xf32> to vector<1x128xf32>
      %739 = arith.index_cast %arg12 : i32 to index
      %c6_392 = arith.constant 6 : index
      %c0_393 = arith.constant 0 : index
      %c0_394 = arith.constant 0 : index
      %740 = vector.load %arg1[%739, %c6_392, %c0_393, %c0_394] : memref<5x49x1x128xf32, #tpu.memory_space<vmem>>, vector<1x1x1x128xf32>
      %741 = vector.shape_cast %740 : vector<1x1x1x128xf32> to vector<1x128xf32>
      %742 = arith.mulf %723, %arg13 : vector<1x128xf32>
      %743 = arith.mulf %726, %arg14 : vector<1x128xf32>
      %744 = arith.addf %742, %743 : vector<1x128xf32>
      %745 = arith.mulf %729, %arg15 : vector<1x128xf32>
      %746 = arith.addf %744, %745 : vector<1x128xf32>
      %747 = arith.mulf %732, %arg16 : vector<1x128xf32>
      %748 = arith.addf %746, %747 : vector<1x128xf32>
      %749 = arith.mulf %735, %676 : vector<1x128xf32>
      %750 = arith.addf %748, %749 : vector<1x128xf32>
      %751 = arith.mulf %738, %684 : vector<1x128xf32>
      %752 = arith.addf %750, %751 : vector<1x128xf32>
      %753 = arith.mulf %741, %692 : vector<1x128xf32>
      %754 = arith.addf %752, %753 : vector<1x128xf32>
      %cst_395 = arith.constant 5.000000e-01 : f32
      %755 = vector.broadcast %cst_395 : f32 to vector<1x128xf32>
      %756 = arith.mulf %755, %754 : vector<1x128xf32>
      %757 = arith.index_cast %arg12 : i32 to index
      %c0_396 = arith.constant 0 : index
      %c0_397 = arith.constant 0 : index
      %c0_398 = arith.constant 0 : index
      %758 = vector.load %arg2[%757, %c0_396, %c0_397, %c0_398] : memref<5x7x1x128xf32, #tpu.memory_space<vmem>>, vector<1x1x1x128xf32>
      %759 = vector.shape_cast %758 : vector<1x1x1x128xf32> to vector<1x128xf32>
      %760 = arith.addf %756, %759 : vector<1x128xf32>
      %761 = arith.mulf %arg13, %760 : vector<1x128xf32>
      %762 = arith.addf %556, %761 : vector<1x128xf32>
      %763 = arith.index_cast %arg12 : i32 to index
      %c7_399 = arith.constant 7 : index
      %c0_400 = arith.constant 0 : index
      %c0_401 = arith.constant 0 : index
      %764 = vector.load %arg1[%763, %c7_399, %c0_400, %c0_401] : memref<5x49x1x128xf32, #tpu.memory_space<vmem>>, vector<1x1x1x128xf32>
      %765 = vector.shape_cast %764 : vector<1x1x1x128xf32> to vector<1x128xf32>
      %766 = arith.index_cast %arg12 : i32 to index
      %c8_402 = arith.constant 8 : index
      %c0_403 = arith.constant 0 : index
      %c0_404 = arith.constant 0 : index
      %767 = vector.load %arg1[%766, %c8_402, %c0_403, %c0_404] : memref<5x49x1x128xf32, #tpu.memory_space<vmem>>, vector<1x1x1x128xf32>
      %768 = vector.shape_cast %767 : vector<1x1x1x128xf32> to vector<1x128xf32>
      %769 = arith.index_cast %arg12 : i32 to index
      %c9_405 = arith.constant 9 : index
      %c0_406 = arith.constant 0 : index
      %c0_407 = arith.constant 0 : index
      %770 = vector.load %arg1[%769, %c9_405, %c0_406, %c0_407] : memref<5x49x1x128xf32, #tpu.memory_space<vmem>>, vector<1x1x1x128xf32>
      %771 = vector.shape_cast %770 : vector<1x1x1x128xf32> to vector<1x128xf32>
      %772 = arith.index_cast %arg12 : i32 to index
      %c10_408 = arith.constant 10 : index
      %c0_409 = arith.constant 0 : index
      %c0_410 = arith.constant 0 : index
      %773 = vector.load %arg1[%772, %c10_408, %c0_409, %c0_410] : memref<5x49x1x128xf32, #tpu.memory_space<vmem>>, vector<1x1x1x128xf32>
      %774 = vector.shape_cast %773 : vector<1x1x1x128xf32> to vector<1x128xf32>
      %775 = arith.index_cast %arg12 : i32 to index
      %c11_411 = arith.constant 11 : index
      %c0_412 = arith.constant 0 : index
      %c0_413 = arith.constant 0 : index
      %776 = vector.load %arg1[%775, %c11_411, %c0_412, %c0_413] : memref<5x49x1x128xf32, #tpu.memory_space<vmem>>, vector<1x1x1x128xf32>
      %777 = vector.shape_cast %776 : vector<1x1x1x128xf32> to vector<1x128xf32>
      %778 = arith.index_cast %arg12 : i32 to index
      %c12_414 = arith.constant 12 : index
      %c0_415 = arith.constant 0 : index
      %c0_416 = arith.constant 0 : index
      %779 = vector.load %arg1[%778, %c12_414, %c0_415, %c0_416] : memref<5x49x1x128xf32, #tpu.memory_space<vmem>>, vector<1x1x1x128xf32>
      %780 = vector.shape_cast %779 : vector<1x1x1x128xf32> to vector<1x128xf32>
      %781 = arith.index_cast %arg12 : i32 to index
      %c13_417 = arith.constant 13 : index
      %c0_418 = arith.constant 0 : index
      %c0_419 = arith.constant 0 : index
      %782 = vector.load %arg1[%781, %c13_417, %c0_418, %c0_419] : memref<5x49x1x128xf32, #tpu.memory_space<vmem>>, vector<1x1x1x128xf32>
      %783 = vector.shape_cast %782 : vector<1x1x1x128xf32> to vector<1x128xf32>
      %784 = arith.mulf %765, %arg13 : vector<1x128xf32>
      %785 = arith.mulf %768, %arg14 : vector<1x128xf32>
      %786 = arith.addf %784, %785 : vector<1x128xf32>
      %787 = arith.mulf %771, %arg15 : vector<1x128xf32>
      %788 = arith.addf %786, %787 : vector<1x128xf32>
      %789 = arith.mulf %774, %arg16 : vector<1x128xf32>
      %790 = arith.addf %788, %789 : vector<1x128xf32>
      %791 = arith.mulf %777, %676 : vector<1x128xf32>
      %792 = arith.addf %790, %791 : vector<1x128xf32>
      %793 = arith.mulf %780, %684 : vector<1x128xf32>
      %794 = arith.addf %792, %793 : vector<1x128xf32>
      %795 = arith.mulf %783, %692 : vector<1x128xf32>
      %796 = arith.addf %794, %795 : vector<1x128xf32>
      %cst_420 = arith.constant 5.000000e-01 : f32
      %797 = vector.broadcast %cst_420 : f32 to vector<1x128xf32>
      %798 = arith.mulf %797, %796 : vector<1x128xf32>
      %799 = arith.index_cast %arg12 : i32 to index
      %c1_421 = arith.constant 1 : index
      %c0_422 = arith.constant 0 : index
      %c0_423 = arith.constant 0 : index
      %800 = vector.load %arg2[%799, %c1_421, %c0_422, %c0_423] : memref<5x7x1x128xf32, #tpu.memory_space<vmem>>, vector<1x1x1x128xf32>
      %801 = vector.shape_cast %800 : vector<1x1x1x128xf32> to vector<1x128xf32>
      %802 = arith.addf %798, %801 : vector<1x128xf32>
      %803 = arith.mulf %arg14, %802 : vector<1x128xf32>
      %804 = arith.addf %762, %803 : vector<1x128xf32>
      %805 = arith.index_cast %arg12 : i32 to index
      %c14_424 = arith.constant 14 : index
      %c0_425 = arith.constant 0 : index
      %c0_426 = arith.constant 0 : index
      %806 = vector.load %arg1[%805, %c14_424, %c0_425, %c0_426] : memref<5x49x1x128xf32, #tpu.memory_space<vmem>>, vector<1x1x1x128xf32>
      %807 = vector.shape_cast %806 : vector<1x1x1x128xf32> to vector<1x128xf32>
      %808 = arith.index_cast %arg12 : i32 to index
      %c15_427 = arith.constant 15 : index
      %c0_428 = arith.constant 0 : index
      %c0_429 = arith.constant 0 : index
      %809 = vector.load %arg1[%808, %c15_427, %c0_428, %c0_429] : memref<5x49x1x128xf32, #tpu.memory_space<vmem>>, vector<1x1x1x128xf32>
      %810 = vector.shape_cast %809 : vector<1x1x1x128xf32> to vector<1x128xf32>
      %811 = arith.index_cast %arg12 : i32 to index
      %c16_430 = arith.constant 16 : index
      %c0_431 = arith.constant 0 : index
      %c0_432 = arith.constant 0 : index
      %812 = vector.load %arg1[%811, %c16_430, %c0_431, %c0_432] : memref<5x49x1x128xf32, #tpu.memory_space<vmem>>, vector<1x1x1x128xf32>
      %813 = vector.shape_cast %812 : vector<1x1x1x128xf32> to vector<1x128xf32>
      %814 = arith.index_cast %arg12 : i32 to index
      %c17_433 = arith.constant 17 : index
      %c0_434 = arith.constant 0 : index
      %c0_435 = arith.constant 0 : index
      %815 = vector.load %arg1[%814, %c17_433, %c0_434, %c0_435] : memref<5x49x1x128xf32, #tpu.memory_space<vmem>>, vector<1x1x1x128xf32>
      %816 = vector.shape_cast %815 : vector<1x1x1x128xf32> to vector<1x128xf32>
      %817 = arith.index_cast %arg12 : i32 to index
      %c18_436 = arith.constant 18 : index
      %c0_437 = arith.constant 0 : index
      %c0_438 = arith.constant 0 : index
      %818 = vector.load %arg1[%817, %c18_436, %c0_437, %c0_438] : memref<5x49x1x128xf32, #tpu.memory_space<vmem>>, vector<1x1x1x128xf32>
      %819 = vector.shape_cast %818 : vector<1x1x1x128xf32> to vector<1x128xf32>
      %820 = arith.index_cast %arg12 : i32 to index
      %c19_439 = arith.constant 19 : index
      %c0_440 = arith.constant 0 : index
      %c0_441 = arith.constant 0 : index
      %821 = vector.load %arg1[%820, %c19_439, %c0_440, %c0_441] : memref<5x49x1x128xf32, #tpu.memory_space<vmem>>, vector<1x1x1x128xf32>
      %822 = vector.shape_cast %821 : vector<1x1x1x128xf32> to vector<1x128xf32>
      %823 = arith.index_cast %arg12 : i32 to index
      %c20_442 = arith.constant 20 : index
      %c0_443 = arith.constant 0 : index
      %c0_444 = arith.constant 0 : index
      %824 = vector.load %arg1[%823, %c20_442, %c0_443, %c0_444] : memref<5x49x1x128xf32, #tpu.memory_space<vmem>>, vector<1x1x1x128xf32>
      %825 = vector.shape_cast %824 : vector<1x1x1x128xf32> to vector<1x128xf32>
      %826 = arith.mulf %807, %arg13 : vector<1x128xf32>
      %827 = arith.mulf %810, %arg14 : vector<1x128xf32>
      %828 = arith.addf %826, %827 : vector<1x128xf32>
      %829 = arith.mulf %813, %arg15 : vector<1x128xf32>
      %830 = arith.addf %828, %829 : vector<1x128xf32>
      %831 = arith.mulf %816, %arg16 : vector<1x128xf32>
      %832 = arith.addf %830, %831 : vector<1x128xf32>
      %833 = arith.mulf %819, %676 : vector<1x128xf32>
      %834 = arith.addf %832, %833 : vector<1x128xf32>
      %835 = arith.mulf %822, %684 : vector<1x128xf32>
      %836 = arith.addf %834, %835 : vector<1x128xf32>
      %837 = arith.mulf %825, %692 : vector<1x128xf32>
      %838 = arith.addf %836, %837 : vector<1x128xf32>
      %cst_445 = arith.constant 5.000000e-01 : f32
      %839 = vector.broadcast %cst_445 : f32 to vector<1x128xf32>
      %840 = arith.mulf %839, %838 : vector<1x128xf32>
      %841 = arith.index_cast %arg12 : i32 to index
      %c2_446 = arith.constant 2 : index
      %c0_447 = arith.constant 0 : index
      %c0_448 = arith.constant 0 : index
      %842 = vector.load %arg2[%841, %c2_446, %c0_447, %c0_448] : memref<5x7x1x128xf32, #tpu.memory_space<vmem>>, vector<1x1x1x128xf32>
      %843 = vector.shape_cast %842 : vector<1x1x1x128xf32> to vector<1x128xf32>
      %844 = arith.addf %840, %843 : vector<1x128xf32>
      %845 = arith.mulf %arg15, %844 : vector<1x128xf32>
      %846 = arith.addf %804, %845 : vector<1x128xf32>
      %847 = arith.index_cast %arg12 : i32 to index
      %c21 = arith.constant 21 : index
      %c0_449 = arith.constant 0 : index
      %c0_450 = arith.constant 0 : index
      %848 = vector.load %arg1[%847, %c21, %c0_449, %c0_450] : memref<5x49x1x128xf32, #tpu.memory_space<vmem>>, vector<1x1x1x128xf32>
      %849 = vector.shape_cast %848 : vector<1x1x1x128xf32> to vector<1x128xf32>
      %850 = arith.index_cast %arg12 : i32 to index
      %c22 = arith.constant 22 : index
      %c0_451 = arith.constant 0 : index
      %c0_452 = arith.constant 0 : index
      %851 = vector.load %arg1[%850, %c22, %c0_451, %c0_452] : memref<5x49x1x128xf32, #tpu.memory_space<vmem>>, vector<1x1x1x128xf32>
      %852 = vector.shape_cast %851 : vector<1x1x1x128xf32> to vector<1x128xf32>
      %853 = arith.index_cast %arg12 : i32 to index
      %c23 = arith.constant 23 : index
      %c0_453 = arith.constant 0 : index
      %c0_454 = arith.constant 0 : index
      %854 = vector.load %arg1[%853, %c23, %c0_453, %c0_454] : memref<5x49x1x128xf32, #tpu.memory_space<vmem>>, vector<1x1x1x128xf32>
      %855 = vector.shape_cast %854 : vector<1x1x1x128xf32> to vector<1x128xf32>
      %856 = arith.index_cast %arg12 : i32 to index
      %c24_455 = arith.constant 24 : index
      %c0_456 = arith.constant 0 : index
      %c0_457 = arith.constant 0 : index
      %857 = vector.load %arg1[%856, %c24_455, %c0_456, %c0_457] : memref<5x49x1x128xf32, #tpu.memory_space<vmem>>, vector<1x1x1x128xf32>
      %858 = vector.shape_cast %857 : vector<1x1x1x128xf32> to vector<1x128xf32>
      %859 = arith.index_cast %arg12 : i32 to index
      %c25_458 = arith.constant 25 : index
      %c0_459 = arith.constant 0 : index
      %c0_460 = arith.constant 0 : index
      %860 = vector.load %arg1[%859, %c25_458, %c0_459, %c0_460] : memref<5x49x1x128xf32, #tpu.memory_space<vmem>>, vector<1x1x1x128xf32>
      %861 = vector.shape_cast %860 : vector<1x1x1x128xf32> to vector<1x128xf32>
      %862 = arith.index_cast %arg12 : i32 to index
      %c26_461 = arith.constant 26 : index
      %c0_462 = arith.constant 0 : index
      %c0_463 = arith.constant 0 : index
      %863 = vector.load %arg1[%862, %c26_461, %c0_462, %c0_463] : memref<5x49x1x128xf32, #tpu.memory_space<vmem>>, vector<1x1x1x128xf32>
      %864 = vector.shape_cast %863 : vector<1x1x1x128xf32> to vector<1x128xf32>
      %865 = arith.index_cast %arg12 : i32 to index
      %c27_464 = arith.constant 27 : index
      %c0_465 = arith.constant 0 : index
      %c0_466 = arith.constant 0 : index
      %866 = vector.load %arg1[%865, %c27_464, %c0_465, %c0_466] : memref<5x49x1x128xf32, #tpu.memory_space<vmem>>, vector<1x1x1x128xf32>
      %867 = vector.shape_cast %866 : vector<1x1x1x128xf32> to vector<1x128xf32>
      %868 = arith.mulf %849, %arg13 : vector<1x128xf32>
      %869 = arith.mulf %852, %arg14 : vector<1x128xf32>
      %870 = arith.addf %868, %869 : vector<1x128xf32>
      %871 = arith.mulf %855, %arg15 : vector<1x128xf32>
      %872 = arith.addf %870, %871 : vector<1x128xf32>
      %873 = arith.mulf %858, %arg16 : vector<1x128xf32>
      %874 = arith.addf %872, %873 : vector<1x128xf32>
      %875 = arith.mulf %861, %676 : vector<1x128xf32>
      %876 = arith.addf %874, %875 : vector<1x128xf32>
      %877 = arith.mulf %864, %684 : vector<1x128xf32>
      %878 = arith.addf %876, %877 : vector<1x128xf32>
      %879 = arith.mulf %867, %692 : vector<1x128xf32>
      %880 = arith.addf %878, %879 : vector<1x128xf32>
      %cst_467 = arith.constant 5.000000e-01 : f32
      %881 = vector.broadcast %cst_467 : f32 to vector<1x128xf32>
      %882 = arith.mulf %881, %880 : vector<1x128xf32>
      %883 = arith.index_cast %arg12 : i32 to index
      %c3_468 = arith.constant 3 : index
      %c0_469 = arith.constant 0 : index
      %c0_470 = arith.constant 0 : index
      %884 = vector.load %arg2[%883, %c3_468, %c0_469, %c0_470] : memref<5x7x1x128xf32, #tpu.memory_space<vmem>>, vector<1x1x1x128xf32>
      %885 = vector.shape_cast %884 : vector<1x1x1x128xf32> to vector<1x128xf32>
      %886 = arith.addf %882, %885 : vector<1x128xf32>
      %887 = arith.mulf %arg16, %886 : vector<1x128xf32>
      %888 = arith.addf %846, %887 : vector<1x128xf32>
      %889 = arith.index_cast %arg12 : i32 to index
      %c28 = arith.constant 28 : index
      %c0_471 = arith.constant 0 : index
      %c0_472 = arith.constant 0 : index
      %890 = vector.load %arg1[%889, %c28, %c0_471, %c0_472] : memref<5x49x1x128xf32, #tpu.memory_space<vmem>>, vector<1x1x1x128xf32>
      %891 = vector.shape_cast %890 : vector<1x1x1x128xf32> to vector<1x128xf32>
      %892 = arith.index_cast %arg12 : i32 to index
      %c29 = arith.constant 29 : index
      %c0_473 = arith.constant 0 : index
      %c0_474 = arith.constant 0 : index
      %893 = vector.load %arg1[%892, %c29, %c0_473, %c0_474] : memref<5x49x1x128xf32, #tpu.memory_space<vmem>>, vector<1x1x1x128xf32>
      %894 = vector.shape_cast %893 : vector<1x1x1x128xf32> to vector<1x128xf32>
      %895 = arith.index_cast %arg12 : i32 to index
      %c30 = arith.constant 30 : index
      %c0_475 = arith.constant 0 : index
      %c0_476 = arith.constant 0 : index
      %896 = vector.load %arg1[%895, %c30, %c0_475, %c0_476] : memref<5x49x1x128xf32, #tpu.memory_space<vmem>>, vector<1x1x1x128xf32>
      %897 = vector.shape_cast %896 : vector<1x1x1x128xf32> to vector<1x128xf32>
      %898 = arith.index_cast %arg12 : i32 to index
      %c31 = arith.constant 31 : index
      %c0_477 = arith.constant 0 : index
      %c0_478 = arith.constant 0 : index
      %899 = vector.load %arg1[%898, %c31, %c0_477, %c0_478] : memref<5x49x1x128xf32, #tpu.memory_space<vmem>>, vector<1x1x1x128xf32>
      %900 = vector.shape_cast %899 : vector<1x1x1x128xf32> to vector<1x128xf32>
      %901 = arith.index_cast %arg12 : i32 to index
      %c32_479 = arith.constant 32 : index
      %c0_480 = arith.constant 0 : index
      %c0_481 = arith.constant 0 : index
      %902 = vector.load %arg1[%901, %c32_479, %c0_480, %c0_481] : memref<5x49x1x128xf32, #tpu.memory_space<vmem>>, vector<1x1x1x128xf32>
      %903 = vector.shape_cast %902 : vector<1x1x1x128xf32> to vector<1x128xf32>
      %904 = arith.index_cast %arg12 : i32 to index
      %c33_482 = arith.constant 33 : index
      %c0_483 = arith.constant 0 : index
      %c0_484 = arith.constant 0 : index
      %905 = vector.load %arg1[%904, %c33_482, %c0_483, %c0_484] : memref<5x49x1x128xf32, #tpu.memory_space<vmem>>, vector<1x1x1x128xf32>
      %906 = vector.shape_cast %905 : vector<1x1x1x128xf32> to vector<1x128xf32>
      %907 = arith.index_cast %arg12 : i32 to index
      %c34_485 = arith.constant 34 : index
      %c0_486 = arith.constant 0 : index
      %c0_487 = arith.constant 0 : index
      %908 = vector.load %arg1[%907, %c34_485, %c0_486, %c0_487] : memref<5x49x1x128xf32, #tpu.memory_space<vmem>>, vector<1x1x1x128xf32>
      %909 = vector.shape_cast %908 : vector<1x1x1x128xf32> to vector<1x128xf32>
      %910 = arith.mulf %891, %arg13 : vector<1x128xf32>
      %911 = arith.mulf %894, %arg14 : vector<1x128xf32>
      %912 = arith.addf %910, %911 : vector<1x128xf32>
      %913 = arith.mulf %897, %arg15 : vector<1x128xf32>
      %914 = arith.addf %912, %913 : vector<1x128xf32>
      %915 = arith.mulf %900, %arg16 : vector<1x128xf32>
      %916 = arith.addf %914, %915 : vector<1x128xf32>
      %917 = arith.mulf %903, %676 : vector<1x128xf32>
      %918 = arith.addf %916, %917 : vector<1x128xf32>
      %919 = arith.mulf %906, %684 : vector<1x128xf32>
      %920 = arith.addf %918, %919 : vector<1x128xf32>
      %921 = arith.mulf %909, %692 : vector<1x128xf32>
      %922 = arith.addf %920, %921 : vector<1x128xf32>
      %cst_488 = arith.constant 5.000000e-01 : f32
      %923 = vector.broadcast %cst_488 : f32 to vector<1x128xf32>
      %924 = arith.mulf %923, %922 : vector<1x128xf32>
      %925 = arith.index_cast %arg12 : i32 to index
      %c4_489 = arith.constant 4 : index
      %c0_490 = arith.constant 0 : index
      %c0_491 = arith.constant 0 : index
      %926 = vector.load %arg2[%925, %c4_489, %c0_490, %c0_491] : memref<5x7x1x128xf32, #tpu.memory_space<vmem>>, vector<1x1x1x128xf32>
      %927 = vector.shape_cast %926 : vector<1x1x1x128xf32> to vector<1x128xf32>
      %928 = arith.addf %924, %927 : vector<1x128xf32>
      %929 = arith.mulf %676, %928 : vector<1x128xf32>
      %930 = arith.addf %888, %929 : vector<1x128xf32>
      %931 = arith.index_cast %arg12 : i32 to index
      %c35 = arith.constant 35 : index
      %c0_492 = arith.constant 0 : index
      %c0_493 = arith.constant 0 : index
      %932 = vector.load %arg1[%931, %c35, %c0_492, %c0_493] : memref<5x49x1x128xf32, #tpu.memory_space<vmem>>, vector<1x1x1x128xf32>
      %933 = vector.shape_cast %932 : vector<1x1x1x128xf32> to vector<1x128xf32>
      %934 = arith.index_cast %arg12 : i32 to index
      %c36 = arith.constant 36 : index
      %c0_494 = arith.constant 0 : index
      %c0_495 = arith.constant 0 : index
      %935 = vector.load %arg1[%934, %c36, %c0_494, %c0_495] : memref<5x49x1x128xf32, #tpu.memory_space<vmem>>, vector<1x1x1x128xf32>
      %936 = vector.shape_cast %935 : vector<1x1x1x128xf32> to vector<1x128xf32>
      %937 = arith.index_cast %arg12 : i32 to index
      %c37 = arith.constant 37 : index
      %c0_496 = arith.constant 0 : index
      %c0_497 = arith.constant 0 : index
      %938 = vector.load %arg1[%937, %c37, %c0_496, %c0_497] : memref<5x49x1x128xf32, #tpu.memory_space<vmem>>, vector<1x1x1x128xf32>
      %939 = vector.shape_cast %938 : vector<1x1x1x128xf32> to vector<1x128xf32>
      %940 = arith.index_cast %arg12 : i32 to index
      %c38 = arith.constant 38 : index
      %c0_498 = arith.constant 0 : index
      %c0_499 = arith.constant 0 : index
      %941 = vector.load %arg1[%940, %c38, %c0_498, %c0_499] : memref<5x49x1x128xf32, #tpu.memory_space<vmem>>, vector<1x1x1x128xf32>
      %942 = vector.shape_cast %941 : vector<1x1x1x128xf32> to vector<1x128xf32>
      %943 = arith.index_cast %arg12 : i32 to index
      %c39_500 = arith.constant 39 : index
      %c0_501 = arith.constant 0 : index
      %c0_502 = arith.constant 0 : index
      %944 = vector.load %arg1[%943, %c39_500, %c0_501, %c0_502] : memref<5x49x1x128xf32, #tpu.memory_space<vmem>>, vector<1x1x1x128xf32>
      %945 = vector.shape_cast %944 : vector<1x1x1x128xf32> to vector<1x128xf32>
      %946 = arith.index_cast %arg12 : i32 to index
      %c40_503 = arith.constant 40 : index
      %c0_504 = arith.constant 0 : index
      %c0_505 = arith.constant 0 : index
      %947 = vector.load %arg1[%946, %c40_503, %c0_504, %c0_505] : memref<5x49x1x128xf32, #tpu.memory_space<vmem>>, vector<1x1x1x128xf32>
      %948 = vector.shape_cast %947 : vector<1x1x1x128xf32> to vector<1x128xf32>
      %949 = arith.index_cast %arg12 : i32 to index
      %c41_506 = arith.constant 41 : index
      %c0_507 = arith.constant 0 : index
      %c0_508 = arith.constant 0 : index
      %950 = vector.load %arg1[%949, %c41_506, %c0_507, %c0_508] : memref<5x49x1x128xf32, #tpu.memory_space<vmem>>, vector<1x1x1x128xf32>
      %951 = vector.shape_cast %950 : vector<1x1x1x128xf32> to vector<1x128xf32>
      %952 = arith.mulf %933, %arg13 : vector<1x128xf32>
      %953 = arith.mulf %936, %arg14 : vector<1x128xf32>
      %954 = arith.addf %952, %953 : vector<1x128xf32>
      %955 = arith.mulf %939, %arg15 : vector<1x128xf32>
      %956 = arith.addf %954, %955 : vector<1x128xf32>
      %957 = arith.mulf %942, %arg16 : vector<1x128xf32>
      %958 = arith.addf %956, %957 : vector<1x128xf32>
      %959 = arith.mulf %945, %676 : vector<1x128xf32>
      %960 = arith.addf %958, %959 : vector<1x128xf32>
      %961 = arith.mulf %948, %684 : vector<1x128xf32>
      %962 = arith.addf %960, %961 : vector<1x128xf32>
      %963 = arith.mulf %951, %692 : vector<1x128xf32>
      %964 = arith.addf %962, %963 : vector<1x128xf32>
      %cst_509 = arith.constant 5.000000e-01 : f32
      %965 = vector.broadcast %cst_509 : f32 to vector<1x128xf32>
      %966 = arith.mulf %965, %964 : vector<1x128xf32>
      %967 = arith.index_cast %arg12 : i32 to index
      %c5_510 = arith.constant 5 : index
      %c0_511 = arith.constant 0 : index
      %c0_512 = arith.constant 0 : index
      %968 = vector.load %arg2[%967, %c5_510, %c0_511, %c0_512] : memref<5x7x1x128xf32, #tpu.memory_space<vmem>>, vector<1x1x1x128xf32>
      %969 = vector.shape_cast %968 : vector<1x1x1x128xf32> to vector<1x128xf32>
      %970 = arith.addf %966, %969 : vector<1x128xf32>
      %971 = arith.mulf %684, %970 : vector<1x128xf32>
      %972 = arith.addf %930, %971 : vector<1x128xf32>
      %973 = arith.index_cast %arg12 : i32 to index
      %c42 = arith.constant 42 : index
      %c0_513 = arith.constant 0 : index
      %c0_514 = arith.constant 0 : index
      %974 = vector.load %arg1[%973, %c42, %c0_513, %c0_514] : memref<5x49x1x128xf32, #tpu.memory_space<vmem>>, vector<1x1x1x128xf32>
      %975 = vector.shape_cast %974 : vector<1x1x1x128xf32> to vector<1x128xf32>
      %976 = arith.index_cast %arg12 : i32 to index
      %c43 = arith.constant 43 : index
      %c0_515 = arith.constant 0 : index
      %c0_516 = arith.constant 0 : index
      %977 = vector.load %arg1[%976, %c43, %c0_515, %c0_516] : memref<5x49x1x128xf32, #tpu.memory_space<vmem>>, vector<1x1x1x128xf32>
      %978 = vector.shape_cast %977 : vector<1x1x1x128xf32> to vector<1x128xf32>
      %979 = arith.index_cast %arg12 : i32 to index
      %c44 = arith.constant 44 : index
      %c0_517 = arith.constant 0 : index
      %c0_518 = arith.constant 0 : index
      %980 = vector.load %arg1[%979, %c44, %c0_517, %c0_518] : memref<5x49x1x128xf32, #tpu.memory_space<vmem>>, vector<1x1x1x128xf32>
      %981 = vector.shape_cast %980 : vector<1x1x1x128xf32> to vector<1x128xf32>
      %982 = arith.index_cast %arg12 : i32 to index
      %c45 = arith.constant 45 : index
      %c0_519 = arith.constant 0 : index
      %c0_520 = arith.constant 0 : index
      %983 = vector.load %arg1[%982, %c45, %c0_519, %c0_520] : memref<5x49x1x128xf32, #tpu.memory_space<vmem>>, vector<1x1x1x128xf32>
      %984 = vector.shape_cast %983 : vector<1x1x1x128xf32> to vector<1x128xf32>
      %985 = arith.index_cast %arg12 : i32 to index
      %c46_521 = arith.constant 46 : index
      %c0_522 = arith.constant 0 : index
      %c0_523 = arith.constant 0 : index
      %986 = vector.load %arg1[%985, %c46_521, %c0_522, %c0_523] : memref<5x49x1x128xf32, #tpu.memory_space<vmem>>, vector<1x1x1x128xf32>
      %987 = vector.shape_cast %986 : vector<1x1x1x128xf32> to vector<1x128xf32>
      %988 = arith.index_cast %arg12 : i32 to index
      %c47_524 = arith.constant 47 : index
      %c0_525 = arith.constant 0 : index
      %c0_526 = arith.constant 0 : index
      %989 = vector.load %arg1[%988, %c47_524, %c0_525, %c0_526] : memref<5x49x1x128xf32, #tpu.memory_space<vmem>>, vector<1x1x1x128xf32>
      %990 = vector.shape_cast %989 : vector<1x1x1x128xf32> to vector<1x128xf32>
      %991 = arith.index_cast %arg12 : i32 to index
      %c48_527 = arith.constant 48 : index
      %c0_528 = arith.constant 0 : index
      %c0_529 = arith.constant 0 : index
      %992 = vector.load %arg1[%991, %c48_527, %c0_528, %c0_529] : memref<5x49x1x128xf32, #tpu.memory_space<vmem>>, vector<1x1x1x128xf32>
      %993 = vector.shape_cast %992 : vector<1x1x1x128xf32> to vector<1x128xf32>
      %994 = arith.mulf %975, %arg13 : vector<1x128xf32>
      %995 = arith.mulf %978, %arg14 : vector<1x128xf32>
      %996 = arith.addf %994, %995 : vector<1x128xf32>
      %997 = arith.mulf %981, %arg15 : vector<1x128xf32>
      %998 = arith.addf %996, %997 : vector<1x128xf32>
      %999 = arith.mulf %984, %arg16 : vector<1x128xf32>
      %1000 = arith.addf %998, %999 : vector<1x128xf32>
      %1001 = arith.mulf %987, %676 : vector<1x128xf32>
      %1002 = arith.addf %1000, %1001 : vector<1x128xf32>
      %1003 = arith.mulf %990, %684 : vector<1x128xf32>
      %1004 = arith.addf %1002, %1003 : vector<1x128xf32>
      %1005 = arith.mulf %993, %692 : vector<1x128xf32>
      %1006 = arith.addf %1004, %1005 : vector<1x128xf32>
      %cst_530 = arith.constant 5.000000e-01 : f32
      %1007 = vector.broadcast %cst_530 : f32 to vector<1x128xf32>
      %1008 = arith.mulf %1007, %1006 : vector<1x128xf32>
      %1009 = arith.index_cast %arg12 : i32 to index
      %c6_531 = arith.constant 6 : index
      %c0_532 = arith.constant 0 : index
      %c0_533 = arith.constant 0 : index
      %1010 = vector.load %arg2[%1009, %c6_531, %c0_532, %c0_533] : memref<5x7x1x128xf32, #tpu.memory_space<vmem>>, vector<1x1x1x128xf32>
      %1011 = vector.shape_cast %1010 : vector<1x1x1x128xf32> to vector<1x128xf32>
      %1012 = arith.addf %1008, %1011 : vector<1x128xf32>
      %1013 = arith.mulf %692, %1012 : vector<1x128xf32>
      %1014 = arith.addf %972, %1013 : vector<1x128xf32>
      %1015 = arith.addf %arg17, %1014 : vector<1x128xf32>
      %1016 = arith.mulf %561, %arg13 : vector<1x128xf32>
      %1017 = arith.mulf %563, %arg14 : vector<1x128xf32>
      %1018 = arith.addf %1016, %1017 : vector<1x128xf32>
      %1019 = arith.mulf %565, %arg15 : vector<1x128xf32>
      %1020 = arith.addf %1018, %1019 : vector<1x128xf32>
      %1021 = arith.mulf %567, %arg16 : vector<1x128xf32>
      %1022 = arith.addf %1020, %1021 : vector<1x128xf32>
      %1023 = arith.mulf %593, %676 : vector<1x128xf32>
      %1024 = arith.mulf %595, %684 : vector<1x128xf32>
      %1025 = arith.addf %1023, %1024 : vector<1x128xf32>
      %1026 = arith.mulf %597, %692 : vector<1x128xf32>
      %1027 = arith.addf %1025, %1026 : vector<1x128xf32>
      %1028 = arith.addf %1022, %1027 : vector<1x128xf32>
      %1029 = arith.addf %1028, %617 : vector<1x128xf32>
      %1030 = arith.mulf %569, %arg13 : vector<1x128xf32>
      %1031 = arith.mulf %571, %arg14 : vector<1x128xf32>
      %1032 = arith.addf %1030, %1031 : vector<1x128xf32>
      %1033 = arith.mulf %573, %arg15 : vector<1x128xf32>
      %1034 = arith.addf %1032, %1033 : vector<1x128xf32>
      %1035 = arith.mulf %575, %arg16 : vector<1x128xf32>
      %1036 = arith.addf %1034, %1035 : vector<1x128xf32>
      %1037 = arith.mulf %599, %676 : vector<1x128xf32>
      %1038 = arith.mulf %601, %684 : vector<1x128xf32>
      %1039 = arith.addf %1037, %1038 : vector<1x128xf32>
      %1040 = arith.mulf %603, %692 : vector<1x128xf32>
      %1041 = arith.addf %1039, %1040 : vector<1x128xf32>
      %1042 = arith.addf %1036, %1041 : vector<1x128xf32>
      %1043 = arith.addf %1042, %619 : vector<1x128xf32>
      %1044 = arith.mulf %577, %arg13 : vector<1x128xf32>
      %1045 = arith.mulf %579, %arg14 : vector<1x128xf32>
      %1046 = arith.addf %1044, %1045 : vector<1x128xf32>
      %1047 = arith.mulf %581, %arg15 : vector<1x128xf32>
      %1048 = arith.addf %1046, %1047 : vector<1x128xf32>
      %1049 = arith.mulf %583, %arg16 : vector<1x128xf32>
      %1050 = arith.addf %1048, %1049 : vector<1x128xf32>
      %1051 = arith.mulf %605, %676 : vector<1x128xf32>
      %1052 = arith.mulf %607, %684 : vector<1x128xf32>
      %1053 = arith.addf %1051, %1052 : vector<1x128xf32>
      %1054 = arith.mulf %609, %692 : vector<1x128xf32>
      %1055 = arith.addf %1053, %1054 : vector<1x128xf32>
      %1056 = arith.addf %1050, %1055 : vector<1x128xf32>
      %1057 = arith.addf %1056, %621 : vector<1x128xf32>
      %1058 = arith.mulf %585, %arg13 : vector<1x128xf32>
      %1059 = arith.mulf %587, %arg14 : vector<1x128xf32>
      %1060 = arith.addf %1058, %1059 : vector<1x128xf32>
      %1061 = arith.mulf %589, %arg15 : vector<1x128xf32>
      %1062 = arith.addf %1060, %1061 : vector<1x128xf32>
      %1063 = arith.mulf %591, %arg16 : vector<1x128xf32>
      %1064 = arith.addf %1062, %1063 : vector<1x128xf32>
      %1065 = arith.mulf %611, %676 : vector<1x128xf32>
      %1066 = arith.mulf %613, %684 : vector<1x128xf32>
      %1067 = arith.addf %1065, %1066 : vector<1x128xf32>
      %1068 = arith.mulf %615, %692 : vector<1x128xf32>
      %1069 = arith.addf %1067, %1068 : vector<1x128xf32>
      %1070 = arith.addf %1064, %1069 : vector<1x128xf32>
      %1071 = arith.addf %1070, %623 : vector<1x128xf32>
      scf.yield %1029, %1043, %1057, %1071, %1015 : vector<1x128xf32>, vector<1x128xf32>, vector<1x128xf32>, vector<1x128xf32>, vector<1x128xf32>
    }
    %c5_i32_211 = arith.constant 5 : i32
    %c0_212 = arith.constant 0 : index
    %c0_213 = arith.constant 0 : index
    %559 = vector.load %arg9[%c0_212, %c0_213] : memref<1x128xf32, #tpu.memory_space<vmem>>, vector<1x128xf32>
    tpu.vector_store %arg9[%c0_212, %c0_213], %558#4 {strides = array<i32>} : memref<1x128xf32, #tpu.memory_space<vmem>>, vector<1x128xf32>,
    return
  }
  func.func @transform_0(%arg0: i32) -> (i32, i32, i32, i32) {
    %c0_i32 = arith.constant 0 : i32
    %c0_i32_0 = arith.constant 0 : i32
    %c0_i32_1 = arith.constant 0 : i32
    %c0_i32_2 = arith.constant 0 : i32
    return %c0_i32, %c0_i32_0, %arg0, %c0_i32_1 : i32, i32, i32, i32
  }
  func.func @transform_1(%arg0: i32) -> (i32, i32, i32, i32) {
    %c0_i32 = arith.constant 0 : i32
    %c0_i32_0 = arith.constant 0 : i32
    %c0_i32_1 = arith.constant 0 : i32
    %c0_i32_2 = arith.constant 0 : i32
    return %c0_i32, %c0_i32_0, %arg0, %c0_i32_1 : i32, i32, i32, i32
  }
  func.func @transform_2(%arg0: i32) -> (i32, i32, i32) {
    %c0_i32 = arith.constant 0 : i32
    %c0_i32_0 = arith.constant 0 : i32
    %c0_i32_1 = arith.constant 0 : i32
    return %c0_i32, %arg0, %c0_i32_0 : i32, i32, i32
  }
  func.func @transform_3(%arg0: i32) -> (i32, i32, i32) {
    %c0_i32 = arith.constant 0 : i32
    %c0_i32_0 = arith.constant 0 : i32
    %c0_i32_1 = arith.constant 0 : i32
    return %c0_i32, %arg0, %c0_i32_0 : i32, i32, i32
  }
  func.func @transform_4(%arg0: i32) -> (i32, i32, i32) {
    %c0_i32 = arith.constant 0 : i32
    %c0_i32_0 = arith.constant 0 : i32
    %c0_i32_1 = arith.constant 0 : i32
    return %c0_i32, %arg0, %c0_i32_0 : i32, i32, i32
  }
  func.func @transform_5(%arg0: i32) -> (i32, i32, i32) {
    %c0_i32 = arith.constant 0 : i32
    %c0_i32_0 = arith.constant 0 : i32
    %c0_i32_1 = arith.constant 0 : i32
    return %c0_i32, %arg0, %c0_i32_0 : i32, i32, i32
  }
  func.func @transform_6(%arg0: i32) -> (i32, i32, i32, i32) {
    %c0_i32 = arith.constant 0 : i32
    %c0_i32_0 = arith.constant 0 : i32
    %c0_i32_1 = arith.constant 0 : i32
    %c0_i32_2 = arith.constant 0 : i32
    return %c0_i32, %c0_i32_0, %arg0, %c0_i32_1 : i32, i32, i32, i32
  }
  func.func @transform_7(%arg0: i32) -> (i32, i32, i32, i32) {
    %c0_i32 = arith.constant 0 : i32
    %c0_i32_0 = arith.constant 0 : i32
    %c0_i32_1 = arith.constant 0 : i32
    %c0_i32_2 = arith.constant 0 : i32
    return %c0_i32, %c0_i32_0, %arg0, %c0_i32_1 : i32, i32, i32, i32
  }
  func.func @transform_8(%arg0: i32) -> (i32, i32) {
    %c0_i32 = arith.constant 0 : i32
    %c0_i32_0 = arith.constant 0 : i32
    return %arg0, %c0_i32 : i32, i32
  }
}

</mosaic_0001>

<bundles_post_ra>
// kernel: lqr_pallas.1
= control target key start
LH: loop header
LB: loop body
LE: loop exit
PB: predicated region body
PF: predicated region fallthrough
CT: control target
= control target key end

     0   :  { %s4051_s15 = smov 1   ;;  %s6003_s0 = inlined_call_operand.vmem [shape: f32[5,49,1,128], index: 0, kind: input, shape index: {}]   ;;  %s6004_s2 = inlined_call_operand.vmem [shape: f32[16,1,128], index: 2, kind: input, shape index: {}]   ;;  %s6005_s3 = inlined_call_operand.vmem [shape: f32[12,1,128], index: 3, kind: input, shape index: {}]   ;;  %s6006_s4 = inlined_call_operand.vmem [shape: f32[4,1,128], index: 4, kind: input, shape index: {}]   ;;  %s6007_s5 = inlined_call_operand.vmem [shape: f32[4,1,128], index: 5, kind: input, shape index: {}]   ;;  %s6008_s6 = inlined_call_operand.vmem [shape: f32[5,4,1,128], index: 6, kind: output, shape index: {0}]   ;;  %s6009_s7 = inlined_call_operand.vmem [shape: f32[5,3,1,128], index: 7, kind: output, shape index: {1}]   ;;  %s6010_s8 = inlined_call_operand.vmem [shape: f32[1,128], index: 8, kind: output, shape index: {2}]   ;;  %s6011_s1 = inlined_call_operand.vmem [shape: f32[5,7,1,128], index: 1, kind: input, shape index: {}]  }
   0x1   :  { %v3270_v0 = vld [vmem:[%s6003_s0 + $0xe5] sm:$0x1]  ;;  %v3275_v1 = vld [vmem:[%s6003_s0 + $0xe6] sm:$0x1]  ;;  %v3280_v2 = vld [vmem:[%s6003_s0 + $0xec] sm:$0x1] }
   0x2   :  { %6110 = vst [vmem:[#allocation4_spill] sm:$0xff] %v3275_v1  ;;  %v3285_v3 = vld [vmem:[%s6003_s0 + $0xed] sm:$0x1]  ;;  %v3290_v4 = vld [vmem:[%s6003_s0 + $0xf4] sm:$0x1]  ;;  %v109_v11 = vmul.f32 %v3280_v2, %v3275_v1  ;;  %v127_v20 = vmul.f32 %v3275_v1, %v3270_v0  ;;  %v132_v21 = vmul.f32 %v3270_v0, %v3270_v0  ;;  %v124_v26 = vmul.f32 %v3275_v1, %v3275_v1 }
   0x3   :  { %6111 = vst [vmem:[#allocation5_spill] sm:$0xff] %v3285_v3  ;;  %v102_v5 = vmul.f32 %v3290_v4, %v3280_v2  ;;  %v103_v6 = vmul.f32 %v3285_v3, %v3285_v3  ;;  %v105_v7 = vmul.f32 %v3285_v3, %v3275_v1  ;;  %v106_v8 = vmul.f32 %v3290_v4, %v3270_v0  ;;  %v3303_v9 = vld [vmem:[%s6003_s0 + $0xe4] sm:$0x1]  ;;  %v3327_v32 = vld [vmem:[%s6003_s0 + $0xc8] sm:$0x1] }
   0x4   :  { %v108_v10 = vmul.f32 %v3285_v3, %v3270_v0  ;;  %v128_v23 = vmul.f32 %v3285_v3, %v3303_v9  ;;  %v131_v24 = vmul.f32 %v3280_v2, %v3303_v9  ;;  %v123_v25 = vmul.f32 %v3290_v4, %v3303_v9  ;;  %v3332_v33 = vld [vmem:[%s6003_s0 + $0xc9] sm:$0x1]  ;;  %v3337_v35 = vld [vmem:[%s6003_s0 + $0xca] sm:$0x1]  ;;  %v3342_v36 = vld [vmem:[%s6003_s0 + $0xcf] sm:$0x1] }
   0x5   :  { %v104_v12 = vsub.f32 %v102_v5, %v103_v6  ;;  %v107_v13 = vsub.f32 %v105_v7, %v106_v8  ;;  %v3347_v37 = vld [vmem:[%s6003_s0 + $0xd0] sm:$0x1]  ;;  %v3356_v41 = vld [vmem:[%s6003_s0 + $0xd1] sm:$0x1]  ;;  %v3361_v42 = vld [vmem:[%s6003_s0 + $0xd6] sm:$0x1] }
   0x6   :  { %v110_v14 = vsub.f32 %v108_v10, %v109_v11  ;;  %v129_v29 = vsub.f32 %v127_v20, %v128_v23  ;;  %v133_v30 = vsub.f32 %v131_v24, %v132_v21  ;;  %v125_v31 = vsub.f32 %v123_v25, %v124_v26  ;;  %v3366_v43 = vld [vmem:[%s6003_s0 + $0xd7] sm:$0x1]  ;;  %v3373_v45 = vld [vmem:[%s6003_s0 + $0xd8] sm:$0x1]  ;;  %v3378_v46 = vld [vmem:[%s6003_s0 + $0xdd] sm:$0x1] }
   0x7   :  { %v111_v15 = vmul.f32 %v3303_v9, %v104_v12  ;;  %v112_v16 = vmul.f32 %v3270_v0, %v107_v13  ;;  %6113 = vst [vmem:[#allocation7_spill] sm:$0xff] %v3378_v46  ;;  %v3383_v47 = vld [vmem:[%s6003_s0 + $0xde] sm:$0x1]  ;;  %v3398_v54 = vld [vmem:[%s6003_s0 + $0xdf] sm:$0x1] }
   0x8   :  { %v114_v17 = vmul.f32 %v3275_v1, %v110_v14  ;;  %v3429_v20 = vld [vmem:[%s6011_s1 + $0x20] sm:$0x1] }
   0x9   :  { %v113_v18 = vadd.f32 %v112_v16, %v111_v15 }
   0xb   :  { %v115_v19 = vadd.f32 %v114_v17, %v113_v18 }
   0xd   :  { %3043 = vrcp.f32 %v115_v19 }
  0x13   :  { %v3044_v22 = vpop.eup %3043 }
  0x14   :  { %v117_v27 = vmul.f32 %v3044_v22, %v115_v19 }
  0x16   :  { %v118_v28 = vsub.f32 2.0, %v117_v27 }
  0x18   :  { %v119_v34 = vmul.f32 %v3044_v22, %v118_v28 }
  0x1a   :  { %v120_v38 = vmul.f32 %v119_v34, %v104_v12  ;;  %v3349_v39 = vmul.f32 %v119_v34, %v107_v13  ;;  %v3351_v40 = vmul.f32 %v119_v34, %v110_v14  ;;  %v3368_v44 = vmul.f32 %v129_v29, %v119_v34 }
  0x1b   :  { %v3385_v48 = vmul.f32 %v133_v30, %v119_v34  ;;  %v3387_v49 = vmul.f32 %v125_v31, %v119_v34 }
  0x1c   :  { %6112 = vst [vmem:[#allocation6_spill] sm:$0xff] %v3351_v40  ;;  %v135_v50 = vmul.f32 %v3327_v32, %v120_v38  ;;  %v136_v51 = vmul.f32 %v3332_v33, %v3349_v39  ;;  %v138_v52 = vmul.f32 %v3337_v35, %v3351_v40  ;;  %v141_v53 = vmul.f32 %v3342_v36, %v120_v38 }
  0x1d   :  { %6114 = vst [vmem:[#allocation8_spill] sm:$0xff] %v3385_v48  ;;  %v142_v55 = vmul.f32 %v3347_v37, %v3349_v39  ;;  %v144_v56 = vmul.f32 %v3356_v41, %v3351_v40  ;;  %v147_v57 = vmul.f32 %v3361_v42, %v120_v38  ;;  %v148_v58 = vmul.f32 %v3366_v43, %v3349_v39 }
  0x1e   :  { %v137_v59 = vadd.f32 %v136_v51, %v135_v50  ;;  %v150_v60 = vmul.f32 %v3373_v45, %v3351_v40  ;;  %v153_v61 = vmul.f32 %v3378_v46, %v120_v38  ;;  %v154_v62 = vmul.f32 %v3383_v47, %v3349_v39 }
  0x1f   :  { %v143_v63 = vadd.f32 %v142_v55, %v141_v53  ;;  %v149_v5 = vadd.f32 %v148_v58, %v147_v57  ;;  %v156_v6 = vmul.f32 %v3398_v54, %v3351_v40  ;;  %v183_v7 = vmul.f32 %v3327_v32, %v3351_v40 }
  0x20   :  { %v139_v8 = vadd.f32 %v138_v52, %v137_v59  ;;  %v155_v10 = vadd.f32 %v154_v62, %v153_v61  ;;  %v184_v11 = vmul.f32 %v3332_v33, %v3368_v44  ;;  %v186_v12 = vmul.f32 %v3337_v35, %v3385_v48 }
  0x21   :  { %v145_v13 = vadd.f32 %v144_v56, %v143_v63  ;;  %v151_v14 = vadd.f32 %v150_v60, %v149_v5  ;;  %v159_v15 = vmul.f32 %v3327_v32, %v3349_v39  ;;  %v160_v16 = vmul.f32 %v3332_v33, %v3387_v49  ;;  %v3488_v56 = vld [vmem:[%s6011_s1 + $0x22] sm:$0x1] }
  0x22   :  { %v3424_v17 = vsub.f32 0.0, %v139_v8  ;;  %v157_v18 = vadd.f32 %v156_v6, %v155_v10  ;;  %v185_v19 = vadd.f32 %v184_v11, %v183_v7  ;;  %v162_v25 = vmul.f32 %v3337_v35, %v3368_v44  ;;  %6121 = vst [vmem:[#allocation15_spill] sm:$0xff] %v3488_v56  ;;  %v2679_v8 = vld [vmem:[%s6003_s0 + $0xeb] sm:$0x1] }
  0x23   :  { %v3431_v21 = vsub.f32 0.0, %v145_v13  ;;  %v3434_v22 = vsub.f32 0.0, %v151_v14  ;;  %v161_v24 = vadd.f32 %v160_v16, %v159_v15  ;;  %v207_v29 = vmul.f32 %v3429_v20, %v120_v38  ;;  %v3468_v38 = vld [vmem:[%s6011_s1 + $0x21] sm:$0x1] }
  0x24   :  { %6115 = vst [vmem:[#allocation9_spill] sm:$0xff] %v3424_v17  ;;  %v187_v23 = vadd.f32 %v186_v12, %v185_v19  ;;  %v3441_v26 = vmul.f32 %v3342_v36, %v3424_v17  ;;  %v295_v27 = vmul.f32 %v3361_v42, %v3424_v17  ;;  %v3445_v28 = vsub.f32 0.0, %v157_v18 }
  0x25   :  { %6116 = vst [vmem:[#allocation10_spill] sm:$0xff] %v3431_v21  ;;  %v3450_v30 = vmul.f32 %v3327_v32, %v3431_v21  ;;  %v3454_v31 = vmul.f32 %v3342_v36, %v3431_v21  ;;  %v3458_v34 = vmul.f32 %v3303_v9, %v3431_v21  ;;  %v3463_v50 = vmul.f32 %v3327_v32, %v3434_v22 }
  0x26   :  { %226 = vst [vmem:[#allocation2 + $0x30] sm:$0x1] %v3424_v17  ;;  %v3472_v51 = vmul.f32 %v3342_v36, %v3434_v22  ;;  %v3476_v52 = vmul.f32 %v3361_v42, %v3431_v21  ;;  %v3480_v53 = vmul.f32 %v3361_v42, %v3434_v22  ;;  %v3482_v55 = vsub.f32 0.0, %v187_v23 }
  0x27   :  { %6117 = vst [vmem:[#allocation11_spill] sm:$0xff] %v3434_v22  ;;  %v3492_v57 = vmul.f32 %v3303_v9, %v3434_v22  ;;  %v3496_v58 = vmul.f32 %v3327_v32, %v3445_v28  ;;  %v3500_v59 = vmul.f32 %v3342_v36, %v3445_v28  ;;  %v3504_v60 = vmul.f32 %v3361_v42, %v3445_v28 }
  0x28   :  { %228 = vst [vmem:[#allocation2 + $0x31] sm:$0x1] %v3431_v21  ;;  %v315_v61 = vmul.f32 %v3378_v46, %v3424_v17  ;;  %v3510_v62 = vmul.f32 %v3378_v46, %v3431_v21  ;;  %v3514_v63 = vmul.f32 %v3378_v46, %v3434_v22  ;;  %v163_v5 = vadd.f32 %v162_v25, %v161_v24 }
  0x29   :  { %6118 = vst [vmem:[#allocation12_spill] sm:$0xff] %v3441_v26  ;;  %v298_v6 = vmul.f32 %v3373_v45, %v3482_v55  ;;  %v3521_v7 = vmul.f32 %v3378_v46, %v3445_v28  ;;  %v208_v10 = vmul.f32 %v3468_v38, %v3349_v39  ;;  %v210_v11 = vmul.f32 %v3488_v56, %v3351_v40 }
  0x2a   :  { %6119 = vst [vmem:[#allocation13_spill] sm:$0xff] %v3445_v28  ;;  %v318_v12 = vmul.f32 %v3398_v54, %v3482_v55  ;;  %v3532_v13 = vsub.f32 0.0, %v163_v5  ;;  %v335_v14 = vmul.f32 %v3303_v9, %v3424_v17  ;;  %v355_v15 = vmul.f32 %v2679_v8, %v3424_v17 }
  0x2b   :  { %230 = vst [vmem:[#allocation2 + $0x32] sm:$0x1] %v3434_v22  ;;  %v3539_v16 = vmul.f32 %v3303_v9, %v3445_v28  ;;  %v209_v18 = vadd.f32 %v208_v10, %v207_v29  ;;  %v338_v19 = vmul.f32 %v3275_v1, %v3482_v55  ;;  %v358_v23 = vmul.f32 %v3285_v3, %v3482_v55 }
  0x2c   :  { %6120 = vst [vmem:[#allocation14_spill] sm:$0xff] %v3476_v52  ;;  %v296_v24 = vmul.f32 %v3366_v43, %v3532_v13  ;;  %v316_v25 = vmul.f32 %v3383_v47, %v3532_v13  ;;  %v336_v5 = vmul.f32 %v3270_v0, %v3532_v13  ;;  %v3555_v10 = vmul.f32 %v2679_v8, %v3431_v21  ;;  %v2682_v52 = vld [vmem:[%s6003_s0 + $0xf2] sm:$0x1] }
  0x2d   :  { %232 = vst [vmem:[#allocation2 + $0x33] sm:$0x1] %v3445_v28  ;;  %v211_v29 = vadd.f32 %v210_v11, %v209_v18  ;;  %v3558_v3 = vmul.f32 %v2679_v8, %v3434_v22  ;;  %v3561_v1 = vmul.f32 %v2679_v8, %v3445_v28  ;;  %v3567_v11 = vmul.f32 %v2682_v52, %v3424_v17 }
  0x2e   :  { %6122 = vst [vmem:[#allocation16_spill] sm:$0xff] %v3492_v57  ;;  %v297_v26 = vadd.f32 %v296_v24, %v295_v27  ;;  %v317_v48 = vadd.f32 %v316_v25, %v315_v61  ;;  %v337_v40 = vadd.f32 %v336_v5, %v335_v14  ;;  %v165_v18 = vmul.f32 %v3342_v36, %v3349_v39 }
  0x2f   :  { %6123 = vst [vmem:[#allocation17_spill] sm:$0xff] %v3514_v63  ;;  %v356_v63 = vmul.f32 %v3280_v2, %v3532_v13  ;;  %v212_v57 = vsub.f32 0.0, %v211_v29  ;;  %v3577_v27 = vmul.f32 %v2682_v52, %v3434_v22  ;;  %v171_v24 = vmul.f32 %v3361_v42, %v3349_v39 }
  0x30   :  { %246 = vst [vmem:[#allocation2 + $0x38] sm:$0x1] %v3482_v55  ;;  %v3579_v61 = vadd.f32 %v298_v6, %v297_v26  ;;  %v172_v25 = vmul.f32 %v3366_v43, %v3387_v49  ;;  %v3604_v5 = vadd.f32 %v318_v12, %v317_v48  ;;  %v178_v29 = vmul.f32 %v3383_v47, %v3387_v49 }
  0x31   :  { %6124 = vst [vmem:[#allocation18_spill] sm:$0xff] %v3521_v7  ;;  %v339_v7 = vadd.f32 %v338_v19, %v337_v40  ;;  %v3585_v14 = vmul.f32 %v3327_v32, %v212_v57  ;;  %v3592_v19 = vmul.f32 %v3342_v36, %v212_v57  ;;  %v3598_v26 = vmul.f32 %v3378_v46, %v212_v57 }
  0x32   :  { %6125 = vst [vmem:[#allocation19_spill] sm:$0xff] %v3539_v16  ;;  %v357_v16 = vadd.f32 %v356_v63, %v355_v15  ;;  %v3582_v63 = vmul.f32 %v2682_v52, %v3445_v28  ;;  %v168_v15 = vmul.f32 %v3356_v41, %v3368_v44  ;;  %v173_v22 = vadd.f32 %v172_v25, %v171_v24 }
  0x33   :  { %236 = vst [vmem:[#allocation2 + $0x34] sm:$0x1] %v3532_v13  ;;  %v397_v40 = vmul.f32 %v339_v7, %v3424_v17  ;;  %v177_v7 = vmul.f32 %v3378_v46, %v3349_v39  ;;  %v3617_v48 = vmul.f32 %v3303_v9, %v212_v57  ;;  %v3619_v12 = vmul.f32 %v2679_v8, %v212_v57 }
  0x34   :  { %6126 = vst [vmem:[#allocation20_spill] sm:$0xff] %v3555_v10  ;;  %v3574_v10 = vmul.f32 %v2682_v52, %v3431_v21  ;;  %v3625_v46 = vmul.f32 %v2682_v52, %v212_v57  ;;  %v255_v9 = vmul.f32 %v3327_v32, %v3424_v17  ;;  %v256_v8 = vmul.f32 %v3332_v33, %v3532_v13  ;;  %v2683_v52 = vld [vmem:[%s6003_s0 + $0xf3] sm:$0x1] }
  0x35   :  { %6127 = vst [vmem:[#allocation21_spill] sm:$0xff] %v3558_v3  ;;  %v166_v3 = vmul.f32 %v3347_v37, %v3387_v49  ;;  %v378_v25 = vmul.f32 %v3290_v4, %v3482_v55 }
  0x36   :  { %6128 = vst [vmem:[#allocation22_spill] sm:$0xff] %v3561_v1  ;;  %v359_v1 = vadd.f32 %v358_v23, %v357_v16  ;;  %v3595_v23 = vmul.f32 %v3361_v42, %v212_v57 }
  0x37   :  { %234 = vst [vmem:[#allocation3 + $0xc] sm:$0x1] %v212_v57  ;;  %v167_v6 = vadd.f32 %v166_v3, %v165_v18  ;;  %v180_v3 = vmul.f32 %v3398_v54, %v3368_v44  ;;  %v213_v18 = vmul.f32 %v3429_v20, %v3349_v39  ;;  %v216_v39 = vmul.f32 %v3488_v56, %v3368_v44 }
  0x38   :  { %6129 = vst [vmem:[#allocation23_spill] sm:$0xff] %v3579_v61  ;;  %v398_v16 = vmul.f32 %v359_v1, %v3532_v13  ;;  %v174_v1 = vmul.f32 %v3373_v45, %v3368_v44  ;;  %v214_v61 = vmul.f32 %v3468_v38, %v3387_v49 }
  0x39   :  { %6130 = vst [vmem:[#allocation24_spill] sm:$0xff] %v3604_v5  ;;  %v169_v28 = vadd.f32 %v168_v15, %v167_v6  ;;  %v179_v5 = vadd.f32 %v178_v29, %v177_v7 }
  0x3a   :  { %v3623_v21 = vadd.f32 %v398_v16, %v397_v40  ;;  %6131 = vst [vmem:[#allocation25_spill] sm:$0xff] %v3625_v46  ;;  %v175_v6 = vadd.f32 %v174_v1, %v173_v22  ;;  %v215_v57 = vadd.f32 %v214_v61, %v213_v18  ;;  %v258_v40 = vmul.f32 %v3337_v35, %v3482_v55 }
  0x3b   :  { %v3627_v15 = vsub.f32 0.0, %v169_v28  ;;  %v181_v24 = vadd.f32 %v180_v3, %v179_v5  ;;  %v376_v16 = vmul.f32 %v2683_v52, %v3532_v13 }
  0x3c   :  { %v3645_v32 = vsub.f32 0.0, %v175_v6 }
  0x3d   :  { %238 = vst [vmem:[#allocation2 + $0x35] sm:$0x1] %v3627_v15  ;;  %v261_v49 = vmul.f32 %v3332_v33, %v3627_v15  ;;  %v281_v28 = vmul.f32 %v3347_v37, %v3627_v15  ;;  %v321_v22 = vmul.f32 %v3383_v47, %v3627_v15  ;;  %v3661_v61 = vsub.f32 0.0, %v181_v24 }
  0x3e   :  { %v341_v29 = vmul.f32 %v3270_v0, %v3627_v15  ;;  %240 = vst [vmem:[#allocation2 + $0x36] sm:$0x1] %v3645_v32  ;;  %v266_v3 = vmul.f32 %v3332_v33, %v3645_v32  ;;  %v217_v24 = vadd.f32 %v216_v39, %v215_v57  ;;  %v346_v46 = vmul.f32 %v3270_v0, %v3645_v32 }
  0x3f   :  { %v3653_v5 = vadd.f32 %v261_v49, %v3450_v30  ;;  %v3656_v1 = vadd.f32 %v281_v28, %v3454_v31  ;;  %v3659_v7 = vadd.f32 %v321_v22, %v3510_v62  ;;  %v286_v30 = vmul.f32 %v3347_v37, %v3645_v32  ;;  %242 = vst [vmem:[#allocation2 + $0x37] sm:$0x1] %v3661_v61 }
  0x40   :  { %v306_v31 = vmul.f32 %v3366_v43, %v3645_v32  ;;  %v361_v62 = vmul.f32 %v3280_v2, %v3627_v15  ;;  %v271_v18 = vmul.f32 %v3332_v33, %v3661_v61  ;;  %v291_v6 = vmul.f32 %v3347_v37, %v3661_v61 }
  0x41   :  { %6132 = vst [vmem:[#allocation26_spill] sm:$0xff] %v3659_v7  ;;  %v3680_v49 = vadd.f32 %v266_v3, %v3463_v50  ;;  %v3683_v28 = vadd.f32 %v286_v30, %v3472_v51  ;;  %v311_v7 = vmul.f32 %v3366_v43, %v3661_v61  ;;  %v366_v17 = vmul.f32 %v3280_v2, %v3645_v32 }
  0x42   :  { %v3686_v22 = vadd.f32 %v306_v31, %v3480_v53  ;;  %v3695_v39 = vadd.f32 %v271_v18, %v3496_v58  ;;  %v3698_v50 = vadd.f32 %v291_v6, %v3500_v59  ;;  %v331_v53 = vmul.f32 %v3383_v47, %v3661_v61  ;;  %v6138_v6 = vld [vmem:[#allocation18_spill] sm:$0xff] }
  0x43   :  { %v3701_v51 = vadd.f32 %v311_v7, %v3504_v60  ;;  %v351_v57 = vmul.f32 %v3270_v0, %v3661_v61  ;;  %v371_v3 = vmul.f32 %v3280_v2, %v3661_v61  ;;  %v218_v30 = vsub.f32 0.0, %v217_v24  ;;  %v6137_v60 = vld [vmem:[#allocation20_spill] sm:$0xff] }
  0x44   :  { %6133 = vst [vmem:[#allocation27_spill] sm:$0xff] %v3686_v22  ;;  %v257_v31 = vadd.f32 %v256_v8, %v255_v9  ;;  %v377_v58 = vadd.f32 %v376_v16, %v3567_v11  ;;  %v381_v18 = vmul.f32 %v2683_v52, %v3627_v15  ;;  %v3712_v59 = vadd.f32 %v341_v29, %v3458_v34  ;;  %v6140_v9 = vld [vmem:[#allocation16_spill] sm:$0xff]  ;;  %v6141_v11 = vld [vmem:[#allocation21_spill] sm:$0xff] }
  0x45   :  { %6134 = vst [vmem:[#allocation28_spill] sm:$0xff] %v3695_v39  ;;  %v3715_v7 = vadd.f32 %v361_v62, %v6137_v60  ;;  %v386_v24 = vmul.f32 %v2683_v52, %v3645_v32  ;;  %v3725_v8 = vadd.f32 %v346_v46, %v6140_v9  ;;  %v3728_v16 = vadd.f32 %v366_v17, %v6141_v11  ;;  %v6142_v62 = vld [vmem:[#allocation19_spill] sm:$0xff] }
  0x46   :  { %6135 = vst [vmem:[#allocation29_spill] sm:$0xff] %v3698_v50  ;;  %v2654_v50 = vld [vmem:[%s6003_s0 + $0xc4] sm:$0x1]  ;;  %v259_v34 = vadd.f32 %v258_v40, %v257_v31  ;;  %v379_v29 = vadd.f32 %v378_v25, %v377_v58  ;;  %v3731_v60 = vadd.f32 %v351_v57, %v6142_v62  ;;  %v391_v39 = vmul.f32 %v2683_v52, %v3661_v61 }
  0x47   :  { %6136 = vst [vmem:[#allocation30_spill] sm:$0xff] %v3701_v51  ;;  %v3718_v51 = vadd.f32 %v331_v53, %v6138_v6  ;;  %v6143_v53 = vld [vmem:[#allocation22_spill] sm:$0xff]  ;;  %v3739_v22 = vadd.f32 %v386_v24, %v3577_v27  ;;  %v494_v9 = vmul.f32 %v3332_v33, %v218_v30  ;;  %v476_v40 = vmul.f32 %v3270_v0, %v218_v30 }
  0x48   :  { %244 = vst [vmem:[#allocation3 + $0xd] sm:$0x1] %v218_v30  ;;  %v3734_v6 = vadd.f32 %v371_v3, %v6143_v53  ;;  %v395_v46 = vadd.f32 %v2654_v50, %v259_v34  ;;  %v400_v17 = vmul.f32 %v379_v29, %v3482_v55  ;;  %v482_v25 = vmul.f32 %v3280_v2, %v218_v30  ;;  %v6146_v0 = vld [vmem:[#allocation6_spill] sm:$0xff]  ;;  %v6151_v29 = vld [vmem:[#allocation12_spill] sm:$0xff] }
  0x49   :  { %6139 = vst [vmem:[#allocation20_spill] sm:$0xff] %v3718_v51  ;;  %v382_v51 = vadd.f32 %v381_v18, %v3574_v10  ;;  %v3745_v57 = vmul.f32 %v2683_v52, %v218_v30  ;;  %v506_v3 = vmul.f32 %v3347_v37, %v218_v30  ;;  %v3750_v58 = vadd.f32 %v494_v9, %v3585_v14  ;;  %v6149_v14 = vld [vmem:[#allocation8_spill] sm:$0xff] }
  0x4a   :  { %v396_v31 = vadd.f32 %v395_v46, %v259_v34  ;;  %v401_v10 = vadd.f32 %v400_v17, %v3623_v21  ;;  %v518_v27 = vmul.f32 %v3366_v43, %v218_v30  ;;  %v530_v33 = vmul.f32 %v3383_v47, %v218_v30  ;;  %v6152_v17 = vld [vmem:[#allocation7_spill] sm:$0xff] }
  0x4b   :  { %6144 = vst [vmem:[#allocation18_spill] sm:$0xff] %v3750_v58  ;;  %v3754_v50 = vadd.f32 %v506_v3, %v3592_v19  ;;  %v189_v2 = vmul.f32 %v3342_v36, %v6146_v0  ;;  %v190_v52 = vmul.f32 %v3347_v37, %v3368_v44  ;;  %v192_v24 = vmul.f32 %v3356_v41, %v6149_v14 }
  0x4c   :  { %v3761_v18 = vadd.f32 %v401_v10, %v396_v31   ;;  %v3764_v21 = vadd.f32 %v518_v27, %v3595_v23  ;;  %v276_v19 = vmul.f32 %v3347_v37, %v3532_v13  ;;  %v3771_v11 = vadd.f32 %v530_v33, %v3598_v26  ;;  %v6153_v10 = vld [vmem:[#allocation14_spill] sm:$0xff] }
  0x4d   :  { %6145 = vst [vmem:[#allocation16_spill] sm:$0xff] %v3754_v50  ;;  %v191_v30 = vadd.f32 %v190_v52, %v189_v2  ;;  %v278_v36 = vmul.f32 %v3356_v41, %v3482_v55  ;;  %v195_v34 = vmul.f32 %v3361_v42, %v6146_v0  ;;  %v196_v23 = vmul.f32 %v3366_v43, %v3368_v44 }
  0x4e   :  { %6147 = vst [vmem:[#allocation21_spill] sm:$0xff] %v3761_v18  ;;  %v277_v62 = vadd.f32 %v276_v19, %v6151_v29  ;;  %v198_v53 = vmul.f32 %v3373_v45, %v6149_v14  ;;  %v301_v37 = vmul.f32 %v3366_v43, %v3627_v15  ;;  %v3785_v26 = vadd.f32 %v391_v39, %v3582_v63  ;;  %v6156_v29 = vld [vmem:[#allocation5_spill] sm:$0xff] }
  0x4f   :  { %6148 = vst [vmem:[#allocation19_spill] sm:$0xff] %v3764_v21  ;;  %v193_v46 = vadd.f32 %v192_v24, %v191_v30  ;;  %v201_v9 = vmul.f32 %v6152_v17, %v6146_v0  ;;  %v202_v42 = vmul.f32 %v3383_v47, %v3368_v44  ;;  %v3792_v3 = vadd.f32 %v476_v40, %v3617_v48  ;;  %v6154_v48 = vld [vmem:[#allocation17_spill] sm:$0xff] }
  0x50   :  { %6150 = vst [vmem:[#allocation22_spill] sm:$0xff] %v3771_v11  ;;  %v197_v31 = vadd.f32 %v196_v23, %v195_v34  ;;  %v302_v27 = vadd.f32 %v301_v37, %v6153_v10  ;;  %v326_v33 = vmul.f32 %v3383_v47, %v3645_v32  ;;  %v3798_v43 = vadd.f32 %v482_v25, %v3619_v12  ;;  %v6155_v25 = vld [vmem:[#allocation4_spill] sm:$0xff] }
  0x51   :  { %v3800_v63 = vsub.f32 0.0, %v193_v46  ;;  %v279_v39 = vadd.f32 %v278_v36, %v277_v62  ;;  %v3804_v2 = vmul.f32 %v3398_v54, %v6149_v14  ;;  %v3806_v24 = vadd.f32 %v202_v42, %v201_v9  ;;  %v2658_v34 = vld [vmem:[%s6003_s0 + $0xcc] sm:$0x1] }
  0x52   :  { %v199_v52 = vadd.f32 %v198_v53, %v197_v31  ;;  %v3809_v40 = vadd.f32 %v326_v33, %v6154_v48  ;;  %v3813_v19 = vmul.f32 %v3429_v20, %v6146_v0  ;;  %v3824_v36 = vmul.f32 %v3468_v38, %v3368_v44  ;;  %v2655_v0 = vld [vmem:[%s6003_s0 + $0xc5] sm:$0x1]  ;;  %v6158_v48 = vld [vmem:[#allocation10_spill] sm:$0xff] }
  0x53   :  { %248 = vst [vmem:[#allocation2 + $0x39] sm:$0x1] %v3800_v63  ;;  %v263_v47 = vmul.f32 %v3337_v35, %v3800_v63  ;;  %v283_v12 = vmul.f32 %v3356_v41, %v3800_v63  ;;  %v343_v30 = vmul.f32 %v6155_v25, %v3800_v63  ;;  %v363_v62 = vmul.f32 %v6156_v29, %v3800_v63 }
  0x54   :  { %v383_v23 = vmul.f32 %v3290_v4, %v3800_v63  ;;  %v3836_v53 = vsub.f32 0.0, %v199_v52  ;;  %v3840_v44 = vmul.f32 %v3488_v56, %v6149_v14  ;;  %v303_v9 = vmul.f32 %v3373_v45, %v3800_v63 }
  0x55   :  { %v264_v37 = vadd.f32 %v263_v47, %v3653_v5  ;;  %v284_v46 = vadd.f32 %v283_v12, %v3656_v1  ;;  %v344_v17 = vadd.f32 %v343_v30, %v3712_v59  ;;  %v364_v42 = vadd.f32 %v363_v62, %v3715_v7  ;;  %v6157_v5 = vld [vmem:[#allocation9_spill] sm:$0xff]  ;;  %v2656_v30 = vld [vmem:[%s6003_s0 + $0xc6] sm:$0x1] }
  0x56   :  { %v384_v31 = vadd.f32 %v383_v23, %v382_v51  ;;  %250 = vst [vmem:[#allocation2 + $0x3a] sm:$0x1] %v3836_v53  ;;  %v268_v10 = vmul.f32 %v3337_v35, %v3836_v53  ;;  %v288_v14 = vmul.f32 %v3356_v41, %v3836_v53  ;;  %v304_v11 = vadd.f32 %v303_v9, %v302_v27  ;;  %v6159_v27 = vld [vmem:[#allocation27_spill] sm:$0xff] }
  0x57   :  { %v403_v33 = vadd.f32 %v2655_v0, %v264_v37  ;;  %v405_v52 = vmul.f32 %v344_v17, %v6157_v5  ;;  %v427_v1 = vadd.f32 %v2658_v34, %v284_v46  ;;  %v429_v59 = vmul.f32 %v344_v17, %v6158_v48  ;;  %v2659_v0 = vld [vmem:[%s6003_s0 + $0xcd] sm:$0x1] }
  0x58   :  { %v406_v47 = vmul.f32 %v364_v42, %v3532_v13  ;;  %v408_v12 = vmul.f32 %v384_v31, %v3482_v55  ;;  %v430_v51 = vmul.f32 %v364_v42, %v3627_v15  ;;  %v432_v7 = vmul.f32 %v384_v31, %v3800_v63  ;;  %v2661_v31 = vld [vmem:[%s6003_s0 + $0xd4] sm:$0x1] }
  0x59   :  { %v404_v62 = vadd.f32 %v403_v33, %v279_v39  ;;  %v428_v23 = vadd.f32 %v427_v1, %v284_v46  ;;  %v269_v34 = vadd.f32 %v268_v10, %v3680_v49  ;;  %v289_v37 = vadd.f32 %v288_v14, %v3683_v28 }
  0x5a   :  { %v407_v17 = vadd.f32 %v406_v47, %v405_v52  ;;  %v431_v18 = vadd.f32 %v430_v51, %v429_v59  ;;  %v308_v42 = vmul.f32 %v3373_v45, %v3836_v53  ;;  %v348_v39 = vmul.f32 %v6155_v25, %v3836_v53  ;;  %v6160_v47 = vld [vmem:[#allocation23_spill] sm:$0xff] }
  0x5b   :  { %v368_v46 = vmul.f32 %v6156_v29, %v3836_v53  ;;  %v388_v49 = vmul.f32 %v3290_v4, %v3836_v53  ;;  %v411_v28 = vadd.f32 %v2656_v30, %v269_v34  ;;  %v435_v33 = vadd.f32 %v2659_v0, %v289_v37 }
  0x5c   :  { %v409_v10 = vadd.f32 %v408_v12, %v407_v17  ;;  %v433_v14 = vadd.f32 %v432_v7, %v431_v18  ;;  %v309_v9 = vadd.f32 %v308_v42, %v6159_v27  ;;  %v349_v52 = vadd.f32 %v348_v39, %v3725_v8  ;;  %v6162_v17 = vld [vmem:[#allocation25_spill] sm:$0xff]  ;;  %v6163_v27 = vld [vmem:[#allocation26_spill] sm:$0xff] }
  0x5d   :  { %v369_v1 = vadd.f32 %v368_v46, %v3728_v16  ;;  %v389_v59 = vadd.f32 %v388_v49, %v3739_v22  ;;  %v412_v51 = vadd.f32 %v411_v28, %v6160_v47  ;;  %v436_v58 = vadd.f32 %v435_v33, %v304_v11 }
  0x5e   :  { %v3883_v21 = vadd.f32 %v409_v10, %v404_v62   ;;  %v3885_v50 = vadd.f32 %v433_v14, %v428_v23   ;;  %v451_v56 = vadd.f32 %v2661_v31, %v309_v9  ;;  %v413_v12 = vmul.f32 %v349_v52, %v6157_v5  ;;  %v6161_v62 = vld [vmem:[#allocation11_spill] sm:$0xff] }
  0x5f   :  { %v414_v18 = vmul.f32 %v369_v1, %v3532_v13  ;;  %v416_v7 = vmul.f32 %v389_v59, %v3482_v55  ;;  %v437_v8 = vmul.f32 %v349_v52, %v6158_v48  ;;  %v323_v16 = vmul.f32 %v3398_v54, %v3800_v63 }
  0x60   :  { %v438_v22 = vmul.f32 %v369_v1, %v3627_v15  ;;  %v440_v30 = vmul.f32 %v389_v59, %v3800_v63  ;;  %v453_v23 = vmul.f32 %v349_v52, %v6161_v62  ;;  %v454_v11 = vmul.f32 %v369_v1, %v3645_v32 }
  0x61   :  { %v415_v0 = vadd.f32 %v414_v18, %v413_v12  ;;  %v456_v34 = vmul.f32 %v389_v59, %v3836_v53  ;;  %v205_v37 = vadd.f32 %v3804_v2, %v3806_v24  ;;  %v3902_v42 = vadd.f32 %v3745_v57, %v6162_v17  ;;  %v6164_v12 = vld [vmem:[#allocation28_spill] sm:$0xff] }
  0x62   :  { %v439_v31 = vadd.f32 %v438_v22, %v437_v8  ;;  %v328_v39 = vmul.f32 %v3398_v54, %v3836_v53  ;;  %v221_v46 = vadd.f32 %v3824_v36, %v3813_v19  ;;  %v452_v28 = vadd.f32 %v451_v56, %v309_v9  ;;  %v2657_v9 = vld [vmem:[%s6003_s0 + $0xc7] sm:$0x1]  ;;  %v6166_v22 = vld [vmem:[#allocation30_spill] sm:$0xff] }
  0x63   :  { %v417_v49 = vadd.f32 %v416_v7, %v415_v0  ;;  %v455_v10 = vadd.f32 %v454_v11, %v453_v23  ;;  %v3908_v14 = vsub.f32 0.0, %v205_v37  ;;  %v324_v33 = vadd.f32 %v323_v16, %v6163_v27  ;;  %v6165_v7 = vld [vmem:[#allocation29_spill] sm:$0xff]  ;;  %v6167_v23 = vld [vmem:[#allocation20_spill] sm:$0xff] }
  0x64   :  { %v441_v52 = vadd.f32 %v440_v30, %v439_v31  ;;  %v329_v2 = vadd.f32 %v328_v39, %v3809_v40  ;;  %v223_v57 = vadd.f32 %v3840_v44, %v221_v46  ;;  %v2660_v40 = vld [vmem:[%s6003_s0 + $0xce] sm:$0x1] }
  0x65   :  { %v3913_v24 = vadd.f32 %v417_v49, %v412_v51   ;;  %v457_v1 = vadd.f32 %v456_v34, %v455_v10  ;;  %252 = vst [vmem:[#allocation2 + $0x3b] sm:$0x1] %v3908_v14  ;;  %v273_v19 = vmul.f32 %v3337_v35, %v3908_v14  ;;  %v293_v56 = vmul.f32 %v3356_v41, %v3908_v14  ;;  %v6168_v27 = vld [vmem:[#allocation24_spill] sm:$0xff] }
  0x66   :  { %v3920_v36 = vadd.f32 %v441_v52, %v436_v58   ;;  %v313_v44 = vmul.f32 %v3373_v45, %v3908_v14  ;;  %v333_v59 = vmul.f32 %v3398_v54, %v3908_v14  ;;  %v353_v47 = vmul.f32 %v6155_v25, %v3908_v14  ;;  %v2662_v58 = vld [vmem:[%s6003_s0 + $0xd5] sm:$0x1] }
  0x67   :  { %v3934_v51 = vadd.f32 %v457_v1, %v452_v28   ;;  %v274_v18 = vadd.f32 %v273_v19, %v6164_v12  ;;  %v294_v8 = vadd.f32 %v293_v56, %v6165_v7  ;;  %v373_v16 = vmul.f32 %v6156_v29, %v3908_v14  ;;  %v6169_v12 = vld [vmem:[#allocation13_spill] sm:$0xff] }
  0x68   :  { %v314_v30 = vadd.f32 %v313_v44, %v6166_v22  ;;  %v334_v0 = vadd.f32 %v333_v59, %v6167_v23  ;;  %v354_v11 = vadd.f32 %v353_v47, %v3731_v60  ;;  %v393_v34 = vmul.f32 %v3290_v4, %v3908_v14  ;;  %v2663_v60 = vld [vmem:[%s6003_s0 + $0xdc] sm:$0x1] }
  0x69   :  { %v374_v37 = vadd.f32 %v373_v16, %v3734_v6  ;;  %v419_v17 = vadd.f32 %v2657_v9, %v274_v18  ;;  %v443_v31 = vadd.f32 %v2660_v40, %v294_v8  ;;  %v3949_v39 = vsub.f32 0.0, %v223_v57 }
  0x6a   :  { %v394_v46 = vadd.f32 %v393_v34, %v3785_v26  ;;  %v421_v49 = vmul.f32 %v354_v11, %v6157_v5  ;;  %v445_v28 = vmul.f32 %v354_v11, %v6158_v48  ;;  %v459_v10 = vadd.f32 %v2662_v58, %v314_v30 }
  0x6b   :  { %v420_v52 = vadd.f32 %v419_v17, %v6168_v27  ;;  %v422_v1 = vmul.f32 %v374_v37, %v3532_v13  ;;  %v444_v6 = vadd.f32 %v443_v31, %v324_v33  ;;  %v446_v19 = vmul.f32 %v374_v37, %v3627_v15  ;;  %254 = vst [vmem:[#allocation3 + $0xe] sm:$0x1] %v3949_v39 }
  0x6c   :  { %v424_v26 = vmul.f32 %v394_v46, %v3482_v55  ;;  %v448_v57 = vmul.f32 %v394_v46, %v3800_v63  ;;  %v460_v56 = vadd.f32 %v459_v10, %v329_v2  ;;  %v461_v9 = vmul.f32 %v354_v11, %v6161_v62 }
  0x6d   :  { %v423_v40 = vadd.f32 %v422_v1, %v421_v49  ;;  %v447_v44 = vadd.f32 %v446_v19, %v445_v28  ;;  %v462_v59 = vmul.f32 %v374_v37, %v3645_v32  ;;  %v464_v47 = vmul.f32 %v394_v46, %v3836_v53  ;;  %v6172_v19 = vld [vmem:[#allocation16_spill] sm:$0xff] }
  0x6e   :  { %v467_v58 = vadd.f32 %v2663_v60, %v334_v0  ;;  %v469_v33 = vmul.f32 %v354_v11, %v6169_v12  ;;  %v470_v18 = vmul.f32 %v374_v37, %v3661_v61  ;;  %v472_v7 = vmul.f32 %v394_v46, %v3908_v14 }
  0x6f   :  { %v425_v8 = vadd.f32 %v424_v26, %v423_v40  ;;  %v449_v16 = vadd.f32 %v448_v57, %v447_v44  ;;  %v463_v22 = vadd.f32 %v462_v59, %v461_v9  ;;  %v478_v2 = vmul.f32 %v6155_v25, %v3949_v39  ;;  %v6173_v57 = vld [vmem:[#allocation19_spill] sm:$0xff] }
  0x70   :  { %v468_v30 = vadd.f32 %v467_v58, %v334_v0  ;;  %v471_v23 = vadd.f32 %v470_v18, %v469_v33  ;;  %v484_v34 = vmul.f32 %v6156_v29, %v3949_v39  ;;  %v490_v17 = vmul.f32 %v3290_v4, %v3949_v39  ;;  %v2685_v29 = vld [vmem:[%s6011_s1 + $0x1c] sm:$0x1] }
  0x71   :  { %v426_v31 = vadd.f32 %v425_v8, %v420_v52   ;;  %v450_v11 = vadd.f32 %v449_v16, %v444_v6   ;;  %v465_v49 = vadd.f32 %v464_v47, %v463_v22  ;;  %v479_v37 = vadd.f32 %v478_v2, %v3792_v3  ;;  %v6170_v52 = vld [vmem:[#allocation15_spill] sm:$0xff]  ;;  %v6174_v2 = vld [vmem:[#allocation22_spill] sm:$0xff] }
  0x72   :  { %v473_v46 = vadd.f32 %v472_v7, %v471_v23  ;;  %v485_v28 = vadd.f32 %v484_v34, %v3798_v43  ;;  %v491_v10 = vadd.f32 %v490_v17, %v3902_v42  ;;  %v496_v25 = vmul.f32 %v3337_v35, %v3949_v39  ;;  %v2686_v43 = vld [vmem:[%s6011_s1 + $0x1d] sm:$0x1]  ;;  %v2687_v35 = vld [vmem:[%s6011_s1 + $0x1e] sm:$0x1] }
  0x73   :  { %v466_v0 = vadd.f32 %v465_v49, %v460_v56   ;;  %v480_v4 = vadd.f32 %v3429_v20, %v479_v37  ;;  %v508_v60 = vmul.f32 %v3356_v41, %v3949_v39  ;;  %v520_v3 = vmul.f32 %v3373_v45, %v3949_v39  ;;  %v6171_v20 = vld [vmem:[#allocation18_spill] sm:$0xff] }
  0x74   :  { %v474_v42 = vadd.f32 %v473_v46, %v468_v30   ;;  %v486_v27 = vadd.f32 %v3468_v38, %v485_v28  ;;  %v492_v1 = vadd.f32 %v6170_v52, %v491_v10  ;;  %v497_v6 = vadd.f32 %v496_v25, %v6171_v20 }
  0x75   :  { %v499_v41 = vmul.f32 %v480_v4, %v6157_v5  ;;  %v509_v26 = vadd.f32 %v508_v60, %v6172_v19  ;;  %v511_v45 = vmul.f32 %v480_v4, %v6158_v48  ;;  %v521_v56 = vadd.f32 %v520_v3, %v6173_v57 }
  0x76   :  { %v498_v9 = vadd.f32 %v2685_v29, %v497_v6  ;;  %v500_v40 = vmul.f32 %v486_v27, %v3532_v13  ;;  %v502_v44 = vmul.f32 %v492_v1, %v3482_v55  ;;  %v512_v59 = vmul.f32 %v486_v27, %v3627_v15 }
  0x77   :  { %v510_v38 = vadd.f32 %v2686_v43, %v509_v26  ;;  %v514_v47 = vmul.f32 %v492_v1, %v3800_v63  ;;  %v522_v58 = vadd.f32 %v2687_v35, %v521_v56  ;;  %v523_v33 = vmul.f32 %v480_v4, %v6161_v62  ;;  %v2688_v63 = vld [vmem:[%s6011_s1 + $0x1f] sm:$0x1] }
  0x78   :  { %v501_v5 = vadd.f32 %v500_v40, %v499_v41  ;;  %v513_v18 = vadd.f32 %v512_v59, %v511_v45  ;;  %v524_v7 = vmul.f32 %v486_v27, %v3645_v32  ;;  %v526_v48 = vmul.f32 %v492_v1, %v3836_v53 }
  0x79   :  { %v532_v8 = vmul.f32 %v3398_v54, %v3949_v39  ;;  %v535_v13 = vmul.f32 %v480_v4, %v6169_v12  ;;  %v536_v55 = vmul.f32 %v486_v27, %v3661_v61  ;;  %v538_v15 = vmul.f32 %v492_v1, %v3908_v14  ;;  %v6175_v61 = vld [vmem:[#allocation21_spill] sm:$0xff] }
  0x7a   :  { %v503_v62 = vadd.f32 %v502_v44, %v501_v5  ;;  %v515_v16 = vadd.f32 %v514_v47, %v513_v18  ;;  %v525_v22 = vadd.f32 %v524_v7, %v523_v33 }
  0x7b   :  { %v533_v32 = vadd.f32 %v532_v8, %v6174_v2  ;;  %v537_v30 = vadd.f32 %v536_v55, %v535_v13 }
  0x7c   :  { %v504_v53 = vadd.f32 %v503_v62, %v498_v9   ;;  %v516_v23 = vadd.f32 %v515_v16, %v510_v38   ;;  %v527_v34 = vadd.f32 %v526_v48, %v525_v22 }
  0x7d   :  { %v534_v54 = vadd.f32 %v2688_v63, %v533_v32  ;;  %v539_v39 = vadd.f32 %v538_v15, %v537_v30 }
  0x7e   :  { %v528_v12 = vadd.f32 %v527_v34, %v522_v58  }
  0x7f   :  { %v540_v17 = vadd.f32 %v539_v39, %v534_v54  }
  0x80 LB: > { %6176 = vst [vmem:[#allocation31_spill] sm:$0xff] %v3140_v17  ;;  %v4101_v14 = vld [vmem:[%s6004_s2] sm:$0x1]  ;;  %v4106_v49 = vld [vmem:[%s6004_s2 + $0x1] sm:$0x1]  ;;  %s4449_s30 = ssub.s32 4, %s3196_s15  ;;  %s3196_s15 = sphi %s4051_s15, %s546_s15   ;;  %v3192_v61 = vphi %v6175_v61, %v5477_v61   ;;  %v3188_v21 = vphi %v3883_v21, %v6335_v21   ;;  %v3184_v24 = vphi %v3913_v24, %v6334_v24   ;;  %v3180_v31 = vphi %v426_v31, %v6333_v31   ;;  %v3176_v50 = vphi %v3885_v50, %v6332_v50   ;;  %v3172_v36 = vphi %v3920_v36, %v5526_v36   ;;  %v3168_v11 = vphi %v450_v11, %v5534_v11   ;;  %v3164_v51 = vphi %v3934_v51, %v5544_v51   ;;  %v3160_v0 = vphi %v466_v0, %v5562_v0   ;;  %v3156_v42 = vphi %v474_v42, %v1623_v42   ;;  %v3152_v53 = vphi %v504_v53, %v1653_v53   ;;  %v3148_v23 = vphi %v516_v23, %v1665_v23   ;;  %v3144_v12 = vphi %v528_v12, %v1677_v12   ;;  %v3140_v17 = vphi %v540_v17, %v1689_v17  }
  0x81   : > { %6177 = vst [vmem:[#allocation32_spill] sm:$0xff] %v3144_v12  ;;  %v4111_v37 = vld [vmem:[%s6004_s2 + $0x4] sm:$0x1]  ;;  %v4116_v46 = vld [vmem:[%s6004_s2 + $0x8] sm:$0x1]  ;;  %v623_v4 = vmul.f32 %v3192_v61, %v4101_v14  ;;  %v630_v1 = vmul.f32 %v3192_v61, %v4106_v49  ;;  %v651_v55 = vmul.f32 %v3188_v21, %v4101_v14  ;;  %v658_v34 = vmul.f32 %v3188_v21, %v4106_v49  ;;  %s851_s9 = smul.u32 49, %s4449_s30 }
  0x82   : > { %6178 = vst [vmem:[#allocation33_spill] sm:$0xff] %v3148_v23  ;;  %v4121_v28 = vld [vmem:[%s6004_s2 + $0xc] sm:$0x1]  ;;  %v4126_v10 = vld [vmem:[%s6004_s2 + $0x5] sm:$0x1]  ;;  %v624_v60 = vmul.f32 %v3188_v21, %v4111_v37  ;;  %v626_v3 = vmul.f32 %v3184_v24, %v4116_v46  ;;  %v652_v15 = vmul.f32 %v3176_v50, %v4111_v37  ;;  %v654_v16 = vmul.f32 %v3172_v36, %v4116_v46  ;;  %s1159_s22 = smul.u32 7, %s4449_s30 }
  0x83   : > { %6179 = vst [vmem:[#allocation34_spill] sm:$0xff] %v3152_v53  ;;  %v4131_v25 = vld [vmem:[%s6004_s2 + $0x9] sm:$0x1]  ;;  %v4136_v29 = vld [vmem:[%s6004_s2 + $0xd] sm:$0x1]  ;;  %v628_v43 = vmul.f32 %v3180_v31, %v4121_v28  ;;  %v631_v20 = vmul.f32 %v3188_v21, %v4126_v10  ;;  %v656_v22 = vmul.f32 %v3168_v11, %v4121_v28  ;;  %v659_v39 = vmul.f32 %v3176_v50, %v4126_v10  ;;  %s4513_s12 = scalar_lea.vmem %s6003_s0, %s851_s9  ;;  %s546_s15 = sadd.s32 1, %s3196_s15  }
  0x84   : > { %6180 = vst [vmem:[#allocation35_spill] sm:$0xff] %v3156_v42  ;;  %v4149_v35 = vld [vmem:[%s6004_s2 + $0x2] sm:$0x1]  ;;  %v4154_v27 = vld [vmem:[%s6004_s2 + $0x6] sm:$0x1]  ;;  %v633_v6 = vmul.f32 %v3184_v24, %v4131_v25  ;;  %v635_v41 = vmul.f32 %v3180_v31, %v4136_v29  ;;  %v625_v57 = vadd.f32 %v624_v60, %v623_v4  ;;  %v653_v30 = vadd.f32 %v652_v15, %v651_v55  ;;  %s4851_s25 = scalar_lea.vmem %s6011_s1, %s1159_s22  ;;  %s1371_s22 = smul.u32 3, %s4449_s30 }
  0x85   : > { %6181 = vst [vmem:[#allocation36_spill] sm:$0xff] %v3164_v51  ;;  %v4159_v52 = vld [vmem:[%s6004_s2 + $0xa] sm:$0x1]  ;;  %v4172_v19 = vld [vmem:[%s6004_s2 + $0x3] sm:$0x1]  ;;  %v637_v56 = vmul.f32 %v3192_v61, %v4149_v35  ;;  %v638_v9 = vmul.f32 %v3188_v21, %v4154_v27  ;;  %v632_v38 = vadd.f32 %v631_v20, %v630_v1  ;;  %v661_v4 = vmul.f32 %v3172_v36, %v4131_v25  ;;  %p5610_p0 = scmp.ge.s32.totalorder %s546_s15, 5  }
  0x86   : > { %6182 = vst [vmem:[#allocation37_spill] sm:$0xff] %v3176_v50  ;;  %v4177_v26 = vld [vmem:[%s6004_s2 + $0x7] sm:$0x1]  ;;  %v4182_v45 = vld [vmem:[%s6004_s2 + $0xe] sm:$0x1]  ;;  %v640_v40 = vmul.f32 %v3184_v24, %v4159_v52  ;;  %v644_v58 = vmul.f32 %v3192_v61, %v4172_v19  ;;  %v627_v5 = vadd.f32 %v626_v3, %v625_v57  ;;  %v663_v60 = vmul.f32 %v3168_v11, %v4136_v29  ;;  %s5677_s15 = smov (%p5610_p0), 0  }
  0x87   : > { %6183 = vst [vmem:[#allocation38_spill] sm:$0xff] %v3188_v21  ;;  %v4193_v44 = vld [vmem:[%s6004_s2 + $0xb] sm:$0x1]  ;;  %v4198_v59 = vld [vmem:[%s6004_s2 + $0xf] sm:$0x1]  ;;  %v642_v47 = vmul.f32 %v3180_v31, %v4182_v45  ;;  %v645_v33 = vmul.f32 %v3188_v21, %v4177_v26  ;;  %v639_v18 = vadd.f32 %v638_v9, %v637_v56  ;;  %v634_v8 = vadd.f32 %v633_v6, %v632_v38 }
  0x88   : > { %6184 = vst [vmem:[#allocation39_spill] sm:$0xff] %v3192_v61  ;;  %v647_v7 = vmul.f32 %v3184_v24, %v4193_v44  ;;  %v649_v48 = vmul.f32 %v3180_v31, %v4198_v59  ;;  %v4214_v63 = vadd.f32 %v628_v43, %v627_v5  ;;  %v655_v43 = vadd.f32 %v654_v16, %v653_v30  ;;  %v4406_v53 = vld [vmem:[%s6005_s3 + $0x9] sm:$0x1] }
  0x89   : > { %6185 = vst [vmem:[#allocation40_spill] sm:$0xff] %v4111_v37  ;;  %v646_v13 = vadd.f32 %v645_v33, %v644_v58  ;;  %v641_v62 = vadd.f32 %v640_v40, %v639_v18  ;;  %v4220_v2 = vadd.f32 %v635_v41, %v634_v8  ;;  %v665_v1 = vmul.f32 %v3188_v21, %v4149_v35 }
  0x8a   : > { %6186 = vst [vmem:[#allocation41_spill] sm:$0xff] %v4116_v46  ;;  %v666_v20 = vmul.f32 %v3176_v50, %v4154_v27  ;;  %v660_v6 = vadd.f32 %v659_v39, %v658_v34  ;;  %v668_v41 = vmul.f32 %v3172_v36, %v4159_v52  ;;  %v670_v57 = vmul.f32 %v3168_v11, %v4182_v45 }
  0x8b   : > { %6187 = vst [vmem:[#allocation42_spill] sm:$0xff] %v4121_v28  ;;  %v648_v32 = vadd.f32 %v647_v7, %v646_v13  ;;  %v4224_v54 = vadd.f32 %v642_v47, %v641_v62  ;;  %v672_v56 = vmul.f32 %v3188_v21, %v4172_v19  ;;  %v4244_v9 = vadd.f32 %v656_v22, %v655_v43 }
  0x8c   : > { %6188 = vst [vmem:[#allocation43_spill] sm:$0xff] %v4131_v25  ;;  %v667_v40 = vadd.f32 %v666_v20, %v665_v1  ;;  %v673_v38 = vmul.f32 %v3176_v50, %v4177_v26  ;;  %v675_v47 = vmul.f32 %v3172_v36, %v4193_v44  ;;  %v662_v58 = vadd.f32 %v661_v4, %v660_v6 }
  0x8d   : > { %6189 = vst [vmem:[#allocation44_spill] sm:$0xff] %v4136_v29  ;;  %v4232_v3 = vadd.f32 %v649_v48, %v648_v32  ;;  %v677_v33 = vmul.f32 %v3168_v11, %v4198_v59  ;;  %v679_v5 = vmul.f32 %v3184_v24, %v4101_v14  ;;  %v680_v18 = vmul.f32 %v3172_v36, %v4111_v37 }
  0x8e   : > { %6190 = vst [vmem:[#allocation45_spill] sm:$0xff] %v4149_v35  ;;  %v669_v7 = vadd.f32 %v668_v41, %v667_v40  ;;  %v674_v48 = vadd.f32 %v673_v38, %v672_v56  ;;  %v682_v8 = vmul.f32 %v3164_v51, %v4116_v46  ;;  %v684_v13 = vmul.f32 %v3160_v0, %v4121_v28 }
  0x8f   : > { %6191 = vst [vmem:[#allocation46_spill] sm:$0xff] %v4154_v27  ;;  %v4260_v55 = vadd.f32 %v663_v60, %v662_v58  ;;  %v681_v15 = vadd.f32 %v680_v18, %v679_v5  ;;  %v686_v62 = vmul.f32 %v3184_v24, %v4106_v49  ;;  %v687_v16 = vmul.f32 %v3172_v36, %v4126_v10 }
  0x90   : > { %6192 = vst [vmem:[#allocation47_spill] sm:$0xff] %v4159_v52  ;;  %v4266_v22 = vadd.f32 %v670_v57, %v669_v7  ;;  %v676_v32 = vadd.f32 %v675_v47, %v674_v48  ;;  %v689_v30 = vmul.f32 %v3164_v51, %v4131_v25  ;;  %v691_v34 = vmul.f32 %v3160_v0, %v4136_v29 }
  0x91   : > { %6193 = vst [vmem:[#allocation48_spill] sm:$0xff] %v4172_v19  ;;  %v683_v39 = vadd.f32 %v682_v8, %v681_v15  ;;  %v688_v4 = vadd.f32 %v687_v16, %v686_v62  ;;  %v693_v60 = vmul.f32 %v3184_v24, %v4149_v35  ;;  %v694_v43 = vmul.f32 %v3172_v36, %v4154_v27 }
  0x92   : > { %6194 = vst [vmem:[#allocation49_spill] sm:$0xff] %v4177_v26  ;;  %v4276_v1 = vadd.f32 %v677_v33, %v676_v32  ;;  %v696_v20 = vmul.f32 %v3164_v51, %v4159_v52  ;;  %v698_v6 = vmul.f32 %v3160_v0, %v4182_v45  ;;  %v700_v41 = vmul.f32 %v3184_v24, %v4172_v19 }
  0x93   : > { %6195 = vst [vmem:[#allocation50_spill] sm:$0xff] %v4182_v45  ;;  %v4284_v57 = vadd.f32 %v684_v13, %v683_v39  ;;  %v690_v56 = vadd.f32 %v689_v30, %v688_v4  ;;  %v695_v40 = vadd.f32 %v694_v43, %v693_v60  ;;  %v701_v38 = vmul.f32 %v3172_v36, %v4177_v26 }
  0x94   : > { %6196 = vst [vmem:[#allocation51_spill] sm:$0xff] %v4193_v44  ;;  %v703_v47 = vmul.f32 %v3164_v51, %v4193_v44  ;;  %v705_v58 = vmul.f32 %v3160_v0, %v4198_v59  ;;  %v707_v33 = vmul.f32 %v3180_v31, %v4101_v14  ;;  %v708_v5 = vmul.f32 %v3168_v11, %v4111_v37 }
  0x95   : > { %6197 = vst [vmem:[#allocation52_spill] sm:$0xff] %v4198_v59  ;;  %v4296_v18 = vadd.f32 %v691_v34, %v690_v56  ;;  %v697_v7 = vadd.f32 %v696_v20, %v695_v40  ;;  %v702_v48 = vadd.f32 %v701_v38, %v700_v41  ;;  %v710_v8 = vmul.f32 %v3160_v0, %v4116_v46 }
  0x96   : > { %v709_v13 = vadd.f32 %v708_v5, %v707_v33  ;;  %v712_v15 = vmul.f32 %v3156_v42, %v4121_v28  ;;  %v714_v62 = vmul.f32 %v3180_v31, %v4106_v49  ;;  %v715_v16 = vmul.f32 %v3168_v11, %v4126_v10  ;;  %6207 = vst [vmem:[#allocation62_spill] sm:$0xff] %v4406_v53 }
  0x97   : > { %v4306_v32 = vadd.f32 %v698_v6, %v697_v7  ;;  %v704_v30 = vadd.f32 %v703_v47, %v702_v48  ;;  %v717_v34 = vmul.f32 %v3160_v0, %v4131_v25  ;;  %v719_v39 = vmul.f32 %v3156_v42, %v4136_v29 }
  0x98   : > { %v711_v4 = vadd.f32 %v710_v8, %v709_v13  ;;  %v716_v60 = vadd.f32 %v715_v16, %v714_v62  ;;  %v721_v43 = vmul.f32 %v3180_v31, %v4149_v35  ;;  %v722_v20 = vmul.f32 %v3168_v11, %v4154_v27 }
  0x99   : > { %v4316_v41 = vadd.f32 %v705_v58, %v704_v30  ;;  %v724_v6 = vmul.f32 %v3160_v0, %v4159_v52  ;;  %v726_v56 = vmul.f32 %v3156_v42, %v4182_v45  ;;  %v728_v40 = vmul.f32 %v3180_v31, %v4172_v19  ;;  %v4341_v30 = vld [vmem:[%s6005_s3] sm:$0x1] }
  0x9a   : > { %v4324_v38 = vadd.f32 %v712_v15, %v711_v4  ;;  %v718_v47 = vadd.f32 %v717_v34, %v716_v60  ;;  %v723_v33 = vadd.f32 %v722_v20, %v721_v43  ;;  %v729_v5 = vmul.f32 %v3168_v11, %v4177_v26  ;;  %6198 = vst [vmem:[#allocation53_spill] sm:$0xff] %v4341_v30  ;;  %v4346_v34 = vld [vmem:[%s6005_s3 + $0x1] sm:$0x1]  ;;  %v4356_v4 = vld [vmem:[%s6005_s3 + $0x4] sm:$0x1] }
  0x9b   : > { %v731_v58 = vmul.f32 %v3160_v0, %v4193_v44  ;;  %v733_v13 = vmul.f32 %v3156_v42, %v4198_v59  ;;  %6199 = vst [vmem:[#allocation54_spill] sm:$0xff] %v4346_v34  ;;  %v4361_v60 = vld [vmem:[%s6005_s3 + $0x2] sm:$0x1]  ;;  %v4366_v43 = vld [vmem:[%s6005_s3 + $0x5] sm:$0x1]  ;;  %v735_v20 = vmul.f32 %v3192_v61, %v4341_v30  ;;  %v740_v52 = vmul.f32 %v3180_v31, %v4406_v53 }
  0x9c   : > { %v4330_v7 = vadd.f32 %v719_v39, %v718_v47  ;;  %v725_v48 = vadd.f32 %v724_v6, %v723_v33  ;;  %v730_v8 = vadd.f32 %v729_v5, %v728_v40  ;;  %v4351_v39 = vld [vmem:[%s6005_s3 + $0x3] sm:$0x1]  ;;  %6201 = vst [vmem:[#allocation56_spill] sm:$0xff] %v4356_v4  ;;  %v743_v40 = vmul.f32 %v3188_v21, %v4356_v4  ;;  %v4379_v47 = vld [vmem:[%s6005_s3 + $0x6] sm:$0x1] }
  0x9d   : > { %6200 = vst [vmem:[#allocation55_spill] sm:$0xff] %v4351_v39  ;;  %v736_v6 = vmul.f32 %v3188_v21, %v4351_v39  ;;  %v4384_v33 = vld [vmem:[%s6005_s3 + $0x7] sm:$0x1]  ;;  %v749_v5 = vmul.f32 %v3192_v61, %v4361_v60  ;;  %v738_v17 = vmul.f32 %v3184_v24, %v4379_v47  ;;  %v771_v42 = vmul.f32 %v3176_v50, %v4366_v43 }
  0x9e   : > { %v4334_v62 = vadd.f32 %v726_v56, %v725_v48  ;;  %v732_v16 = vadd.f32 %v731_v58, %v730_v8  ;;  %6202 = vst [vmem:[#allocation57_spill] sm:$0xff] %v4361_v60  ;;  %v742_v56 = vmul.f32 %v3192_v61, %v4346_v34  ;;  %v750_v58 = vmul.f32 %v3188_v21, %v4366_v43  ;;  %v4411_v61 = vld [vmem:[%s6005_s3 + $0xa] sm:$0x1] }
  0x9f   : > { %6203 = vst [vmem:[#allocation58_spill] sm:$0xff] %v4366_v43  ;;  %v756_v48 = vmul.f32 %v3188_v21, %v4341_v30  ;;  %v757_v8 = vmul.f32 %v3176_v50, %v4351_v39  ;;  %v745_v23 = vmul.f32 %v3184_v24, %v4384_v33  ;;  %v759_v19 = vmul.f32 %v3172_v36, %v4379_v47 }
  0xa0   : > { %v4336_v15 = vadd.f32 %v733_v13, %v732_v16  ;;  %6204 = vst [vmem:[#allocation59_spill] sm:$0xff] %v4379_v47  ;;  %v4397_v13 = vld [vmem:[%s6005_s3 + $0x8] sm:$0x1]  ;;  %v737_v16 = vadd.f32 %v736_v6, %v735_v20  ;;  %v744_v12 = vadd.f32 %v743_v40, %v742_v56  ;;  %v4416_v20 = vld [vmem:[%s6005_s3 + $0xb] sm:$0x1]  ;;  %v763_v6 = vmul.f32 %v3188_v21, %v4346_v34 }
  0xa1   : > { %6205 = vst [vmem:[#allocation60_spill] sm:$0xff] %v4384_v33  ;;  %v764_v56 = vmul.f32 %v3176_v50, %v4356_v4  ;;  %v770_v40 = vmul.f32 %v3188_v21, %v4361_v60  ;;  %v751_v59 = vadd.f32 %v750_v58, %v749_v5  ;;  %v752_v44 = vmul.f32 %v3184_v24, %v4397_v13 }
  0xa2   : > { %6206 = vst [vmem:[#allocation61_spill] sm:$0xff] %v4397_v13  ;;  %v758_v26 = vadd.f32 %v757_v8, %v756_v48  ;;  %v739_v45 = vadd.f32 %v738_v17, %v737_v16  ;;  %v747_v27 = vmul.f32 %v3180_v31, %v4411_v61  ;;  %v754_v21 = vmul.f32 %v3180_v31, %v4416_v20 }
  0xa3   : > { %6208 = vst [vmem:[#allocation63_spill] sm:$0xff] %v4411_v61  ;;  %v765_v50 = vadd.f32 %v764_v56, %v763_v6  ;;  %v766_v5 = vmul.f32 %v3172_v36, %v4384_v33  ;;  %v772_v58 = vadd.f32 %v771_v42, %v770_v40  ;;  %v773_v48 = vmul.f32 %v3172_v36, %v4397_v13 }
  0xa4   : > { %6209 = vst [vmem:[#allocation64_spill] sm:$0xff] %v4416_v20  ;;  %v746_v8 = vadd.f32 %v745_v23, %v744_v12  ;;  %v753_v35 = vadd.f32 %v752_v44, %v751_v59  ;;  %v760_v17 = vadd.f32 %v759_v19, %v758_v26  ;;  %v761_v16 = vmul.f32 %v3168_v11, %v4406_v53 }
  0xa5   : > { %v777_v29 = vmul.f32 %v3184_v24, %v4341_v30  ;;  %v778_v25 = vmul.f32 %v3172_v36, %v4351_v39  ;;  %v4446_v6 = vadd.f32 %v740_v52, %v739_v45  ;;  %v767_v42 = vadd.f32 %v766_v5, %v765_v50 }
  0xa6   : > { %v768_v23 = vmul.f32 %v3168_v11, %v4411_v61  ;;  %v774_v12 = vadd.f32 %v773_v48, %v772_v58  ;;  %v775_v19 = vmul.f32 %v3168_v11, %v4416_v20  ;;  %v4455_v26 = vadd.f32 %v747_v27, %v746_v8 }
  0xa7   : > { %v4457_v44 = vadd.f32 %v754_v21, %v753_v35  ;;  %v4459_v59 = vadd.f32 %v761_v16, %v760_v17  ;;  %v780_v52 = vmul.f32 %v3164_v51, %v4379_v47  ;;  %v779_v45 = vadd.f32 %v778_v25, %v777_v29 }
  0xa8   : > { %6210 = vst [vmem:[#allocation65_spill] sm:$0xff] %v4455_v26  ;;  %v4465_v50 = vmul.f32 %v3160_v0, %v4406_v53  ;;  %v784_v56 = vmul.f32 %v3184_v24, %v4346_v34  ;;  %v785_v40 = vmul.f32 %v3172_v36, %v4356_v4  ;;  %v791_v21 = vmul.f32 %v3184_v24, %v4361_v60 }
  0xa9   : > { %6211 = vst [vmem:[#allocation66_spill] sm:$0xff] %v4457_v44  ;;  %v792_v35 = vmul.f32 %v3172_v36, %v4366_v43  ;;  %v854_v25 = vmul.f32 %v4214_v63, %v4101_v14  ;;  %v855_v29 = vmul.f32 %v4111_v37, %v4244_v9  ;;  %v4480_v27 = vadd.f32 %v768_v23, %v767_v42 }
  0xaa   : > { %v4482_v5 = vadd.f32 %v775_v19, %v774_v12  ;;  %v4486_v58 = vmul.f32 %v3164_v51, %v4384_v33  ;;  %v4490_v48 = vmul.f32 %v3160_v0, %v4411_v61  ;;  %v857_v17 = vmul.f32 %v4116_v46, %v4284_v57 }
  0xab   : > { %6212 = vst [vmem:[#allocation67_spill] sm:$0xff] %v4480_v27  ;;  %v856_v8 = vadd.f32 %v855_v29, %v854_v25  ;;  %v859_v63 = vmul.f32 %v4121_v28, %v4324_v38  ;;  %v865_v9 = vmul.f32 %v4220_v2, %v4101_v14  ;;  %v4498_v16 = vadd.f32 %v780_v52, %v779_v45  ;;  %v2722_v27 = vld [vmem:[%s4513_s12 + $0x2] sm:$0x1] }
  0xac   : > { %6213 = vst [vmem:[#allocation68_spill] sm:$0xff] %v4482_v5  ;;  %v4500_v42 = vadd.f32 %v785_v40, %v784_v56  ;;  %v4504_v23 = vmul.f32 %v3164_v51, %v4397_v13  ;;  %v866_v12 = vmul.f32 %v4111_v37, %v4260_v55  ;;  %v4508_v19 = vadd.f32 %v792_v35, %v791_v21  ;;  %v853_v56 = vld [vmem:[%s4513_s12] sm:$0x1] }
  0xad   : > { %v858_v57 = vadd.f32 %v857_v17, %v856_v8  ;;  %v868_v38 = vmul.f32 %v4116_v46, %v4296_v18  ;;  %v876_v52 = vmul.f32 %v4224_v54, %v4101_v14  ;;  %v4521_v45 = vmul.f32 %v3180_v31, %v4341_v30 }
  0xae   : > { %v867_v40 = vadd.f32 %v866_v12, %v865_v9  ;;  %v870_v21 = vmul.f32 %v4121_v28, %v4330_v7  ;;  %v877_v35 = vmul.f32 %v4111_v37, %v4266_v22  ;;  %v4530_v25 = vmul.f32 %v3168_v11, %v4351_v39  ;;  %v2721_v39 = vld [vmem:[%s4513_s12 + $0x1] sm:$0x1] }
  0xaf   : > { %v860_v29 = vadd.f32 %v859_v63, %v858_v57  ;;  %v879_v8 = vmul.f32 %v4116_v46, %v4306_v32  ;;  %v887_v17 = vmul.f32 %v4232_v3, %v4101_v14  ;;  %v881_v12 = vmul.f32 %v4121_v28, %v4334_v62 }
  0xb0   : > { %v869_v30 = vadd.f32 %v868_v38, %v867_v40  ;;  %v878_v9 = vadd.f32 %v877_v35, %v876_v52  ;;  %v888_v5 = vmul.f32 %v4111_v37, %v4276_v1  ;;  %v890_v63 = vmul.f32 %v4116_v46, %v4316_v41 }
  0xb1   : > { %v4540_v44 = vadd.f32 %v860_v29, %v853_v56  ;;  %v892_v57 = vmul.f32 %v4121_v28, %v4336_v15  ;;  %v898_v38 = vmul.f32 %v4106_v49, %v4220_v2  ;;  %v899_v51 = vmul.f32 %v4126_v10, %v4260_v55  ;;  %v6215_v56 = vld [vmem:[#allocation43_spill] sm:$0xff] }
  0xb2   : > { %v871_v52 = vadd.f32 %v870_v21, %v869_v30  ;;  %v880_v40 = vadd.f32 %v879_v8, %v878_v9  ;;  %v889_v35 = vadd.f32 %v888_v5, %v887_v17  ;;  %v901_v29 = vmul.f32 %v6215_v56, %v4296_v18  ;;  %v2723_v55 = vld [vmem:[%s4513_s12 + $0x3] sm:$0x1] }
  0xb3   : > { %6214 = vst [vmem:[#allocation69_spill] sm:$0xff] %v4540_v44  ;;  %v6216_v44 = vld [vmem:[#allocation44_spill] sm:$0xff]  ;;  %v909_v28 = vmul.f32 %v4106_v49, %v4224_v54  ;;  %v910_v2 = vmul.f32 %v4126_v10, %v4266_v22  ;;  %v900_v8 = vadd.f32 %v899_v51, %v898_v38  ;;  %v912_v18 = vmul.f32 %v6215_v56, %v4306_v32  ;;  %v2724_v51 = vld [vmem:[%s4513_s12 + $0x8] sm:$0x1] }
  0xb4   : > { %v903_v46 = vmul.f32 %v6216_v44, %v4330_v7  ;;  %v4560_v30 = vadd.f32 %v2721_v39, %v871_v52  ;;  %v882_v5 = vadd.f32 %v881_v12, %v880_v40  ;;  %v891_v21 = vadd.f32 %v890_v63, %v889_v35  ;;  %v6219_v52 = vld [vmem:[#allocation45_spill] sm:$0xff] }
  0xb5   : > { %v911_v17 = vadd.f32 %v910_v2, %v909_v28  ;;  %v914_v7 = vmul.f32 %v6216_v44, %v4334_v62  ;;  %v920_v9 = vmul.f32 %v4106_v49, %v4232_v3  ;;  %v902_v39 = vadd.f32 %v901_v29, %v900_v8  ;;  %v6221_v2 = vld [vmem:[#allocation46_spill] sm:$0xff]  ;;  %v6222_v8 = vld [vmem:[#allocation47_spill] sm:$0xff] }
  0xb6   : > { %6217 = vst [vmem:[#allocation43_spill] sm:$0xff] %v4560_v30  ;;  %v4569_v26 = vadd.f32 %v2722_v27, %v882_v5  ;;  %v893_v37 = vadd.f32 %v892_v57, %v891_v21  ;;  %v921_v12 = vmul.f32 %v4126_v10, %v4276_v1  ;;  %v923_v28 = vmul.f32 %v6215_v56, %v4316_v41  ;;  %v2725_v57 = vld [vmem:[%s4513_s12 + $0x9] sm:$0x1] }
  0xb7   : > { %v913_v63 = vadd.f32 %v912_v18, %v911_v17  ;;  %v925_v38 = vmul.f32 %v6216_v44, %v4336_v15  ;;  %v931_v40 = vmul.f32 %v6219_v52, %v4224_v54  ;;  %v904_v27 = vadd.f32 %v903_v46, %v902_v39  ;;  %v6223_v18 = vld [vmem:[#allocation50_spill] sm:$0xff] }
  0xb8   : > { %6218 = vst [vmem:[#allocation44_spill] sm:$0xff] %v4569_v26  ;;  %v4580_v35 = vadd.f32 %v2723_v55, %v893_v37  ;;  %v922_v29 = vadd.f32 %v921_v12, %v920_v9  ;;  %v932_v5 = vmul.f32 %v6221_v2, %v4266_v22  ;;  %v934_v17 = vmul.f32 %v6222_v8, %v4306_v32  ;;  %v2726_v22 = vld [vmem:[%s4513_s12 + $0xa] sm:$0x1] }
  0xb9   : > { %v915_v21 = vadd.f32 %v914_v7, %v913_v63  ;;  %v936_v26 = vmul.f32 %v6223_v18, %v4334_v62  ;;  %v942_v30 = vmul.f32 %v6219_v52, %v4232_v3  ;;  %v4591_v54 = vadd.f32 %v2724_v51, %v904_v27  ;;  %v6226_v7 = vld [vmem:[#allocation48_spill] sm:$0xff] }
  0xba   : > { %6220 = vst [vmem:[#allocation45_spill] sm:$0xff] %v4580_v35  ;;  %v924_v37 = vadd.f32 %v923_v28, %v922_v29  ;;  %v933_v46 = vadd.f32 %v932_v5, %v931_v40  ;;  %v943_v55 = vmul.f32 %v6221_v2, %v4276_v1  ;;  %v945_v32 = vmul.f32 %v6222_v8, %v4316_v41  ;;  %v6227_v28 = vld [vmem:[#allocation49_spill] sm:$0xff]  ;;  %v2727_v29 = vld [vmem:[%s4513_s12 + $0x10] sm:$0x1]  ;;  %v6228_v5 = vld [vmem:[#allocation51_spill] sm:$0xff] }
  0xbb   : > { %6224 = vst [vmem:[#allocation70_spill] sm:$0xff] %v4591_v54  ;;  %v4595_v9 = vadd.f32 %v2725_v57, %v915_v21  ;;  %v947_v62 = vmul.f32 %v6223_v18, %v4336_v15  ;;  %v953_v39 = vmul.f32 %v6226_v7, %v4232_v3  ;;  %v954_v40 = vmul.f32 %v6227_v28, %v4276_v1  ;;  %v6240_v35 = vld [vmem:[#allocation67_spill] sm:$0xff]  ;;  %v6241_v28 = vld [vmem:[#allocation36_spill] sm:$0xff]  ;;  %v6242_v18 = vld [vmem:[#allocation41_spill] sm:$0xff] }
  0xbc   : > { %v926_v12 = vadd.f32 %v925_v38, %v924_v37  ;;  %v935_v51 = vadd.f32 %v934_v17, %v933_v46  ;;  %v944_v63 = vadd.f32 %v943_v55, %v942_v30  ;;  %v788_v27 = vadd.f32 %v4486_v58, %v4500_v42  ;;  %v2728_v46 = vld [vmem:[%s4513_s12 + $0x11] sm:$0x1] }
  0xbd   : > { %6225 = vst [vmem:[#allocation71_spill] sm:$0xff] %v4595_v9  ;;  %v796_v57 = vmul.f32 %v3160_v0, %v4416_v20  ;;  %v956_v21 = vmul.f32 %v6228_v5, %v4316_v41  ;;  %v6229_v9 = vld [vmem:[#allocation52_spill] sm:$0xff]  ;;  %v955_v37 = vadd.f32 %v954_v40, %v953_v39  ;;  %v795_v1 = vadd.f32 %v4504_v23, %v4508_v19 }
  0xbe   : > { %v958_v3 = vmul.f32 %v6229_v9, %v4336_v15  ;;  %v4615_v38 = vadd.f32 %v2726_v22, %v926_v12  ;;  %v937_v17 = vadd.f32 %v936_v26, %v935_v51  ;;  %v946_v30 = vadd.f32 %v945_v32, %v944_v63  ;;  %v616_v15 = vld [vmem:[%s6006_s4] sm:$0x1]  ;;  %v2718_v26 = vld [vmem:[%s6006_s4 + $0x1] sm:$0x1]  ;;  %v6232_v32 = vld [vmem:[#allocation35_spill] sm:$0xff] }
  0xbf   : > { %v800_v58 = vadd.f32 %v4530_v25, %v4521_v45  ;;  %v801_v42 = vmul.f32 %v3160_v0, %v4379_v47  ;;  %v805_v41 = vmul.f32 %v3180_v31, %v4346_v34  ;;  %v806_v23 = vmul.f32 %v3168_v11, %v4356_v4  ;;  %v2729_v51 = vld [vmem:[%s4513_s12 + $0x18] sm:$0x1]  ;;  %v6244_v2 = vld [vmem:[#allocation68_spill] sm:$0xff] }
  0xc0   : > { %6230 = vst [vmem:[#allocation72_spill] sm:$0xff] %v4615_v38  ;;  %v4634_v19 = vadd.f32 %v2727_v29, %v937_v17  ;;  %v948_v45 = vadd.f32 %v947_v62, %v946_v30  ;;  %v957_v25 = vadd.f32 %v956_v21, %v955_v37  ;;  %v4638_v55 = vadd.f32 %v4465_v50, %v4498_v16  ;;  %v6235_v21 = vld [vmem:[#allocation38_spill] sm:$0xff]  ;;  %v6239_v38 = vld [vmem:[#allocation65_spill] sm:$0xff] }
  0xc1   : > { %v4641_v22 = vadd.f32 %v4490_v48, %v788_v27  ;;  %v803_v39 = vmul.f32 %v6232_v32, %v4406_v53  ;;  %v808_v12 = vmul.f32 %v3160_v0, %v4384_v33  ;;  %v810_v63 = vmul.f32 %v6232_v32, %v4411_v61  ;;  %v6234_v27 = vld [vmem:[#allocation39_spill] sm:$0xff]  ;;  %v2719_v30 = vld [vmem:[%s6006_s4 + $0x2] sm:$0x1] }
  0xc2   : > { %6231 = vst [vmem:[#allocation73_spill] sm:$0xff] %v4634_v19  ;;  %v812_v62 = vmul.f32 %v3180_v31, %v4361_v60  ;;  %v4652_v40 = vadd.f32 %v2728_v46, %v948_v45  ;;  %v959_v50 = vadd.f32 %v958_v3, %v957_v25  ;;  %v4654_v16 = vadd.f32 %v796_v57, %v795_v1  ;;  %v6237_v3 = vld [vmem:[#allocation37_spill] sm:$0xff] }
  0xc3   : > { %v802_v48 = vadd.f32 %v801_v42, %v800_v58  ;;  %v819_v29 = vmul.f32 %v6234_v27, %v616_v15  ;;  %v820_v17 = vmul.f32 %v6235_v21, %v2718_v26  ;;  %v807_v37 = vadd.f32 %v806_v23, %v805_v41  ;;  %v6238_v27 = vld [vmem:[#allocation40_spill] sm:$0xff] }
  0xc4   : > { %6233 = vst [vmem:[#allocation35_spill] sm:$0xff] %v4652_v40  ;;  %v813_v19 = vmul.f32 %v3168_v11, %v4366_v43  ;;  %v815_v46 = vmul.f32 %v3160_v0, %v4397_v13  ;;  %v4665_v45 = vadd.f32 %v2729_v51, %v959_v50  ;;  %v827_v57 = vmul.f32 %v6235_v21, %v616_v15 }
  0xc5   : > { %v828_v1 = vmul.f32 %v6237_v3, %v2718_v26  ;;  %v835_v58 = vmul.f32 %v3184_v24, %v616_v15  ;;  %v836_v42 = vmul.f32 %v3172_v36, %v2718_v26  ;;  %v843_v25 = vmul.f32 %v3180_v31, %v616_v15  ;;  %v2720_v15 = vld [vmem:[%s6006_s4 + $0x3] sm:$0x1] }
  0xc6   : > { %6236 = vst [vmem:[#allocation39_spill] sm:$0xff] %v4665_v45  ;;  %v844_v41 = vmul.f32 %v3168_v11, %v2718_v26  ;;  %v964_v23 = vmul.f32 %v4446_v6, %v4101_v14  ;;  %v965_v40 = vmul.f32 %v6238_v27, %v4459_v59  ;;  %v4677_v51 = vadd.f32 %v803_v39, %v802_v48 }
  0xc7   : > { %v817_v50 = vmul.f32 %v6232_v32, %v4416_v20  ;;  %v821_v21 = vadd.f32 %v820_v17, %v819_v29  ;;  %v822_v3 = vmul.f32 %v3184_v24, %v2719_v30  ;;  %v809_v45 = vadd.f32 %v808_v12, %v807_v37  ;;  %v6243_v37 = vld [vmem:[#allocation66_spill] sm:$0xff] }
  0xc8   : > { %v814_v26 = vadd.f32 %v813_v19, %v812_v62  ;;  %v975_v54 = vmul.f32 %v6239_v38, %v4101_v14  ;;  %v976_v9 = vmul.f32 %v6238_v27, %v6240_v35  ;;  %v829_v39 = vadd.f32 %v828_v1, %v827_v57 }
  0xc9   : > { %v830_v48 = vmul.f32 %v3172_v36, %v2719_v30  ;;  %v837_v5 = vadd.f32 %v836_v42, %v835_v58  ;;  %v838_v29 = vmul.f32 %v6241_v28, %v2719_v30  ;;  %v845_v17 = vadd.f32 %v844_v41, %v843_v25 }
  0xca   : > { %v846_v24 = vmul.f32 %v3160_v0, %v2719_v30  ;;  %v966_v7 = vadd.f32 %v965_v40, %v964_v23  ;;  %v967_v12 = vmul.f32 %v6242_v18, %v4638_v55  ;;  %v823_v19 = vadd.f32 %v822_v3, %v821_v21  ;;  %v6245_v21 = vld [vmem:[#allocation42_spill] sm:$0xff] }
  0xcb   : > { %v824_v62 = vmul.f32 %v3180_v31, %v2720_v15  ;;  %v986_v8 = vmul.f32 %v6243_v37, %v4101_v14  ;;  %v987_v57 = vmul.f32 %v6238_v27, %v6244_v2  ;;  %v4699_v36 = vadd.f32 %v810_v63, %v809_v45 }
  0xcc   : > { %v816_v1 = vadd.f32 %v815_v46, %v814_v26  ;;  %v977_v28 = vadd.f32 %v976_v9, %v975_v54  ;;  %v978_v30 = vmul.f32 %v6242_v18, %v4641_v22  ;;  %v831_v40 = vadd.f32 %v830_v48, %v829_v39  ;;  %v2730_v26 = vld [vmem:[%s4513_s12 + $0x4] sm:$0x1] }
  0xcd   : > { %v832_v58 = vmul.f32 %v3168_v11, %v2720_v15  ;;  %v840_v42 = vmul.f32 %v3160_v0, %v2720_v15  ;;  %v848_v31 = vmul.f32 %v6232_v32, %v2720_v15  ;;  %v839_v25 = vadd.f32 %v838_v29, %v837_v5  ;;  %v6247_v29 = vld [vmem:[#allocation34_spill] sm:$0xff] }
  0xce   : > { %v847_v41 = vadd.f32 %v846_v24, %v845_v17  ;;  %v968_v23 = vadd.f32 %v967_v12, %v966_v7  ;;  %v969_v63 = vmul.f32 %v6245_v21, %v4677_v51  ;;  %v825_v45 = vadd.f32 %v824_v62, %v823_v19 }
  0xcf   : > { %v988_v46 = vadd.f32 %v987_v57, %v986_v8  ;;  %v989_v54 = vmul.f32 %v6242_v18, %v4654_v16  ;;  %v979_v9 = vadd.f32 %v978_v30, %v977_v28  ;;  %v980_v11 = vmul.f32 %v6245_v21, %v4699_v36  ;;  %v6249_v30 = vld [vmem:[#allocation33_spill] sm:$0xff] }
  0xd0   : > { %v997_v0 = vmul.f32 %v4106_v49, %v4446_v6  ;;  %v998_v5 = vmul.f32 %v4126_v10, %v4459_v59  ;;  %v4716_v7 = vadd.f32 %v817_v50, %v816_v1  ;;  %v833_v32 = vadd.f32 %v832_v58, %v831_v40  ;;  %v2731_v50 = vld [vmem:[%s4513_s12 + $0x5] sm:$0x1]  ;;  %v6250_v58 = vld [vmem:[#allocation32_spill] sm:$0xff] }
  0xd1   : > { %v841_v3 = vadd.f32 %v840_v42, %v839_v25  ;;  %v849_v15 = vadd.f32 %v848_v31, %v847_v41  ;;  %v970_v8 = vadd.f32 %v969_v63, %v968_v23  ;;  %v990_v39 = vadd.f32 %v989_v54, %v988_v46  ;;  %v6251_v31 = vld [vmem:[#allocation31_spill] sm:$0xff] }
  0xd2   : > { %6246 = vst [vmem:[#allocation38_spill] sm:$0xff] %v4716_v7  ;;  %v991_v48 = vmul.f32 %v6245_v21, %v4716_v7  ;;  %v4722_v17 = vadd.f32 %v6247_v29, %v825_v45  ;;  %v981_v24 = vadd.f32 %v980_v11, %v979_v9  ;;  %v999_v12 = vadd.f32 %v998_v5, %v997_v0  ;;  %v2732_v9 = vld [vmem:[%s4513_s12 + $0x6] sm:$0x1]  ;;  %v6254_v0 = vld [vmem:[#allocation53_spill] sm:$0xff] }
  0xd3   : > { %v1000_v19 = vmul.f32 %v6215_v56, %v4638_v55  ;;  %v1008_v62 = vmul.f32 %v4106_v49, %v6239_v38  ;;  %v1009_v57 = vmul.f32 %v4126_v10, %v6240_v35  ;;  %v1019_v1 = vmul.f32 %v4106_v49, %v6243_v37 }
  0xd4   : > { %6248 = vst [vmem:[#allocation37_spill] sm:$0xff] %v4722_v17  ;;  %v1020_v28 = vmul.f32 %v4126_v10, %v6244_v2  ;;  %v4736_v40 = vadd.f32 %v6249_v30, %v833_v32  ;;  %v4739_v42 = vadd.f32 %v6250_v58, %v841_v3  ;;  %v4742_v25 = vadd.f32 %v6251_v31, %v849_v15  ;;  %v6255_v32 = vld [vmem:[#allocation55_spill] sm:$0xff] }
  0xd5   : > { %v4744_v41 = vadd.f32 %v2730_v26, %v970_v8  ;;  %v992_v23 = vadd.f32 %v991_v48, %v990_v39  ;;  %v4748_v63 = vmul.f32 %v6216_v44, %v4677_v51  ;;  %v4752_v45 = vmul.f32 %v6215_v56, %v4641_v22 }
  0xd6   : > { %v4756_v46 = vmul.f32 %v6216_v44, %v4699_v36  ;;  %v4758_v54 = vadd.f32 %v2731_v50, %v981_v24  ;;  %v4761_v11 = vadd.f32 %v1000_v19, %v999_v12  ;;  %v1096_v5 = vmul.f32 %v4446_v6, %v6254_v0 }
  0xd7   : > { %6252 = vst [vmem:[#allocation40_spill] sm:$0xff] %v4744_v41  ;;  %v1097_v3 = vmul.f32 %v6255_v32, %v4459_v59  ;;  %v4767_v15 = vadd.f32 %v1009_v57, %v1008_v62  ;;  %v4769_v8 = vadd.f32 %v1020_v28, %v1019_v1  ;;  %v1107_v26 = vmul.f32 %v6239_v38, %v6254_v0 }
  0xd8   : > { %6253 = vst [vmem:[#allocation65_spill] sm:$0xff] %v4758_v54  ;;  %v1108_v39 = vmul.f32 %v6255_v32, %v6240_v35  ;;  %v4777_v48 = vmul.f32 %v6215_v56, %v4654_v16  ;;  %v4781_v29 = vmul.f32 %v6216_v44, %v4716_v7  ;;  %v1118_v24 = vmul.f32 %v6243_v37, %v6254_v0  ;;  %v2749_v0 = vld [vmem:[%s4851_s25 + $0x2] sm:$0x1] }
  0xd9   : > { %v1119_v12 = vmul.f32 %v6255_v32, %v6244_v2  ;;  %v4787_v19 = vadd.f32 %v2732_v9, %v992_v23  ;;  %v4791_v50 = vmul.f32 %v6219_v52, %v4446_v6  ;;  %v1129_v62 = vmul.f32 %v4346_v34, %v6239_v38 }
  0xda   : > { %v1130_v57 = vmul.f32 %v4356_v4, %v6240_v35  ;;  %v1098_v1 = vadd.f32 %v1097_v3, %v1096_v5  ;;  %v1099_v28 = vmul.f32 %v4379_v47, %v4638_v55  ;;  %v1101_v30 = vmul.f32 %v4406_v53, %v4677_v51 }
  0xdb   : > { %6256 = vst [vmem:[#allocation67_spill] sm:$0xff] %v4787_v19  ;;  %v1110_v58 = vmul.f32 %v4379_v47, %v4641_v22  ;;  %v1109_v31 = vadd.f32 %v1108_v39, %v1107_v26  ;;  %v1132_v9 = vmul.f32 %v4384_v33, %v4641_v22  ;;  %v1140_v19 = vmul.f32 %v4346_v34, %v6243_v37 }
  0xdc   : > { %v1131_v23 = vadd.f32 %v1130_v57, %v1129_v62  ;;  %v1112_v5 = vmul.f32 %v4406_v53, %v4699_v36  ;;  %v1120_v3 = vadd.f32 %v1119_v12, %v1118_v24  ;;  %v1121_v54 = vmul.f32 %v4379_v47, %v4654_v16 }
  0xdd   : > { %v1141_v41 = vmul.f32 %v4356_v4, %v6244_v2  ;;  %v1134_v26 = vmul.f32 %v4411_v61, %v4699_v36  ;;  %v1143_v39 = vmul.f32 %v4384_v33, %v4654_v16  ;;  %v1151_v62 = vmul.f32 %v4361_v60, %v6243_v37 }
  0xde   : > { %v1133_v32 = vadd.f32 %v1132_v9, %v1131_v23  ;;  %v1100_v57 = vadd.f32 %v1099_v28, %v1098_v1  ;;  %v1123_v24 = vmul.f32 %v4406_v53, %v4716_v7  ;;  %v1152_v47 = vmul.f32 %v4366_v43, %v6244_v2  ;;  %v2743_v43 = vld [vmem:[%s4513_s12 + $0x21] sm:$0x1] }
  0xdf   : > { %v1142_v12 = vadd.f32 %v1141_v41, %v1140_v19  ;;  %v1111_v4 = vadd.f32 %v1110_v58, %v1109_v31  ;;  %v1145_v23 = vmul.f32 %v4411_v61, %v4716_v7  ;;  %v1154_v9 = vmul.f32 %v4397_v13, %v4654_v16  ;;  %v6262_v13 = vld [vmem:[#allocation51_spill] sm:$0xff] }
  0xe0   : > { %v1162_v33 = vmul.f32 %v4722_v17, %v4101_v14  ;;  %v1153_v60 = vadd.f32 %v1152_v47, %v1151_v62  ;;  %v1156_v1 = vmul.f32 %v4416_v20, %v4716_v7  ;;  %v1163_v41 = vmul.f32 %v6238_v27, %v4736_v40  ;;  %v6260_v62 = vld [vmem:[#allocation48_spill] sm:$0xff] }
  0xe1   : > { %v1144_v34 = vadd.f32 %v1143_v39, %v1142_v12  ;;  %v1122_v19 = vadd.f32 %v1121_v54, %v1120_v3  ;;  %v1135_v28 = vadd.f32 %v1134_v26, %v1133_v32  ;;  %v1165_v58 = vmul.f32 %v6242_v18, %v4739_v42  ;;  %v6258_v32 = vld [vmem:[#allocation47_spill] sm:$0xff] }
  0xe2   : > { %v1173_v31 = vmul.f32 %v4106_v49, %v4722_v17  ;;  %v1155_v61 = vadd.f32 %v1154_v9, %v1153_v60  ;;  %v1164_v53 = vadd.f32 %v1163_v41, %v1162_v33  ;;  %v1167_v14 = vmul.f32 %v6245_v21, %v4742_v25  ;;  %v6257_v49 = vld [vmem:[#allocation46_spill] sm:$0xff]  ;;  %v2746_v9 = vld [vmem:[%s4513_s12 + $0x29] sm:$0x1] }
  0xe3   : > { %v1174_v47 = vmul.f32 %v4126_v10, %v4736_v40  ;;  %v1146_v39 = vadd.f32 %v1145_v23, %v1144_v34  ;;  %v1176_v27 = vmul.f32 %v6215_v56, %v4739_v42  ;;  %v1184_v18 = vmul.f32 %v6219_v52, %v4722_v17  ;;  %v1161_v21 = vld [vmem:[%s4851_s25] sm:$0x1] }
  0xe4   : > { %v1185_v60 = vmul.f32 %v6257_v49, %v4736_v40  ;;  %v1157_v33 = vadd.f32 %v1156_v1, %v1155_v61  ;;  %v1166_v10 = vadd.f32 %v1165_v58, %v1164_v53  ;;  %v1178_v56 = vmul.f32 %v6216_v44, %v4742_v25  ;;  %v6259_v61 = vld [vmem:[#allocation50_spill] sm:$0xff]  ;;  %v2745_v53 = vld [vmem:[%s4513_s12 + $0x28] sm:$0x1]  ;;  %v2747_v1 = vld [vmem:[%s4513_s12 + $0x30] sm:$0x1] }
  0xe5   : > { %v1175_v34 = vadd.f32 %v1174_v47, %v1173_v31  ;;  %v1187_v3 = vmul.f32 %v6258_v32, %v4739_v42  ;;  %v1189_v26 = vmul.f32 %v6259_v61, %v4742_v25  ;;  %v1195_v12 = vmul.f32 %v6260_v62, %v4722_v17  ;;  %v6261_v58 = vld [vmem:[#allocation49_spill] sm:$0xff] }
  0xe6   : > { %v1186_v54 = vadd.f32 %v1185_v60, %v1184_v18  ;;  %v1102_v23 = vadd.f32 %v1101_v30, %v1100_v57  ;;  %v1168_v41 = vadd.f32 %v1167_v14, %v1166_v10  ;;  %v1196_v31 = vmul.f32 %v6261_v58, %v4736_v40  ;;  %v2748_v60 = vld [vmem:[%s4851_s25 + $0x1] sm:$0x1]  ;;  %v2744_v30 = vld [vmem:[%s4513_s12 + $0x22] sm:$0x1] }
  0xe7   : > { %v1177_v44 = vadd.f32 %v1176_v27, %v1175_v34  ;;  %v1113_v47 = vadd.f32 %v1112_v5, %v1111_v4  ;;  %v1124_v18 = vadd.f32 %v1123_v24, %v1122_v19  ;;  %v1198_v7 = vmul.f32 %v6262_v13, %v4739_v42  ;;  %v6264_v27 = vld [vmem:[#allocation52_spill] sm:$0xff] }
  0xe8   : > { %v1188_v20 = vadd.f32 %v1187_v3, %v1186_v54  ;;  %v4872_v57 = vadd.f32 %v1168_v41, %v1161_v21  ;;  %v1197_v14 = vadd.f32 %v1196_v31, %v1195_v12  ;;  %v1200_v10 = vmul.f32 %v6264_v27, %v4742_v25  ;;  %v2733_v3 = vld [vmem:[%s4513_s12 + $0xb] sm:$0x1] }
  0xe9   : > { %v1179_v17 = vadd.f32 %v1178_v56, %v1177_v44  ;;  %v4877_v4 = vadd.f32 %v2745_v53, %v1135_v28  ;;  %v4879_v5 = vadd.f32 %v2746_v9, %v1146_v39  ;;  %v4881_v24 = vadd.f32 %v2747_v1, %v1157_v33  ;;  %v2742_v56 = vld [vmem:[%s4513_s12 + $0x20] sm:$0x1] }
  0xea   : > { %6263 = vst [vmem:[#allocation36_spill] sm:$0xff] %v4872_v57  ;;  %v1190_v19 = vadd.f32 %v1189_v26, %v1188_v20  ;;  %v1003_v13 = vadd.f32 %v4748_v63, %v4761_v11  ;;  %v1031_v34 = vmul.f32 %v6257_v49, %v4459_v59  ;;  %v1199_v54 = vadd.f32 %v1198_v7, %v1197_v14  ;;  %v2750_v20 = vld [vmem:[%s4851_s25 + $0x3] sm:$0x1] }
  0xeb   : > { %6265 = vst [vmem:[#allocation41_spill] sm:$0xff] %v4877_v4  ;;  %v4888_v21 = vadd.f32 %v2748_v60, %v1179_v17  ;;  %v1012_v28 = vadd.f32 %v4752_v45, %v4767_v15  ;;  %v4893_v12 = vadd.f32 %v2743_v43, %v1113_v47  ;;  %v4895_v39 = vadd.f32 %v2744_v30, %v1124_v18 }
  0xec   : > { %6266 = vst [vmem:[#allocation66_spill] sm:$0xff] %v4881_v24  ;;  %v4897_v33 = vadd.f32 %v2749_v0, %v1190_v19  ;;  %v1023_v63 = vadd.f32 %v4777_v48, %v4769_v8  ;;  %v1033_v11 = vmul.f32 %v6258_v32, %v4638_v55  ;;  %v4906_v7 = vmul.f32 %v6259_v61, %v4677_v51 }
  0xed   : > { %6267 = vst [vmem:[#allocation68_spill] sm:$0xff] %v4888_v21  ;;  %v1201_v17 = vadd.f32 %v1200_v10, %v1199_v54  ;;  %v1041_v43 = vmul.f32 %v6219_v52, %v6239_v38  ;;  %v4910_v45 = vadd.f32 %v2742_v56, %v1102_v23  ;;  %v1236_v0 = vmul.f32 %v4881_v24, %v4877_v4  ;;  %v3049_v56 = vld [vmem:[%s6004_s2 + $0x3] sm:$0x1]  ;;  %v6271_v54 = vld [vmem:[#allocation53_spill] sm:$0xff] }
  0xee   : > { %6268 = vst [vmem:[#allocation42_spill] sm:$0xff] %v4897_v33  ;;  %v1237_v15 = vmul.f32 %v4879_v5, %v4879_v5  ;;  %v4916_v8 = vadd.f32 %v2733_v3, %v1003_v13  ;;  %v1032_v48 = vadd.f32 %v1031_v34, %v4791_v50  ;;  %v1042_v26 = vmul.f32 %v6257_v49, %v6240_v35  ;;  %v3048_v13 = vld [vmem:[%s6004_s2 + $0x7] sm:$0x1]  ;;  %v6272_v3 = vld [vmem:[#allocation37_spill] sm:$0xff] }
  0xef   : > { %v4921_v53 = vadd.f32 %v2750_v20, %v1201_v17  ;;  %v1239_v23 = vmul.f32 %v4879_v5, %v4895_v39  ;;  %v1240_v1 = vmul.f32 %v4881_v24, %v4893_v12  ;;  %v1242_v41 = vmul.f32 %v4879_v5, %v4893_v12 }
  0xf0   : > { %6269 = vst [vmem:[#allocation34_spill] sm:$0xff] %v4916_v8  ;;  %v4923_v9 = vsub.f32 %v1236_v0, %v1237_v15  ;;  %v4932_v44 = vadd.f32 %v4756_v46, %v1012_v28  ;;  %v4935_v50 = vadd.f32 %v4781_v29, %v1023_v63  ;;  %v1044_v49 = vmul.f32 %v6258_v32, %v4641_v22  ;;  %v3047_v32 = vld [vmem:[%s6004_s2 + $0x6] sm:$0x1]  ;;  %v6277_v15 = vld [vmem:[#allocation58_spill] sm:$0xff] }
  0xf1   : > { %6270 = vst [vmem:[#allocation33_spill] sm:$0xff] %v4921_v53  ;;  %v1243_v31 = vmul.f32 %v4877_v4, %v4895_v39  ;;  %v4943_v47 = vmul.f32 %v6259_v61, %v4699_v36  ;;  %v1052_v18 = vmul.f32 %v6219_v52, %v6243_v37  ;;  %v4947_v60 = vsub.f32 %v1239_v23, %v1240_v1  ;;  %v6273_v28 = vld [vmem:[#allocation55_spill] sm:$0xff]  ;;  %v3051_v1 = vld [vmem:[%s6004_s2 + $0xb] sm:$0x1] }
  0xf2   : > { %v1245_v46 = vmul.f32 %v4923_v9, %v4910_v45  ;;  %v4951_v29 = vadd.f32 %v1033_v11, %v1032_v48  ;;  %v1043_v30 = vadd.f32 %v1042_v26, %v1041_v43  ;;  %v1053_v14 = vmul.f32 %v3047_v32, %v6244_v2  ;;  %v6276_v43 = vld [vmem:[#allocation57_spill] sm:$0xff] }
  0xf3   : > { %v4957_v27 = vsub.f32 %v1242_v41, %v1243_v31  ;;  %v1063_v61 = vmul.f32 %v6260_v62, %v4446_v6  ;;  %v1064_v52 = vmul.f32 %v6261_v58, %v4459_v59  ;;  %v1074_v10 = vmul.f32 %v6260_v62, %v6239_v38  ;;  %v3050_v62 = vld [vmem:[%s6004_s2 + $0xa] sm:$0x1] }
  0xf4   : > { %v1246_v19 = vmul.f32 %v4947_v60, %v4893_v12  ;;  %v1075_v34 = vmul.f32 %v3048_v13, %v6240_v35  ;;  %v1085_v6 = vmul.f32 %v3049_v56, %v6243_v37  ;;  %v1086_v59 = vmul.f32 %v3048_v13, %v6244_v2  ;;  %v6274_v37 = vld [vmem:[#allocation54_spill] sm:$0xff]  ;;  %v6275_v2 = vld [vmem:[#allocation56_spill] sm:$0xff] }
  0xf5   : > { %v1248_v38 = vmul.f32 %v4957_v27, %v4895_v39  ;;  %v1055_v58 = vmul.f32 %v3050_v62, %v4654_v16  ;;  %v1206_v35 = vmul.f32 %v6272_v3, %v6271_v54  ;;  %v1207_v20 = vmul.f32 %v6273_v28, %v4736_v40  ;;  %v3052_v56 = vld [vmem:[%s6004_s2 + $0xe] sm:$0x1] }
  0xf6   : > { %v1247_v63 = vadd.f32 %v1246_v19, %v1245_v46  ;;  %v1217_v11 = vmul.f32 %v6274_v37, %v6272_v3  ;;  %v1218_v17 = vmul.f32 %v6275_v2, %v4736_v40  ;;  %v1228_v0 = vmul.f32 %v6276_v43, %v6272_v3 }
  0xf7   : > { %v1229_v48 = vmul.f32 %v6277_v15, %v4736_v40  ;;  %v1054_v26 = vadd.f32 %v1053_v14, %v1052_v18  ;;  %v1065_v23 = vadd.f32 %v1064_v52, %v1063_v61  ;;  %v1066_v41 = vmul.f32 %v3051_v1, %v4638_v55  ;;  %v6278_v40 = vld [vmem:[#allocation38_spill] sm:$0xff]  ;;  %v6279_v61 = vld [vmem:[#allocation59_spill] sm:$0xff]  ;;  %v6280_v55 = vld [vmem:[#allocation60_spill] sm:$0xff] }
  0xf8   : > { %v1249_v31 = vadd.f32 %v1248_v38, %v1247_v63  ;;  %v1076_v46 = vadd.f32 %v1075_v34, %v1074_v10  ;;  %v1077_v32 = vmul.f32 %v3051_v1, %v4641_v22  ;;  %v1087_v19 = vadd.f32 %v1086_v59, %v1085_v6  ;;  %v6281_v22 = vld [vmem:[#allocation61_spill] sm:$0xff]  ;;  %v3053_v38 = vld [vmem:[%s6004_s2 + $0xf] sm:$0x1]  ;;  %v2734_v15 = vld [vmem:[%s4513_s12 + $0xc] sm:$0x1] }
  0xf9   : > { %v1088_v13 = vmul.f32 %v3051_v1, %v4654_v16  ;;  %v1057_v18 = vmul.f32 %v3052_v56, %v6278_v40  ;;  %v1208_v14 = vadd.f32 %v1207_v20, %v1206_v35  ;;  %v1209_v52 = vmul.f32 %v6279_v61, %v4739_v42 }
  0xfa   : > { %3045 = vrcp.f32 %v1249_v31  ;;  %v1219_v62 = vadd.f32 %v1218_v17, %v1217_v11  ;;  %v1220_v10 = vmul.f32 %v6280_v55, %v4739_v42  ;;  %v1230_v34 = vadd.f32 %v1229_v48, %v1228_v0  ;;  %v6284_v11 = vld [vmem:[#allocation64_spill] sm:$0xff] }
  0xfb   : > { %v1231_v6 = vmul.f32 %v6281_v22, %v4739_v42  ;;  %v1045_v16 = vadd.f32 %v1044_v49, %v1043_v30  ;;  %v1056_v59 = vadd.f32 %v1055_v58, %v1054_v26  ;;  %v1068_v54 = vmul.f32 %v3053_v38, %v4677_v51  ;;  %v6282_v42 = vld [vmem:[#allocation62_spill] sm:$0xff]  ;;  %v6283_v30 = vld [vmem:[#allocation63_spill] sm:$0xff]  ;;  %v2735_v48 = vld [vmem:[%s4513_s12 + $0xd] sm:$0x1] }
  0xfc   : > { %v1079_v3 = vmul.f32 %v3053_v38, %v4699_v36  ;;  %v1067_v35 = vadd.f32 %v1066_v41, %v1065_v23  ;;  %v1078_v28 = vadd.f32 %v1077_v32, %v1076_v46  ;;  %v1089_v20 = vadd.f32 %v1088_v13, %v1087_v19  ;;  %v2736_v41 = vld [vmem:[%s4513_s12 + $0x12] sm:$0x1]  ;;  %v2737_v32 = vld [vmem:[%s4513_s12 + $0x13] sm:$0x1] }
  0xfd   : > { %v1090_v63 = vmul.f32 %v3053_v38, %v6278_v40  ;;  %v1210_v37 = vadd.f32 %v1209_v52, %v1208_v14  ;;  %v1211_v49 = vmul.f32 %v6282_v42, %v4742_v25  ;;  %v1222_v58 = vmul.f32 %v6283_v30, %v4742_v25  ;;  %v2738_v40 = vld [vmem:[%s4513_s12 + $0x14] sm:$0x1]  ;;  %v2739_v14 = vld [vmem:[%s4513_s12 + $0x19] sm:$0x1]  ;;  %v2740_v52 = vld [vmem:[%s4513_s12 + $0x1a] sm:$0x1] }
  0xfe   : > { %v1233_v51 = vmul.f32 %v6284_v11, %v4742_v25  ;;  %v1221_v2 = vadd.f32 %v1220_v10, %v1219_v62  ;;  %v1232_v17 = vadd.f32 %v1231_v6, %v1230_v34  ;;  %v1257_v36 = vmul.f32 %v4881_v24, %v4910_v45 }
  0xff   : > { %v1258_v43 = vmul.f32 %v4895_v39, %v4895_v39  ;;  %v1261_v26 = vmul.f32 %v4895_v39, %v4893_v12  ;;  %v1262_v25 = vmul.f32 %v4879_v5, %v4910_v45  ;;  %v1265_v23 = vmul.f32 %v4877_v4, %v4910_v45 }
 0x100   : > { %v3046_v0 = vpop.eup %3045  ;;  %v1266_v1 = vmul.f32 %v4893_v12, %v4893_v12  ;;  %v1036_v46 = vadd.f32 %v4906_v7, %v4951_v29  ;;  %v1047_v19 = vadd.f32 %v4943_v47, %v1045_v16  ;;  %v1058_v13 = vadd.f32 %v1057_v18, %v1056_v59  ;;  %v2741_v7 = vld [vmem:[%s4513_s12 + $0x1b] sm:$0x1]  ;;  %v2751_v29 = vld [vmem:[%s4851_s25 + $0x4] sm:$0x1]  ;;  %v2752_v18 = vld [vmem:[%s4851_s25 + $0x5] sm:$0x1] }
 0x101   : > { %v1251_v56 = vmul.f32 %v3046_v0, %v1249_v31  ;;  %v1069_v61 = vadd.f32 %v1068_v54, %v1067_v35  ;;  %v1080_v62 = vadd.f32 %v1079_v3, %v1078_v28  ;;  %v1091_v55 = vadd.f32 %v1090_v63, %v1089_v20  ;;  %s1359_s12 = smul.u32 12, %s4449_s30  ;;  %s1372_s30 = scalar_lea.vmem [#allocation3], %s1371_s22 }
 0x102   : > { %v1212_v10 = vadd.f32 %v1211_v49, %v1210_v37  ;;  %v5045_v34 = vadd.f32 %v2734_v15, %v4932_v44  ;;  %v5048_v22 = vadd.f32 %v2735_v48, %v4935_v50  ;;  %v1223_v47 = vadd.f32 %v1222_v58, %v1221_v2  ;;  %v2753_v44 = vld [vmem:[%s4851_s25 + $0x6] sm:$0x1] }
 0x103   : > { %v1252_v6 = vsub.f32 2.0, %v1251_v56  ;;  %v1234_v31 = vadd.f32 %v1233_v51, %v1232_v17  ;;  %v1259_v16 = vsub.f32 %v1257_v36, %v1258_v43  ;;  %v1263_v59 = vsub.f32 %v1261_v26, %v1262_v25  ;;  %v6296_v36 = vld [vmem:[#allocation40_spill] sm:$0xff]  ;;  %v6298_v15 = vld [vmem:[#allocation67_spill] sm:$0xff]  ;;  %s5138_s21 = scalar_lea.vmem [#allocation2], %s1359_s12 }
 0x104   : > { %6285 = vst [vmem:[#allocation32_spill] sm:$0xff] %v5045_v34  ;;  %v1267_v38 = vsub.f32 %v1265_v23, %v1266_v1  ;;  %v5053_v54 = vadd.f32 %v2736_v41, %v1036_v46  ;;  %v5055_v3 = vadd.f32 %v2737_v32, %v1047_v19  ;;  %v5057_v35 = vadd.f32 %v2738_v40, %v1058_v13 }
 0x105   : > { %6286 = vst [vmem:[#allocation31_spill] sm:$0xff] %v5048_v22  ;;  %v1253_v28 = vmul.f32 %v3046_v0, %v1252_v6  ;;  %v5060_v20 = vadd.f32 %v2739_v14, %v1069_v61  ;;  %v5062_v50 = vadd.f32 %v2740_v52, %v1080_v62  ;;  %v5064_v63 = vadd.f32 %v2741_v7, %v1091_v55  ;;  %v6297_v0 = vld [vmem:[#allocation65_spill] sm:$0xff] }
 0x106   : > { %6287 = vst [vmem:[#allocation46_spill] sm:$0xff] %v5053_v54  ;;  %v5066_v37 = vadd.f32 %v2751_v29, %v1212_v10  ;;  %v5068_v42 = vadd.f32 %v2752_v18, %v1223_v47  ;;  %v5079_v11 = vadd.f32 %v2753_v44, %v1234_v31 }
 0x107   : > { %6288 = vst [vmem:[#allocation47_spill] sm:$0xff] %v5055_v3  ;;  %v5071_v49 = vmul.f32 %v1253_v28, %v4923_v9  ;;  %v5074_v30 = vmul.f32 %v1253_v28, %v4947_v60  ;;  %v5077_v58 = vmul.f32 %v1253_v28, %v4957_v27  ;;  %v5081_v51 = vmul.f32 %v1259_v16, %v1253_v28 }
 0x108   : > { %6289 = vst [vmem:[#allocation50_spill] sm:$0xff] %v5057_v35  ;;  %v5083_v2 = vmul.f32 %v1263_v59, %v1253_v28  ;;  %v5085_v17 = vmul.f32 %v1267_v38, %v1253_v28 }
 0x109   : > { %6290 = vst [vmem:[#allocation48_spill] sm:$0xff] %v5060_v20  ;;  %v1269_v43 = vmul.f32 %v5071_v49, %v6296_v36  ;;  %v1270_v9 = vmul.f32 %v5074_v30, %v6297_v0  ;;  %v1272_v60 = vmul.f32 %v5077_v58, %v6298_v15  ;;  %v1275_v27 = vmul.f32 %v5071_v49, %v4916_v8 }
 0x10a   : > { %6291 = vst [vmem:[#allocation49_spill] sm:$0xff] %v5062_v50  ;;  %v1276_v48 = vmul.f32 %v5074_v30, %v5045_v34  ;;  %v1278_v26 = vmul.f32 %v5077_v58, %v5048_v22  ;;  %v1281_v25 = vmul.f32 %v5071_v49, %v5053_v54  ;;  %v1282_v23 = vmul.f32 %v5074_v30, %v5055_v3 }
 0x10b   : > { %6292 = vst [vmem:[#allocation51_spill] sm:$0xff] %v5064_v63  ;;  %v1271_v1 = vadd.f32 %v1270_v9, %v1269_v43  ;;  %v1284_v41 = vmul.f32 %v5077_v58, %v5057_v35  ;;  %v1287_v46 = vmul.f32 %v5071_v49, %v5060_v20  ;;  %v1288_v32 = vmul.f32 %v5074_v30, %v5062_v50 }
 0x10c   : > { %6293 = vst [vmem:[#allocation52_spill] sm:$0xff] %v5066_v37  ;;  %v1277_v19 = vadd.f32 %v1276_v48, %v1275_v27  ;;  %v1283_v13 = vadd.f32 %v1282_v23, %v1281_v25  ;;  %v1290_v56 = vmul.f32 %v5077_v58, %v5064_v63  ;;  %v1293_v40 = vmul.f32 %v5074_v30, %v6296_v36 }
 0x10d   : > { %6294 = vst [vmem:[#allocation53_spill] sm:$0xff] %v5068_v42  ;;  %v1273_v14 = vadd.f32 %v1272_v60, %v1271_v1  ;;  %v1289_v61 = vadd.f32 %v1288_v32, %v1287_v46  ;;  %v1294_v52 = vmul.f32 %v5081_v51, %v6297_v0  ;;  %v1296_v62 = vmul.f32 %v5083_v2, %v6298_v15 }
 0x10e   : > { %6295 = vst [vmem:[#allocation37_spill] sm:$0xff] %v5079_v11  ;;  %v1279_v55 = vadd.f32 %v1278_v26, %v1277_v19  ;;  %v1285_v10 = vadd.f32 %v1284_v41, %v1283_v13  ;;  %v1299_v7 = vmul.f32 %v5074_v30, %v4916_v8  ;;  %v1300_v29 = vmul.f32 %v5081_v51, %v5045_v34 }
 0x10f   : > { %v5122_v47 = vsub.f32 0.0, %v1273_v14  ;;  %v1291_v6 = vadd.f32 %v1290_v56, %v1289_v61  ;;  %v1295_v18 = vadd.f32 %v1294_v52, %v1293_v40  ;;  %v1302_v31 = vmul.f32 %v5083_v2, %v5048_v22 }
 0x110   : > { %v5126_v16 = vsub.f32 0.0, %v1279_v55  ;;  %v5128_v59 = vsub.f32 0.0, %v1285_v10  ;;  %v1301_v38 = vadd.f32 %v1300_v29, %v1299_v7  ;;  %v1305_v44 = vmul.f32 %v5074_v30, %v5053_v54 }
 0x111   : > { %v5132_v28 = vsub.f32 0.0, %v1291_v6  ;;  %v1297_v43 = vadd.f32 %v1296_v62, %v1295_v18  ;;  %v1306_v9 = vmul.f32 %v5081_v51, %v5055_v3  ;;  %v1308_v60 = vmul.f32 %v5083_v2, %v5057_v35  ;;  %1361 = vst [vmem:[%s5138_s21] sm:$0x1] %v5122_v47 }
 0x112   : > { %v1303_v27 = vadd.f32 %v1302_v31, %v1301_v38  ;;  %v1311_v48 = vmul.f32 %v5074_v30, %v5060_v20  ;;  %v1312_v26 = vmul.f32 %v5081_v51, %v5062_v50  ;;  %v1314_v25 = vmul.f32 %v5083_v2, %v5064_v63  ;;  %2754 = vst [vmem:[%s5138_s21 + $0x1] sm:$0x1] %v5126_v16 }
 0x113   : > { %v5150_v23 = vsub.f32 0.0, %v1297_v43  ;;  %v1307_v1 = vadd.f32 %v1306_v9, %v1305_v44  ;;  %v1317_v41 = vmul.f32 %v5077_v58, %v6296_v36  ;;  %v1318_v46 = vmul.f32 %v5083_v2, %v6297_v0  ;;  %2755 = vst [vmem:[%s5138_s21 + $0x2] sm:$0x1] %v5128_v59 }
 0x114   : > { %v5158_v32 = vsub.f32 0.0, %v1303_v27  ;;  %v1313_v19 = vadd.f32 %v1312_v26, %v1311_v48  ;;  %v1320_v13 = vmul.f32 %v5085_v17, %v6298_v15  ;;  %v1323_v56 = vmul.f32 %v5077_v58, %v4916_v8  ;;  %2756 = vst [vmem:[%s5138_s21 + $0x3] sm:$0x1] %v5132_v28 }
 0x115   : > { %v1309_v40 = vadd.f32 %v1308_v60, %v1307_v1  ;;  %v1319_v14 = vadd.f32 %v1318_v46, %v1317_v41  ;;  %v1324_v61 = vmul.f32 %v5083_v2, %v5045_v34  ;;  %v1326_v52 = vmul.f32 %v5085_v17, %v5048_v22  ;;  %2757 = vst [vmem:[%s5138_s21 + $0x4] sm:$0x1] %v5150_v23 }
 0x116   : > { %v1315_v62 = vadd.f32 %v1314_v25, %v1313_v19  ;;  %v1329_v55 = vmul.f32 %v5077_v58, %v5053_v54  ;;  %v1330_v10 = vmul.f32 %v5083_v2, %v5055_v3  ;;  %v1332_v7 = vmul.f32 %v5085_v17, %v5057_v35  ;;  %2758 = vst [vmem:[%s5138_s21 + $0x5] sm:$0x1] %v5158_v32 }
 0x117   : > { %v5180_v29 = vsub.f32 0.0, %v1309_v40  ;;  %v1321_v6 = vadd.f32 %v1320_v13, %v1319_v14  ;;  %v1325_v18 = vadd.f32 %v1324_v61, %v1323_v56  ;;  %v1335_v31 = vmul.f32 %v5077_v58, %v5060_v20 }
 0x118   : > { %v5184_v38 = vsub.f32 0.0, %v1315_v62  ;;  %v1331_v44 = vadd.f32 %v1330_v10, %v1329_v55  ;;  %v1336_v43 = vmul.f32 %v5083_v2, %v5062_v50  ;;  %v1338_v9 = vmul.f32 %v5085_v17, %v5064_v63 }
 0x119   : > { %v5190_v60 = vsub.f32 0.0, %v1321_v6  ;;  %v1327_v27 = vadd.f32 %v1326_v52, %v1325_v18  ;;  %v1341_v48 = vmul.f32 %v5071_v49, %v5066_v37  ;;  %v1342_v26 = vmul.f32 %v5074_v30, %v5068_v42  ;;  %2759 = vst [vmem:[%s5138_s21 + $0x6] sm:$0x1] %v5180_v29 }
 0x11a   : > { %v1333_v25 = vadd.f32 %v1332_v7, %v1331_v44  ;;  %v1337_v1 = vadd.f32 %v1336_v43, %v1335_v31  ;;  %v1344_v41 = vmul.f32 %v5077_v58, %v5079_v11  ;;  %v1347_v46 = vmul.f32 %v5074_v30, %v5066_v37  ;;  %2760 = vst [vmem:[%s5138_s21 + $0x7] sm:$0x1] %v5184_v38 }
 0x11b   : > { %v5205_v19 = vsub.f32 0.0, %v1327_v27  ;;  %v1343_v49 = vadd.f32 %v1342_v26, %v1341_v48  ;;  %v1348_v13 = vmul.f32 %v5081_v51, %v5068_v42  ;;  %v1350_v56 = vmul.f32 %v5083_v2, %v5079_v11  ;;  %2762 = vst [vmem:[%s5138_s21 + $0x8] sm:$0x1] %v5190_v60 }
 0x11c   : > { %v5213_v40 = vsub.f32 0.0, %v1333_v25  ;;  %v1339_v14 = vadd.f32 %v1338_v9, %v1337_v1  ;;  %v1353_v30 = vmul.f32 %v5077_v58, %v5066_v37  ;;  %v1354_v61 = vmul.f32 %v5083_v2, %v5068_v42 }
 0x11d   : > { %v1345_v52 = vadd.f32 %v1344_v41, %v1343_v49  ;;  %v1349_v62 = vadd.f32 %v1348_v13, %v1347_v46  ;;  %v1356_v51 = vmul.f32 %v5085_v17, %v5079_v11  ;;  %2763 = vst [vmem:[%s5138_s21 + $0x9] sm:$0x1] %v5205_v19  ;;  %v1404_v55 = vmul.f32 %v5122_v47, %v6296_v36 }
 0x11e   : > { %v5225_v10 = vsub.f32 0.0, %v1339_v14  ;;  %v1355_v7 = vadd.f32 %v1354_v61, %v1353_v30  ;;  %2764 = vst [vmem:[%s5138_s21 + $0xa] sm:$0x1] %v5213_v40  ;;  %v1405_v58 = vmul.f32 %v5150_v23, %v6297_v0  ;;  %v1407_v2 = vmul.f32 %v5190_v60, %v6298_v15 }
 0x11f   : > { %v5233_v6 = vsub.f32 0.0, %v1345_v52  ;;  %v1351_v18 = vadd.f32 %v1350_v56, %v1349_v62  ;;  %v1409_v17 = vmul.f32 %v5126_v16, %v6296_v36  ;;  %v1410_v31 = vmul.f32 %v5158_v32, %v6297_v0 }
 0x120   : > { %v1357_v44 = vadd.f32 %v1356_v51, %v1355_v7  ;;  %2765 = vst [vmem:[%s5138_s21 + $0xb] sm:$0x1] %v5225_v10  ;;  %v1406_v43 = vadd.f32 %v1405_v58, %v1404_v55  ;;  %v1412_v9 = vmul.f32 %v5205_v19, %v6298_v15  ;;  %v1414_v27 = vmul.f32 %v5128_v59, %v6296_v36 }
 0x121   : > { %v5245_v48 = vsub.f32 0.0, %v1351_v18  ;;  %1373 = vst [vmem:[%s1372_s30] sm:$0x1] %v5233_v6  ;;  %v1411_v26 = vadd.f32 %v1410_v31, %v1409_v17  ;;  %v1415_v25 = vmul.f32 %v5180_v29, %v6297_v0  ;;  %v1417_v1 = vmul.f32 %v5213_v40, %v6298_v15 }
 0x122   : > { %v5252_v41 = vsub.f32 0.0, %v1357_v44  ;;  %v5254_v46 = vadd.f32 %v1407_v2, %v1406_v43  ;;  %v1419_v49 = vmul.f32 %v5132_v28, %v6296_v36  ;;  %v1420_v13 = vmul.f32 %v5184_v38, %v6297_v0 }
 0x123   : > { %2761 = vst [vmem:[%s1372_s30 + $0x1] sm:$0x1] %v5245_v48  ;;  %v5261_v56 = vadd.f32 %v1412_v9, %v1411_v26  ;;  %v1416_v14 = vadd.f32 %v1415_v25, %v1414_v27  ;;  %v1422_v30 = vmul.f32 %v5225_v10, %v6298_v15  ;;  %v1424_v61 = vmul.f32 %v5122_v47, %v4916_v8 }
 0x124   : > { %2766 = vst [vmem:[%s1372_s30 + $0x2] sm:$0x1] %v5252_v41  ;;  %v1421_v52 = vadd.f32 %v1420_v13, %v1419_v49  ;;  %v1425_v62 = vmul.f32 %v5150_v23, %v5045_v34  ;;  %v1427_v51 = vmul.f32 %v5190_v60, %v5048_v22  ;;  %v1429_v55 = vmul.f32 %v5126_v16, %v4916_v8 }
 0x125   : > { %v5274_v7 = vadd.f32 %v1417_v1, %v1416_v14  ;;  %v1430_v58 = vmul.f32 %v5158_v32, %v5045_v34  ;;  %v1432_v2 = vmul.f32 %v5205_v19, %v5048_v22  ;;  %v1434_v18 = vmul.f32 %v5128_v59, %v4916_v8 }
 0x126   : > { %v5282_v17 = vadd.f32 %v1422_v30, %v1421_v52  ;;  %v1426_v31 = vadd.f32 %v1425_v62, %v1424_v61  ;;  %v1435_v44 = vmul.f32 %v5180_v29, %v5045_v34  ;;  %v1437_v43 = vmul.f32 %v5213_v40, %v5048_v22 }
 0x127   : > { %v1431_v9 = vadd.f32 %v1430_v58, %v1429_v55  ;;  %v1439_v27 = vmul.f32 %v5132_v28, %v4916_v8  ;;  %v1440_v26 = vmul.f32 %v5184_v38, %v5045_v34  ;;  %v1442_v25 = vmul.f32 %v5225_v10, %v5048_v22 }
 0x128   : > { %v5294_v1 = vadd.f32 %v1427_v51, %v1426_v31  ;;  %v1436_v49 = vadd.f32 %v1435_v44, %v1434_v18  ;;  %v1444_v13 = vmul.f32 %v5122_v47, %v5053_v54  ;;  %v1445_v14 = vmul.f32 %v5150_v23, %v5055_v3 }
 0x129   : > { %v5300_v30 = vadd.f32 %v1432_v2, %v1431_v9  ;;  %v1441_v61 = vadd.f32 %v1440_v26, %v1439_v27  ;;  %v1447_v52 = vmul.f32 %v5190_v60, %v5057_v35  ;;  %v1449_v62 = vmul.f32 %v5126_v16, %v5053_v54 }
 0x12a   : > { %v5306_v55 = vadd.f32 %v1437_v43, %v1436_v49  ;;  %v1446_v51 = vadd.f32 %v1445_v14, %v1444_v13  ;;  %v1450_v58 = vmul.f32 %v5158_v32, %v5055_v3  ;;  %v1452_v18 = vmul.f32 %v5205_v19, %v5057_v35 }
 0x12b   : > { %v5312_v31 = vadd.f32 %v1442_v25, %v1441_v61  ;;  %v1454_v2 = vmul.f32 %v5128_v59, %v5053_v54  ;;  %v1455_v44 = vmul.f32 %v5180_v29, %v5055_v3  ;;  %v1457_v9 = vmul.f32 %v5213_v40, %v5057_v35 }
 0x12c   : > { %v5320_v43 = vadd.f32 %v1447_v52, %v1446_v51  ;;  %v1451_v27 = vadd.f32 %v1450_v58, %v1449_v62  ;;  %v1459_v26 = vmul.f32 %v5132_v28, %v5053_v54  ;;  %v1460_v49 = vmul.f32 %v5184_v38, %v5055_v3 }
 0x12d   : > { %v1456_v25 = vadd.f32 %v1455_v44, %v1454_v2  ;;  %v1462_v13 = vmul.f32 %v5225_v10, %v5057_v35  ;;  %v1464_v14 = vmul.f32 %v5122_v47, %v5060_v20  ;;  %v1465_v61 = vmul.f32 %v5150_v23, %v5062_v50 }
 0x12e   : > { %v5332_v53 = vadd.f32 %v1452_v18, %v1451_v27  ;;  %v1461_v52 = vadd.f32 %v1460_v49, %v1459_v26  ;;  %v1467_v62 = vmul.f32 %v5190_v60, %v5064_v63  ;;  %v1469_v51 = vmul.f32 %v5126_v16, %v5060_v20 }
 0x12f   : > { %v5338_v58 = vadd.f32 %v1457_v9, %v1456_v25  ;;  %v1466_v2 = vadd.f32 %v1465_v61, %v1464_v14  ;;  %v1470_v44 = vmul.f32 %v5158_v32, %v5062_v50  ;;  %v1472_v33 = vmul.f32 %v5205_v19, %v5064_v63 }
 0x130   : > { %v5344_v21 = vadd.f32 %v1462_v13, %v1461_v52  ;;  %v1474_v18 = vmul.f32 %v5128_v59, %v5060_v20  ;;  %v1475_v27 = vmul.f32 %v5180_v29, %v5062_v50  ;;  %v1477_v26 = vmul.f32 %v5213_v40, %v5064_v63 }
 0x131   : > { %v5352_v9 = vadd.f32 %v1467_v62, %v1466_v2  ;;  %v1471_v49 = vadd.f32 %v1470_v44, %v1469_v51  ;;  %v1479_v25 = vmul.f32 %v5132_v28, %v5060_v20  ;;  %v1480_v14 = vmul.f32 %v5184_v38, %v5062_v50 }
 0x132   : > { %v1476_v13 = vadd.f32 %v1475_v27, %v1474_v18  ;;  %v1482_v61 = vmul.f32 %v5225_v10, %v5064_v63  ;;  %v1484_v52 = vmul.f32 %v5122_v47, %v4910_v45  ;;  %v1485_v35 = vmul.f32 %v5150_v23, %v4893_v12 }
 0x133   : > { %v5364_v57 = vadd.f32 %v1472_v33, %v1471_v49  ;;  %v1481_v62 = vadd.f32 %v1480_v14, %v1479_v25  ;;  %v1487_v51 = vmul.f32 %v5190_v60, %v4895_v39  ;;  %v1489_v2 = vmul.f32 %v5126_v16, %v4910_v45 }
 0x134   : > { %v5370_v44 = vadd.f32 %v1477_v26, %v1476_v13  ;;  %v1486_v18 = vadd.f32 %v1485_v35, %v1484_v52  ;;  %v1490_v27 = vmul.f32 %v5158_v32, %v4893_v12  ;;  %v1492_v63 = vmul.f32 %v5205_v19, %v4895_v39 }
 0x135   : > { %v5376_v50 = vadd.f32 %v1482_v61, %v1481_v62  ;;  %v1494_v33 = vmul.f32 %v5128_v59, %v4910_v45  ;;  %v1495_v49 = vmul.f32 %v5180_v29, %v4893_v12  ;;  %v1497_v25 = vmul.f32 %v5213_v40, %v4895_v39 }
 0x136   : > { %v1488_v26 = vadd.f32 %v1487_v51, %v1486_v18  ;;  %v1491_v14 = vadd.f32 %v1490_v27, %v1489_v2  ;;  %v1499_v35 = vmul.f32 %v5132_v28, %v4910_v45  ;;  %v1500_v13 = vmul.f32 %v5184_v38, %v4893_v12 }
 0x137   : > { %v1496_v52 = vadd.f32 %v1495_v49, %v1494_v33  ;;  %v1502_v61 = vmul.f32 %v5225_v10, %v4895_v39  ;;  %v1504_v62 = vmul.f32 %v5122_v47, %v4893_v12  ;;  %v1505_v20 = vmul.f32 %v5150_v23, %v4877_v4 }
 0x138   : > { %v5394_v11 = vadd.f32 %v1492_v63, %v1491_v14  ;;  %v1501_v51 = vadd.f32 %v1500_v13, %v1499_v35  ;;  %v1507_v2 = vmul.f32 %v5190_v60, %v4879_v5  ;;  %v1509_v18 = vmul.f32 %v5126_v16, %v4893_v12 }
 0x139   : > { %v5400_v27 = vadd.f32 %v1497_v25, %v1496_v52  ;;  %v1506_v33 = vadd.f32 %v1505_v20, %v1504_v62  ;;  %v1510_v49 = vmul.f32 %v5158_v32, %v4877_v4  ;;  %v1512_v3 = vmul.f32 %v5205_v19, %v4879_v5 }
 0x13a   : > { %v5406_v54 = vadd.f32 %v1502_v61, %v1501_v51  ;;  %v1514_v63 = vmul.f32 %v5128_v59, %v4893_v12  ;;  %v1515_v14 = vmul.f32 %v5180_v29, %v4877_v4  ;;  %v1517_v35 = vmul.f32 %v5213_v40, %v4879_v5 }
 0x13b   : > { %v1508_v25 = vadd.f32 %v1507_v2, %v1506_v33  ;;  %v1511_v13 = vadd.f32 %v1510_v49, %v1509_v18  ;;  %v1519_v20 = vmul.f32 %v5132_v28, %v4893_v12  ;;  %v1520_v52 = vmul.f32 %v5184_v38, %v4877_v4  ;;  %v6300_v4 = vld [vmem:[#allocation43_spill] sm:$0xff] }
 0x13c   : > { %v1516_v62 = vadd.f32 %v1515_v14, %v1514_v63  ;;  %v1522_v61 = vmul.f32 %v5225_v10, %v4879_v5  ;;  %v1524_v51 = vmul.f32 %v5122_v47, %v4895_v39  ;;  %v1525_v22 = vmul.f32 %v5150_v23, %v4879_v5 }
 0x13d   : > { %v1513_v42 = vadd.f32 %v1512_v3, %v1511_v13  ;;  %v1521_v34 = vadd.f32 %v1520_v52, %v1519_v20  ;;  %v1527_v2 = vmul.f32 %v5190_v60, %v4881_v24  ;;  %v1529_v18 = vmul.f32 %v5126_v16, %v4895_v39 }
 0x13e   : > { %v5428_v33 = vadd.f32 %v1517_v35, %v1516_v62  ;;  %v1526_v49 = vadd.f32 %v1525_v22, %v1524_v51  ;;  %v1530_v63 = vmul.f32 %v5158_v32, %v4879_v5  ;;  %v1532_v14 = vmul.f32 %v5205_v19, %v4881_v24 }
 0x13f   : > { %v5434_v37 = vadd.f32 %v1522_v61, %v1521_v34  ;;  %v1534_v3 = vmul.f32 %v5128_v59, %v4895_v39  ;;  %v1535_v13 = vmul.f32 %v5180_v29, %v4879_v5  ;;  %v1537_v20 = vmul.f32 %v5213_v40, %v4881_v24  ;;  %v6299_v61 = vld [vmem:[#allocation69_spill] sm:$0xff] }
 0x140   : > { %v1528_v35 = vadd.f32 %v1527_v2, %v1526_v49  ;;  %v1531_v52 = vadd.f32 %v1530_v63, %v1529_v18  ;;  %v1539_v22 = vmul.f32 %v5132_v28, %v4895_v39  ;;  %v1540_v62 = vmul.f32 %v5184_v38, %v4879_v5 }
 0x141   : > { %v1536_v51 = vadd.f32 %v1535_v13, %v1534_v3  ;;  %v1542_v34 = vmul.f32 %v5225_v10, %v4881_v24  ;;  %v1544_v8 = vadd.f32 %v5254_v46, %v6299_v61  ;;  %v1546_v15 = vmul.f32 %v1488_v26, %v5122_v47 }
 0x142   : > { %v1533_v0 = vadd.f32 %v1532_v14, %v1531_v52  ;;  %v1541_v36 = vadd.f32 %v1540_v62, %v1539_v22  ;;  %v1547_v2 = vmul.f32 %v1508_v25, %v5150_v23  ;;  %v1549_v18 = vmul.f32 %v1528_v35, %v5190_v60  ;;  %v6301_v52 = vld [vmem:[#allocation44_spill] sm:$0xff] }
 0x143   : > { %v1538_v49 = vadd.f32 %v1537_v20, %v1536_v51  ;;  %v1545_v63 = vadd.f32 %v1544_v8, %v5254_v46  ;;  %v1552_v3 = vadd.f32 %v5261_v56, %v6300_v4  ;;  %v1554_v13 = vmul.f32 %v5394_v11, %v5122_v47 }
 0x144   : > { %v5458_v24 = vadd.f32 %v1542_v34, %v1541_v36  ;;  %v1548_v61 = vadd.f32 %v1547_v2, %v1546_v15  ;;  %v1555_v26 = vmul.f32 %v1513_v42, %v5150_v23  ;;  %v1557_v14 = vmul.f32 %v1533_v0, %v5190_v60  ;;  %v6302_v15 = vld [vmem:[#allocation45_spill] sm:$0xff] }
 0x145   : > { %v1553_v25 = vadd.f32 %v1552_v3, %v5294_v1  ;;  %v1560_v20 = vadd.f32 %v5274_v7, %v6301_v52  ;;  %v1562_v8 = vmul.f32 %v5400_v27, %v5122_v47  ;;  %v1563_v4 = vmul.f32 %v5428_v33, %v5150_v23 }
 0x146   : > { %v1550_v46 = vadd.f32 %v1549_v18, %v1548_v61  ;;  %v1556_v56 = vadd.f32 %v1555_v26, %v1554_v13  ;;  %v1565_v36 = vmul.f32 %v1538_v49, %v5190_v60  ;;  %v1568_v35 = vadd.f32 %v5282_v17, %v6302_v15  ;;  %v6303_v17 = vld [vmem:[#allocation70_spill] sm:$0xff] }
 0x147   : > { %v1561_v22 = vadd.f32 %v1560_v20, %v5320_v43  ;;  %v1564_v62 = vadd.f32 %v1563_v4, %v1562_v8  ;;  %v1570_v1 = vmul.f32 %v5406_v54, %v5122_v47  ;;  %v1571_v7 = vmul.f32 %v5434_v37, %v5150_v23 }
 0x148   : > { %v5477_v61 = vadd.f32 %v1550_v46, %v1545_v63   ;;  %v1558_v51 = vadd.f32 %v1557_v14, %v1556_v56  ;;  %v1569_v34 = vadd.f32 %v1568_v35, %v5352_v9  ;;  %v1573_v2 = vmul.f32 %v5458_v24, %v5190_v60  ;;  %v6304_v14 = vld [vmem:[#allocation71_spill] sm:$0xff] }
 0x149   : > { %v1566_v18 = vadd.f32 %v1565_v36, %v1564_v62  ;;  %v1572_v3 = vadd.f32 %v1571_v7, %v1570_v1  ;;  %v1576_v43 = vadd.f32 %v5300_v30, %v6303_v17  ;;  %v1578_v13 = vmul.f32 %v5394_v11, %v5126_v16  ;;  %v6306_v36 = vld [vmem:[#allocation72_spill] sm:$0xff]  ;;  %v6307_v1 = vld [vmem:[#allocation73_spill] sm:$0xff] }
 0x14a   : > { %v5486_v26 = vadd.f32 %v1558_v51, %v1553_v25   ;;  %v1579_v52 = vmul.f32 %v1513_v42, %v5158_v32  ;;  %v1581_v63 = vmul.f32 %v1533_v0, %v5205_v19  ;;  %v1584_v9 = vadd.f32 %v5306_v55, %v6304_v14 }
 0x14b   : > { %v5492_v20 = vadd.f32 %v1566_v18, %v1561_v22   ;;  %v1574_v8 = vadd.f32 %v1573_v2, %v1572_v3  ;;  %v1577_v4 = vadd.f32 %v1576_v43, %v5300_v30  ;;  %v1586_v46 = vmul.f32 %v5400_v27, %v5126_v16 }
 0x14c   : > { %v1580_v56 = vadd.f32 %v1579_v52, %v1578_v13  ;;  %v1585_v11 = vadd.f32 %v1584_v9, %v5332_v53  ;;  %v1587_v25 = vmul.f32 %v5428_v33, %v5158_v32  ;;  %v1589_v42 = vmul.f32 %v1538_v49, %v5205_v19  ;;  %v6309_v9 = vld [vmem:[#allocation39_spill] sm:$0xff] }
 0x14d   : > { %v5501_v0 = vadd.f32 %v1574_v8, %v1569_v34   ;;  %v1592_v55 = vadd.f32 %v5312_v31, %v6306_v36  ;;  %v1594_v35 = vmul.f32 %v5406_v54, %v5126_v16  ;;  %v1595_v30 = vmul.f32 %v5434_v37, %v5158_v32 }
 0x14e   : > { %v1582_v22 = vadd.f32 %v1581_v63, %v1580_v56  ;;  %v1588_v62 = vadd.f32 %v1587_v25, %v1586_v46  ;;  %v1597_v53 = vmul.f32 %v5458_v24, %v5205_v19  ;;  %v1600_v7 = vadd.f32 %v5338_v58, %v6307_v1  ;;  %v6308_v63 = vld [vmem:[#allocation35_spill] sm:$0xff]  ;;  %v6311_v1 = vld [vmem:[#allocation66_spill] sm:$0xff] }
 0x14f   : > { %v6305_v15 = vmov %v5501_v0  ;;  %v1593_v51 = vadd.f32 %v1592_v55, %v5364_v57  ;;  %v1596_v34 = vadd.f32 %v1595_v30, %v1594_v35  ;;  %v1602_v31 = vmul.f32 %v5400_v27, %v5128_v59 }
 0x150   : > { %v1603_v2 = vmul.f32 %v5428_v33, %v5180_v29  ;;  %v5518_v18 = vadd.f32 %v1582_v22, %v1577_v4   ;;  %v1590_v3 = vadd.f32 %v1589_v42, %v1588_v62  ;;  %v1601_v17 = vadd.f32 %v1600_v7, %v5338_v58 }
 0x151   : > { %v1605_v43 = vmul.f32 %v1538_v49, %v5213_v40  ;;  %v1598_v13 = vadd.f32 %v1597_v53, %v1596_v34  ;;  %v1608_v14 = vadd.f32 %v5344_v21, %v6308_v63  ;;  %v1610_v57 = vmul.f32 %v5406_v54, %v5128_v59  ;;  %v6316_v63 = vld [vmem:[#allocation52_spill] sm:$0xff] }
 0x152   : > { %v1604_v52 = vadd.f32 %v1603_v2, %v1602_v31  ;;  %v5526_v36 = vadd.f32 %v1590_v3, %v1585_v11   ;;  %v1611_v27 = vmul.f32 %v5434_v37, %v5180_v29  ;;  %v1613_v33 = vmul.f32 %v5458_v24, %v5213_v40  ;;  %v6312_v31 = vld [vmem:[#allocation40_spill] sm:$0xff]  ;;  %v6313_v3 = vld [vmem:[#allocation65_spill] sm:$0xff] }
 0x153   : > { %v1616_v58 = vadd.f32 %v5376_v50, %v6309_v9  ;;  %v5534_v11 = vadd.f32 %v1598_v13, %v1593_v51   ;;  %v1609_v8 = vadd.f32 %v1608_v14, %v5370_v44  ;;  %v1618_v21 = vmul.f32 %v5406_v54, %v5132_v28  ;;  %v6315_v13 = vld [vmem:[#allocation34_spill] sm:$0xff] }
 0x154   : > { %v1606_v49 = vadd.f32 %v1605_v43, %v1604_v52  ;;  %v1612_v4 = vadd.f32 %v1611_v27, %v1610_v57  ;;  %v1619_v56 = vmul.f32 %v5434_v37, %v5184_v38  ;;  %v1621_v25 = vmul.f32 %v5458_v24, %v5225_v10  ;;  %v6310_v37 = vld [vmem:[#allocation41_spill] sm:$0xff]  ;;  %v6314_v43 = vld [vmem:[#allocation67_spill] sm:$0xff] }
 0x155   : > { %v1617_v46 = vadd.f32 %v1616_v58, %v5376_v50  ;;  %v1624_v42 = vmul.f32 %v5233_v6, %v4910_v45  ;;  %v1625_v44 = vmul.f32 %v5245_v48, %v4893_v12  ;;  %v1627_v54 = vmul.f32 %v5252_v41, %v4895_v39  ;;  %v6318_v58 = vld [vmem:[#allocation53_spill] sm:$0xff] }
 0x156   : > { %v5544_v51 = vadd.f32 %v1606_v49, %v1601_v17   ;;  %v1614_v0 = vadd.f32 %v1613_v33, %v1612_v4  ;;  %v1620_v55 = vadd.f32 %v1619_v56, %v1618_v21  ;;  %v1630_v50 = vmul.f32 %v5233_v6, %v4893_v12  ;;  %v6317_v33 = vld [vmem:[#allocation32_spill] sm:$0xff]  ;;  %v6320_v4 = vld [vmem:[#allocation46_spill] sm:$0xff]  ;;  %v6321_v56 = vld [vmem:[#allocation47_spill] sm:$0xff] }
 0x157   : > { %v1631_v35 = vmul.f32 %v5245_v48, %v6310_v37  ;;  %v1626_v24 = vadd.f32 %v1625_v44, %v1624_v42  ;;  %v1633_v30 = vmul.f32 %v5252_v41, %v4879_v5  ;;  %v1636_v45 = vmul.f32 %v5233_v6, %v4895_v39  ;;  %v6322_v44 = vld [vmem:[#allocation37_spill] sm:$0xff] }
 0x158   : > { %v1637_v22 = vmul.f32 %v5245_v48, %v4879_v5  ;;  %v5562_v0 = vadd.f32 %v1614_v0, %v1609_v8   ;;  %v1622_v62 = vadd.f32 %v1621_v25, %v1620_v55  ;;  %v1639_v12 = vmul.f32 %v5252_v41, %v6311_v1  ;;  %v6319_v8 = vld [vmem:[#allocation31_spill] sm:$0xff] }
 0x159   : > { %v1632_v53 = vadd.f32 %v1631_v35, %v1630_v50  ;;  %v1628_v7 = vadd.f32 %v1627_v54, %v1626_v24  ;;  %v1642_v2 = vmul.f32 %v5233_v6, %v6312_v31  ;;  %v1643_v17 = vmul.f32 %v5245_v48, %v6313_v3  ;;  %v6324_v31 = vld [vmem:[#allocation50_spill] sm:$0xff] }
 0x15a   : > { %v1638_v34 = vadd.f32 %v1637_v22, %v1636_v45  ;;  %v1623_v42 = vadd.f32 %v1622_v62, %v1617_v46   ;;  %v1645_v5 = vmul.f32 %v5252_v41, %v6314_v43  ;;  %v1654_v52 = vmul.f32 %v5233_v6, %v6315_v13  ;;  %v6323_v22 = vld [vmem:[#allocation36_spill] sm:$0xff] }
 0x15b   : > { %v1634_v39 = vadd.f32 %v1633_v30, %v1632_v53  ;;  %v1629_v14 = vadd.f32 %v1628_v7, %v6316_v63  ;;  %v1644_v27 = vadd.f32 %v1643_v17, %v1642_v2  ;;  %v1655_v9 = vmul.f32 %v5245_v48, %v6317_v33  ;;  %v6326_v17 = vld [vmem:[#allocation48_spill] sm:$0xff]  ;;  %v6328_v63 = vld [vmem:[#allocation51_spill] sm:$0xff] }
 0x15c   : > { %v1640_v57 = vadd.f32 %v1639_v12, %v1638_v34  ;;  %v1657_v21 = vmul.f32 %v5252_v41, %v6319_v8  ;;  %v1666_v46 = vmul.f32 %v5233_v6, %v6320_v4  ;;  %v1667_v25 = vmul.f32 %v5245_v48, %v6321_v56 }
 0x15d   : > { %v1635_v49 = vadd.f32 %v1634_v39, %v6318_v58  ;;  %v1646_v55 = vadd.f32 %v1645_v5, %v1644_v27  ;;  %v1648_v50 = vmul.f32 %v1629_v14, %v5122_v47  ;;  %v1656_v37 = vadd.f32 %v1655_v9, %v1654_v52 }
 0x15e   : > { %v1641_v54 = vadd.f32 %v1640_v57, %v6322_v44  ;;  %v1660_v24 = vmul.f32 %v1629_v14, %v5126_v16  ;;  %v1668_v45 = vadd.f32 %v1667_v25, %v1666_v46  ;;  %v1669_v47 = vmul.f32 %v5252_v41, %v6324_v31 }
 0x15f   : > { %v1649_v35 = vmul.f32 %v1635_v49, %v5150_v23  ;;  %v1661_v30 = vmul.f32 %v1635_v49, %v5158_v32  ;;  %v1647_v62 = vadd.f32 %v1646_v55, %v6323_v22  ;;  %v1658_v1 = vadd.f32 %v1657_v21, %v1656_v37  ;;  %v6325_v23 = vld [vmem:[#allocation68_spill] sm:$0xff]  ;;  %v6330_v21 = vld [vmem:[#allocation33_spill] sm:$0xff] }
 0x160   : > { %v1651_v53 = vmul.f32 %v1641_v54, %v5190_v60  ;;  %v1663_v12 = vmul.f32 %v1641_v54, %v5205_v19  ;;  %v1672_v2 = vmul.f32 %v1629_v14, %v5128_v59  ;;  %v1673_v16 = vmul.f32 %v1635_v49, %v5180_v29  ;;  %v6327_v19 = vld [vmem:[#allocation49_spill] sm:$0xff]  ;;  %v6329_v29 = vld [vmem:[#allocation42_spill] sm:$0xff] }
 0x161   : > { %v1650_v7 = vadd.f32 %v1649_v35, %v1648_v50  ;;  %v1662_v34 = vadd.f32 %v1661_v30, %v1660_v24  ;;  %v1659_v3 = vadd.f32 %v1658_v1, %v6325_v23  ;;  %v1675_v32 = vmul.f32 %v1641_v54, %v5213_v40 }
 0x162   : > { %v1678_v39 = vmul.f32 %v5233_v6, %v6326_v17  ;;  %v1670_v5 = vadd.f32 %v1669_v47, %v1668_v45  ;;  %v1679_v13 = vmul.f32 %v5245_v48, %v6327_v19  ;;  %v1674_v52 = vadd.f32 %v1673_v16, %v1672_v2 }
 0x163   : > { %v1652_v60 = vadd.f32 %v1651_v53, %v1650_v7  ;;  %v1664_v43 = vadd.f32 %v1663_v12, %v1662_v34  ;;  %v1681_v57 = vmul.f32 %v5252_v41, %v6328_v63  ;;  %v1684_v59 = vmul.f32 %v1629_v14, %v5132_v28  ;;  %v1690_v28 = vld [vmem:[%s6007_s5] sm:$0x1] (%p5610_p0)   ;;  %v2769_v41 = vld [vmem:[%s6007_s5 + $0x3] sm:$0x1] (%p5610_p0)  }
 0x164   : > { %v1685_v27 = vmul.f32 %v1635_v49, %v5184_v38  ;;  %v1671_v40 = vadd.f32 %v1670_v5, %v6329_v29  ;;  %v1680_v33 = vadd.f32 %v1679_v13, %v1678_v39  ;;  %v1676_v6 = vadd.f32 %v1675_v32, %v1674_v52  ;;  %v2767_v38 = vld [vmem:[%s6007_s5 + $0x1] sm:$0x1] (%p5610_p0)  }
 0x165   : > { %v1653_v53 = vadd.f32 %v1652_v60, %v1647_v62   ;;  %v1665_v23 = vadd.f32 %v1664_v43, %v1659_v3   ;;  %v1687_v58 = vmul.f32 %v1641_v54, %v5225_v10  ;;  %v6332_v50 = vmov %v5518_v18  ;;  %v2768_v10 = vld [vmem:[%s6007_s5 + $0x2] sm:$0x1] (%p5610_p0)  }
 0x166   : > { %v1686_v9 = vadd.f32 %v1685_v27, %v1684_v59  ;;  %v1682_v8 = vadd.f32 %v1681_v57, %v1680_v33  ;;  %v1677_v12 = vadd.f32 %v1676_v6, %v1671_v40   ;;  %v6333_v31 = vmov %v6305_v15  ;;  %545 = sbr.rel (!%p5610_p0) target bundleno = 128 (0x80), region = 316 }
 0x167   : > { %v6334_v24 = vmov %v5492_v20  ;;  %v5667_v61 = vmov (%p5610_p0), 0.0  }
 0x168   : > { %v1688_v48 = vadd.f32 %v1687_v58, %v1686_v9  ;;  %v1683_v4 = vadd.f32 %v1682_v8, %v6330_v21  ;;  %v6335_v21 = vmov %v5486_v26 }
 0x16a   : > { %v1689_v17 = vadd.f32 %v1688_v48, %v1683_v4  }
 0x16b LB: > { %s2812_s5 = sshll.u32 %s3220_s15, 2  ;;  %s1769_s16 = smul.u32 12, %s3220_s15  ;;  %s3220_s15 = sphi %s5677_s15, %s1702_s15   ;;  %v3216_v28 = vphi %v1690_v28, %v6337_v28   ;;  %v3212_v38 = vphi %v2767_v38, %v2171_v38   ;;  %v3208_v10 = vphi %v2768_v10, %v2185_v10   ;;  %v3204_v41 = vphi %v2769_v41, %v2199_v41   ;;  %v3200_v61 = vphi %v5667_v61, %v6336_v61  }
 0x16c   : > { %s1839_s14 = scalar_lea.vmem %s6008_s6, %s2812_s5  ;;  %s1856_s17 = smul.u32 49, %s3220_s15 }
 0x16d   : > { %1840 = vst [vmem:[%s1839_s14] sm:$0x1] %v3216_v28  ;;  %s1770_s18 = scalar_lea.vmem [#allocation2], %s1769_s16  ;;  %s1805_s21 = smul.u32 3, %s3220_s15 }
 0x16e   : > { %2814 = vst [vmem:[%s1839_s14 + $0x1] sm:$0x1] %v3212_v38  ;;  %v1771_v26 = vld [vmem:[%s1770_s18] sm:$0x1]  ;;  %v2799_v20 = vld [vmem:[%s1770_s18 + $0x1] sm:$0x1]  ;;  %s5710_s12 = scalar_lea.vmem %s6003_s0, %s1856_s17 }
 0x16f   : > { %2816 = vst [vmem:[%s1839_s14 + $0x2] sm:$0x1] %v3208_v10  ;;  %v2800_v11 = vld [vmem:[%s1770_s18 + $0x2] sm:$0x1]  ;;  %v2801_v15 = vld [vmem:[%s1770_s18 + $0x3] sm:$0x1]  ;;  %v1814_v51 = vmul.f32 %v3216_v28, %v1771_v26  ;;  %v1815_v18 = vmul.f32 %v3212_v38, %v2799_v20  ;;  %s5736_s24 = scalar_lea.vmem %s6009_s7, %s1805_s21 }
 0x170   : > { %2818 = vst [vmem:[%s1839_s14 + $0x3] sm:$0x1] %v3204_v41  ;;  %v2802_v36 = vld [vmem:[%s1770_s18 + $0x4] sm:$0x1]  ;;  %v2803_v42 = vld [vmem:[%s1770_s18 + $0x5] sm:$0x1]  ;;  %v1817_v49 = vmul.f32 %v3208_v10, %v2800_v11  ;;  %v1819_v55 = vmul.f32 %v3204_v41, %v2801_v15 }
 0x171   : > { %v2804_v0 = vld [vmem:[%s1770_s18 + $0x6] sm:$0x1]  ;;  %v2805_v14 = vld [vmem:[%s1770_s18 + $0x7] sm:$0x1]  ;;  %v1822_v46 = vmul.f32 %v3216_v28, %v2802_v36  ;;  %v2806_v56 = vld [vmem:[%s1770_s18 + $0x8] sm:$0x1]  ;;  %v1816_v54 = vadd.f32 %v1815_v18, %v1814_v51  ;;  %v1823_v50 = vmul.f32 %v3212_v38, %v2803_v42 }
 0x172   : > { %v2807_v25 = vld [vmem:[%s1770_s18 + $0x9] sm:$0x1]  ;;  %v2808_v44 = vld [vmem:[%s1770_s18 + $0xa] sm:$0x1]  ;;  %v1825_v37 = vmul.f32 %v3208_v10, %v2804_v0  ;;  %v2809_v35 = vld [vmem:[%s1770_s18 + $0xb] sm:$0x1]  ;;  %v1830_v24 = vmul.f32 %v3216_v28, %v2806_v56  ;;  %v1827_v1 = vmul.f32 %v3204_v41, %v2805_v14 }
 0x173   : > { %v1831_v30 = vmul.f32 %v3212_v38, %v2807_v25  ;;  %v1833_v45 = vmul.f32 %v3208_v10, %v2808_v44  ;;  %v1858_v22 = vld [vmem:[%s5710_s12] sm:$0x1]  ;;  %v1818_v62 = vadd.f32 %v1817_v49, %v1816_v54  ;;  %v1824_v53 = vadd.f32 %v1823_v50, %v1822_v46  ;;  %v2821_v12 = vld [vmem:[%s5710_s12 + $0x1] sm:$0x1]  ;;  %v2822_v7 = vld [vmem:[%s5710_s12 + $0x2] sm:$0x1] }
 0x174   : > { %v2823_v34 = vld [vmem:[%s5710_s12 + $0x3] sm:$0x1]  ;;  %v1877_v31 = vmul.f32 %v3216_v28, %v1858_v22  ;;  %v1835_v2 = vmul.f32 %v3204_v41, %v2809_v35  ;;  %v1878_v23 = vmul.f32 %v3212_v38, %v2821_v12  ;;  %v1880_v3 = vmul.f32 %v3208_v10, %v2822_v7  ;;  %s1806_s22 = scalar_lea.vmem [#allocation3], %s1805_s21  ;;  %v2824_v60 = vld [vmem:[%s5710_s12 + $0x4] sm:$0x1]  ;;  %s1891_s25 = smul.u32 7, %s3220_s15 }
 0x175   : > { %v1832_v47 = vadd.f32 %v1831_v30, %v1830_v24  ;;  %v1807_v16 = vld [vmem:[%s1806_s22] sm:$0x1]  ;;  %v2810_v32 = vld [vmem:[%s1806_s22 + $0x1] sm:$0x1]  ;;  %v1820_v17 = vadd.f32 %v1819_v55, %v1818_v62  ;;  %v1826_v39 = vadd.f32 %v1825_v37, %v1824_v53  ;;  %v2811_v43 = vld [vmem:[%s1806_s22 + $0x2] sm:$0x1]  ;;  %v1882_v52 = vmul.f32 %v3204_v41, %v2823_v34 }
 0x176   : > { %v2825_v19 = vld [vmem:[%s5710_s12 + $0x5] sm:$0x1]  ;;  %v1879_v13 = vadd.f32 %v1878_v23, %v1877_v31  ;;  %v2827_v63 = vld [vmem:[%s5710_s12 + $0x7] sm:$0x1]  ;;  %v2828_v57 = vld [vmem:[%s5710_s12 + $0x8] sm:$0x1]  ;;  %s5791_s28 = scalar_lea.vmem %s6011_s1, %s1891_s25 }
 0x177   : > { %v1834_v5 = vadd.f32 %v1833_v45, %v1832_v47  ;;  %v5742_v59 = vadd.f32 %v1820_v17, %v1807_v16  ;;  %v1828_v27 = vadd.f32 %v1827_v1, %v1826_v39  ;;  %v2826_v29 = vld [vmem:[%s5710_s12 + $0x6] sm:$0x1]  ;;  %v2829_v40 = vld [vmem:[%s5710_s12 + $0x9] sm:$0x1]  ;;  %v2830_v33 = vld [vmem:[%s5710_s12 + $0xa] sm:$0x1]  ;;  %v1918_v9 = vmul.f32 %v3216_v28, %v2827_v63 }
 0x178   : > { %v2831_v6 = vld [vmem:[%s5710_s12 + $0xb] sm:$0x1]  ;;  %v1919_v58 = vmul.f32 %v3212_v38, %v2828_v57  ;;  %v1881_v48 = vadd.f32 %v1880_v3, %v1879_v13  ;;  %v2832_v21 = vld [vmem:[%s5710_s12 + $0xc] sm:$0x1]  ;;  %v2833_v4 = vld [vmem:[%s5710_s12 + $0xd] sm:$0x1]  ;;  %v1921_v26 = vmul.f32 %v3208_v10, %v2829_v40  ;;  %v1923_v20 = vmul.f32 %v3204_v41, %v2830_v33 }
 0x179   : > { %v1836_v8 = vadd.f32 %v1835_v2, %v1834_v5  ;;  %v2835_v11 = vld [vmem:[%s5710_s12 + $0xe] sm:$0x1]  ;;  %v5756_v15 = vadd.f32 %v2810_v32, %v1828_v27  ;;  %1851 = vst [vmem:[%s5736_s24] sm:$0x1] %v5742_v59  ;;  %v1884_v36 = vmul.f32 %v2824_v60, %v5742_v59  ;;  %v1925_v18 = vmul.f32 %v2831_v6, %v5742_v59  ;;  %v2836_v42 = vld [vmem:[%s5710_s12 + $0xf] sm:$0x1]  ;;  %s1702_s15 = sadd.s32 1, %s3220_s15  }
 0x17a   : > { %v1920_v51 = vadd.f32 %v1919_v58, %v1918_v9  ;;  %v2837_v0 = vld [vmem:[%s5710_s12 + $0x10] sm:$0x1]  ;;  %v1883_v49 = vadd.f32 %v1882_v52, %v1881_v48  ;;  %v2838_v46 = vld [vmem:[%s5710_s12 + $0x11] sm:$0x1]  ;;  %v2839_v56 = vld [vmem:[%s5710_s12 + $0x12] sm:$0x1]  ;;  %v1959_v44 = vmul.f32 %v3216_v28, %v2835_v11  ;;  %v1960_v54 = vmul.f32 %v3212_v38, %v2836_v42 }
 0x17b   : > { %v5764_v14 = vadd.f32 %v2811_v43, %v1836_v8  ;;  %v2840_v25 = vld [vmem:[%s5710_s12 + $0x13] sm:$0x1]  ;;  %v1886_v55 = vmul.f32 %v2825_v19, %v5756_v15  ;;  %v1927_v37 = vmul.f32 %v2832_v21, %v5756_v15  ;;  %v2841_v35 = vld [vmem:[%s5710_s12 + $0x14] sm:$0x1]  ;;  %v1962_v24 = vmul.f32 %v3208_v10, %v2837_v0  ;;  %v2843_v30 = vld [vmem:[%s5710_s12 + $0x15] sm:$0x1] }
 0x17c   : > { %v1922_v50 = vadd.f32 %v1921_v26, %v1920_v51  ;;  %v1885_v45 = vadd.f32 %v1884_v36, %v1883_v49  ;;  %v1961_v53 = vadd.f32 %v1960_v54, %v1959_v44  ;;  %v2844_v1 = vld [vmem:[%s5710_s12 + $0x16] sm:$0x1]  ;;  %v2845_v12 = vld [vmem:[%s5710_s12 + $0x17] sm:$0x1]  ;;  %v2846_v7 = vld [vmem:[%s5710_s12 + $0x18] sm:$0x1]  ;;  %v1964_v31 = vmul.f32 %v3204_v41, %v2838_v46 }
 0x17d   : > { %v1888_v22 = vmul.f32 %v2826_v29, %v5764_v14  ;;  %v1929_v62 = vmul.f32 %v2833_v4, %v5764_v14  ;;  %v1966_v47 = vmul.f32 %v2839_v56, %v5742_v59  ;;  %v1968_v2 = vmul.f32 %v2840_v25, %v5756_v15  ;;  %v2847_v23 = vld [vmem:[%s5710_s12 + $0x19] sm:$0x1]  ;;  %v2848_v3 = vld [vmem:[%s5710_s12 + $0x1a] sm:$0x1]  ;;  %v2849_v39 = vld [vmem:[%s5710_s12 + $0x1b] sm:$0x1] }
 0x17e   : > { %v1924_v34 = vadd.f32 %v1923_v20, %v1922_v50  ;;  %v1887_v16 = vadd.f32 %v1886_v55, %v1885_v45  ;;  %v1963_v32 = vadd.f32 %v1962_v24, %v1961_v53  ;;  %v1970_v17 = vmul.f32 %v2841_v35, %v5764_v14  ;;  %v2851_v43 = vld [vmem:[%s5710_s12 + $0x1c] sm:$0x1]  ;;  %v2852_v63 = vld [vmem:[%s5710_s12 + $0x1d] sm:$0x1]  ;;  %v2853_v57 = vld [vmem:[%s5710_s12 + $0x1e] sm:$0x1] }
 0x17f   : > { %v2000_v60 = vmul.f32 %v3216_v28, %v2843_v30  ;;  %v2001_v19 = vmul.f32 %v3212_v38, %v2844_v1  ;;  %v2003_v13 = vmul.f32 %v3208_v10, %v2845_v12  ;;  %v2005_v52 = vmul.f32 %v3204_v41, %v2846_v7  ;;  %v2854_v6 = vld [vmem:[%s5710_s12 + $0x1f] sm:$0x1]  ;;  %v2855_v9 = vld [vmem:[%s5710_s12 + $0x20] sm:$0x1]  ;;  %v2856_v4 = vld [vmem:[%s5710_s12 + $0x21] sm:$0x1] }
 0x180   : > { %v1926_v5 = vadd.f32 %v1925_v18, %v1924_v34  ;;  %v1889_v27 = vadd.f32 %v1888_v22, %v1887_v16  ;;  %v1965_v29 = vadd.f32 %v1964_v31, %v1963_v32  ;;  %v2007_v40 = vmul.f32 %v2847_v23, %v5742_v59  ;;  %v1893_v58 = vld [vmem:[%s5791_s28] sm:$0x1]  ;;  %v2857_v36 = vld [vmem:[%s5710_s12 + $0x22] sm:$0x1]  ;;  %v2859_v42 = vld [vmem:[%s5710_s12 + $0x23] sm:$0x1] }
 0x181   : > { %v2009_v33 = vmul.f32 %v2848_v3, %v5756_v15  ;;  %v2002_v48 = vadd.f32 %v2001_v19, %v2000_v60  ;;  %v2011_v21 = vmul.f32 %v2849_v39, %v5764_v14  ;;  %v2041_v26 = vmul.f32 %v3216_v28, %v2851_v43  ;;  %v2860_v25 = vld [vmem:[%s5710_s12 + $0x24] sm:$0x1]  ;;  %v2834_v44 = vld [vmem:[%s5791_s28 + $0x1] sm:$0x1]  ;;  %v2861_v35 = vld [vmem:[%s5710_s12 + $0x25] sm:$0x1] }
 0x182   : > { %v1928_v8 = vadd.f32 %v1927_v37, %v1926_v5  ;;  %v1890_v20 = vmul.f32 0.5, %v1889_v27  ;;  %v1967_v11 = vadd.f32 %v1966_v47, %v1965_v29  ;;  %v2042_v51 = vmul.f32 %v3212_v38, %v2852_v63  ;;  %v2862_v24 = vld [vmem:[%s5710_s12 + $0x26] sm:$0x1]  ;;  %2819 = vst [vmem:[%s5736_s24 + $0x1] sm:$0x1] %v5756_v15  ;;  %p1699_p1 = scmp.ge.s32.totalorder %s1702_s15, 5  }
 0x183   : > { %v2044_v18 = vmul.f32 %v3208_v10, %v2853_v57  ;;  %v2004_v49 = vadd.f32 %v2003_v13, %v2002_v48  ;;  %v2046_v46 = vmul.f32 %v3204_v41, %v2854_v6  ;;  %v2048_v56 = vmul.f32 %v2855_v9, %v5742_v59  ;;  %v2864_v34 = vld [vmem:[%s5710_s12 + $0x28] sm:$0x1]  ;;  %v2865_v31 = vld [vmem:[%s5710_s12 + $0x29] sm:$0x1]  ;;  %2820 = vst [vmem:[%s5736_s24 + $0x2] sm:$0x1] %v5764_v14 }
 0x184   : > { %v1930_v0 = vadd.f32 %v1929_v62, %v1928_v8  ;;  %v1894_v54 = vadd.f32 %v1893_v58, %v1890_v20  ;;  %v1969_v55 = vadd.f32 %v1968_v2, %v1967_v11  ;;  %v2043_v50 = vadd.f32 %v2042_v51, %v2041_v26  ;;  %v2863_v62 = vld [vmem:[%s5710_s12 + $0x27] sm:$0x1]  ;;  %v2842_v2 = vld [vmem:[%s5791_s28 + $0x2] sm:$0x1]  ;;  %v2867_v39 = vld [vmem:[%s5710_s12 + $0x2a] sm:$0x1] }
 0x185   : > { %v2050_v37 = vmul.f32 %v2856_v4, %v5756_v15  ;;  %v2006_v45 = vadd.f32 %v2005_v52, %v2004_v49  ;;  %v2052_v22 = vmul.f32 %v2857_v36, %v5764_v14  ;;  %v2082_v53 = vmul.f32 %v3216_v28, %v2859_v42  ;;  %v2868_v19 = vld [vmem:[%s5710_s12 + $0x2b] sm:$0x1]  ;;  %v2869_v13 = vld [vmem:[%s5710_s12 + $0x2c] sm:$0x1]  ;;  %v2870_v29 = vld [vmem:[%s5710_s12 + $0x2d] sm:$0x1] }
 0x186   : > { %v1931_v30 = vmul.f32 0.5, %v1930_v0  ;;  %v1895_v1 = vmul.f32 %v3216_v28, %v1894_v54  ;;  %v1971_v12 = vadd.f32 %v1970_v17, %v1969_v55  ;;  %v2045_v7 = vadd.f32 %v2044_v18, %v2043_v50  ;;  %v2871_v58 = vld [vmem:[%s5710_s12 + $0x2e] sm:$0x1]  ;;  %v2872_v8 = vld [vmem:[%s5710_s12 + $0x2f] sm:$0x1] }
 0x187   : > { %v2083_v47 = vmul.f32 %v3212_v38, %v2860_v25  ;;  %v2008_v3 = vadd.f32 %v2007_v40, %v2006_v45  ;;  %v2085_v16 = vmul.f32 %v3208_v10, %v2861_v35  ;;  %v2087_v32 = vmul.f32 %v3204_v41, %v2862_v24  ;;  %v2873_v20 = vld [vmem:[%s5710_s12 + $0x30] sm:$0x1]  ;;  %v1708_v51 = vld [vmem:[%s6004_s2] sm:$0x1]  ;;  %v2770_v18 = vld [vmem:[%s6004_s2 + $0x1] sm:$0x1] }
 0x188   : > { %v1935_v23 = vadd.f32 %v2834_v44, %v1931_v30  ;;  %v1972_v17 = vmul.f32 0.5, %v1971_v12  ;;  %v2047_v60 = vadd.f32 %v2046_v46, %v2045_v7  ;;  %v2089_v5 = vmul.f32 %v2863_v62, %v5742_v59  ;;  %v2771_v46 = vld [vmem:[%s6004_s2 + $0x2] sm:$0x1]  ;;  %v1739_v50 = vld [vmem:[%s6005_s3] sm:$0x1] }
 0x189   : > { %v2084_v43 = vadd.f32 %v2083_v47, %v2082_v53  ;;  %v2010_v63 = vadd.f32 %v2009_v33, %v2008_v3  ;;  %v2091_v57 = vmul.f32 %v2864_v34, %v5756_v15  ;;  %v2093_v27 = vmul.f32 %v2865_v31, %v5764_v14  ;;  %v2850_v33 = vld [vmem:[%s5791_s28 + $0x3] sm:$0x1]  ;;  %v2858_v45 = vld [vmem:[%s5791_s28 + $0x4] sm:$0x1]  ;;  %v2785_v62 = vld [vmem:[%s6005_s3 + $0x1] sm:$0x1] }
 0x18a   : > { %v1936_v52 = vmul.f32 %v3212_v38, %v1935_v23  ;;  %v1976_v40 = vadd.f32 %v2842_v2, %v1972_v17  ;;  %v2049_v6 = vadd.f32 %v2048_v56, %v2047_v60  ;;  %v2123_v48 = vmul.f32 %v3216_v28, %v2867_v39  ;;  %v2772_v56 = vld [vmem:[%s6004_s2 + $0x3] sm:$0x1]  ;;  %v2786_v53 = vld [vmem:[%s6005_s3 + $0x2] sm:$0x1]  ;;  %v2774_v3 = vld [vmem:[%s6004_s2 + $0x5] sm:$0x1] }
 0x18b   : > { %v2086_v9 = vadd.f32 %v2085_v16, %v2084_v43  ;;  %v2012_v26 = vadd.f32 %v2011_v21, %v2010_v63  ;;  %v2124_v11 = vmul.f32 %v3212_v38, %v2868_v19  ;;  %v2126_v36 = vmul.f32 %v3208_v10, %v2869_v13  ;;  %v2775_v60 = vld [vmem:[%s6004_s2 + $0x6] sm:$0x1]  ;;  %v2776_v43 = vld [vmem:[%s6004_s2 + $0x7] sm:$0x1]  ;;  %v2866_v63 = vld [vmem:[%s5791_s28 + $0x5] sm:$0x1] }
 0x18c   : > { %v1937_v4 = vadd.f32 %v1936_v52, %v1895_v1  ;;  %v1977_v42 = vmul.f32 %v3208_v10, %v1976_v40  ;;  %v2051_v0 = vadd.f32 %v2050_v37, %v2049_v6  ;;  %v2128_v21 = vmul.f32 %v3204_v41, %v2870_v29 }
 0x18d   : > { %v2088_v49 = vadd.f32 %v2087_v32, %v2086_v9  ;;  %v2013_v25 = vmul.f32 0.5, %v2012_v26  ;;  %v2125_v44 = vadd.f32 %v2124_v11, %v2123_v48  ;;  %v2130_v54 = vmul.f32 %v2871_v58, %v5742_v59  ;;  %v2788_v58 = vld [vmem:[%s6005_s3 + $0x4] sm:$0x1] }
 0x18e   : > { %v2132_v55 = vmul.f32 %v2872_v8, %v5756_v15  ;;  %v1978_v37 = vadd.f32 %v1977_v42, %v1937_v4  ;;  %v2053_v35 = vadd.f32 %v2052_v22, %v2051_v0  ;;  %v2134_v30 = vmul.f32 %v2873_v20, %v5764_v14  ;;  %v2773_v22 = vld [vmem:[%s6004_s2 + $0x4] sm:$0x1]  ;;  %v2777_v20 = vld [vmem:[%s6004_s2 + $0x8] sm:$0x1]  ;;  %v2779_v42 = vld [vmem:[%s6004_s2 + $0xa] sm:$0x1] }
 0x18f   : > { %v2090_v24 = vadd.f32 %v2089_v5, %v2088_v49  ;;  %v2017_v1 = vadd.f32 %v2850_v33, %v2013_v25  ;;  %v2127_v12 = vadd.f32 %v2126_v36, %v2125_v44  ;;  %v2144_v7 = vmul.f32 %v3216_v28, %v1708_v51  ;;  %v2781_v25 = vld [vmem:[%s6004_s2 + $0xc] sm:$0x1]  ;;  %v1762_v44 = vld [vmem:[%s6006_s4] sm:$0x1] }
 0x190   : > { %v2145_v34 = vmul.f32 %v3212_v38, %v2770_v18  ;;  %v2054_v31 = vmul.f32 0.5, %v2053_v35  ;;  %v2147_v2 = vmul.f32 %v3208_v10, %v2771_v46  ;;  %v2149_v23 = vmul.f32 %v3204_v41, %v2772_v56  ;;  %v2778_v18 = vld [vmem:[%s6004_s2 + $0x9] sm:$0x1]  ;;  %v2780_v56 = vld [vmem:[%s6004_s2 + $0xb] sm:$0x1] }
 0x191   : > { %v2092_v47 = vadd.f32 %v2091_v57, %v2090_v24  ;;  %v2018_v16 = vmul.f32 %v3204_v41, %v2017_v1  ;;  %v2129_v32 = vadd.f32 %v2128_v21, %v2127_v12  ;;  %v2151_v17 = vmul.f32 %v5742_v59, %v1739_v50  ;;  %v2787_v57 = vld [vmem:[%s6005_s3 + $0x3] sm:$0x1]  ;;  %v2874_v35 = vld [vmem:[%s5791_s28 + $0x6] sm:$0x1]  ;;  %v2782_v24 = vld [vmem:[%s6004_s2 + $0xd] sm:$0x1] }
 0x192   : > { %v2146_v39 = vadd.f32 %v2145_v34, %v2144_v7  ;;  %v2058_v5 = vadd.f32 %v2858_v45, %v2054_v31  ;;  %v2152_v13 = vmul.f32 %v2785_v62, %v5756_v15  ;;  %v2154_v52 = vmul.f32 %v2786_v53, %v5764_v14  ;;  %v2790_v45 = vld [vmem:[%s6005_s3 + $0x6] sm:$0x1]  ;;  %v2791_v12 = vld [vmem:[%s6005_s3 + $0x7] sm:$0x1]  ;;  %v2792_v7 = vld [vmem:[%s6005_s3 + $0x8] sm:$0x1] }
 0x193   : > { %v2094_v19 = vadd.f32 %v2093_v27, %v2092_v47  ;;  %v2019_v29 = vadd.f32 %v2018_v16, %v1978_v37  ;;  %v2131_v40 = vadd.f32 %v2130_v54, %v2129_v32  ;;  %v2158_v9 = vmul.f32 %v3216_v28, %v2773_v22  ;;  %v2789_v27 = vld [vmem:[%s6005_s3 + $0x5] sm:$0x1] }
 0x194   : > { %v2148_v6 = vadd.f32 %v2147_v2, %v2146_v39  ;;  %v2059_v8 = vmul.f32 %v2058_v5, %v5742_v59  ;;  %v2153_v4 = vadd.f32 %v2152_v13, %v2151_v17  ;;  %v2159_v26 = vmul.f32 %v3212_v38, %v2774_v3  ;;  %v2783_v2 = vld [vmem:[%s6004_s2 + $0xe] sm:$0x1]  ;;  %v2784_v39 = vld [vmem:[%s6004_s2 + $0xf] sm:$0x1]  ;;  %v2793_v17 = vld [vmem:[%s6005_s3 + $0x9] sm:$0x1] }
 0x195   : > { %v2095_v48 = vmul.f32 0.5, %v2094_v19  ;;  %v2133_v11 = vadd.f32 %v2132_v55, %v2131_v40  ;;  %v2161_v33 = vmul.f32 %v3208_v10, %v2775_v60  ;;  %v2163_v51 = vmul.f32 %v3204_v41, %v2776_v43  ;;  %v2794_v13 = vld [vmem:[%s6005_s3 + $0xa] sm:$0x1] }
 0x196   : > { %v2150_v36 = vadd.f32 %v2149_v23, %v2148_v6  ;;  %v2060_v0 = vadd.f32 %v2059_v8, %v2019_v29  ;;  %v2155_v21 = vadd.f32 %v2154_v52, %v2153_v4  ;;  %v2160_v46 = vadd.f32 %v2159_v26, %v2158_v9  ;;  %v2796_v52 = vld [vmem:[%s6006_s4 + $0x1] sm:$0x1]  ;;  %v2795_v6 = vld [vmem:[%s6005_s3 + $0xb] sm:$0x1] }
 0x197   : > { %v2099_v49 = vadd.f32 %v2866_v63, %v2095_v48  ;;  %v2135_v54 = vadd.f32 %v2134_v30, %v2133_v11  ;;  %v2165_v55 = vmul.f32 %v2787_v57, %v5742_v59  ;;  %v2166_v50 = vmul.f32 %v2788_v58, %v5756_v15 }
 0x198   : > { %v2168_v37 = vmul.f32 %v2789_v27, %v5764_v14  ;;  %v2156_v53 = vadd.f32 %v2155_v21, %v2150_v36  ;;  %v2162_v1 = vadd.f32 %v2161_v33, %v2160_v46  ;;  %v2172_v30 = vmul.f32 %v3216_v28, %v2777_v20 }
 0x199   : > { %v2100_v62 = vmul.f32 %v2099_v49, %v5756_v15  ;;  %v2136_v34 = vmul.f32 0.5, %v2135_v54  ;;  %v2167_v22 = vadd.f32 %v2166_v50, %v2165_v55  ;;  %v2173_v31 = vmul.f32 %v3212_v38, %v2778_v18 }
 0x19a   : > { %v2175_v47 = vmul.f32 %v3208_v10, %v2779_v42  ;;  %v2157_v3 = vadd.f32 %v2156_v53, %v1762_v44   ;;  %v2164_v16 = vadd.f32 %v2163_v51, %v2162_v1  ;;  %v2177_v32 = vmul.f32 %v3204_v41, %v2780_v56  ;;  %v2797_v42 = vld [vmem:[%s6006_s4 + $0x2] sm:$0x1] }
 0x19b   : > { %v2101_v23 = vadd.f32 %v2100_v62, %v2060_v0  ;;  %v2140_v60 = vadd.f32 %v2874_v35, %v2136_v34  ;;  %v2169_v43 = vadd.f32 %v2168_v37, %v2167_v22  ;;  %v2174_v5 = vadd.f32 %v2173_v31, %v2172_v30 }
 0x19c   : > { %v2179_v19 = vmul.f32 %v2790_v45, %v5742_v59  ;;  %v2180_v63 = vmul.f32 %v2791_v12, %v5756_v15  ;;  %v2182_v57 = vmul.f32 %v2792_v7, %v5764_v14  ;;  %v2186_v29 = vmul.f32 %v3216_v28, %v2781_v25 }
 0x19d   : > { %v2187_v40 = vmul.f32 %v3212_v38, %v2782_v24  ;;  %v2141_v9 = vmul.f32 %v2140_v60, %v5764_v14  ;;  %v2170_v58 = vadd.f32 %v2169_v43, %v2164_v16  ;;  %v2176_v27 = vadd.f32 %v2175_v47, %v2174_v5 }
 0x19e   : > { %v2189_v8 = vmul.f32 %v3208_v10, %v2783_v2  ;;  %v2181_v48 = vadd.f32 %v2180_v63, %v2179_v19  ;;  %v2191_v26 = vmul.f32 %v3204_v41, %v2784_v39  ;;  %v2193_v20 = vmul.f32 %v2793_v17, %v5742_v59  ;;  %v2798_v59 = vld [vmem:[%s6006_s4 + $0x3] sm:$0x1] }
 0x19f   : > { %v2188_v4 = vadd.f32 %v2187_v40, %v2186_v29  ;;  %v2142_v11 = vadd.f32 %v2141_v9, %v2101_v23  ;;  %v2171_v38 = vadd.f32 %v2796_v52, %v2170_v58   ;;  %v2178_v28 = vadd.f32 %v2177_v32, %v2176_v27 }
 0x1a0   : > { %v2194_v36 = vmul.f32 %v2794_v13, %v5756_v15  ;;  %v2183_v33 = vadd.f32 %v2182_v57, %v2181_v48  ;;  %v2196_v18 = vmul.f32 %v2795_v6, %v5764_v14 }
 0x1a1   : > { %v2190_v51 = vadd.f32 %v2189_v8, %v2188_v4  ;;  %v2143_v0 = vadd.f32 %v3200_v61, %v2142_v11  }
 0x1a2   : > { %v2195_v10 = vadd.f32 %v2194_v36, %v2193_v20  ;;  %v2184_v49 = vadd.f32 %v2183_v33, %v2178_v28  ;;  %v6337_v28 = vmov %v2157_v3 }
 0x1a3   : > { %v2192_v41 = vadd.f32 %v2191_v26, %v2190_v51  ;;  %v6336_v61 = vmov %v2143_v0  ;;  %2200 = vst [vmem:[%s6010_s8] sm:$0x1] (%p1699_p1), %v2143_v0 }
 0x1a4   : > { %v2197_v21 = vadd.f32 %v2196_v18, %v2195_v10  ;;  %v2185_v10 = vadd.f32 %v2797_v42, %v2184_v49   ;;  %1701 = sbr.rel (!%p1699_p1) target bundleno = 363 (0x16b), region = 327 }
 0x1a6   : > { %v2198_v15 = vadd.f32 %v2197_v21, %v2192_v41 }
 0x1a8   : > { %v2199_v41 = vadd.f32 %v2798_v59, %v2198_v15  }

</bundles_post_ra>
